<compile_context>
chip_gen: v7x
topology: tpu7x:2x2x1
jax: 0.10.0
libtpu: 0.0.40
codegen_flags: <defaults>
</compile_context>

<pallas_src>
import functools

import jax
import jax.numpy as jnp
from jax.experimental import pallas as pl
from jax.experimental.pallas import tpu as pltpu


# ----------------------------------------------------------------------------
# Pallas kernels
# ----------------------------------------------------------------------------
def _fused_point_pool_kernel(x_ref, wp_ref, bp_ref, w4_ref, b4_ref,
                             b1_ref, b2r_ref, b3r_ref, b4o_ref,
                             *, n1, n3r, n5r, compute_dtype):
    """Fused stem kernel, one batch element per grid step.

    - One matmul for the three 1x1 convs that consume x (weights concatenated on Cout).
    - 3x3/s1/p1 max-pool computed in VMEM and immediately fed to branch4's 1x1 conv.
    - The 3x3 / 5x5 reduce activations are stored zero-padded (interior store) so the
      following conv kernels need no wrapper-side padding or im2col.
    """
    _, H, W, C = x_ref.shape
    xv = x_ref[0]                                   # (H, W, C)
    x2d = xv.reshape(H * W, C)

    # ---- fused 1x1 convs (BN folded into weights) ---------------------------
    pt = jnp.dot(x2d.astype(compute_dtype), wp_ref[...].astype(compute_dtype),
                 preferred_element_type=jnp.float32)
    pt = jnp.maximum(pt + bp_ref[...], 0.0)

    b1 = pt[:, :n1]
    b2r = pt[:, n1:n1 + n3r]
    b3r = pt[:, n1 + n3r:n1 + n3r + n5r]

    b1_ref[...] = b1.reshape(1, H, W, n1).astype(b1_ref.dtype)

    # zero-padded reduce outputs: zero the whole block, then store the interior.
    b2r_ref[...] = jnp.zeros(b2r_ref.shape, b2r_ref.dtype)
    b2r_ref[:, pl.ds(1, H), pl.ds(1, W), :] = (
        b2r.reshape(1, H, W, n3r).astype(b2r_ref.dtype))

    b3r_ref[...] = jnp.zeros(b3r_ref.shape, b3r_ref.dtype)
    b3r_ref[:, pl.ds(2, H), pl.ds(2, W), :] = (
        b3r.reshape(1, H, W, n5r).astype(b3r_ref.dtype))

    # ---- branch4: 3x3 stride-1 max-pool fused with its 1x1 conv -------------
    # Clamped-window max is identical to max-pool with implicit -inf padding.
    up = jnp.concatenate([xv[:1], xv[:-1]], axis=0)
    dn = jnp.concatenate([xv[1:], xv[-1:]], axis=0)
    mh = jnp.maximum(jnp.maximum(up, xv), dn)
    lf = jnp.concatenate([mh[:, :1], mh[:, :-1]], axis=1)
    rt = jnp.concatenate([mh[:, 1:], mh[:, -1:]], axis=1)
    pooled = jnp.maximum(jnp.maximum(lf, mh), rt)

    p2d = pooled.reshape(H * W, C)
    b4 = jnp.dot(p2d.astype(compute_dtype), w4_ref[...].astype(compute_dtype),
                 preferred_element_type=jnp.float32)
    b4 = jnp.maximum(b4 + b4_ref[...], 0.0)
    b4o_ref[...] = b4.reshape(1, H, W, b4o_ref.shape[3]).astype(b4o_ref.dtype)


def _conv_kxk_bn_relu_kernel(xp_ref, w_ref, b_ref, o_ref, *, k, compute_dtype):
    """k x k 'same' conv as k*k accumulated matmuls over a pre-padded VMEM tile,
    with folded-BN bias + ReLU epilogue on the f32 accumulator."""
    _, H, W, cout = o_ref.shape
    cin = xp_ref.shape[3]
    xpv = xp_ref[0]                                 # (H + k - 1, W + k - 1, cin)
    acc = jnp.zeros((H * W, cout), jnp.float32)
    for dy in range(k):
        for dx in range(k):
            xs = xpv[dy:dy + H, dx:dx + W, :].reshape(H * W, cin)
            acc = acc + jnp.dot(xs.astype(compute_dtype),
                                w_ref[dy, dx].astype(compute_dtype),
                                preferred_element_type=jnp.float32)
    out = jnp.maximum(acc + b_ref[...], 0.0)
    o_ref[...] = out.reshape(1, H, W, cout).astype(o_ref.dtype)


# ----------------------------------------------------------------------------
# Pallas wrappers
# ----------------------------------------------------------------------------
def _fused_point_pool(x_nhwc, wp, bp, w4, bias4, n1, n3r, n5r, compute_dtype):
    N, H, W, C = x_nhwc.shape
    wcols = wp.shape[1]
    pp = w4.shape[1]
    kern = functools.partial(_fused_point_pool_kernel,
                             n1=n1, n3r=n3r, n5r=n5r, compute_dtype=compute_dtype)
    return pl.pallas_call(
        kern,
        grid=(N,),
        in_specs=[
            pl.BlockSpec((1, H, W, C), lambda b: (b, 0, 0, 0)),
            pl.BlockSpec((C, wcols), lambda b: (0, 0)),
            pl.BlockSpec((1, wcols), lambda b: (0, 0)),
            pl.BlockSpec((C, pp), lambda b: (0, 0)),
            pl.BlockSpec((1, pp), lambda b: (0, 0)),
        ],
        out_shape=(
            jax.ShapeDtypeStruct((N, H, W, n1), jnp.float32),
            jax.ShapeDtypeStruct((N, H + 2, W + 2, n3r), jnp.float32),
            jax.ShapeDtypeStruct((N, H + 4, W + 4, n5r), jnp.float32),
            jax.ShapeDtypeStruct((N, H, W, pp), jnp.float32),
        ),
        out_specs=(
            pl.BlockSpec((1, H, W, n1), lambda b: (b, 0, 0, 0)),
            pl.BlockSpec((1, H + 2, W + 2, n3r), lambda b: (b, 0, 0, 0)),
            pl.BlockSpec((1, H + 4, W + 4, n5r), lambda b: (b, 0, 0, 0)),
            pl.BlockSpec((1, H, W, pp), lambda b: (b, 0, 0, 0)),
        ),
        compiler_params=pltpu.CompilerParams(dimension_semantics=("parallel",)),
    )(x_nhwc, wp, bp, w4, bias4)


def _conv_kxk_bn_relu(x_padded, w, bias, k, compute_dtype):
    """x_padded: (N, H+k-1, W+k-1, Cin) zero-padded activation; w: (k,k,Cin,Cout)."""
    N, Hp, Wpad, cin = x_padded.shape
    H, W = Hp - (k - 1), Wpad - (k - 1)
    cout = w.shape[3]
    kern = functools.partial(_conv_kxk_bn_relu_kernel, k=k, compute_dtype=compute_dtype)
    return pl.pallas_call(
        kern,
        grid=(N,),
        in_specs=[
            pl.BlockSpec((1, Hp, Wpad, cin), lambda b: (b, 0, 0, 0)),
            pl.BlockSpec((k, k, cin, cout), lambda b: (0, 0, 0, 0)),
            pl.BlockSpec((1, cout), lambda b: (0, 0)),
        ],
        out_shape=jax.ShapeDtypeStruct((N, H, W, cout), jnp.float32),
        out_specs=pl.BlockSpec((1, H, W, cout), lambda b: (b, 0, 0, 0)),
        compiler_params=pltpu.CompilerParams(dimension_semantics=("parallel",)),
    )(x_padded, w, bias)


# ----------------------------------------------------------------------------
# Parameter construction (deterministic, PyTorch-like shapes) and BN folding
# ----------------------------------------------------------------------------
def _make_conv_bn(key, cin, cout, k):
    ks = jax.random.split(key, 6)
    fan_in = cin * k * k
    bound = 1.0 / jnp.sqrt(fan_in)
    return dict(
        w=jax.random.uniform(ks[0], (cout, cin, k, k), jnp.float32, -bound, bound),
        b=jax.random.uniform(ks[1], (cout,), jnp.float32, -bound, bound),
        gamma=jax.random.uniform(ks[2], (cout,), jnp.float32, 0.5, 1.5),
        beta=jax.random.uniform(ks[3], (cout,), jnp.float32, -0.5, 0.5),
        mean=jax.random.uniform(ks[4], (cout,), jnp.float32, -0.5, 0.5),
        var=jax.random.uniform(ks[5], (cout,), jnp.float32, 0.5, 1.5),
        k=k, cin=cin, cout=cout,
    )


def _fold_conv_bn(p, eps=1e-5):
    """Fold BN (inference mode) into the conv weights/bias.

    Returns:
      k == 1: w (cin, cout),            bias (1, cout)
      k  > 1: w (k, k, cin, cout),      bias (1, cout)
    """
    scale = p["gamma"] / jnp.sqrt(p["var"] + eps)                  # (cout,)
    bias = (p["b"] - p["mean"]) * scale + p["beta"]                # (cout,)
    if p["k"] == 1:
        w = p["w"][:, :, 0, 0].T * scale[None, :]                  # (cin, cout)
    else:
        w = jnp.transpose(p["w"], (2, 3, 1, 0)) * scale            # (k,k,cin,cout)
    return w, bias.reshape(1, -1)


# ----------------------------------------------------------------------------
# Inception module
# ----------------------------------------------------------------------------
class InceptionPallas:
    def __init__(self, key, input_channels, n1x1, n3x3_reduce, n3x3,
                 n5x5_reduce, n5x5, pool_proj, compute_dtype=jnp.float32):
        ks = jax.random.split(key, 6)
        p_b1 = _make_conv_bn(ks[0], input_channels, n1x1, 1)
        p_b2r = _make_conv_bn(ks[1], input_channels, n3x3_reduce, 1)
        p_b2 = _make_conv_bn(ks[2], n3x3_reduce, n3x3, 3)
        p_b3r = _make_conv_bn(ks[3], input_channels, n5x5_reduce, 1)
        p_b3 = _make_conv_bn(ks[4], n5x5_reduce, n5x5, 5)
        p_b4 = _make_conv_bn(ks[5], input_channels, pool_proj, 1)

        w1, bias1 = _fold_conv_bn(p_b1)
        w2r, bias2r = _fold_conv_bn(p_b2r)
        w3r, bias3r = _fold_conv_bn(p_b3r)
        # Fuse the three 1x1 convs that read x into one weight / bias matrix.
        self.wp = jnp.concatenate([w1, w2r, w3r], axis=1)          # (Cin, n1+n3r+n5r)
        self.bp = jnp.concatenate([bias1, bias2r, bias3r], axis=1)

        self.w3, self.bias3 = _fold_conv_bn(p_b2)                  # (3,3,n3r,n3x3)
        self.w5, self.bias5 = _fold_conv_bn(p_b3)                  # (5,5,n5r,n5x5)
        self.w4, self.bias4 = _fold_conv_bn(p_b4)                  # (Cin, pool_proj)

        self.n1, self.n3r, self.n5r = n1x1, n3x3_reduce, n5x5_reduce
        self.compute_dtype = compute_dtype

    def __call__(self, x_nchw):
        # NCHW in/out (PyTorch convention); NHWC internally (channels on the lane axis).
        x = jnp.transpose(x_nchw, (0, 2, 3, 1)).astype(jnp.float32)

        b1, b2r_pad, b3r_pad, b4 = _fused_point_pool(
            x, self.wp, self.bp, self.w4, self.bias4,
            self.n1, self.n3r, self.n5r, self.compute_dtype)

        b2 = _conv_kxk_bn_relu(b2r_pad, self.w3, self.bias3, 3, self.compute_dtype)
        b3 = _conv_kxk_bn_relu(b3r_pad, self.w5, self.bias5, 5, self.compute_dtype)

        # TODO(synk): final channel concat + layout transpose stay in XLA; writing each
        # branch directly into the concatenated buffer would need aliased channel-offset
        # stores across kernels.
        out = jnp.concatenate([b1, b2, b3, b4], axis=-1)           # NHWC concat
        return jnp.transpose(out, (0, 3, 1, 2))                    # back to NCHW


# ----------------------------------------------------------------------------
if __name__ == "__main__":
    key = jax.random.PRNGKey(0)
    k_params, k_x = jax.random.split(key)

    # Small Inception config: in=4 -> (8, 4->8, 4->8, 8) => 32 output channels.
    model = InceptionPallas(
        k_params,
        input_channels=4,
        n1x1=8,
        n3x3_reduce=4,
        n3x3=8,
        n5x5_reduce=4,
        n5x5=8,
        pool_proj=8,
    )

    x = jax.random.normal(k_x, (2, 4, 16, 16), jnp.float32)        # NCHW, like PyTorch
    fwd = jax.jit(model.__call__)
    out = jax.block_until_ready(fwd(x))

    assert out.shape == (2, 32, 16, 16), out.shape
    assert jnp.isfinite(out).all()
    print("KERNEL_OK")
</pallas_src>

<mosaic_0001>
module attributes {stable_mosaic.version = 11 : i64} {
  func.func @_conv_kxk_bn_relu_kernel(%arg0: i32, %arg1: memref<1x18x18x4xf32, #tpu.memory_space<vmem>>, %arg2: memref<3x3x4x8xf32, #tpu.memory_space<vmem>>, %arg3: memref<1x8xf32, #tpu.memory_space<vmem>>, %arg4: memref<1x16x16x8xf32, #tpu.memory_space<vmem>>) attributes {dimension_semantics = [#tpu.dimension_semantics<parallel>], iteration_bounds = array<i64: 2>, scalar_prefetch = 0 : i64, scratch_operands = 0 : i64, tpu.core_type = #tpu.core_type<tc>, window_params = [{transform_indices = @transform_0, window_bounds = array<i64: 1, 18, 18, 4>}, {pipeline_mode = #tpu.pipeline_mode<synchronous>, transform_indices = @transform_1, window_bounds = array<i64: 3, 3, 4, 8>}, {pipeline_mode = #tpu.pipeline_mode<synchronous>, transform_indices = @transform_2, window_bounds = array<i64: 1, 8>}, {transform_indices = @transform_3, window_bounds = array<i64: 1, 16, 16, 8>}]} {
    %c0 = arith.constant 0 : index
    %c0_0 = arith.constant 0 : index
    %c0_1 = arith.constant 0 : index
    %c0_2 = arith.constant 0 : index
    %0 = vector.load %arg1[%c0, %c0_0, %c0_1, %c0_2] : memref<1x18x18x4xf32, #tpu.memory_space<vmem>>, vector<1x18x18x4xf32>
    %1 = vector.shape_cast %0 : vector<1x18x18x4xf32> to vector<18x18x4xf32>
    %cst = arith.constant 0.000000e+00 : f32
    %2 = vector.broadcast %cst : f32 to vector<256x8xf32>
    %3 = vector.extract_strided_slice %1 {offsets = [0, 0, 0], sizes = [16, 16, 4], strides = [1, 1, 1]} : vector<18x18x4xf32> to vector<16x16x4xf32>
    %4 = vector.shape_cast %3 : vector<16x16x4xf32> to vector<256x4xf32>
    %c0_3 = arith.constant 0 : index
    %c0_4 = arith.constant 0 : index
    %c0_5 = arith.constant 0 : index
    %c0_6 = arith.constant 0 : index
    %5 = vector.load %arg2[%c0_3, %c0_4, %c0_5, %c0_6] : memref<3x3x4x8xf32, #tpu.memory_space<vmem>>, vector<1x1x4x8xf32>
    %6 = vector.shape_cast %5 : vector<1x1x4x8xf32> to vector<4x8xf32>
    %cst_7 = arith.constant dense<0.000000e+00> : vector<256x8xf32>
    %7 = tpu.matmul %4, %6, %cst_7 {dimension_numbers = #tpu.dot_dimension_numbers<[1], [0], [0], [1], [0, 0, 1, 1], [], []>} : vector<256x4xf32>, vector<4x8xf32>, vector<256x8xf32> -> vector<256x8xf32>
    %8 = arith.addf %2, %7 : vector<256x8xf32>
    %9 = vector.extract_strided_slice %1 {offsets = [0, 1, 0], sizes = [16, 16, 4], strides = [1, 1, 1]} : vector<18x18x4xf32> to vector<16x16x4xf32>
    %10 = vector.shape_cast %9 : vector<16x16x4xf32> to vector<256x4xf32>
    %c0_8 = arith.constant 0 : index
    %c1 = arith.constant 1 : index
    %c0_9 = arith.constant 0 : index
    %c0_10 = arith.constant 0 : index
    %11 = vector.load %arg2[%c0_8, %c1, %c0_9, %c0_10] : memref<3x3x4x8xf32, #tpu.memory_space<vmem>>, vector<1x1x4x8xf32>
    %12 = vector.shape_cast %11 : vector<1x1x4x8xf32> to vector<4x8xf32>
    %cst_11 = arith.constant dense<0.000000e+00> : vector<256x8xf32>
    %13 = tpu.matmul %10, %12, %cst_11 {dimension_numbers = #tpu.dot_dimension_numbers<[1], [0], [0], [1], [0, 0, 1, 1], [], []>} : vector<256x4xf32>, vector<4x8xf32>, vector<256x8xf32> -> vector<256x8xf32>
    %14 = arith.addf %8, %13 : vector<256x8xf32>
    %15 = vector.extract_strided_slice %1 {offsets = [0, 2, 0], sizes = [16, 16, 4], strides = [1, 1, 1]} : vector<18x18x4xf32> to vector<16x16x4xf32>
    %16 = vector.shape_cast %15 : vector<16x16x4xf32> to vector<256x4xf32>
    %c0_12 = arith.constant 0 : index
    %c2 = arith.constant 2 : index
    %c0_13 = arith.constant 0 : index
    %c0_14 = arith.constant 0 : index
    %17 = vector.load %arg2[%c0_12, %c2, %c0_13, %c0_14] : memref<3x3x4x8xf32, #tpu.memory_space<vmem>>, vector<1x1x4x8xf32>
    %18 = vector.shape_cast %17 : vector<1x1x4x8xf32> to vector<4x8xf32>
    %cst_15 = arith.constant dense<0.000000e+00> : vector<256x8xf32>
    %19 = tpu.matmul %16, %18, %cst_15 {dimension_numbers = #tpu.dot_dimension_numbers<[1], [0], [0], [1], [0, 0, 1, 1], [], []>} : vector<256x4xf32>, vector<4x8xf32>, vector<256x8xf32> -> vector<256x8xf32>
    %20 = arith.addf %14, %19 : vector<256x8xf32>
    %21 = vector.extract_strided_slice %1 {offsets = [1, 0, 0], sizes = [16, 16, 4], strides = [1, 1, 1]} : vector<18x18x4xf32> to vector<16x16x4xf32>
    %22 = vector.shape_cast %21 : vector<16x16x4xf32> to vector<256x4xf32>
    %c1_16 = arith.constant 1 : index
    %c0_17 = arith.constant 0 : index
    %c0_18 = arith.constant 0 : index
    %c0_19 = arith.constant 0 : index
    %23 = vector.load %arg2[%c1_16, %c0_17, %c0_18, %c0_19] : memref<3x3x4x8xf32, #tpu.memory_space<vmem>>, vector<1x1x4x8xf32>
    %24 = vector.shape_cast %23 : vector<1x1x4x8xf32> to vector<4x8xf32>
    %cst_20 = arith.constant dense<0.000000e+00> : vector<256x8xf32>
    %25 = tpu.matmul %22, %24, %cst_20 {dimension_numbers = #tpu.dot_dimension_numbers<[1], [0], [0], [1], [0, 0, 1, 1], [], []>} : vector<256x4xf32>, vector<4x8xf32>, vector<256x8xf32> -> vector<256x8xf32>
    %26 = arith.addf %20, %25 : vector<256x8xf32>
    %27 = vector.extract_strided_slice %1 {offsets = [1, 1, 0], sizes = [16, 16, 4], strides = [1, 1, 1]} : vector<18x18x4xf32> to vector<16x16x4xf32>
    %28 = vector.shape_cast %27 : vector<16x16x4xf32> to vector<256x4xf32>
    %c1_21 = arith.constant 1 : index
    %c1_22 = arith.constant 1 : index
    %c0_23 = arith.constant 0 : index
    %c0_24 = arith.constant 0 : index
    %29 = vector.load %arg2[%c1_21, %c1_22, %c0_23, %c0_24] : memref<3x3x4x8xf32, #tpu.memory_space<vmem>>, vector<1x1x4x8xf32>
    %30 = vector.shape_cast %29 : vector<1x1x4x8xf32> to vector<4x8xf32>
    %cst_25 = arith.constant dense<0.000000e+00> : vector<256x8xf32>
    %31 = tpu.matmul %28, %30, %cst_25 {dimension_numbers = #tpu.dot_dimension_numbers<[1], [0], [0], [1], [0, 0, 1, 1], [], []>} : vector<256x4xf32>, vector<4x8xf32>, vector<256x8xf32> -> vector<256x8xf32>
    %32 = arith.addf %26, %31 : vector<256x8xf32>
    %33 = vector.extract_strided_slice %1 {offsets = [1, 2, 0], sizes = [16, 16, 4], strides = [1, 1, 1]} : vector<18x18x4xf32> to vector<16x16x4xf32>
    %34 = vector.shape_cast %33 : vector<16x16x4xf32> to vector<256x4xf32>
    %c1_26 = arith.constant 1 : index
    %c2_27 = arith.constant 2 : index
    %c0_28 = arith.constant 0 : index
    %c0_29 = arith.constant 0 : index
    %35 = vector.load %arg2[%c1_26, %c2_27, %c0_28, %c0_29] : memref<3x3x4x8xf32, #tpu.memory_space<vmem>>, vector<1x1x4x8xf32>
    %36 = vector.shape_cast %35 : vector<1x1x4x8xf32> to vector<4x8xf32>
    %cst_30 = arith.constant dense<0.000000e+00> : vector<256x8xf32>
    %37 = tpu.matmul %34, %36, %cst_30 {dimension_numbers = #tpu.dot_dimension_numbers<[1], [0], [0], [1], [0, 0, 1, 1], [], []>} : vector<256x4xf32>, vector<4x8xf32>, vector<256x8xf32> -> vector<256x8xf32>
    %38 = arith.addf %32, %37 : vector<256x8xf32>
    %39 = vector.extract_strided_slice %1 {offsets = [2, 0, 0], sizes = [16, 16, 4], strides = [1, 1, 1]} : vector<18x18x4xf32> to vector<16x16x4xf32>
    %40 = vector.shape_cast %39 : vector<16x16x4xf32> to vector<256x4xf32>
    %c2_31 = arith.constant 2 : index
    %c0_32 = arith.constant 0 : index
    %c0_33 = arith.constant 0 : index
    %c0_34 = arith.constant 0 : index
    %41 = vector.load %arg2[%c2_31, %c0_32, %c0_33, %c0_34] : memref<3x3x4x8xf32, #tpu.memory_space<vmem>>, vector<1x1x4x8xf32>
    %42 = vector.shape_cast %41 : vector<1x1x4x8xf32> to vector<4x8xf32>
    %cst_35 = arith.constant dense<0.000000e+00> : vector<256x8xf32>
    %43 = tpu.matmul %40, %42, %cst_35 {dimension_numbers = #tpu.dot_dimension_numbers<[1], [0], [0], [1], [0, 0, 1, 1], [], []>} : vector<256x4xf32>, vector<4x8xf32>, vector<256x8xf32> -> vector<256x8xf32>
    %44 = arith.addf %38, %43 : vector<256x8xf32>
    %45 = vector.extract_strided_slice %1 {offsets = [2, 1, 0], sizes = [16, 16, 4], strides = [1, 1, 1]} : vector<18x18x4xf32> to vector<16x16x4xf32>
    %46 = vector.shape_cast %45 : vector<16x16x4xf32> to vector<256x4xf32>
    %c2_36 = arith.constant 2 : index
    %c1_37 = arith.constant 1 : index
    %c0_38 = arith.constant 0 : index
    %c0_39 = arith.constant 0 : index
    %47 = vector.load %arg2[%c2_36, %c1_37, %c0_38, %c0_39] : memref<3x3x4x8xf32, #tpu.memory_space<vmem>>, vector<1x1x4x8xf32>
    %48 = vector.shape_cast %47 : vector<1x1x4x8xf32> to vector<4x8xf32>
    %cst_40 = arith.constant dense<0.000000e+00> : vector<256x8xf32>
    %49 = tpu.matmul %46, %48, %cst_40 {dimension_numbers = #tpu.dot_dimension_numbers<[1], [0], [0], [1], [0, 0, 1, 1], [], []>} : vector<256x4xf32>, vector<4x8xf32>, vector<256x8xf32> -> vector<256x8xf32>
    %50 = arith.addf %44, %49 : vector<256x8xf32>
    %51 = vector.extract_strided_slice %1 {offsets = [2, 2, 0], sizes = [16, 16, 4], strides = [1, 1, 1]} : vector<18x18x4xf32> to vector<16x16x4xf32>
    %52 = vector.shape_cast %51 : vector<16x16x4xf32> to vector<256x4xf32>
    %c2_41 = arith.constant 2 : index
    %c2_42 = arith.constant 2 : index
    %c0_43 = arith.constant 0 : index
    %c0_44 = arith.constant 0 : index
    %53 = vector.load %arg2[%c2_41, %c2_42, %c0_43, %c0_44] : memref<3x3x4x8xf32, #tpu.memory_space<vmem>>, vector<1x1x4x8xf32>
    %54 = vector.shape_cast %53 : vector<1x1x4x8xf32> to vector<4x8xf32>
    %cst_45 = arith.constant dense<0.000000e+00> : vector<256x8xf32>
    %55 = tpu.matmul %52, %54, %cst_45 {dimension_numbers = #tpu.dot_dimension_numbers<[1], [0], [0], [1], [0, 0, 1, 1], [], []>} : vector<256x4xf32>, vector<4x8xf32>, vector<256x8xf32> -> vector<256x8xf32>
    %56 = arith.addf %50, %55 : vector<256x8xf32>
    %c0_46 = arith.constant 0 : index
    %c0_47 = arith.constant 0 : index
    %57 = vector.load %arg3[%c0_46, %c0_47] : memref<1x8xf32, #tpu.memory_space<vmem>>, vector<1x8xf32>
    %58 = vector.broadcast %57 : vector<1x8xf32> to vector<256x8xf32>
    %59 = arith.addf %56, %58 : vector<256x8xf32>
    %cst_48 = arith.constant 0.000000e+00 : f32
    %60 = vector.broadcast %cst_48 : f32 to vector<256x8xf32>
    %61 = arith.maximumf %59, %60 : vector<256x8xf32>
    %62 = vector.shape_cast %61 : vector<256x8xf32> to vector<1x16x16x8xf32>
    %c0_49 = arith.constant 0 : index
    %c0_50 = arith.constant 0 : index
    %c0_51 = arith.constant 0 : index
    %c0_52 = arith.constant 0 : index
    %63 = vector.load %arg4[%c0_49, %c0_50, %c0_51, %c0_52] : memref<1x16x16x8xf32, #tpu.memory_space<vmem>>, vector<1x16x16x8xf32>
    tpu.vector_store %arg4[%c0_49, %c0_50, %c0_51, %c0_52], %62 {strides = array<i32>} : memref<1x16x16x8xf32, #tpu.memory_space<vmem>>, vector<1x16x16x8xf32>,
    return
  }
  func.func @transform_0(%arg0: i32) -> (i32, i32, i32, i32) {
    %c0_i32 = arith.constant 0 : i32
    %c0_i32_0 = arith.constant 0 : i32
    %c0_i32_1 = arith.constant 0 : i32
    %c0_i32_2 = arith.constant 0 : i32
    return %arg0, %c0_i32, %c0_i32_0, %c0_i32_1 : i32, i32, i32, i32
  }
  func.func @transform_1(%arg0: i32) -> (i32, i32, i32, i32) {
    %c0_i32 = arith.constant 0 : i32
    %c0_i32_0 = arith.constant 0 : i32
    %c0_i32_1 = arith.constant 0 : i32
    %c0_i32_2 = arith.constant 0 : i32
    %c0_i32_3 = arith.constant 0 : i32
    return %c0_i32, %c0_i32_0, %c0_i32_1, %c0_i32_2 : i32, i32, i32, i32
  }
  func.func @transform_2(%arg0: i32) -> (i32, i32) {
    %c0_i32 = arith.constant 0 : i32
    %c0_i32_0 = arith.constant 0 : i32
    %c0_i32_1 = arith.constant 0 : i32
    return %c0_i32, %c0_i32_0 : i32, i32
  }
  func.func @transform_3(%arg0: i32) -> (i32, i32, i32, i32) {
    %c0_i32 = arith.constant 0 : i32
    %c0_i32_0 = arith.constant 0 : i32
    %c0_i32_1 = arith.constant 0 : i32
    %c0_i32_2 = arith.constant 0 : i32
    return %arg0, %c0_i32, %c0_i32_0, %c0_i32_1 : i32, i32, i32, i32
  }
}

module attributes {stable_mosaic.version = 11 : i64} {
  func.func @_conv_kxk_bn_relu_kernel(%arg0: i32, %arg1: memref<1x20x20x4xf32, #tpu.memory_space<vmem>>, %arg2: memref<5x5x4x8xf32, #tpu.memory_space<vmem>>, %arg3: memref<1x8xf32, #tpu.memory_space<vmem>>, %arg4: memref<1x16x16x8xf32, #tpu.memory_space<vmem>>) attributes {dimension_semantics = [#tpu.dimension_semantics<parallel>], iteration_bounds = array<i64: 2>, scalar_prefetch = 0 : i64, scratch_operands = 0 : i64, tpu.core_type = #tpu.core_type<tc>, window_params = [{transform_indices = @transform_0, window_bounds = array<i64: 1, 20, 20, 4>}, {pipeline_mode = #tpu.pipeline_mode<synchronous>, transform_indices = @transform_1, window_bounds = array<i64: 5, 5, 4, 8>}, {pipeline_mode = #tpu.pipeline_mode<synchronous>, transform_indices = @transform_2, window_bounds = array<i64: 1, 8>}, {transform_indices = @transform_3, window_bounds = array<i64: 1, 16, 16, 8>}]} {
    %c0 = arith.constant 0 : index
    %c0_0 = arith.constant 0 : index
    %c0_1 = arith.constant 0 : index
    %c0_2 = arith.constant 0 : index
    %0 = vector.load %arg1[%c0, %c0_0, %c0_1, %c0_2] : memref<1x20x20x4xf32, #tpu.memory_space<vmem>>, vector<1x20x20x4xf32>
    %1 = vector.shape_cast %0 : vector<1x20x20x4xf32> to vector<20x20x4xf32>
    %cst = arith.constant 0.000000e+00 : f32
    %2 = vector.broadcast %cst : f32 to vector<256x8xf32>
    %3 = vector.extract_strided_slice %1 {offsets = [0, 0, 0], sizes = [16, 16, 4], strides = [1, 1, 1]} : vector<20x20x4xf32> to vector<16x16x4xf32>
    %4 = vector.shape_cast %3 : vector<16x16x4xf32> to vector<256x4xf32>
    %c0_3 = arith.constant 0 : index
    %c0_4 = arith.constant 0 : index
    %c0_5 = arith.constant 0 : index
    %c0_6 = arith.constant 0 : index
    %5 = vector.load %arg2[%c0_3, %c0_4, %c0_5, %c0_6] : memref<5x5x4x8xf32, #tpu.memory_space<vmem>>, vector<1x1x4x8xf32>
    %6 = vector.shape_cast %5 : vector<1x1x4x8xf32> to vector<4x8xf32>
    %cst_7 = arith.constant dense<0.000000e+00> : vector<256x8xf32>
    %7 = tpu.matmul %4, %6, %cst_7 {dimension_numbers = #tpu.dot_dimension_numbers<[1], [0], [0], [1], [0, 0, 1, 1], [], []>} : vector<256x4xf32>, vector<4x8xf32>, vector<256x8xf32> -> vector<256x8xf32>
    %8 = arith.addf %2, %7 : vector<256x8xf32>
    %9 = vector.extract_strided_slice %1 {offsets = [0, 1, 0], sizes = [16, 16, 4], strides = [1, 1, 1]} : vector<20x20x4xf32> to vector<16x16x4xf32>
    %10 = vector.shape_cast %9 : vector<16x16x4xf32> to vector<256x4xf32>
    %c0_8 = arith.constant 0 : index
    %c1 = arith.constant 1 : index
    %c0_9 = arith.constant 0 : index
    %c0_10 = arith.constant 0 : index
    %11 = vector.load %arg2[%c0_8, %c1, %c0_9, %c0_10] : memref<5x5x4x8xf32, #tpu.memory_space<vmem>>, vector<1x1x4x8xf32>
    %12 = vector.shape_cast %11 : vector<1x1x4x8xf32> to vector<4x8xf32>
    %cst_11 = arith.constant dense<0.000000e+00> : vector<256x8xf32>
    %13 = tpu.matmul %10, %12, %cst_11 {dimension_numbers = #tpu.dot_dimension_numbers<[1], [0], [0], [1], [0, 0, 1, 1], [], []>} : vector<256x4xf32>, vector<4x8xf32>, vector<256x8xf32> -> vector<256x8xf32>
    %14 = arith.addf %8, %13 : vector<256x8xf32>
    %15 = vector.extract_strided_slice %1 {offsets = [0, 2, 0], sizes = [16, 16, 4], strides = [1, 1, 1]} : vector<20x20x4xf32> to vector<16x16x4xf32>
    %16 = vector.shape_cast %15 : vector<16x16x4xf32> to vector<256x4xf32>
    %c0_12 = arith.constant 0 : index
    %c2 = arith.constant 2 : index
    %c0_13 = arith.constant 0 : index
    %c0_14 = arith.constant 0 : index
    %17 = vector.load %arg2[%c0_12, %c2, %c0_13, %c0_14] : memref<5x5x4x8xf32, #tpu.memory_space<vmem>>, vector<1x1x4x8xf32>
    %18 = vector.shape_cast %17 : vector<1x1x4x8xf32> to vector<4x8xf32>
    %cst_15 = arith.constant dense<0.000000e+00> : vector<256x8xf32>
    %19 = tpu.matmul %16, %18, %cst_15 {dimension_numbers = #tpu.dot_dimension_numbers<[1], [0], [0], [1], [0, 0, 1, 1], [], []>} : vector<256x4xf32>, vector<4x8xf32>, vector<256x8xf32> -> vector<256x8xf32>
    %20 = arith.addf %14, %19 : vector<256x8xf32>
    %21 = vector.extract_strided_slice %1 {offsets = [0, 3, 0], sizes = [16, 16, 4], strides = [1, 1, 1]} : vector<20x20x4xf32> to vector<16x16x4xf32>
    %22 = vector.shape_cast %21 : vector<16x16x4xf32> to vector<256x4xf32>
    %c0_16 = arith.constant 0 : index
    %c3 = arith.constant 3 : index
    %c0_17 = arith.constant 0 : index
    %c0_18 = arith.constant 0 : index
    %23 = vector.load %arg2[%c0_16, %c3, %c0_17, %c0_18] : memref<5x5x4x8xf32, #tpu.memory_space<vmem>>, vector<1x1x4x8xf32>
    %24 = vector.shape_cast %23 : vector<1x1x4x8xf32> to vector<4x8xf32>
    %cst_19 = arith.constant dense<0.000000e+00> : vector<256x8xf32>
    %25 = tpu.matmul %22, %24, %cst_19 {dimension_numbers = #tpu.dot_dimension_numbers<[1], [0], [0], [1], [0, 0, 1, 1], [], []>} : vector<256x4xf32>, vector<4x8xf32>, vector<256x8xf32> -> vector<256x8xf32>
    %26 = arith.addf %20, %25 : vector<256x8xf32>
    %27 = vector.extract_strided_slice %1 {offsets = [0, 4, 0], sizes = [16, 16, 4], strides = [1, 1, 1]} : vector<20x20x4xf32> to vector<16x16x4xf32>
    %28 = vector.shape_cast %27 : vector<16x16x4xf32> to vector<256x4xf32>
    %c0_20 = arith.constant 0 : index
    %c4 = arith.constant 4 : index
    %c0_21 = arith.constant 0 : index
    %c0_22 = arith.constant 0 : index
    %29 = vector.load %arg2[%c0_20, %c4, %c0_21, %c0_22] : memref<5x5x4x8xf32, #tpu.memory_space<vmem>>, vector<1x1x4x8xf32>
    %30 = vector.shape_cast %29 : vector<1x1x4x8xf32> to vector<4x8xf32>
    %cst_23 = arith.constant dense<0.000000e+00> : vector<256x8xf32>
    %31 = tpu.matmul %28, %30, %cst_23 {dimension_numbers = #tpu.dot_dimension_numbers<[1], [0], [0], [1], [0, 0, 1, 1], [], []>} : vector<256x4xf32>, vector<4x8xf32>, vector<256x8xf32> -> vector<256x8xf32>
    %32 = arith.addf %26, %31 : vector<256x8xf32>
    %33 = vector.extract_strided_slice %1 {offsets = [1, 0, 0], sizes = [16, 16, 4], strides = [1, 1, 1]} : vector<20x20x4xf32> to vector<16x16x4xf32>
    %34 = vector.shape_cast %33 : vector<16x16x4xf32> to vector<256x4xf32>
    %c1_24 = arith.constant 1 : index
    %c0_25 = arith.constant 0 : index
    %c0_26 = arith.constant 0 : index
    %c0_27 = arith.constant 0 : index
    %35 = vector.load %arg2[%c1_24, %c0_25, %c0_26, %c0_27] : memref<5x5x4x8xf32, #tpu.memory_space<vmem>>, vector<1x1x4x8xf32>
    %36 = vector.shape_cast %35 : vector<1x1x4x8xf32> to vector<4x8xf32>
    %cst_28 = arith.constant dense<0.000000e+00> : vector<256x8xf32>
    %37 = tpu.matmul %34, %36, %cst_28 {dimension_numbers = #tpu.dot_dimension_numbers<[1], [0], [0], [1], [0, 0, 1, 1], [], []>} : vector<256x4xf32>, vector<4x8xf32>, vector<256x8xf32> -> vector<256x8xf32>
    %38 = arith.addf %32, %37 : vector<256x8xf32>
    %39 = vector.extract_strided_slice %1 {offsets = [1, 1, 0], sizes = [16, 16, 4], strides = [1, 1, 1]} : vector<20x20x4xf32> to vector<16x16x4xf32>
    %40 = vector.shape_cast %39 : vector<16x16x4xf32> to vector<256x4xf32>
    %c1_29 = arith.constant 1 : index
    %c1_30 = arith.constant 1 : index
    %c0_31 = arith.constant 0 : index
    %c0_32 = arith.constant 0 : index
    %41 = vector.load %arg2[%c1_29, %c1_30, %c0_31, %c0_32] : memref<5x5x4x8xf32, #tpu.memory_space<vmem>>, vector<1x1x4x8xf32>
    %42 = vector.shape_cast %41 : vector<1x1x4x8xf32> to vector<4x8xf32>
    %cst_33 = arith.constant dense<0.000000e+00> : vector<256x8xf32>
    %43 = tpu.matmul %40, %42, %cst_33 {dimension_numbers = #tpu.dot_dimension_numbers<[1], [0], [0], [1], [0, 0, 1, 1], [], []>} : vector<256x4xf32>, vector<4x8xf32>, vector<256x8xf32> -> vector<256x8xf32>
    %44 = arith.addf %38, %43 : vector<256x8xf32>
    %45 = vector.extract_strided_slice %1 {offsets = [1, 2, 0], sizes = [16, 16, 4], strides = [1, 1, 1]} : vector<20x20x4xf32> to vector<16x16x4xf32>
    %46 = vector.shape_cast %45 : vector<16x16x4xf32> to vector<256x4xf32>
    %c1_34 = arith.constant 1 : index
    %c2_35 = arith.constant 2 : index
    %c0_36 = arith.constant 0 : index
    %c0_37 = arith.constant 0 : index
    %47 = vector.load %arg2[%c1_34, %c2_35, %c0_36, %c0_37] : memref<5x5x4x8xf32, #tpu.memory_space<vmem>>, vector<1x1x4x8xf32>
    %48 = vector.shape_cast %47 : vector<1x1x4x8xf32> to vector<4x8xf32>
    %cst_38 = arith.constant dense<0.000000e+00> : vector<256x8xf32>
    %49 = tpu.matmul %46, %48, %cst_38 {dimension_numbers = #tpu.dot_dimension_numbers<[1], [0], [0], [1], [0, 0, 1, 1], [], []>} : vector<256x4xf32>, vector<4x8xf32>, vector<256x8xf32> -> vector<256x8xf32>
    %50 = arith.addf %44, %49 : vector<256x8xf32>
    %51 = vector.extract_strided_slice %1 {offsets = [1, 3, 0], sizes = [16, 16, 4], strides = [1, 1, 1]} : vector<20x20x4xf32> to vector<16x16x4xf32>
    %52 = vector.shape_cast %51 : vector<16x16x4xf32> to vector<256x4xf32>
    %c1_39 = arith.constant 1 : index
    %c3_40 = arith.constant 3 : index
    %c0_41 = arith.constant 0 : index
    %c0_42 = arith.constant 0 : index
    %53 = vector.load %arg2[%c1_39, %c3_40, %c0_41, %c0_42] : memref<5x5x4x8xf32, #tpu.memory_space<vmem>>, vector<1x1x4x8xf32>
    %54 = vector.shape_cast %53 : vector<1x1x4x8xf32> to vector<4x8xf32>
    %cst_43 = arith.constant dense<0.000000e+00> : vector<256x8xf32>
    %55 = tpu.matmul %52, %54, %cst_43 {dimension_numbers = #tpu.dot_dimension_numbers<[1], [0], [0], [1], [0, 0, 1, 1], [], []>} : vector<256x4xf32>, vector<4x8xf32>, vector<256x8xf32> -> vector<256x8xf32>
    %56 = arith.addf %50, %55 : vector<256x8xf32>
    %57 = vector.extract_strided_slice %1 {offsets = [1, 4, 0], sizes = [16, 16, 4], strides = [1, 1, 1]} : vector<20x20x4xf32> to vector<16x16x4xf32>
    %58 = vector.shape_cast %57 : vector<16x16x4xf32> to vector<256x4xf32>
    %c1_44 = arith.constant 1 : index
    %c4_45 = arith.constant 4 : index
    %c0_46 = arith.constant 0 : index
    %c0_47 = arith.constant 0 : index
    %59 = vector.load %arg2[%c1_44, %c4_45, %c0_46, %c0_47] : memref<5x5x4x8xf32, #tpu.memory_space<vmem>>, vector<1x1x4x8xf32>
    %60 = vector.shape_cast %59 : vector<1x1x4x8xf32> to vector<4x8xf32>
    %cst_48 = arith.constant dense<0.000000e+00> : vector<256x8xf32>
    %61 = tpu.matmul %58, %60, %cst_48 {dimension_numbers = #tpu.dot_dimension_numbers<[1], [0], [0], [1], [0, 0, 1, 1], [], []>} : vector<256x4xf32>, vector<4x8xf32>, vector<256x8xf32> -> vector<256x8xf32>
    %62 = arith.addf %56, %61 : vector<256x8xf32>
    %63 = vector.extract_strided_slice %1 {offsets = [2, 0, 0], sizes = [16, 16, 4], strides = [1, 1, 1]} : vector<20x20x4xf32> to vector<16x16x4xf32>
    %64 = vector.shape_cast %63 : vector<16x16x4xf32> to vector<256x4xf32>
    %c2_49 = arith.constant 2 : index
    %c0_50 = arith.constant 0 : index
    %c0_51 = arith.constant 0 : index
    %c0_52 = arith.constant 0 : index
    %65 = vector.load %arg2[%c2_49, %c0_50, %c0_51, %c0_52] : memref<5x5x4x8xf32, #tpu.memory_space<vmem>>, vector<1x1x4x8xf32>
    %66 = vector.shape_cast %65 : vector<1x1x4x8xf32> to vector<4x8xf32>
    %cst_53 = arith.constant dense<0.000000e+00> : vector<256x8xf32>
    %67 = tpu.matmul %64, %66, %cst_53 {dimension_numbers = #tpu.dot_dimension_numbers<[1], [0], [0], [1], [0, 0, 1, 1], [], []>} : vector<256x4xf32>, vector<4x8xf32>, vector<256x8xf32> -> vector<256x8xf32>
    %68 = arith.addf %62, %67 : vector<256x8xf32>
    %69 = vector.extract_strided_slice %1 {offsets = [2, 1, 0], sizes = [16, 16, 4], strides = [1, 1, 1]} : vector<20x20x4xf32> to vector<16x16x4xf32>
    %70 = vector.shape_cast %69 : vector<16x16x4xf32> to vector<256x4xf32>
    %c2_54 = arith.constant 2 : index
    %c1_55 = arith.constant 1 : index
    %c0_56 = arith.constant 0 : index
    %c0_57 = arith.constant 0 : index
    %71 = vector.load %arg2[%c2_54, %c1_55, %c0_56, %c0_57] : memref<5x5x4x8xf32, #tpu.memory_space<vmem>>, vector<1x1x4x8xf32>
    %72 = vector.shape_cast %71 : vector<1x1x4x8xf32> to vector<4x8xf32>
    %cst_58 = arith.constant dense<0.000000e+00> : vector<256x8xf32>
    %73 = tpu.matmul %70, %72, %cst_58 {dimension_numbers = #tpu.dot_dimension_numbers<[1], [0], [0], [1], [0, 0, 1, 1], [], []>} : vector<256x4xf32>, vector<4x8xf32>, vector<256x8xf32> -> vector<256x8xf32>
    %74 = arith.addf %68, %73 : vector<256x8xf32>
    %75 = vector.extract_strided_slice %1 {offsets = [2, 2, 0], sizes = [16, 16, 4], strides = [1, 1, 1]} : vector<20x20x4xf32> to vector<16x16x4xf32>
    %76 = vector.shape_cast %75 : vector<16x16x4xf32> to vector<256x4xf32>
    %c2_59 = arith.constant 2 : index
    %c2_60 = arith.constant 2 : index
    %c0_61 = arith.constant 0 : index
    %c0_62 = arith.constant 0 : index
    %77 = vector.load %arg2[%c2_59, %c2_60, %c0_61, %c0_62] : memref<5x5x4x8xf32, #tpu.memory_space<vmem>>, vector<1x1x4x8xf32>
    %78 = vector.shape_cast %77 : vector<1x1x4x8xf32> to vector<4x8xf32>
    %cst_63 = arith.constant dense<0.000000e+00> : vector<256x8xf32>
    %79 = tpu.matmul %76, %78, %cst_63 {dimension_numbers = #tpu.dot_dimension_numbers<[1], [0], [0], [1], [0, 0, 1, 1], [], []>} : vector<256x4xf32>, vector<4x8xf32>, vector<256x8xf32> -> vector<256x8xf32>
    %80 = arith.addf %74, %79 : vector<256x8xf32>
    %81 = vector.extract_strided_slice %1 {offsets = [2, 3, 0], sizes = [16, 16, 4], strides = [1, 1, 1]} : vector<20x20x4xf32> to vector<16x16x4xf32>
    %82 = vector.shape_cast %81 : vector<16x16x4xf32> to vector<256x4xf32>
    %c2_64 = arith.constant 2 : index
    %c3_65 = arith.constant 3 : index
    %c0_66 = arith.constant 0 : index
    %c0_67 = arith.constant 0 : index
    %83 = vector.load %arg2[%c2_64, %c3_65, %c0_66, %c0_67] : memref<5x5x4x8xf32, #tpu.memory_space<vmem>>, vector<1x1x4x8xf32>
    %84 = vector.shape_cast %83 : vector<1x1x4x8xf32> to vector<4x8xf32>
    %cst_68 = arith.constant dense<0.000000e+00> : vector<256x8xf32>
    %85 = tpu.matmul %82, %84, %cst_68 {dimension_numbers = #tpu.dot_dimension_numbers<[1], [0], [0], [1], [0, 0, 1, 1], [], []>} : vector<256x4xf32>, vector<4x8xf32>, vector<256x8xf32> -> vector<256x8xf32>
    %86 = arith.addf %80, %85 : vector<256x8xf32>
    %87 = vector.extract_strided_slice %1 {offsets = [2, 4, 0], sizes = [16, 16, 4], strides = [1, 1, 1]} : vector<20x20x4xf32> to vector<16x16x4xf32>
    %88 = vector.shape_cast %87 : vector<16x16x4xf32> to vector<256x4xf32>
    %c2_69 = arith.constant 2 : index
    %c4_70 = arith.constant 4 : index
    %c0_71 = arith.constant 0 : index
    %c0_72 = arith.constant 0 : index
    %89 = vector.load %arg2[%c2_69, %c4_70, %c0_71, %c0_72] : memref<5x5x4x8xf32, #tpu.memory_space<vmem>>, vector<1x1x4x8xf32>
    %90 = vector.shape_cast %89 : vector<1x1x4x8xf32> to vector<4x8xf32>
    %cst_73 = arith.constant dense<0.000000e+00> : vector<256x8xf32>
    %91 = tpu.matmul %88, %90, %cst_73 {dimension_numbers = #tpu.dot_dimension_numbers<[1], [0], [0], [1], [0, 0, 1, 1], [], []>} : vector<256x4xf32>, vector<4x8xf32>, vector<256x8xf32> -> vector<256x8xf32>
    %92 = arith.addf %86, %91 : vector<256x8xf32>
    %93 = vector.extract_strided_slice %1 {offsets = [3, 0, 0], sizes = [16, 16, 4], strides = [1, 1, 1]} : vector<20x20x4xf32> to vector<16x16x4xf32>
    %94 = vector.shape_cast %93 : vector<16x16x4xf32> to vector<256x4xf32>
    %c3_74 = arith.constant 3 : index
    %c0_75 = arith.constant 0 : index
    %c0_76 = arith.constant 0 : index
    %c0_77 = arith.constant 0 : index
    %95 = vector.load %arg2[%c3_74, %c0_75, %c0_76, %c0_77] : memref<5x5x4x8xf32, #tpu.memory_space<vmem>>, vector<1x1x4x8xf32>
    %96 = vector.shape_cast %95 : vector<1x1x4x8xf32> to vector<4x8xf32>
    %cst_78 = arith.constant dense<0.000000e+00> : vector<256x8xf32>
    %97 = tpu.matmul %94, %96, %cst_78 {dimension_numbers = #tpu.dot_dimension_numbers<[1], [0], [0], [1], [0, 0, 1, 1], [], []>} : vector<256x4xf32>, vector<4x8xf32>, vector<256x8xf32> -> vector<256x8xf32>
    %98 = arith.addf %92, %97 : vector<256x8xf32>
    %99 = vector.extract_strided_slice %1 {offsets = [3, 1, 0], sizes = [16, 16, 4], strides = [1, 1, 1]} : vector<20x20x4xf32> to vector<16x16x4xf32>
    %100 = vector.shape_cast %99 : vector<16x16x4xf32> to vector<256x4xf32>
    %c3_79 = arith.constant 3 : index
    %c1_80 = arith.constant 1 : index
    %c0_81 = arith.constant 0 : index
    %c0_82 = arith.constant 0 : index
    %101 = vector.load %arg2[%c3_79, %c1_80, %c0_81, %c0_82] : memref<5x5x4x8xf32, #tpu.memory_space<vmem>>, vector<1x1x4x8xf32>
    %102 = vector.shape_cast %101 : vector<1x1x4x8xf32> to vector<4x8xf32>
    %cst_83 = arith.constant dense<0.000000e+00> : vector<256x8xf32>
    %103 = tpu.matmul %100, %102, %cst_83 {dimension_numbers = #tpu.dot_dimension_numbers<[1], [0], [0], [1], [0, 0, 1, 1], [], []>} : vector<256x4xf32>, vector<4x8xf32>, vector<256x8xf32> -> vector<256x8xf32>
    %104 = arith.addf %98, %103 : vector<256x8xf32>
    %105 = vector.extract_strided_slice %1 {offsets = [3, 2, 0], sizes = [16, 16, 4], strides = [1, 1, 1]} : vector<20x20x4xf32> to vector<16x16x4xf32>
    %106 = vector.shape_cast %105 : vector<16x16x4xf32> to vector<256x4xf32>
    %c3_84 = arith.constant 3 : index
    %c2_85 = arith.constant 2 : index
    %c0_86 = arith.constant 0 : index
    %c0_87 = arith.constant 0 : index
    %107 = vector.load %arg2[%c3_84, %c2_85, %c0_86, %c0_87] : memref<5x5x4x8xf32, #tpu.memory_space<vmem>>, vector<1x1x4x8xf32>
    %108 = vector.shape_cast %107 : vector<1x1x4x8xf32> to vector<4x8xf32>
    %cst_88 = arith.constant dense<0.000000e+00> : vector<256x8xf32>
    %109 = tpu.matmul %106, %108, %cst_88 {dimension_numbers = #tpu.dot_dimension_numbers<[1], [0], [0], [1], [0, 0, 1, 1], [], []>} : vector<256x4xf32>, vector<4x8xf32>, vector<256x8xf32> -> vector<256x8xf32>
    %110 = arith.addf %104, %109 : vector<256x8xf32>
    %111 = vector.extract_strided_slice %1 {offsets = [3, 3, 0], sizes = [16, 16, 4], strides = [1, 1, 1]} : vector<20x20x4xf32> to vector<16x16x4xf32>
    %112 = vector.shape_cast %111 : vector<16x16x4xf32> to vector<256x4xf32>
    %c3_89 = arith.constant 3 : index
    %c3_90 = arith.constant 3 : index
    %c0_91 = arith.constant 0 : index
    %c0_92 = arith.constant 0 : index
    %113 = vector.load %arg2[%c3_89, %c3_90, %c0_91, %c0_92] : memref<5x5x4x8xf32, #tpu.memory_space<vmem>>, vector<1x1x4x8xf32>
    %114 = vector.shape_cast %113 : vector<1x1x4x8xf32> to vector<4x8xf32>
    %cst_93 = arith.constant dense<0.000000e+00> : vector<256x8xf32>
    %115 = tpu.matmul %112, %114, %cst_93 {dimension_numbers = #tpu.dot_dimension_numbers<[1], [0], [0], [1], [0, 0, 1, 1], [], []>} : vector<256x4xf32>, vector<4x8xf32>, vector<256x8xf32> -> vector<256x8xf32>
    %116 = arith.addf %110, %115 : vector<256x8xf32>
    %117 = vector.extract_strided_slice %1 {offsets = [3, 4, 0], sizes = [16, 16, 4], strides = [1, 1, 1]} : vector<20x20x4xf32> to vector<16x16x4xf32>
    %118 = vector.shape_cast %117 : vector<16x16x4xf32> to vector<256x4xf32>
    %c3_94 = arith.constant 3 : index
    %c4_95 = arith.constant 4 : index
    %c0_96 = arith.constant 0 : index
    %c0_97 = arith.constant 0 : index
    %119 = vector.load %arg2[%c3_94, %c4_95, %c0_96, %c0_97] : memref<5x5x4x8xf32, #tpu.memory_space<vmem>>, vector<1x1x4x8xf32>
    %120 = vector.shape_cast %119 : vector<1x1x4x8xf32> to vector<4x8xf32>
    %cst_98 = arith.constant dense<0.000000e+00> : vector<256x8xf32>
    %121 = tpu.matmul %118, %120, %cst_98 {dimension_numbers = #tpu.dot_dimension_numbers<[1], [0], [0], [1], [0, 0, 1, 1], [], []>} : vector<256x4xf32>, vector<4x8xf32>, vector<256x8xf32> -> vector<256x8xf32>
    %122 = arith.addf %116, %121 : vector<256x8xf32>
    %123 = vector.extract_strided_slice %1 {offsets = [4, 0, 0], sizes = [16, 16, 4], strides = [1, 1, 1]} : vector<20x20x4xf32> to vector<16x16x4xf32>
    %124 = vector.shape_cast %123 : vector<16x16x4xf32> to vector<256x4xf32>
    %c4_99 = arith.constant 4 : index
    %c0_100 = arith.constant 0 : index
    %c0_101 = arith.constant 0 : index
    %c0_102 = arith.constant 0 : index
    %125 = vector.load %arg2[%c4_99, %c0_100, %c0_101, %c0_102] : memref<5x5x4x8xf32, #tpu.memory_space<vmem>>, vector<1x1x4x8xf32>
    %126 = vector.shape_cast %125 : vector<1x1x4x8xf32> to vector<4x8xf32>
    %cst_103 = arith.constant dense<0.000000e+00> : vector<256x8xf32>
    %127 = tpu.matmul %124, %126, %cst_103 {dimension_numbers = #tpu.dot_dimension_numbers<[1], [0], [0], [1], [0, 0, 1, 1], [], []>} : vector<256x4xf32>, vector<4x8xf32>, vector<256x8xf32> -> vector<256x8xf32>
    %128 = arith.addf %122, %127 : vector<256x8xf32>
    %129 = vector.extract_strided_slice %1 {offsets = [4, 1, 0], sizes = [16, 16, 4], strides = [1, 1, 1]} : vector<20x20x4xf32> to vector<16x16x4xf32>
    %130 = vector.shape_cast %129 : vector<16x16x4xf32> to vector<256x4xf32>
    %c4_104 = arith.constant 4 : index
    %c1_105 = arith.constant 1 : index
    %c0_106 = arith.constant 0 : index
    %c0_107 = arith.constant 0 : index
    %131 = vector.load %arg2[%c4_104, %c1_105, %c0_106, %c0_107] : memref<5x5x4x8xf32, #tpu.memory_space<vmem>>, vector<1x1x4x8xf32>
    %132 = vector.shape_cast %131 : vector<1x1x4x8xf32> to vector<4x8xf32>
    %cst_108 = arith.constant dense<0.000000e+00> : vector<256x8xf32>
    %133 = tpu.matmul %130, %132, %cst_108 {dimension_numbers = #tpu.dot_dimension_numbers<[1], [0], [0], [1], [0, 0, 1, 1], [], []>} : vector<256x4xf32>, vector<4x8xf32>, vector<256x8xf32> -> vector<256x8xf32>
    %134 = arith.addf %128, %133 : vector<256x8xf32>
    %135 = vector.extract_strided_slice %1 {offsets = [4, 2, 0], sizes = [16, 16, 4], strides = [1, 1, 1]} : vector<20x20x4xf32> to vector<16x16x4xf32>
    %136 = vector.shape_cast %135 : vector<16x16x4xf32> to vector<256x4xf32>
    %c4_109 = arith.constant 4 : index
    %c2_110 = arith.constant 2 : index
    %c0_111 = arith.constant 0 : index
    %c0_112 = arith.constant 0 : index
    %137 = vector.load %arg2[%c4_109, %c2_110, %c0_111, %c0_112] : memref<5x5x4x8xf32, #tpu.memory_space<vmem>>, vector<1x1x4x8xf32>
    %138 = vector.shape_cast %137 : vector<1x1x4x8xf32> to vector<4x8xf32>
    %cst_113 = arith.constant dense<0.000000e+00> : vector<256x8xf32>
    %139 = tpu.matmul %136, %138, %cst_113 {dimension_numbers = #tpu.dot_dimension_numbers<[1], [0], [0], [1], [0, 0, 1, 1], [], []>} : vector<256x4xf32>, vector<4x8xf32>, vector<256x8xf32> -> vector<256x8xf32>
    %140 = arith.addf %134, %139 : vector<256x8xf32>
    %141 = vector.extract_strided_slice %1 {offsets = [4, 3, 0], sizes = [16, 16, 4], strides = [1, 1, 1]} : vector<20x20x4xf32> to vector<16x16x4xf32>
    %142 = vector.shape_cast %141 : vector<16x16x4xf32> to vector<256x4xf32>
    %c4_114 = arith.constant 4 : index
    %c3_115 = arith.constant 3 : index
    %c0_116 = arith.constant 0 : index
    %c0_117 = arith.constant 0 : index
    %143 = vector.load %arg2[%c4_114, %c3_115, %c0_116, %c0_117] : memref<5x5x4x8xf32, #tpu.memory_space<vmem>>, vector<1x1x4x8xf32>
    %144 = vector.shape_cast %143 : vector<1x1x4x8xf32> to vector<4x8xf32>
    %cst_118 = arith.constant dense<0.000000e+00> : vector<256x8xf32>
    %145 = tpu.matmul %142, %144, %cst_118 {dimension_numbers = #tpu.dot_dimension_numbers<[1], [0], [0], [1], [0, 0, 1, 1], [], []>} : vector<256x4xf32>, vector<4x8xf32>, vector<256x8xf32> -> vector<256x8xf32>
    %146 = arith.addf %140, %145 : vector<256x8xf32>
    %147 = vector.extract_strided_slice %1 {offsets = [4, 4, 0], sizes = [16, 16, 4], strides = [1, 1, 1]} : vector<20x20x4xf32> to vector<16x16x4xf32>
    %148 = vector.shape_cast %147 : vector<16x16x4xf32> to vector<256x4xf32>
    %c4_119 = arith.constant 4 : index
    %c4_120 = arith.constant 4 : index
    %c0_121 = arith.constant 0 : index
    %c0_122 = arith.constant 0 : index
    %149 = vector.load %arg2[%c4_119, %c4_120, %c0_121, %c0_122] : memref<5x5x4x8xf32, #tpu.memory_space<vmem>>, vector<1x1x4x8xf32>
    %150 = vector.shape_cast %149 : vector<1x1x4x8xf32> to vector<4x8xf32>
    %cst_123 = arith.constant dense<0.000000e+00> : vector<256x8xf32>
    %151 = tpu.matmul %148, %150, %cst_123 {dimension_numbers = #tpu.dot_dimension_numbers<[1], [0], [0], [1], [0, 0, 1, 1], [], []>} : vector<256x4xf32>, vector<4x8xf32>, vector<256x8xf32> -> vector<256x8xf32>
    %152 = arith.addf %146, %151 : vector<256x8xf32>
    %c0_124 = arith.constant 0 : index
    %c0_125 = arith.constant 0 : index
    %153 = vector.load %arg3[%c0_124, %c0_125] : memref<1x8xf32, #tpu.memory_space<vmem>>, vector<1x8xf32>
    %154 = vector.broadcast %153 : vector<1x8xf32> to vector<256x8xf32>
    %155 = arith.addf %152, %154 : vector<256x8xf32>
    %cst_126 = arith.constant 0.000000e+00 : f32
    %156 = vector.broadcast %cst_126 : f32 to vector<256x8xf32>
    %157 = arith.maximumf %155, %156 : vector<256x8xf32>
    %158 = vector.shape_cast %157 : vector<256x8xf32> to vector<1x16x16x8xf32>
    %c0_127 = arith.constant 0 : index
    %c0_128 = arith.constant 0 : index
    %c0_129 = arith.constant 0 : index
    %c0_130 = arith.constant 0 : index
    %159 = vector.load %arg4[%c0_127, %c0_128, %c0_129, %c0_130] : memref<1x16x16x8xf32, #tpu.memory_space<vmem>>, vector<1x16x16x8xf32>
    tpu.vector_store %arg4[%c0_127, %c0_128, %c0_129, %c0_130], %158 {strides = array<i32>} : memref<1x16x16x8xf32, #tpu.memory_space<vmem>>, vector<1x16x16x8xf32>,
    return
  }
  func.func @transform_0(%arg0: i32) -> (i32, i32, i32, i32) {
    %c0_i32 = arith.constant 0 : i32
    %c0_i32_0 = arith.constant 0 : i32
    %c0_i32_1 = arith.constant 0 : i32
    %c0_i32_2 = arith.constant 0 : i32
    return %arg0, %c0_i32, %c0_i32_0, %c0_i32_1 : i32, i32, i32, i32
  }
  func.func @transform_1(%arg0: i32) -> (i32, i32, i32, i32) {
    %c0_i32 = arith.constant 0 : i32
    %c0_i32_0 = arith.constant 0 : i32
    %c0_i32_1 = arith.constant 0 : i32
    %c0_i32_2 = arith.constant 0 : i32
    %c0_i32_3 = arith.constant 0 : i32
    return %c0_i32, %c0_i32_0, %c0_i32_1, %c0_i32_2 : i32, i32, i32, i32
  }
  func.func @transform_2(%arg0: i32) -> (i32, i32) {
    %c0_i32 = arith.constant 0 : i32
    %c0_i32_0 = arith.constant 0 : i32
    %c0_i32_1 = arith.constant 0 : i32
    return %c0_i32, %c0_i32_0 : i32, i32
  }
  func.func @transform_3(%arg0: i32) -> (i32, i32, i32, i32) {
    %c0_i32 = arith.constant 0 : i32
    %c0_i32_0 = arith.constant 0 : i32
    %c0_i32_1 = arith.constant 0 : i32
    %c0_i32_2 = arith.constant 0 : i32
    return %arg0, %c0_i32, %c0_i32_0, %c0_i32_1 : i32, i32, i32, i32
  }
}

module attributes {stable_mosaic.version = 11 : i64} {
  func.func @_fused_point_pool_kernel(%arg0: i32, %arg1: memref<1x16x16x4xf32, #tpu.memory_space<vmem>>, %arg2: memref<4x16xf32, #tpu.memory_space<vmem>>, %arg3: memref<1x16xf32, #tpu.memory_space<vmem>>, %arg4: memref<4x8xf32, #tpu.memory_space<vmem>>, %arg5: memref<1x8xf32, #tpu.memory_space<vmem>>, %arg6: memref<1x16x16x8xf32, #tpu.memory_space<vmem>>, %arg7: memref<1x18x18x4xf32, #tpu.memory_space<vmem>>, %arg8: memref<1x20x20x4xf32, #tpu.memory_space<vmem>>, %arg9: memref<1x16x16x8xf32, #tpu.memory_space<vmem>>) attributes {dimension_semantics = [#tpu.dimension_semantics<parallel>], iteration_bounds = array<i64: 2>, scalar_prefetch = 0 : i64, scratch_operands = 0 : i64, tpu.core_type = #tpu.core_type<tc>, window_params = [{transform_indices = @transform_0, window_bounds = array<i64: 1, 16, 16, 4>}, {pipeline_mode = #tpu.pipeline_mode<synchronous>, transform_indices = @transform_1, window_bounds = array<i64: 4, 16>}, {pipeline_mode = #tpu.pipeline_mode<synchronous>, transform_indices = @transform_2, window_bounds = array<i64: 1, 16>}, {pipeline_mode = #tpu.pipeline_mode<synchronous>, transform_indices = @transform_3, window_bounds = array<i64: 4, 8>}, {pipeline_mode = #tpu.pipeline_mode<synchronous>, transform_indices = @transform_4, window_bounds = array<i64: 1, 8>}, {transform_indices = @transform_5, window_bounds = array<i64: 1, 16, 16, 8>}, {transform_indices = @transform_6, window_bounds = array<i64: 1, 18, 18, 4>}, {transform_indices = @transform_7, window_bounds = array<i64: 1, 20, 20, 4>}, {transform_indices = @transform_8, window_bounds = array<i64: 1, 16, 16, 8>}]} {
    %c0 = arith.constant 0 : index
    %c0_0 = arith.constant 0 : index
    %c0_1 = arith.constant 0 : index
    %c0_2 = arith.constant 0 : index
    %0 = vector.load %arg1[%c0, %c0_0, %c0_1, %c0_2] : memref<1x16x16x4xf32, #tpu.memory_space<vmem>>, vector<1x16x16x4xf32>
    %1 = vector.shape_cast %0 : vector<1x16x16x4xf32> to vector<16x16x4xf32>
    %2 = vector.shape_cast %1 : vector<16x16x4xf32> to vector<256x4xf32>
    %c0_3 = arith.constant 0 : index
    %c0_4 = arith.constant 0 : index
    %3 = vector.load %arg2[%c0_3, %c0_4] : memref<4x16xf32, #tpu.memory_space<vmem>>, vector<4x16xf32>
    %cst = arith.constant dense<0.000000e+00> : vector<256x16xf32>
    %4 = tpu.matmul %2, %3, %cst {dimension_numbers = #tpu.dot_dimension_numbers<[1], [0], [0], [1], [0, 0, 1, 1], [], []>} : vector<256x4xf32>, vector<4x16xf32>, vector<256x16xf32> -> vector<256x16xf32>
    %c0_5 = arith.constant 0 : index
    %c0_6 = arith.constant 0 : index
    %5 = vector.load %arg3[%c0_5, %c0_6] : memref<1x16xf32, #tpu.memory_space<vmem>>, vector<1x16xf32>
    %6 = vector.broadcast %5 : vector<1x16xf32> to vector<256x16xf32>
    %7 = arith.addf %4, %6 : vector<256x16xf32>
    %cst_7 = arith.constant 0.000000e+00 : f32
    %8 = vector.broadcast %cst_7 : f32 to vector<256x16xf32>
    %9 = arith.maximumf %7, %8 : vector<256x16xf32>
    %10 = vector.extract_strided_slice %9 {offsets = [0, 0], sizes = [256, 8], strides = [1, 1]} : vector<256x16xf32> to vector<256x8xf32>
    %11 = vector.extract_strided_slice %9 {offsets = [0, 8], sizes = [256, 4], strides = [1, 1]} : vector<256x16xf32> to vector<256x4xf32>
    %12 = vector.extract_strided_slice %9 {offsets = [0, 12], sizes = [256, 4], strides = [1, 1]} : vector<256x16xf32> to vector<256x4xf32>
    %13 = vector.shape_cast %10 : vector<256x8xf32> to vector<1x16x16x8xf32>
    %c0_8 = arith.constant 0 : index
    %c0_9 = arith.constant 0 : index
    %c0_10 = arith.constant 0 : index
    %c0_11 = arith.constant 0 : index
    %14 = vector.load %arg6[%c0_8, %c0_9, %c0_10, %c0_11] : memref<1x16x16x8xf32, #tpu.memory_space<vmem>>, vector<1x16x16x8xf32>
    tpu.vector_store %arg6[%c0_8, %c0_9, %c0_10, %c0_11], %13 {strides = array<i32>} : memref<1x16x16x8xf32, #tpu.memory_space<vmem>>, vector<1x16x16x8xf32>,
    %cst_12 = arith.constant 0.000000e+00 : f32
    %15 = vector.broadcast %cst_12 : f32 to vector<1x18x18x4xf32>
    %c0_13 = arith.constant 0 : index
    %c0_14 = arith.constant 0 : index
    %c0_15 = arith.constant 0 : index
    %c0_16 = arith.constant 0 : index
    %16 = vector.load %arg7[%c0_13, %c0_14, %c0_15, %c0_16] : memref<1x18x18x4xf32, #tpu.memory_space<vmem>>, vector<1x18x18x4xf32>
    tpu.vector_store %arg7[%c0_13, %c0_14, %c0_15, %c0_16], %15 {strides = array<i32>} : memref<1x18x18x4xf32, #tpu.memory_space<vmem>>, vector<1x18x18x4xf32>,
    %17 = vector.shape_cast %11 : vector<256x4xf32> to vector<1x16x16x4xf32>
    %c0_17 = arith.constant 0 : index
    %c1 = arith.constant 1 : index
    %c1_18 = arith.constant 1 : index
    %c0_19 = arith.constant 0 : index
    %18 = vector.load %arg7[%c0_17, %c1, %c1_18, %c0_19] : memref<1x18x18x4xf32, #tpu.memory_space<vmem>>, vector<1x16x16x4xf32>
    tpu.vector_store %arg7[%c0_17, %c1, %c1_18, %c0_19], %17 {strides = array<i32>} : memref<1x18x18x4xf32, #tpu.memory_space<vmem>>, vector<1x16x16x4xf32>,
    %cst_20 = arith.constant 0.000000e+00 : f32
    %19 = vector.broadcast %cst_20 : f32 to vector<1x20x20x4xf32>
    %c0_21 = arith.constant 0 : index
    %c0_22 = arith.constant 0 : index
    %c0_23 = arith.constant 0 : index
    %c0_24 = arith.constant 0 : index
    %20 = vector.load %arg8[%c0_21, %c0_22, %c0_23, %c0_24] : memref<1x20x20x4xf32, #tpu.memory_space<vmem>>, vector<1x20x20x4xf32>
    tpu.vector_store %arg8[%c0_21, %c0_22, %c0_23, %c0_24], %19 {strides = array<i32>} : memref<1x20x20x4xf32, #tpu.memory_space<vmem>>, vector<1x20x20x4xf32>,
    %21 = vector.shape_cast %12 : vector<256x4xf32> to vector<1x16x16x4xf32>
    %c0_25 = arith.constant 0 : index
    %c2 = arith.constant 2 : index
    %c2_26 = arith.constant 2 : index
    %c0_27 = arith.constant 0 : index
    %22 = vector.load %arg8[%c0_25, %c2, %c2_26, %c0_27] : memref<1x20x20x4xf32, #tpu.memory_space<vmem>>, vector<1x16x16x4xf32>
    tpu.vector_store %arg8[%c0_25, %c2, %c2_26, %c0_27], %21 {strides = array<i32>} : memref<1x20x20x4xf32, #tpu.memory_space<vmem>>, vector<1x16x16x4xf32>,
    %23 = vector.extract_strided_slice %1 {offsets = [0, 0, 0], sizes = [1, 16, 4], strides = [1, 1, 1]} : vector<16x16x4xf32> to vector<1x16x4xf32>
    %24 = vector.extract_strided_slice %1 {offsets = [0, 0, 0], sizes = [15, 16, 4], strides = [1, 1, 1]} : vector<16x16x4xf32> to vector<15x16x4xf32>
    %25 = tpu.concatenate %23, %24 in 0 : vector<1x16x4xf32>, vector<15x16x4xf32> -> vector<16x16x4xf32>
    %26 = vector.extract_strided_slice %1 {offsets = [1, 0, 0], sizes = [15, 16, 4], strides = [1, 1, 1]} : vector<16x16x4xf32> to vector<15x16x4xf32>
    %27 = vector.extract_strided_slice %1 {offsets = [15, 0, 0], sizes = [1, 16, 4], strides = [1, 1, 1]} : vector<16x16x4xf32> to vector<1x16x4xf32>
    %28 = tpu.concatenate %26, %27 in 0 : vector<15x16x4xf32>, vector<1x16x4xf32> -> vector<16x16x4xf32>
    %29 = arith.maximumf %25, %1 : vector<16x16x4xf32>
    %30 = arith.maximumf %29, %28 : vector<16x16x4xf32>
    %31 = vector.extract_strided_slice %30 {offsets = [0, 0, 0], sizes = [16, 1, 4], strides = [1, 1, 1]} : vector<16x16x4xf32> to vector<16x1x4xf32>
    %32 = vector.extract_strided_slice %30 {offsets = [0, 0, 0], sizes = [16, 15, 4], strides = [1, 1, 1]} : vector<16x16x4xf32> to vector<16x15x4xf32>
    %33 = tpu.concatenate %31, %32 in 1 : vector<16x1x4xf32>, vector<16x15x4xf32> -> vector<16x16x4xf32>
    %34 = vector.extract_strided_slice %30 {offsets = [0, 1, 0], sizes = [16, 15, 4], strides = [1, 1, 1]} : vector<16x16x4xf32> to vector<16x15x4xf32>
    %35 = vector.extract_strided_slice %30 {offsets = [0, 15, 0], sizes = [16, 1, 4], strides = [1, 1, 1]} : vector<16x16x4xf32> to vector<16x1x4xf32>
    %36 = tpu.concatenate %34, %35 in 1 : vector<16x15x4xf32>, vector<16x1x4xf32> -> vector<16x16x4xf32>
    %37 = arith.maximumf %33, %30 : vector<16x16x4xf32>
    %38 = arith.maximumf %37, %36 : vector<16x16x4xf32>
    %39 = vector.shape_cast %38 : vector<16x16x4xf32> to vector<256x4xf32>
    %c0_28 = arith.constant 0 : index
    %c0_29 = arith.constant 0 : index
    %40 = vector.load %arg4[%c0_28, %c0_29] : memref<4x8xf32, #tpu.memory_space<vmem>>, vector<4x8xf32>
    %cst_30 = arith.constant dense<0.000000e+00> : vector<256x8xf32>
    %41 = tpu.matmul %39, %40, %cst_30 {dimension_numbers = #tpu.dot_dimension_numbers<[1], [0], [0], [1], [0, 0, 1, 1], [], []>} : vector<256x4xf32>, vector<4x8xf32>, vector<256x8xf32> -> vector<256x8xf32>
    %c0_31 = arith.constant 0 : index
    %c0_32 = arith.constant 0 : index
    %42 = vector.load %arg5[%c0_31, %c0_32] : memref<1x8xf32, #tpu.memory_space<vmem>>, vector<1x8xf32>
    %43 = vector.broadcast %42 : vector<1x8xf32> to vector<256x8xf32>
    %44 = arith.addf %41, %43 : vector<256x8xf32>
    %cst_33 = arith.constant 0.000000e+00 : f32
    %45 = vector.broadcast %cst_33 : f32 to vector<256x8xf32>
    %46 = arith.maximumf %44, %45 : vector<256x8xf32>
    %47 = vector.shape_cast %46 : vector<256x8xf32> to vector<1x16x16x8xf32>
    %c0_34 = arith.constant 0 : index
    %c0_35 = arith.constant 0 : index
    %c0_36 = arith.constant 0 : index
    %c0_37 = arith.constant 0 : index
    %48 = vector.load %arg9[%c0_34, %c0_35, %c0_36, %c0_37] : memref<1x16x16x8xf32, #tpu.memory_space<vmem>>, vector<1x16x16x8xf32>
    tpu.vector_store %arg9[%c0_34, %c0_35, %c0_36, %c0_37], %47 {strides = array<i32>} : memref<1x16x16x8xf32, #tpu.memory_space<vmem>>, vector<1x16x16x8xf32>,
    return
  }
  func.func @transform_0(%arg0: i32) -> (i32, i32, i32, i32) {
    %c0_i32 = arith.constant 0 : i32
    %c0_i32_0 = arith.constant 0 : i32
    %c0_i32_1 = arith.constant 0 : i32
    %c0_i32_2 = arith.constant 0 : i32
    return %arg0, %c0_i32, %c0_i32_0, %c0_i32_1 : i32, i32, i32, i32
  }
  func.func @transform_1(%arg0: i32) -> (i32, i32) {
    %c0_i32 = arith.constant 0 : i32
    %c0_i32_0 = arith.constant 0 : i32
    %c0_i32_1 = arith.constant 0 : i32
    return %c0_i32, %c0_i32_0 : i32, i32
  }
  func.func @transform_2(%arg0: i32) -> (i32, i32) {
    %c0_i32 = arith.constant 0 : i32
    %c0_i32_0 = arith.constant 0 : i32
    %c0_i32_1 = arith.constant 0 : i32
    return %c0_i32, %c0_i32_0 : i32, i32
  }
  func.func @transform_3(%arg0: i32) -> (i32, i32) {
    %c0_i32 = arith.constant 0 : i32
    %c0_i32_0 = arith.constant 0 : i32
    %c0_i32_1 = arith.constant 0 : i32
    return %c0_i32, %c0_i32_0 : i32, i32
  }
  func.func @transform_4(%arg0: i32) -> (i32, i32) {
    %c0_i32 = arith.constant 0 : i32
    %c0_i32_0 = arith.constant 0 : i32
    %c0_i32_1 = arith.constant 0 : i32
    return %c0_i32, %c0_i32_0 : i32, i32
  }
  func.func @transform_5(%arg0: i32) -> (i32, i32, i32, i32) {
    %c0_i32 = arith.constant 0 : i32
    %c0_i32_0 = arith.constant 0 : i32
    %c0_i32_1 = arith.constant 0 : i32
    %c0_i32_2 = arith.constant 0 : i32
    return %arg0, %c0_i32, %c0_i32_0, %c0_i32_1 : i32, i32, i32, i32
  }
  func.func @transform_6(%arg0: i32) -> (i32, i32, i32, i32) {
    %c0_i32 = arith.constant 0 : i32
    %c0_i32_0 = arith.constant 0 : i32
    %c0_i32_1 = arith.constant 0 : i32
    %c0_i32_2 = arith.constant 0 : i32
    return %arg0, %c0_i32, %c0_i32_0, %c0_i32_1 : i32, i32, i32, i32
  }
  func.func @transform_7(%arg0: i32) -> (i32, i32, i32, i32) {
    %c0_i32 = arith.constant 0 : i32
    %c0_i32_0 = arith.constant 0 : i32
    %c0_i32_1 = arith.constant 0 : i32
    %c0_i32_2 = arith.constant 0 : i32
    return %arg0, %c0_i32, %c0_i32_0, %c0_i32_1 : i32, i32, i32, i32
  }
  func.func @transform_8(%arg0: i32) -> (i32, i32, i32, i32) {
    %c0_i32 = arith.constant 0 : i32
    %c0_i32_0 = arith.constant 0 : i32
    %c0_i32_1 = arith.constant 0 : i32
    %c0_i32_2 = arith.constant 0 : i32
    return %arg0, %c0_i32, %c0_i32_0, %c0_i32_1 : i32, i32, i32, i32
  }
}

</mosaic_0001>

<bundles_post_ra>
// kernel: a_call__.3
= control target key start
LH: loop header
LB: loop body
LE: loop exit
PB: predicated region body
PF: predicated region fallthrough
CT: control target
= control target key end

     0   :  { %s2465_s27 = smov 0   ;;  %s3736_s0 = inlined_call_operand.vmem [shape: f32[2,16,16,4], index: 0, kind: input, shape index: {}]   ;;  %s3737_s1 = inlined_call_operand.vmem [shape: f32[4,16], index: 1, kind: input, shape index: {}]   ;;  %s3738_s2 = inlined_call_operand.vmem [shape: f32[1,16], index: 2, kind: input, shape index: {}]   ;;  %s3739_s3 = inlined_call_operand.vmem [shape: f32[4,8], index: 3, kind: input, shape index: {}]   ;;  %s3740_s4 = inlined_call_operand.vmem [shape: f32[1,8], index: 4, kind: input, shape index: {}]   ;;  %s3741_s5 = inlined_call_operand.vmem [shape: f32[2,16,16,8], index: 5, kind: output, shape index: {0}]   ;;  %s3742_s6 = inlined_call_operand.vmem [shape: f32[2,18,18,4], index: 6, kind: output, shape index: {1}]   ;;  %s3743_s7 = inlined_call_operand.vmem [shape: f32[2,20,20,4], index: 7, kind: output, shape index: {2}]   ;;  %s3744_s8 = inlined_call_operand.vmem [shape: f32[2,16,16,8], index: 8, kind: output, shape index: {3}]  }
   0x1 LB: > { %s2080_s28 = sadd.s32 4294967295, %s2415_s27   ;;  %p2084_p0 = scmp.ge.s32.totalorder %s2415_s27, 1  ;;  %s2415_s27 = sphi %s2465_s27, %s19_s27  }
   0x2   : > { %p269_p1 = scmp.lt.s32.totalorder %s2415_s27, 3 }
   0x4   : > { %p270_p2 = pnand %p2084_p0, %p269_p1 }
   0x5   : > { %v375_v0 = vld [vmem:[%s3737_s1] sm:$0xf] (!%p270_p2)  ;;  %vm480_vm0 = vcmask (!%p270_p2), 1043456   ;;  %p318_p3 = scmp.lt.s32.totalorder (!%p270_p2), %s2080_s28, 1  ;;  %vm383_vm1 = vcmask (!%p270_p2), 31744   ;;  %vm1272_vm2 = vcmask (!%p270_p2), 1040384  }
   0x6   : > { %273 = sbr.rel (%p270_p2) target bundleno = 474 (0x1da), region = 40  ;;  %2296 = vmatprep.subr.msk.mxu0 (!%p270_p2), %vm480_vm0, %v375_v0  ;;  %v1530_v1 = vld [vmem:[%s3739_s3] sm:$0xf] (!%p270_p2)  ;;  %vm1369_vm3 = vcmask (!%p270_p2), 1046528   ;;  %vm992_vm4 = vcmask (!%p270_p2), 27648   ;;  %vm776_vm5 = vcmask (!%p270_p2), 25600  }
   0x7   : > { %2297 = vmatpush3.msk.msra.mxu0 (!%p270_p2), %vm480_vm0, %v375_v0  ;;  %2346 = vmatprep.subr.msk.mxu1 (!%p270_p2), %vm480_vm0, %v1530_v1  ;;  %vm741_vm6 = vcmask (!%p270_p2), 64512   ;;  %s2418_s29 = smov (!%p270_p2), 116   ;;  %s2419_s30 = smov (!%p270_p2), 120  }
   0x8   : > { %2347 = vmatpush3.msk.msra.mxu1 (!%p270_p2), %vm480_vm0, %v1530_v1 }
   0xd   : > { %s3746_s28 = smov (!%p318_p3, %s2080_s28), 1 }
   0xe   : > { %s2482_s11 = sshll.u32 %s3746_s28, 8  ;;  %s2396_s15 = smul.u32 432, %s3746_s28 }
   0xf   : > { %s2488_s14 = scalar_lea.vmem %s3736_s0, %s2482_s11  ;;  %s2397_s16 = smul.u32 480, %s3746_s28 }
  0x10   : > { %v343_v2 = vld [vmem:[%s2488_s14] sm:$0xff]  ;;  %v345_v3 = vld [vmem:[%s2488_s14 + $0x10] sm:$0xff]  ;;  %v344_v4 = vld [vmem:[%s2488_s14 + $0x8] sm:$0xff]  ;;  %s2868_s19 = scalar_lea.vmem %s3742_s6, %s2396_s15  ;;  %s3226_s28 = scalar_lea.vmem %s3741_s5, %s2482_s11 }
  0x11   : > { %2298 = vmatprep.mubr.msk.f32.mxu0 %vm383_vm1, %v343_v2  ;;  %v346_v5 = vld [vmem:[%s2488_s14 + $0x18] sm:$0xff]  ;;  %v347_v6 = vld [vmem:[%s2488_s14 + $0x20] sm:$0xff]  ;;  %v348_v7 = vld [vmem:[%s2488_s14 + $0x28] sm:$0xff]  ;;  %v1180_v9 = vmax.f32 %v343_v2, %v345_v3  ;;  %s2873_s22 = scalar_lea.vmem %s3743_s7, %s2397_s16 }
  0x12   : > { %2299 = vmatmul.mubr.msk.f32.vlgmr.msra.gmra.mrb[0].mxu0 %vm383_vm1, %v344_v4  ;;  %v349_v8 = vld [vmem:[%s2488_s14 + $0x30] sm:$0xff]  ;;  %v1182_v10 = vmax.f32 %v345_v3, %v347_v6  ;;  %v350_v11 = vld [vmem:[%s2488_s14 + $0x38] sm:$0xff]  ;;  %v351_v12 = vld [vmem:[%s2488_s14 + $0x40] sm:$0xff]  ;;  %v1183_v13 = vmax.f32 %v346_v5, %v348_v7  ;;  %v1181_v19 = vmax.f32 %v344_v4, %v346_v5 }
  0x13   : > { %2301 = vmatprep.mubr.msk.f32.mxu0 %vm383_vm1, %v345_v3  ;;  %v1184_v14 = vmax.f32 %v347_v6, %v349_v8  ;;  %v1185_v15 = vmax.f32 %v348_v7, %v350_v11  ;;  %v1186_v16 = vmax.f32 %v349_v8, %v351_v12  ;;  %v352_v17 = vld [vmem:[%s2488_s14 + $0x48] sm:$0xff]  ;;  %v353_v18 = vld [vmem:[%s2488_s14 + $0x50] sm:$0xff]  ;;  %v354_v22 = vld [vmem:[%s2488_s14 + $0x58] sm:$0xff]  ;;  %v1210_v23 = vmax.f32 %v1180_v9, %v347_v6 }
  0x14   : > { %v1187_v20 = vmax.f32 %v350_v11, %v352_v17  ;;  %v1188_v21 = vmax.f32 %v351_v12, %v353_v18  ;;  %v1189_v24 = vmax.f32 %v352_v17, %v354_v22  ;;  %v2510_v25 = vld [vmem:[%s2488_s14 + $0x60] sm:$0xff]  ;;  %v2513_v26 = vld [vmem:[%s2488_s14 + $0x68] sm:$0xff]  ;;  %v1211_v27 = vmax.f32 %v1181_v19, %v348_v7  ;;  %v2529_v35 = vld [vmem:[%s2488_s14 + $0x70] sm:$0xff] }
  0x15   : > { %v2515_v28 = vmax.f32 %v1182_v10, %v349_v8  ;;  %v1190_v29 = vmax.f32 %v353_v18, %v2510_v25  ;;  %v1191_v30 = vmax.f32 %v354_v22, %v2513_v26  ;;  %v2520_v31 = vmax.f32 %v1183_v13, %v350_v11  ;;  %v2540_v39 = vld [vmem:[%s2488_s14 + $0x78] sm:$0xff]  ;;  %v2543_v40 = vld [vmem:[%s2488_s14 + $0x80] sm:$0xff] }
  0x16   : > { %2302 = vmatmul.mubr.msk.f32.gmra.mrb[2].mxu0 %vm383_vm1, %v346_v5  ;;  %v2522_v32 = vmax.f32 %v1184_v14, %v351_v12  ;;  %v2524_v33 = vmax.f32 %v1185_v15, %v352_v17  ;;  %v2526_v34 = vmax.f32 %v1186_v16, %v353_v18  ;;  %v2532_v36 = vmax.f32 %v1187_v20, %v354_v22 }
  0x17   : > { %2304 = vmatprep.mubr.msk.f32.mxu0 %vm383_vm1, %v347_v6  ;;  %v2535_v37 = vmax.f32 %v1188_v21, %v2510_v25  ;;  %v1192_v38 = vmax.f32 %v2510_v25, %v2529_v35  ;;  %v1273_v41 = vrot.slane %v1180_v9, 7  ;;  %v2546_v42 = vmax.f32 %v1189_v24, %v2513_v26 }
  0x18   : > { %v1193_v43 = vmax.f32 %v2513_v26, %v2540_v39  ;;  %v1194_v44 = vmax.f32 %v2529_v35, %v2543_v40  ;;  %v1370_v45 = vrot.slane %v1180_v9, 1  ;;  %v2553_v46 = vmax.f32 %v1190_v29, %v2529_v35 }
  0x19   : > { %v2556_v47 = vmax.f32 %v1191_v30, %v2540_v39  ;;  %v1353_v48 = vsel %vm1272_vm2, %v1180_v9, %v1273_v41  ;;  %v1371_v49 = vrot.slane %v1181_v19, 1  ;;  %v1274_v51 = vrot.slane %v1181_v19, 7 }
  0x1a   : > { %2305 = vmatmul.mubr.msk.f32.gmra.mrb[4].mxu0 %vm383_vm1, %v348_v7  ;;  %v1466_v50 = vmax.f32 %v1353_v48, %v1180_v9  ;;  %v1276_v52 = vrot.slane %v1210_v23, 7  ;;  %v1373_v53 = vrot.slane %v1210_v23, 1  ;;  %v1374_v56 = vrot.slane %v1211_v27, 1 }
  0x1b   : > { %2307 = vmatprep.mubr.msk.f32.mxu0 %vm383_vm1, %v349_v8  ;;  %v1372_v54 = vsel %vm1369_vm3, %v1370_v45, %v1371_v49  ;;  %v1450_v55 = vsel %vm1369_vm3, %v1371_v49, %v1181_v19  ;;  %v1277_v57 = vrot.slane %v1211_v27, 7  ;;  %v1275_v59 = vsel %vm1272_vm2, %v1273_v41, %v1274_v51 }
  0x1c   : > { %v1498_v58 = vmax.f32 %v1466_v50, %v1372_v54  ;;  %v1354_v60 = vsel %vm1272_vm2, %v1210_v23, %v1276_v52  ;;  %v1279_v61 = vrot.slane %v2515_v28, 7  ;;  %v1467_v62 = vmax.f32 %v1275_v59, %v1181_v19 }
  0x1d   : > { %v1375_v63 = vsel %vm1369_vm3, %v1373_v53, %v1374_v56  ;;  %v1468_v0 = vmax.f32 %v1354_v60, %v1210_v23  ;;  %v1278_v1 = vsel %vm1272_vm2, %v1276_v52, %v1277_v57  ;;  %v1451_v2 = vsel %vm1369_vm3, %v1374_v56, %v1211_v27  ;;  %v2638_v57 = vld [vmem:[%s2488_s14 + $0x90] sm:$0xff] }
  0x1e   : > { %2308 = vmatmul.mubr.msk.f32.gmra.mrb[6].mxu0 %vm383_vm1, %v350_v11  ;;  %2348 = vmatprep.mubr.msk.f32.mxu1 %vm383_vm1, %v1498_v58  ;;  %v1469_v3 = vmax.f32 %v1278_v1, %v1211_v27  ;;  %v1355_v4 = vsel %vm1272_vm2, %v2515_v28, %v1279_v61  ;;  %v1376_v5 = vrot.slane %v2515_v28, 1  ;;  %v1499_v6 = vmax.f32 %v1467_v62, %v1450_v55 }
  0x1f   : > { %2310 = vmatprep.mubr.msk.f32.mxu0 %vm383_vm1, %v351_v12  ;;  %v1500_v7 = vmax.f32 %v1468_v0, %v1375_v63  ;;  %v1377_v8 = vrot.slane %v2520_v31, 1  ;;  %v1470_v9 = vmax.f32 %v1355_v4, %v2515_v28  ;;  %v1280_v11 = vrot.slane %v2520_v31, 7 }
  0x20   : > { %v1501_v10 = vmax.f32 %v1469_v3, %v1451_v2  ;;  %v1282_v12 = vrot.slane %v2522_v32, 7  ;;  %v1379_v13 = vrot.slane %v2522_v32, 1  ;;  %2349 = vmatmul.mubr.msk.f32.vlgmr.msra.gmra.mrb[0].mxu1 %vm383_vm1, %v1499_v6  ;;  %v1380_v16 = vrot.slane %v2524_v33, 1  ;;  %v2673_v3 = vld [vmem:[%s2488_s14 + $0xa0] sm:$0xff] }
  0x21   : > { %v1378_v14 = vsel %vm1369_vm3, %v1376_v5, %v1377_v8  ;;  %v1452_v15 = vsel %vm1369_vm3, %v1377_v8, %v2520_v31  ;;  %2351 = vmatprep.mubr.msk.f32.mxu1 %vm383_vm1, %v1500_v7  ;;  %v1281_v19 = vsel %vm1272_vm2, %v1279_v61, %v1280_v11  ;;  %v1285_v21 = vrot.slane %v2526_v34, 7 }
  0x22   : > { %2311 = vmatmul.mubr.msk.f32.gmra.mrb[8].mxu0 %vm383_vm1, %v352_v17  ;;  %v1283_v17 = vrot.slane %v2524_v33, 7  ;;  %v1356_v20 = vsel %vm1272_vm2, %v2522_v32, %v1282_v12  ;;  %v1471_v23 = vmax.f32 %v1281_v19, %v2520_v31  ;;  %v1381_v24 = vsel %vm1369_vm3, %v1379_v13, %v1380_v16 }
  0x23   : > { %2313 = vmatprep.mubr.msk.f32.mxu0 %vm383_vm1, %v353_v18  ;;  %v1502_v18 = vmax.f32 %v1470_v9, %v1378_v14  ;;  %v1472_v27 = vmax.f32 %v1356_v20, %v2522_v32  ;;  %v1453_v30 = vsel %vm1369_vm3, %v1380_v16, %v2524_v33  ;;  %v1357_v41 = vsel %vm1272_vm2, %v2526_v34, %v1285_v21 }
  0x24   : > { %v1284_v28 = vsel %vm1272_vm2, %v1282_v12, %v1283_v17  ;;  %v1382_v45 = vrot.slane %v2526_v34, 1  ;;  %2352 = vmatmul.mubr.msk.f32.gmra.mrb[2].mxu1 %vm383_vm1, %v1501_v10  ;;  %v1503_v31 = vmax.f32 %v1471_v23, %v1452_v15  ;;  %v1383_v49 = vrot.slane %v2532_v36, 1  ;;  %v2691_v12 = vld [vmem:[%s2488_s14 + $0xa8] sm:$0xff]  ;;  %v2699_v15 = vld [vmem:[%s2488_s14 + $0xb0] sm:$0xff] }
  0x25   : > { %v1504_v48 = vmax.f32 %v1472_v27, %v1381_v24  ;;  %v1473_v32 = vmax.f32 %v1284_v28, %v2524_v33  ;;  %2354 = vmatprep.mubr.msk.f32.mxu1 %vm383_vm1, %v1502_v18  ;;  %v1474_v50 = vmax.f32 %v1357_v41, %v2526_v34  ;;  %v1286_v51 = vrot.slane %v2532_v36, 7  ;;  %v2714_v24 = vld [vmem:[%s2488_s14 + $0xb8] sm:$0xff] }
  0x26   : > { %2314 = vmatmul.mubr.msk.f32.gmra.mrb[10].mxu0 %vm383_vm1, %v354_v22  ;;  %v2597_v22 = vld [vmem:[%s2488_s14 + $0x88] sm:$0xff]  ;;  %v1288_v52 = vrot.slane %v2535_v37, 7  ;;  %v1385_v53 = vrot.slane %v2535_v37, 1  ;;  %v2626_v33 = vmax.f32 %v1192_v38, %v2543_v40  ;;  %v1384_v54 = vsel %vm1369_vm3, %v1382_v45, %v1383_v49 }
  0x27   : > { %2316 = vmatprep.mubr.msk.f32.mxu0 %vm383_vm1, %v2510_v25  ;;  %v1195_v29 = vmax.f32 %v2540_v39, %v2597_v22  ;;  %v1386_v55 = vrot.slane %v2546_v42, 1  ;;  %v1289_v34 = vrot.slane %v2546_v42, 7  ;;  %v2635_v56 = vmax.f32 %v1193_v43, %v2597_v22 }
  0x28   : > { %v1287_v58 = vsel %vm1272_vm2, %v1285_v21, %v1286_v51  ;;  %v1358_v25 = vsel %vm1272_vm2, %v2535_v37, %v1288_v52  ;;  %v1291_v38 = vrot.slane %v2553_v46, 7  ;;  %2355 = vmatmul.mubr.msk.f32.gmra.mrb[4].mxu1 %vm383_vm1, %v1503_v31  ;;  %v1505_v59 = vmax.f32 %v1473_v32, %v1453_v30  ;;  %v2722_v30 = vld [vmem:[%s2488_s14 + $0xc0] sm:$0xff] }
  0x29   : > { %v1454_v60 = vsel %vm1369_vm3, %v1383_v49, %v2532_v36  ;;  %2357 = vmatprep.mubr.msk.f32.mxu1 %vm383_vm1, %v1504_v48  ;;  %v1506_v43 = vmax.f32 %v1474_v50, %v1384_v54  ;;  %v1387_v61 = vsel %vm1369_vm3, %v1385_v53, %v1386_v55  ;;  %v1290_v62 = vsel %vm1272_vm2, %v1288_v52, %v1289_v34  ;;  %v2736_v50 = vld [vmem:[%s2488_s14 + $0xc8] sm:$0xff]  ;;  %v2740_v52 = vld [vmem:[%s2488_s14 + $0xd0] sm:$0xff]  ;;  %v2752_v34 = vld [vmem:[%s2488_s14 + $0xd8] sm:$0xff] }
  0x2a   : > { %2317 = vmatmul.mubr.msk.f32.gmra.mrb[12].mxu0 %vm383_vm1, %v2513_v26  ;;  %v1475_v26 = vmax.f32 %v1287_v58, %v2532_v36  ;;  %v2660_v36 = vmax.f32 %v1194_v44, %v2638_v57  ;;  %v1359_v63 = vsel %vm1272_vm2, %v2553_v46, %v1291_v38  ;;  %v1388_v0 = vrot.slane %v2553_v46, 1 }
  0x2b   : > { %2319 = vmatprep.mubr.msk.f32.mxu0 %vm383_vm1, %v2529_v35  ;;  %v1389_v1 = vrot.slane %v2556_v47, 1  ;;  %v1292_v4 = vrot.slane %v2556_v47, 7  ;;  %v1294_v35 = vrot.slane %v2626_v33, 7  ;;  %v1455_v6 = vsel %vm1369_vm3, %v1386_v55, %v2546_v42 }
  0x2c   : > { %2358 = vmatmul.mubr.msk.f32.gmra.mrb[6].mxu1 %vm383_vm1, %v1505_v59  ;;  %v1507_v44 = vmax.f32 %v1475_v26, %v1454_v60  ;;  %v1477_v7 = vmax.f32 %v1290_v62, %v2546_v42  ;;  %v1478_v8 = vmax.f32 %v1359_v63, %v2553_v46  ;;  %v1391_v10 = vrot.slane %v2626_v33, 1  ;;  %v2775_v59 = vld [vmem:[%s2488_s14 + $0xf8] sm:$0xff] }
  0x2d   : > { %2360 = vmatprep.mubr.msk.f32.mxu1 %vm383_vm1, %v1506_v43  ;;  %v1293_v9 = vsel %vm1272_vm2, %v1291_v38, %v1292_v4  ;;  %v1295_v11 = vrot.slane %v2635_v56, 7  ;;  %v1390_v42 = vsel %vm1369_vm3, %v1388_v0, %v1389_v1  ;;  %v1360_v13 = vsel %vm1272_vm2, %v2626_v33, %v1294_v35  ;;  %v2767_v38 = vld [vmem:[%s2488_s14 + $0xf0] sm:$0xff] }
  0x2e   : > { %2320 = vmatmul.mubr.msk.f32.gmra.mrb[14].mxu0 %vm383_vm1, %v2540_v39  ;;  %v1476_v39 = vmax.f32 %v1358_v25, %v2535_v37  ;;  %v2663_v37 = vld [vmem:[%s2488_s14 + $0x98] sm:$0xff]  ;;  %v1392_v14 = vrot.slane %v2635_v56, 1  ;;  %v1297_v46 = vrot.slane %v2660_v36, 7  ;;  %v1509_v16 = vmax.f32 %v1477_v7, %v1455_v6  ;;  %v2764_v25 = vld [vmem:[%s2488_s14 + $0xe8] sm:$0xff] }
  0x2f   : > { %2322 = vmatprep.mubr.msk.f32.mxu0 %vm383_vm1, %v2543_v40  ;;  %v2670_v2 = vmax.f32 %v1195_v29, %v2663_v37  ;;  %v1456_v17 = vsel %vm1369_vm3, %v1389_v1, %v2556_v47  ;;  %v1479_v18 = vmax.f32 %v1293_v9, %v2556_v47  ;;  %v1510_v19 = vmax.f32 %v1478_v8, %v1390_v42 }
  0x30   : > { %v1508_v5 = vmax.f32 %v1476_v39, %v1387_v61  ;;  %2361 = vmatmul.mubr.msk.f32.gmra.mrb[8].mxu1 %vm383_vm1, %v1507_v44  ;;  %v1480_v20 = vmax.f32 %v1360_v13, %v2626_v33  ;;  %v1296_v21 = vsel %vm1272_vm2, %v1294_v35, %v1295_v11  ;;  %v1393_v47 = vsel %vm1369_vm3, %v1391_v10, %v1392_v14 }
  0x31   : > { %v1298_v23 = vrot.slane %v2670_v2, 7  ;;  %v1361_v27 = vsel %vm1272_vm2, %v2660_v36, %v1297_v46  ;;  %v1394_v28 = vrot.slane %v2660_v36, 1  ;;  %v1395_v29 = vrot.slane %v2670_v2, 1 }
  0x32   : > { %2323 = vmatmul.mubr.msk.f32.gmra.mrb[16].mxu0 %vm383_vm1, %v2597_v22  ;;  %2363 = vmatprep.mubr.msk.f32.mxu1 %vm383_vm1, %v1508_v5  ;;  %v1511_v41 = vmax.f32 %v1479_v18, %v1456_v17  ;;  %v1457_v45 = vsel %vm1369_vm3, %v1392_v14, %v2635_v56  ;;  %v1481_v31 = vmax.f32 %v1296_v21, %v2635_v56  ;;  %v2755_v56 = vld [vmem:[%s2488_s14 + $0xe0] sm:$0xff]  ;;  %s3382_s14 = scalar_lea.vmem %s3744_s8, %s2482_s11 }
  0x33   : > { %2325 = vmatprep.mubr.msk.f32.mxu0 %vm383_vm1, %v2638_v57  ;;  %v1512_v48 = vmax.f32 %v1480_v20, %v1393_v47  ;;  %v1482_v32 = vmax.f32 %v1361_v27, %v2660_v36  ;;  %v1299_v49 = vsel %vm1272_vm2, %v1297_v46, %v1298_v23  ;;  %v1396_v51 = vsel %vm1369_vm3, %v1394_v28, %v1395_v29 }
  0x34   : > { %2364 = vmatmul.mubr.msk.f32.gmra.mrb[10].mxu1 %vm383_vm1, %v1509_v16  ;;  %v1513_v53 = vmax.f32 %v1481_v31, %v1457_v45  ;;  %v1483_v33 = vmax.f32 %v1299_v49, %v2670_v2  ;;  %v1458_v55 = vsel %vm1369_vm3, %v1395_v29, %v2670_v2  ;;  %v1196_v60 = vmax.f32 %v2543_v40, %v2638_v57 }
  0x35   : > { %2366 = vmatprep.mubr.msk.f32.mxu1 %vm383_vm1, %v1510_v19  ;;  %v1514_v54 = vmax.f32 %v1482_v32, %v1396_v51  ;;  %v1197_v26 = vmax.f32 %v2597_v22, %v2663_v37  ;;  %v1198_v39 = vmax.f32 %v2638_v57, %v2673_v3  ;;  %v1199_v61 = vmax.f32 %v2663_v37, %v2691_v12 }
  0x36   : > { %2326 = vmatmul.mubr.msk.f32.gmra.mrb[18].mxu0 %vm383_vm1, %v2663_v37  ;;  %v1515_v58 = vmax.f32 %v1483_v33, %v1458_v55  ;;  %v1226_v43 = vmax.f32 %v1196_v60, %v2673_v3  ;;  %v1200_v36 = vmax.f32 %v2673_v3, %v2699_v15  ;;  %v1201_v40 = vmax.f32 %v2691_v12, %v2714_v24 }
  0x37   : > { %2328 = vmatprep.mubr.msk.f32.mxu0 %vm383_vm1, %v2673_v3  ;;  %v1227_v62 = vmax.f32 %v1197_v26, %v2691_v12  ;;  %v1228_v63 = vmax.f32 %v1198_v39, %v2699_v15  ;;  %v1229_v22 = vmax.f32 %v1199_v61, %v2714_v24  ;;  %v1202_v37 = vmax.f32 %v2699_v15, %v2722_v30 }
  0x38   : > { %2367 = vmatmul.mubr.msk.f32.gmra.mrb[12].mxu1 %vm383_vm1, %v1511_v41  ;;  %v1300_v0 = vrot.slane %v1226_v43, 7  ;;  %v1397_v2 = vrot.slane %v1226_v43, 1  ;;  %v1203_v35 = vmax.f32 %v2714_v24, %v2736_v50  ;;  %v1230_v5 = vmax.f32 %v1200_v36, %v2722_v30 }
  0x39   : > { %2369 = vmatprep.mubr.msk.f32.mxu1 %vm383_vm1, %v1512_v48  ;;  %v1301_v1 = vrot.slane %v1227_v62, 7  ;;  %v1398_v4 = vrot.slane %v1227_v62, 1  ;;  %v1303_v8 = vrot.slane %v1228_v63, 7  ;;  %v1231_v9 = vmax.f32 %v1201_v40, %v2736_v50 }
  0x3a   : > { %2329 = vmatmul.mubr.msk.f32.gmra.mrb[20].mxu0 %vm383_vm1, %v2691_v12  ;;  %v1362_v57 = vsel %vm1272_vm2, %v1226_v43, %v1300_v0  ;;  %v1304_v12 = vrot.slane %v1229_v22, 7  ;;  %v1400_v14 = vrot.slane %v1228_v63, 1  ;;  %v1401_v46 = vrot.slane %v1229_v22, 1 }
  0x3b   : > { %2331 = vmatprep.mubr.msk.f32.mxu0 %vm383_vm1, %v2699_v15  ;;  %v1484_v3 = vmax.f32 %v1362_v57, %v1226_v43  ;;  %v1302_v44 = vsel %vm1272_vm2, %v1300_v0, %v1301_v1  ;;  %v1399_v6 = vsel %vm1369_vm3, %v1397_v2, %v1398_v4  ;;  %v1459_v11 = vsel %vm1369_vm3, %v1398_v4, %v1227_v62 }
  0x3c   : > { %2370 = vmatmul.mubr.msk.f32.gmra.mrb[14].mxu1 %vm383_vm1, %v1513_v53  ;;  %v1485_v7 = vmax.f32 %v1302_v44, %v1227_v62  ;;  %v1363_v13 = vsel %vm1272_vm2, %v1228_v63, %v1303_v8  ;;  %v1204_v15 = vmax.f32 %v2722_v30, %v2740_v52  ;;  %v1232_v16 = vmax.f32 %v1202_v37, %v2740_v52 }
  0x3d   : > { %2372 = vmatprep.mubr.msk.f32.mxu1 %vm383_vm1, %v1514_v54  ;;  %v1516_v10 = vmax.f32 %v1484_v3, %v1399_v6  ;;  %v1486_v17 = vmax.f32 %v1363_v13, %v1228_v63  ;;  %v1305_v18 = vsel %vm1272_vm2, %v1303_v8, %v1304_v12  ;;  %v1205_v19 = vmax.f32 %v2736_v50, %v2752_v34 }
  0x3e   : > { %2332 = vmatmul.mubr.msk.f32.gmra.mrb[22].mxu0 %vm383_vm1, %v2714_v24  ;;  %v1517_v42 = vmax.f32 %v1485_v7, %v1459_v11  ;;  %v1402_v20 = vsel %vm1369_vm3, %v1400_v14, %v1401_v46  ;;  %v1487_v21 = vmax.f32 %v1305_v18, %v1229_v22  ;;  %v1306_v23 = vrot.slane %v1230_v5, 7 }
  0x3f   : > { %2334 = vmatprep.mubr.msk.f32.mxu0 %vm383_vm1, %v2722_v30  ;;  %v1233_v24 = vmax.f32 %v1203_v35, %v2752_v34  ;;  %v1518_v47 = vmax.f32 %v1486_v17, %v1402_v20  ;;  %v1460_v27 = vsel %vm1369_vm3, %v1401_v46, %v1229_v22  ;;  %v1307_v28 = vrot.slane %v1231_v9, 7 }
  0x40   : > { %2373 = vmatmul.mubr.msk.f32.gmra.mrb[16].mxu1 %vm383_vm1, %v1515_v58  ;;  %v1519_v29 = vmax.f32 %v1487_v21, %v1460_v27  ;;  %v1364_v30 = vsel %vm1272_vm2, %v1230_v5, %v1306_v23  ;;  %v1403_v41 = vrot.slane %v1230_v5, 1  ;;  %v1404_v45 = vrot.slane %v1231_v9, 1 }
  0x41   : > { %2375 = vmatprep.mubr.msk.f32.mxu1 %vm383_vm1, %v1516_v10  ;;  %v1206_v31 = vmax.f32 %v2740_v52, %v2755_v56  ;;  %v1207_v48 = vmax.f32 %v2752_v34, %v2764_v25  ;;  %v1488_v32 = vmax.f32 %v1364_v30, %v1230_v5  ;;  %v1308_v49 = vsel %vm1272_vm2, %v1306_v23, %v1307_v28 }
  0x42   : > { %2335 = vmatmul.mubr.msk.f32.gmra.mrb[24].mxu0 %vm383_vm1, %v2736_v50  ;;  %v1234_v50 = vmax.f32 %v1204_v15, %v2755_v56  ;;  %v1405_v51 = vsel %vm1369_vm3, %v1403_v41, %v1404_v45  ;;  %v1489_v53 = vmax.f32 %v1308_v49, %v1231_v9  ;;  %v1309_v33 = vrot.slane %v1232_v16, 7 }
  0x43   : > { %2337 = vmatprep.mubr.msk.f32.mxu0 %vm383_vm1, %v2740_v52  ;;  %v1235_v54 = vmax.f32 %v1205_v19, %v2764_v25  ;;  %v1520_v55 = vmax.f32 %v1488_v32, %v1405_v51  ;;  %v1461_v52 = vsel %vm1369_vm3, %v1404_v45, %v1231_v9  ;;  %v1310_v58 = vrot.slane %v1233_v24, 7  ;;  %v3220_v32 = vld [vmem:[%s3738_s2] ss:$0 sm:$0xff] }
  0x44   : > { %2376 = vmatmul.mubr.msk.f32.gmra.mrb[18].mxu1 %vm383_vm1, %v1517_v42  ;;  %v1365_v60 = vsel %vm1272_vm2, %v1232_v16, %v1309_v33  ;;  %v1406_v26 = vrot.slane %v1232_v16, 1  ;;  %v1407_v39 = vrot.slane %v1233_v24, 1  ;;  %v1208_v43 = vmax.f32 %v2755_v56, %v2767_v38 }
  0x45   : > { %2378 = vmatprep.mubr.msk.f32.mxu1 %vm383_vm1, %v1518_v47  ;;  %v1209_v61 = vmax.f32 %v2764_v25, %v2775_v59  ;;  %v1490_v62 = vmax.f32 %v1365_v60, %v1232_v16  ;;  %v1311_v36 = vsel %vm1272_vm2, %v1309_v33, %v1310_v58  ;;  %v1236_v63 = vmax.f32 %v1206_v31, %v2767_v38 }
  0x46   : > { %2338 = vmatmul.mubr.msk.f32.gmra.mrb[26].mxu0 %vm383_vm1, %v2752_v34  ;;  %v1521_v34 = vmax.f32 %v1489_v53, %v1461_v52  ;;  %v1408_v0 = vsel %vm1369_vm3, %v1406_v26, %v1407_v39  ;;  %v1491_v40 = vmax.f32 %v1311_v36, %v1233_v24  ;;  %v1312_v22 = vrot.slane %v1234_v50, 7 }
  0x47   : > { %2340 = vmatprep.mubr.msk.f32.mxu0 %vm383_vm1, %v2755_v56  ;;  %v1237_v1 = vmax.f32 %v1207_v48, %v2775_v59  ;;  %v1522_v57 = vmax.f32 %v1490_v62, %v1408_v0  ;;  %v1462_v56 = vsel %vm1369_vm3, %v1407_v39, %v1233_v24  ;;  %v1313_v2 = vrot.slane %v1235_v54, 7 }
  0x48   : > { %2379 = vmatmul.mubr.msk.f32.gmra.mrb[20].mxu1 %vm383_vm1, %v1519_v29  ;;  %v1366_v4 = vsel %vm1272_vm2, %v1234_v50, %v1312_v22  ;;  %v1409_v37 = vrot.slane %v1234_v50, 1  ;;  %v1410_v35 = vrot.slane %v1235_v54, 1  ;;  %v1238_v5 = vmax.f32 %v1208_v43, %v2767_v38 }
  0x49   : > { %2381 = vmatprep.mubr.msk.f32.mxu1 %vm383_vm1, %v1520_v55  ;;  %v1492_v3 = vmax.f32 %v1366_v4, %v1234_v50  ;;  %v1314_v44 = vsel %vm1272_vm2, %v1312_v22, %v1313_v2  ;;  %v1315_v8 = vrot.slane %v1236_v63, 7  ;;  %v1239_v9 = vmax.f32 %v1209_v61, %v2775_v59 }
  0x4a   : > { %2341 = vmatmul.mubr.msk.f32.gmra.mrb[28].mxu0 %vm383_vm1, %v2764_v25  ;;  %v1523_v25 = vmax.f32 %v1491_v40, %v1462_v56  ;;  %v1411_v6 = vsel %vm1369_vm3, %v1409_v37, %v1410_v35  ;;  %v1493_v7 = vmax.f32 %v1314_v44, %v1235_v54  ;;  %v1463_v11 = vsel %vm1369_vm3, %v1410_v35, %v1235_v54 }
  0x4b   : > { %2343 = vmatprep.mubr.msk.f32.mxu0 %vm383_vm1, %v2767_v38  ;;  %v1524_v10 = vmax.f32 %v1492_v3, %v1411_v6  ;;  %v1316_v12 = vrot.slane %v1237_v1, 7  ;;  %v1367_v13 = vsel %vm1272_vm2, %v1236_v63, %v1315_v8  ;;  %v1412_v14 = vrot.slane %v1236_v63, 1 }
  0x4c   : > { %2382 = vmatmul.mubr.msk.f32.gmra.mrb[22].mxu1 %vm383_vm1, %v1521_v34  ;;  %v1525_v42 = vmax.f32 %v1493_v7, %v1463_v11  ;;  %v1413_v46 = vrot.slane %v1237_v1, 1  ;;  %v1494_v38 = vmax.f32 %v1367_v13, %v1236_v63  ;;  %v1319_v20 = vrot.slane %v1239_v9, 7 }
  0x4d   : > { %2384 = vmatprep.mubr.msk.f32.mxu1 %vm383_vm1, %v1522_v57  ;;  %v1317_v15 = vsel %vm1272_vm2, %v1315_v8, %v1316_v12  ;;  %v1415_v24 = vrot.slane %v1238_v5, 1  ;;  %v1416_v47 = vrot.slane %v1239_v9, 1  ;;  %v2417_v48 = vmov 0.0  }
  0x4e   : > { %2344 = vmatmul.mubr.msk.f32.gmra.mrb[30].mxu0 %vm383_vm1, %v2775_v59  ;;  %v1414_v16 = vsel %vm1369_vm3, %v1412_v14, %v1413_v46  ;;  %v1495_v17 = vmax.f32 %v1317_v15, %v1237_v1  ;;  %v1318_v59 = vrot.slane %v1238_v5, 7  ;;  %v1464_v19 = vsel %vm1369_vm3, %v1413_v46, %v1237_v1  ;;  %993 = vst.msk [vmem:[%s2873_s22 + $0x10] sm:$0xf] %vm992_vm4, %v2417_v48 }
  0x4f   : > { %v1526_v18 = vmax.f32 %v1494_v38, %v1414_v16  ;;  %v1417_v29 = vsel %vm1369_vm3, %v1415_v24, %v1416_v47  ;;  %v1465_v45 = vsel %vm1369_vm3, %v1416_v47, %v1239_v9  ;;  %996 = vst.msk [vmem:[%s2873_s22 + $0x28] sm:$0xf] %vm992_vm4, %v2417_v48  ;;  %999 = vst.msk [vmem:[%s2873_s22 + $0x40] sm:$0xf] %vm992_vm4, %v2417_v48 }
  0x50   : > { %2385 = vmatmul.mubr.msk.f32.gmra.mrb[24].mxu1 %vm383_vm1, %v1523_v25  ;;  %v1527_v21 = vmax.f32 %v1495_v17, %v1464_v19  ;;  %v1368_v23 = vsel %vm1272_vm2, %v1238_v5, %v1318_v59  ;;  %v1320_v28 = vsel %vm1272_vm2, %v1318_v59, %v1319_v20  ;;  %998 = vst.msk [vmem:[%s2873_s22 + $0x38] sm:$0xff] %vm383_vm1, %v2417_v48  ;;  %774 = vst.msk [vmem:[%s2868_s19] sm:$0xff] %vm383_vm1, %v2417_v48 }
  0x51   : > { %2387 = vmatprep.mubr.msk.f32.mxu1 %vm383_vm1, %v1524_v10  ;;  %v1496_v27 = vmax.f32 %v1368_v23, %v1238_v5  ;;  %v1497_v30 = vmax.f32 %v1320_v28, %v1239_v9  ;;  %1047 = vst.msk [vmem:[%s2873_s22 + $0x1c0] sm:$0xf] %vm992_vm4, %v2417_v48  ;;  %1050 = vst.msk [vmem:[%s2873_s22 + $0x1d8] sm:$0xf] %vm992_vm4, %v2417_v48 }
  0x52   : > { %775 = vst.msk [vmem:[%s2868_s19 + $0x8] sm:$0xff] %vm383_vm1, %v2417_v48  ;;  %778 = vst.msk [vmem:[%s2868_s19 + $0x18] sm:$0xff] %vm383_vm1, %v2417_v48 }
  0x53   : > { %v1528_v41 = vmax.f32 %v1496_v27, %v1417_v29  ;;  %v1529_v31 = vmax.f32 %v1497_v30, %v1465_v45  ;;  %779 = vst.msk [vmem:[%s2868_s19 + $0x20] sm:$0xff] %vm383_vm1, %v2417_v48  ;;  %781 = vst.msk [vmem:[%s2868_s19 + $0x30] sm:$0xff] %vm383_vm1, %v2417_v48 }
  0x54   : > { %2388 = vmatmul.mubr.msk.f32.gmra.mrb[26].mxu1 %vm383_vm1, %v1525_v42  ;;  %782 = vst.msk [vmem:[%s2868_s19 + $0x38] sm:$0xff] %vm383_vm1, %v2417_v48  ;;  %784 = vst.msk [vmem:[%s2868_s19 + $0x48] sm:$0xff] %vm383_vm1, %v2417_v48 }
  0x55   : > { %2390 = vmatprep.mubr.msk.f32.mxu1 %vm383_vm1, %v1526_v18  ;;  %785 = vst.msk [vmem:[%s2868_s19 + $0x50] sm:$0xff] %vm383_vm1, %v2417_v48  ;;  %787 = vst.msk [vmem:[%s2868_s19 + $0x60] sm:$0xff] %vm383_vm1, %v2417_v48 }
  0x56   : > { %788 = vst.msk [vmem:[%s2868_s19 + $0x68] sm:$0xff] %vm383_vm1, %v2417_v48  ;;  %790 = vst.msk [vmem:[%s2868_s19 + $0x78] sm:$0xff] %vm383_vm1, %v2417_v48 }
  0x57   : > { %791 = vst.msk [vmem:[%s2868_s19 + $0x80] sm:$0xff] %vm383_vm1, %v2417_v48  ;;  %793 = vst.msk [vmem:[%s2868_s19 + $0x90] sm:$0xff] %vm383_vm1, %v2417_v48 }
  0x58   : > { %2391 = vmatmul.mubr.msk.f32.gmra.mrb[28].mxu1 %vm383_vm1, %v1527_v21  ;;  %794 = vst.msk [vmem:[%s2868_s19 + $0x98] sm:$0xff] %vm383_vm1, %v2417_v48  ;;  %796 = vst.msk [vmem:[%s2868_s19 + $0xa8] sm:$0xff] %vm383_vm1, %v2417_v48 }
  0x59   : > { %2393 = vmatprep.mubr.msk.f32.mxu1 %vm383_vm1, %v1528_v41  ;;  %797 = vst.msk [vmem:[%s2868_s19 + $0xb0] sm:$0xff] %vm383_vm1, %v2417_v48  ;;  %799 = vst.msk [vmem:[%s2868_s19 + $0xc0] sm:$0xff] %vm383_vm1, %v2417_v48 }
  0x5a   : > { %800 = vst.msk [vmem:[%s2868_s19 + $0xc8] sm:$0xff] %vm383_vm1, %v2417_v48  ;;  %802 = vst.msk [vmem:[%s2868_s19 + $0xd8] sm:$0xff] %vm383_vm1, %v2417_v48 }
  0x5b   : > { %803 = vst.msk [vmem:[%s2868_s19 + $0xe0] sm:$0xff] %vm383_vm1, %v2417_v48  ;;  %805 = vst.msk [vmem:[%s2868_s19 + $0xf0] sm:$0xff] %vm383_vm1, %v2417_v48 }
  0x5c   : > { %2394 = vmatmul.mubr.msk.f32.gmra.mrb[30].mxu1 %vm383_vm1, %v1529_v31  ;;  %806 = vst.msk [vmem:[%s2868_s19 + $0xf8] sm:$0xff] %vm383_vm1, %v2417_v48  ;;  %808 = vst.msk [vmem:[%s2868_s19 + $0x108] sm:$0xff] %vm383_vm1, %v2417_v48 }
  0x5d   : > { %809 = vst.msk [vmem:[%s2868_s19 + $0x110] sm:$0xff] %vm383_vm1, %v2417_v48  ;;  %811 = vst.msk [vmem:[%s2868_s19 + $0x120] sm:$0xff] %vm383_vm1, %v2417_v48 }
  0x5e   : > { %812 = vst.msk [vmem:[%s2868_s19 + $0x128] sm:$0xff] %vm383_vm1, %v2417_v48  ;;  %814 = vst.msk [vmem:[%s2868_s19 + $0x138] sm:$0xff] %vm383_vm1, %v2417_v48 }
  0x5f   : > { %815 = vst.msk [vmem:[%s2868_s19 + $0x140] sm:$0xff] %vm383_vm1, %v2417_v48  ;;  %817 = vst.msk [vmem:[%s2868_s19 + $0x150] sm:$0xff] %vm383_vm1, %v2417_v48 }
  0x60   : > { %818 = vst.msk [vmem:[%s2868_s19 + $0x158] sm:$0xff] %vm383_vm1, %v2417_v48  ;;  %820 = vst.msk [vmem:[%s2868_s19 + $0x168] sm:$0xff] %vm383_vm1, %v2417_v48 }
  0x61   : > { %821 = vst.msk [vmem:[%s2868_s19 + $0x170] sm:$0xff] %vm383_vm1, %v2417_v48  ;;  %823 = vst.msk [vmem:[%s2868_s19 + $0x180] sm:$0xff] %vm383_vm1, %v2417_v48 }
  0x62   : > { %824 = vst.msk [vmem:[%s2868_s19 + $0x188] sm:$0xff] %vm383_vm1, %v2417_v48  ;;  %826 = vst.msk [vmem:[%s2868_s19 + $0x198] sm:$0xff] %vm383_vm1, %v2417_v48 }
  0x63   : > { %827 = vst.msk [vmem:[%s2868_s19 + $0x1a0] sm:$0xff] %vm383_vm1, %v2417_v48  ;;  %990 = vst.msk [vmem:[%s2873_s22] sm:$0xff] %vm383_vm1, %v2417_v48 }
  0x64   : > { %991 = vst.msk [vmem:[%s2873_s22 + $0x8] sm:$0xff] %vm383_vm1, %v2417_v48  ;;  %994 = vst.msk [vmem:[%s2873_s22 + $0x18] sm:$0xff] %vm383_vm1, %v2417_v48 }
  0x65   : > { %995 = vst.msk [vmem:[%s2873_s22 + $0x20] sm:$0xff] %vm383_vm1, %v2417_v48  ;;  %997 = vst.msk [vmem:[%s2873_s22 + $0x30] sm:$0xff] %vm383_vm1, %v2417_v48 }
  0x66   : > { %1000 = vst.msk [vmem:[%s2873_s22 + $0x48] sm:$0xff] %vm383_vm1, %v2417_v48  ;;  %1001 = vst.msk [vmem:[%s2873_s22 + $0x50] sm:$0xff] %vm383_vm1, %v2417_v48 }
  0x67   : > { %1002 = vst.msk [vmem:[%s2873_s22 + $0x58] sm:$0xf] %vm992_vm4, %v2417_v48  ;;  %1005 = vst.msk [vmem:[%s2873_s22 + $0x70] sm:$0xf] %vm992_vm4, %v2417_v48 }
  0x68   : > { %1003 = vst.msk [vmem:[%s2873_s22 + $0x60] sm:$0xff] %vm383_vm1, %v2417_v48  ;;  %1004 = vst.msk [vmem:[%s2873_s22 + $0x68] sm:$0xff] %vm383_vm1, %v2417_v48 }
  0x69   : > { %1006 = vst.msk [vmem:[%s2873_s22 + $0x78] sm:$0xff] %vm383_vm1, %v2417_v48  ;;  %1007 = vst.msk [vmem:[%s2873_s22 + $0x80] sm:$0xff] %vm383_vm1, %v2417_v48 }
  0x6a   : > { %1008 = vst.msk [vmem:[%s2873_s22 + $0x88] sm:$0xf] %vm992_vm4, %v2417_v48  ;;  %1011 = vst.msk [vmem:[%s2873_s22 + $0xa0] sm:$0xf] %vm992_vm4, %v2417_v48 }
  0x6b   : > { %1009 = vst.msk [vmem:[%s2873_s22 + $0x90] sm:$0xff] %vm383_vm1, %v2417_v48  ;;  %1010 = vst.msk [vmem:[%s2873_s22 + $0x98] sm:$0xff] %vm383_vm1, %v2417_v48 }
  0x6c   : > { %1012 = vst.msk [vmem:[%s2873_s22 + $0xa8] sm:$0xff] %vm383_vm1, %v2417_v48  ;;  %1013 = vst.msk [vmem:[%s2873_s22 + $0xb0] sm:$0xff] %vm383_vm1, %v2417_v48 }
  0x6d   : > { %1014 = vst.msk [vmem:[%s2873_s22 + $0xb8] sm:$0xf] %vm992_vm4, %v2417_v48  ;;  %1017 = vst.msk [vmem:[%s2873_s22 + $0xd0] sm:$0xf] %vm992_vm4, %v2417_v48 }
  0x6e   : > { %1015 = vst.msk [vmem:[%s2873_s22 + $0xc0] sm:$0xff] %vm383_vm1, %v2417_v48  ;;  %1016 = vst.msk [vmem:[%s2873_s22 + $0xc8] sm:$0xff] %vm383_vm1, %v2417_v48 }
  0x6f   : > { %1018 = vst.msk [vmem:[%s2873_s22 + $0xd8] sm:$0xff] %vm383_vm1, %v2417_v48  ;;  %1019 = vst.msk [vmem:[%s2873_s22 + $0xe0] sm:$0xff] %vm383_vm1, %v2417_v48 }
  0x70   : > { %1020 = vst.msk [vmem:[%s2873_s22 + $0xe8] sm:$0xf] %vm992_vm4, %v2417_v48  ;;  %1023 = vst.msk [vmem:[%s2873_s22 + $0x100] sm:$0xf] %vm992_vm4, %v2417_v48 }
  0x71   : > { %1021 = vst.msk [vmem:[%s2873_s22 + $0xf0] sm:$0xff] %vm383_vm1, %v2417_v48  ;;  %1022 = vst.msk [vmem:[%s2873_s22 + $0xf8] sm:$0xff] %vm383_vm1, %v2417_v48 }
  0x72   : > { %1024 = vst.msk [vmem:[%s2873_s22 + $0x108] sm:$0xff] %vm383_vm1, %v2417_v48  ;;  %1025 = vst.msk [vmem:[%s2873_s22 + $0x110] sm:$0xff] %vm383_vm1, %v2417_v48 }
  0x73   : > { %1026 = vst.msk [vmem:[%s2873_s22 + $0x118] sm:$0xf] %vm992_vm4, %v2417_v48  ;;  %1029 = vst.msk [vmem:[%s2873_s22 + $0x130] sm:$0xf] %vm992_vm4, %v2417_v48 }
  0x74   : > { %1027 = vst.msk [vmem:[%s2873_s22 + $0x120] sm:$0xff] %vm383_vm1, %v2417_v48  ;;  %1028 = vst.msk [vmem:[%s2873_s22 + $0x128] sm:$0xff] %vm383_vm1, %v2417_v48 }
  0x75   : > { %1030 = vst.msk [vmem:[%s2873_s22 + $0x138] sm:$0xff] %vm383_vm1, %v2417_v48  ;;  %1031 = vst.msk [vmem:[%s2873_s22 + $0x140] sm:$0xff] %vm383_vm1, %v2417_v48 }
  0x76   : > { %1032 = vst.msk [vmem:[%s2873_s22 + $0x148] sm:$0xf] %vm992_vm4, %v2417_v48  ;;  %1035 = vst.msk [vmem:[%s2873_s22 + $0x160] sm:$0xf] %vm992_vm4, %v2417_v48 }
  0x77   : > { %1033 = vst.msk [vmem:[%s2873_s22 + $0x150] sm:$0xff] %vm383_vm1, %v2417_v48  ;;  %1034 = vst.msk [vmem:[%s2873_s22 + $0x158] sm:$0xff] %vm383_vm1, %v2417_v48 }
  0x78   : > { %1036 = vst.msk [vmem:[%s2873_s22 + $0x168] sm:$0xff] %vm383_vm1, %v2417_v48  ;;  %1037 = vst.msk [vmem:[%s2873_s22 + $0x170] sm:$0xff] %vm383_vm1, %v2417_v48 }
  0x79   : > { %1038 = vst.msk [vmem:[%s2873_s22 + $0x178] sm:$0xf] %vm992_vm4, %v2417_v48  ;;  %1041 = vst.msk [vmem:[%s2873_s22 + $0x190] sm:$0xf] %vm992_vm4, %v2417_v48 }
  0x7a   : > { %1039 = vst.msk [vmem:[%s2873_s22 + $0x180] sm:$0xff] %vm383_vm1, %v2417_v48  ;;  %1040 = vst.msk [vmem:[%s2873_s22 + $0x188] sm:$0xff] %vm383_vm1, %v2417_v48 }
  0x7b   : > { %1042 = vst.msk [vmem:[%s2873_s22 + $0x198] sm:$0xff] %vm383_vm1, %v2417_v48  ;;  %1043 = vst.msk [vmem:[%s2873_s22 + $0x1a0] sm:$0xff] %vm383_vm1, %v2417_v48 }
  0x7c   : > { %1044 = vst.msk [vmem:[%s2873_s22 + $0x1a8] sm:$0xf] %vm992_vm4, %v2417_v48 }
  0x7d   : > { %1045 = vst.msk [vmem:[%s2873_s22 + $0x1b0] sm:$0xff] %vm383_vm1, %v2417_v48  ;;  %1046 = vst.msk [vmem:[%s2873_s22 + $0x1b8] sm:$0xff] %vm383_vm1, %v2417_v48 }
  0x7e   : > { %1048 = vst.msk [vmem:[%s2873_s22 + $0x1c8] sm:$0xff] %vm383_vm1, %v2417_v48  ;;  %1049 = vst.msk [vmem:[%s2873_s22 + $0x1d0] sm:$0xff] %vm383_vm1, %v2417_v48 }
  0x7f   : > { %777 = vst.msk [vmem:[%s2868_s19 + $0x10] sm:$0x3] %vm776_vm5, %v2417_v48  ;;  %780 = vst.msk [vmem:[%s2868_s19 + $0x28] sm:$0x3] %vm776_vm5, %v2417_v48 }
  0x80   : > { %828 = vst.msk [vmem:[%s2868_s19 + $0x1a8] sm:$0x3] %vm776_vm5, %v2417_v48  ;;  %783 = vst.msk [vmem:[%s2868_s19 + $0x40] sm:$0x3] %vm776_vm5, %v2417_v48 }
  0x81   : > { %786 = vst.msk [vmem:[%s2868_s19 + $0x58] sm:$0x3] %vm776_vm5, %v2417_v48  ;;  %789 = vst.msk [vmem:[%s2868_s19 + $0x70] sm:$0x3] %vm776_vm5, %v2417_v48 }
  0x82   : > { %792 = vst.msk [vmem:[%s2868_s19 + $0x88] sm:$0x3] %vm776_vm5, %v2417_v48  ;;  %795 = vst.msk [vmem:[%s2868_s19 + $0xa0] sm:$0x3] %vm776_vm5, %v2417_v48 }
  0x83   : > { %798 = vst.msk [vmem:[%s2868_s19 + $0xb8] sm:$0x3] %vm776_vm5, %v2417_v48  ;;  %801 = vst.msk [vmem:[%s2868_s19 + $0xd0] sm:$0x3] %vm776_vm5, %v2417_v48 }
  0x84   : > { %804 = vst.msk [vmem:[%s2868_s19 + $0xe8] sm:$0x3] %vm776_vm5, %v2417_v48  ;;  %807 = vst.msk [vmem:[%s2868_s19 + $0x100] sm:$0x3] %vm776_vm5, %v2417_v48 }
  0x85   : > { %810 = vst.msk [vmem:[%s2868_s19 + $0x118] sm:$0x3] %vm776_vm5, %v2417_v48  ;;  %813 = vst.msk [vmem:[%s2868_s19 + $0x130] sm:$0x3] %vm776_vm5, %v2417_v48 }
  0x86   : > { %816 = vst.msk [vmem:[%s2868_s19 + $0x148] sm:$0x3] %vm776_vm5, %v2417_v48  ;;  %819 = vst.msk [vmem:[%s2868_s19 + $0x160] sm:$0x3] %vm776_vm5, %v2417_v48 }
  0x87   : > { %822 = vst.msk [vmem:[%s2868_s19 + $0x178] sm:$0x3] %vm776_vm5, %v2417_v48  ;;  %825 = vst.msk [vmem:[%s2868_s19 + $0x190] sm:$0x3] %vm776_vm5, %v2417_v48 }
  0xe5   : > { %v2300_v49 = vpop.f32.mrb[0].mxu0 }
  0xe6   : > { %v556_v50 = vadd.f32 %v2300_v49, %v3220_v32  ;;  %v550_v51 = vpop.f32.mrb[1].mxu0 }
  0xe7   : > { %v551_v53 = vadd.f32 %v3220_v32, %v550_v51 }
  0xe8   : > { %v710_v33 = vmax.f32 %v556_v50, 0.0 }
  0xe9   : > { %v709_v54 = vmax.f32 %v551_v53, 0.0  ;;  %v2303_v55 = vpop.f32.mrb[2].mxu0 }
  0xea   : > { %743 = vst.msk [vmem:[%s3226_s28 + $0x8] sm:$0xff] %vm741_vm6, %v710_v33  ;;  %v566_v52 = vadd.f32 %v2303_v55, %v3220_v32  ;;  %1053 = vrot.lane.b32.xlu1 %v710_v33, %s2418_s29  ;;  %863 = vrot.lane.b32.xlu0 %v710_v33, %s2419_s30  ;;  %v560_v58 = vpop.f32.mrb[3].mxu0 }
  0xeb   : > { %742 = vst.msk [vmem:[%s3226_s28] sm:$0xff] %vm741_vm6, %v709_v54  ;;  %v561_v34 = vadd.f32 %v3220_v32, %v560_v58 }
  0xec   : > { %v712_v60 = vmax.f32 %v566_v52, 0.0 }
  0xed   : > { %v711_v26 = vmax.f32 %v561_v34, 0.0  ;;  %v2306_v39 = vpop.f32.mrb[4].mxu0 }
  0xee   : > { %745 = vst.msk [vmem:[%s3226_s28 + $0x18] sm:$0xff] %vm741_vm6, %v712_v60  ;;  %867 = vrot.lane.b32.xlu1 %v712_v60, %s2419_s30  ;;  %861 = vrot.lane.b32.xlu0 %v709_v54, %s2419_s30  ;;  %v576_v43 = vadd.f32 %v2306_v39, %v3220_v32  ;;  %v570_v61 = vpop.f32.mrb[5].mxu0 }
  0xef   : > { %744 = vst.msk [vmem:[%s3226_s28 + $0x10] sm:$0xff] %vm741_vm6, %v711_v26  ;;  %v571_v62 = vadd.f32 %v3220_v32, %v570_v61 }
  0xf0   : > { %v714_v36 = vmax.f32 %v576_v43, 0.0 }
  0xf1   : > { %v713_v63 = vmax.f32 %v571_v62, 0.0  ;;  %v2309_v0 = vpop.f32.mrb[6].mxu0 }
  0xf2   : > { %1057 = vrot.lane.b32.xlu1 %v712_v60, %s2418_s29  ;;  %1051 = vrot.lane.b32.xlu0 %v709_v54, %s2418_s29  ;;  %747 = vst.msk [vmem:[%s3226_s28 + $0x28] sm:$0xff] %vm741_vm6, %v714_v36  ;;  %v586_v40 = vadd.f32 %v2309_v0, %v3220_v32  ;;  %v580_v22 = vpop.f32.mrb[7].mxu0 }
  0xf3   : > { %746 = vst.msk [vmem:[%s3226_s28 + $0x20] sm:$0xff] %vm741_vm6, %v713_v63  ;;  %v581_v1 = vadd.f32 %v3220_v32, %v580_v22  ;;  %v2350_v60 = vpop.f32.mrb[0].mxu1 }
  0xf4   : > { %v716_v57 = vmax.f32 %v586_v40, 0.0  ;;  %v1703_v62 = vpop.f32.mrb[1].mxu1 }
  0xf5   : > { %v715_v56 = vmax.f32 %v581_v1, 0.0  ;;  %v2312_v2 = vpop.f32.mrb[8].mxu0 }
  0xf6   : > { %865 = vrot.lane.b32.xlu1 %v711_v26, %s2419_s30  ;;  %1055 = vrot.lane.b32.xlu0 %v711_v26, %s2418_s29  ;;  %749 = vst.msk [vmem:[%s3226_s28 + $0x38] sm:$0xff] %vm741_vm6, %v716_v57  ;;  %v596_v25 = vadd.f32 %v2312_v2, %v3220_v32  ;;  %v590_v4 = vpop.f32.mrb[9].mxu0  ;;  %v3363_v26 = vld [vmem:[%s3740_s4] ss:$0 sm:$0xff] }
  0xf7   : > { %748 = vst.msk [vmem:[%s3226_s28 + $0x30] sm:$0xff] %vm741_vm6, %v715_v56  ;;  %v591_v37 = vadd.f32 %v3220_v32, %v590_v4  ;;  %v1709_v61 = vadd.f32 %v2350_v60, %v3363_v26 }
  0xf8   : > { %v718_v35 = vmax.f32 %v596_v25, 0.0 }
  0xf9   : > { %v717_v3 = vmax.f32 %v591_v37, 0.0  ;;  %v2315_v44 = vpop.f32.mrb[10].mxu0  ;;  %v1863_v40 = vmax.f32 %v1709_v61, 0.0 }
  0xfa   : > { %871 = vrot.lane.b32.xlu1 %v714_v36, %s2419_s30  ;;  %869 = vrot.lane.b32.xlu0 %v713_v63, %s2419_s30  ;;  %751 = vst.msk [vmem:[%s3226_s28 + $0x48] sm:$0xff] %vm741_vm6, %v718_v35  ;;  %v606_v5 = vadd.f32 %v2315_v44, %v3220_v32  ;;  %v600_v6 = vpop.f32.mrb[11].mxu0 }
  0xfb   : > { %750 = vst.msk [vmem:[%s3226_s28 + $0x40] sm:$0xff] %vm741_vm6, %v717_v3  ;;  %v601_v7 = vadd.f32 %v3220_v32, %v600_v6  ;;  %1895 = vst.msk [vmem:[%s3382_s14 + $0x8] sm:$0xff] %vm741_vm6, %v1863_v40 }
  0xfc   : > { %v3270_v8 = vmax.f32 %v606_v5, 0.0 }
  0xfd   : > { %v3272_v9 = vmax.f32 %v601_v7, 0.0  ;;  %v2318_v10 = vpop.f32.mrb[12].mxu0 }
  0xfe   : > { %1061 = vrot.lane.b32.xlu1 %v714_v36, %s2418_s29  ;;  %1059 = vrot.lane.b32.xlu0 %v713_v63, %s2418_s29  ;;  %753 = vst.msk [vmem:[%s3226_s28 + $0x58] sm:$0xff] %vm741_vm6, %v3270_v8  ;;  %v616_v11 = vadd.f32 %v2318_v10, %v3220_v32  ;;  %v610_v12 = vpop.f32.mrb[13].mxu0  ;;  %v1704_v63 = vadd.f32 %v3363_v26, %v1703_v62 }
  0xff   : > { %752 = vst.msk [vmem:[%s3226_s28 + $0x50] sm:$0xff] %vm741_vm6, %v3272_v9  ;;  %v611_v42 = vadd.f32 %v3220_v32, %v610_v12 }
 0x100   : > { %v3284_v13 = vmax.f32 %v616_v11, 0.0 }
 0x101   : > { %v3286_v14 = vmax.f32 %v611_v42, 0.0  ;;  %v2321_v46 = vpop.f32.mrb[14].mxu0 }
 0x102   : > { %875 = vrot.lane.b32.xlu1 %v716_v57, %s2419_s30  ;;  %873 = vrot.lane.b32.xlu0 %v715_v56, %s2419_s30  ;;  %755 = vst.msk [vmem:[%s3226_s28 + $0x68] sm:$0xff] %vm741_vm6, %v3284_v13  ;;  %v626_v38 = vadd.f32 %v2321_v46, %v3220_v32  ;;  %v620_v15 = vpop.f32.mrb[15].mxu0 }
 0x103   : > { %754 = vst.msk [vmem:[%s3226_s28 + $0x60] sm:$0xff] %vm741_vm6, %v3286_v14  ;;  %v621_v16 = vadd.f32 %v3220_v32, %v620_v15 }
 0x104   : > { %v3298_v17 = vmax.f32 %v626_v38, 0.0 }
 0x105   : > { %v3300_v59 = vmax.f32 %v621_v16, 0.0  ;;  %v2324_v18 = vpop.f32.mrb[16].mxu0 }
 0x106   : > { %1065 = vrot.lane.b32.xlu1 %v716_v57, %s2418_s29  ;;  %1063 = vrot.lane.b32.xlu0 %v715_v56, %s2418_s29  ;;  %757 = vst.msk [vmem:[%s3226_s28 + $0x78] sm:$0xff] %vm741_vm6, %v3298_v17  ;;  %v636_v19 = vadd.f32 %v2324_v18, %v3220_v32  ;;  %v630_v20 = vpop.f32.mrb[17].mxu0  ;;  %v1862_v57 = vmax.f32 %v1704_v63, 0.0  ;;  %v2353_v56 = vpop.f32.mrb[2].mxu1 }
 0x107   : > { %756 = vst.msk [vmem:[%s3226_s28 + $0x70] sm:$0xff] %vm741_vm6, %v3300_v59  ;;  %v631_v21 = vadd.f32 %v3220_v32, %v630_v20  ;;  %v1719_v4 = vadd.f32 %v2353_v56, %v3363_v26  ;;  %v1713_v37 = vpop.f32.mrb[3].mxu1 }
 0x108   : > { %v3312_v23 = vmax.f32 %v636_v19, 0.0  ;;  %1894 = vst.msk [vmem:[%s3382_s14] sm:$0xff] %vm741_vm6, %v1862_v57 }
 0x109   : > { %v3314_v24 = vmax.f32 %v631_v21, 0.0  ;;  %v2327_v47 = vpop.f32.mrb[18].mxu0  ;;  %v1865_v5 = vmax.f32 %v1719_v4, 0.0 }
 0x10a   : > { %879 = vrot.lane.b32.xlu1 %v718_v35, %s2419_s30  ;;  %877 = vrot.lane.b32.xlu0 %v717_v3, %s2419_s30  ;;  %759 = vst.msk [vmem:[%s3226_s28 + $0x88] sm:$0xff] %vm741_vm6, %v3312_v23  ;;  %v646_v27 = vadd.f32 %v2327_v47, %v3220_v32  ;;  %v640_v28 = vpop.f32.mrb[19].mxu0 }
 0x10b   : > { %758 = vst.msk [vmem:[%s3226_s28 + $0x80] sm:$0xff] %vm741_vm6, %v3314_v24  ;;  %v641_v29 = vadd.f32 %v3220_v32, %v640_v28  ;;  %1897 = vst.msk [vmem:[%s3382_s14 + $0x18] sm:$0xff] %vm741_vm6, %v1865_v5 }
 0x10c   : > { %v3326_v30 = vmax.f32 %v646_v27, 0.0 }
 0x10d   : > { %v3328_v41 = vmax.f32 %v641_v29, 0.0  ;;  %v2330_v45 = vpop.f32.mrb[20].mxu0 }
 0x10e   : > { %1069 = vrot.lane.b32.xlu1 %v718_v35, %s2418_s29  ;;  %1067 = vrot.lane.b32.xlu0 %v717_v3, %s2418_s29  ;;  %761 = vst.msk [vmem:[%s3226_s28 + $0x98] sm:$0xff] %vm741_vm6, %v3326_v30  ;;  %v656_v31 = vadd.f32 %v2330_v45, %v3220_v32  ;;  %v650_v48 = vpop.f32.mrb[21].mxu0  ;;  %v1714_v3 = vadd.f32 %v3363_v26, %v1713_v37 }
 0x10f   : > { %760 = vst.msk [vmem:[%s3226_s28 + $0x90] sm:$0xff] %vm741_vm6, %v3328_v41  ;;  %v651_v49 = vadd.f32 %v3220_v32, %v650_v48 }
 0x110   : > { %v3340_v50 = vmax.f32 %v656_v31, 0.0 }
 0x111   : > { %v3342_v51 = vmax.f32 %v651_v49, 0.0  ;;  %v2333_v53 = vpop.f32.mrb[22].mxu0 }
 0x112   : > { %883 = vrot.lane.b32.xlu1 %v3270_v8, %s2419_s30  ;;  %881 = vrot.lane.b32.xlu0 %v3272_v9, %s2419_s30  ;;  %763 = vst.msk [vmem:[%s3226_s28 + $0xa8] sm:$0xff] %vm741_vm6, %v3340_v50  ;;  %v666_v33 = vadd.f32 %v2333_v53, %v3220_v32  ;;  %v660_v54 = vpop.f32.mrb[23].mxu0 }
 0x113   : > { %762 = vst.msk [vmem:[%s3226_s28 + $0xa0] sm:$0xff] %vm741_vm6, %v3342_v51  ;;  %v661_v55 = vadd.f32 %v3220_v32, %v660_v54 }
 0x114   : > { %v3356_v52 = vmax.f32 %v666_v33, 0.0 }
 0x115   : > { %v3358_v58 = vmax.f32 %v661_v55, 0.0  ;;  %v2336_v34 = vpop.f32.mrb[24].mxu0 }
 0x116   : > { %1073 = vrot.lane.b32.xlu1 %v3270_v8, %s2418_s29  ;;  %1071 = vrot.lane.b32.xlu0 %v3272_v9, %s2418_s29  ;;  %765 = vst.msk [vmem:[%s3226_s28 + $0xb8] sm:$0xff] %vm741_vm6, %v3356_v52  ;;  %v676_v39 = vadd.f32 %v2336_v34, %v3220_v32  ;;  %v670_v43 = vpop.f32.mrb[25].mxu0  ;;  %v1864_v8 = vmax.f32 %v1714_v3, 0.0  ;;  %v2356_v9 = vpop.f32.mrb[4].mxu1 }
 0x117   : > { %764 = vst.msk [vmem:[%s3226_s28 + $0xb0] sm:$0xff] %vm741_vm6, %v3358_v58  ;;  %v671_v36 = vadd.f32 %v3220_v32, %v670_v43  ;;  %v1729_v12 = vadd.f32 %v2356_v9, %v3363_v26  ;;  %v1723_v42 = vpop.f32.mrb[5].mxu1 }
 0x118   : > { %v3385_v0 = vmax.f32 %v676_v39, 0.0  ;;  %1896 = vst.msk [vmem:[%s3382_s14 + $0x10] sm:$0xff] %vm741_vm6, %v1864_v8  ;;  %v2359_v19 = vpop.f32.mrb[6].mxu1 }
 0x119   : > { %v3387_v22 = vmax.f32 %v671_v36, 0.0  ;;  %v2339_v1 = vpop.f32.mrb[26].mxu0  ;;  %v1867_v38 = vmax.f32 %v1729_v12, 0.0  ;;  %v1739_v47 = vadd.f32 %v2359_v19, %v3363_v26  ;;  %v1733_v27 = vpop.f32.mrb[7].mxu1 }
 0x11a   : > { %887 = vrot.lane.b32.xlu1 %v3284_v13, %s2419_s30  ;;  %885 = vrot.lane.b32.xlu0 %v3286_v14, %s2419_s30  ;;  %767 = vst.msk [vmem:[%s3226_s28 + $0xc8] sm:$0xff] %vm741_vm6, %v3385_v0  ;;  %v686_v2 = vadd.f32 %v2339_v1, %v3220_v32  ;;  %v680_v25 = vpop.f32.mrb[27].mxu0  ;;  %v1734_v29 = vadd.f32 %v3363_v26, %v1733_v27  ;;  %v2362_v53 = vpop.f32.mrb[8].mxu1 }
 0x11b   : > { %766 = vst.msk [vmem:[%s3226_s28 + $0xc0] sm:$0xff] %vm741_vm6, %v3387_v22  ;;  %v681_v35 = vadd.f32 %v3220_v32, %v680_v25  ;;  %1899 = vst.msk [vmem:[%s3382_s14 + $0x28] sm:$0xff] %vm741_vm6, %v1867_v38  ;;  %v1869_v31 = vmax.f32 %v1739_v47, 0.0  ;;  %v1743_v33 = vpop.f32.mrb[9].mxu1 }
 0x11c   : > { %v3407_v44 = vmax.f32 %v686_v2, 0.0  ;;  %v1868_v49 = vmax.f32 %v1734_v29, 0.0  ;;  %v1744_v54 = vadd.f32 %v3363_v26, %v1743_v33 }
 0x11d   : > { %v3409_v6 = vmax.f32 %v681_v35, 0.0  ;;  %v2342_v7 = vpop.f32.mrb[28].mxu0  ;;  %1901 = vst.msk [vmem:[%s3382_s14 + $0x38] sm:$0xff] %vm741_vm6, %v1869_v31 }
 0x11e   : > { %1077 = vrot.lane.b32.xlu1 %v3284_v13, %s2418_s29  ;;  %1075 = vrot.lane.b32.xlu0 %v3286_v14, %s2418_s29  ;;  %769 = vst.msk [vmem:[%s3226_s28 + $0xd8] sm:$0xff] %vm741_vm6, %v3407_v44  ;;  %v696_v10 = vadd.f32 %v2342_v7, %v3220_v32  ;;  %v690_v11 = vpop.f32.mrb[29].mxu0  ;;  %v1724_v14 = vadd.f32 %v3363_v26, %v1723_v42  ;;  %1900 = vst.msk [vmem:[%s3382_s14 + $0x30] sm:$0xff] %vm741_vm6, %v1868_v49  ;;  %v1870_v55 = vmax.f32 %v1744_v54, 0.0 }
 0x11f   : > { %768 = vst.msk [vmem:[%s3226_s28 + $0xd0] sm:$0xff] %vm741_vm6, %v3409_v6  ;;  %v691_v13 = vadd.f32 %v3220_v32, %v690_v11 }
 0x120   : > { %v3429_v46 = vmax.f32 %v696_v10, 0.0  ;;  %v1866_v18 = vmax.f32 %v1724_v14, 0.0  ;;  %1902 = vst.msk [vmem:[%s3382_s14 + $0x40] sm:$0xff] %vm741_vm6, %v1870_v55 }
 0x121   : > { %v3431_v15 = vmax.f32 %v691_v13, 0.0  ;;  %v2345_v16 = vpop.f32.mrb[30].mxu0 }
 0x122   : > { %891 = vrot.lane.b32.xlu1 %v3298_v17, %s2419_s30  ;;  %889 = vrot.lane.b32.xlu0 %v3300_v59, %s2419_s30  ;;  %771 = vst.msk [vmem:[%s3226_s28 + $0xe8] sm:$0xff] %vm741_vm6, %v3429_v46  ;;  %v706_v20 = vadd.f32 %v2345_v16, %v3220_v32  ;;  %v700_v21 = vpop.f32.mrb[31].mxu0  ;;  %1898 = vst.msk [vmem:[%s3382_s14 + $0x20] sm:$0xff] %vm741_vm6, %v1866_v18 }
 0x123   : > { %770 = vst.msk [vmem:[%s3226_s28 + $0xe0] sm:$0xff] %vm741_vm6, %v3431_v15  ;;  %v701_v28 = vadd.f32 %v3220_v32, %v700_v21  ;;  %v1749_v32 = vadd.f32 %v2362_v53, %v3363_v26 }
 0x124   : > { %v3451_v45 = vmax.f32 %v706_v20, 0.0 }
 0x125   : > { %v3453_v48 = vmax.f32 %v701_v28, 0.0 }
 0x126   : > { %1081 = vrot.lane.b32.xlu1 %v3298_v17, %s2418_s29  ;;  %1079 = vrot.lane.b32.xlu0 %v3300_v59, %s2418_s29  ;;  %773 = vst.msk [vmem:[%s3226_s28 + $0xf8] sm:$0xff] %vm741_vm6, %v3451_v45  ;;  %v1871_v17 = vmax.f32 %v1749_v32, 0.0  ;;  %v2365_v59 = vpop.f32.mrb[10].mxu1 }
 0x127   : > { %772 = vst.msk [vmem:[%s3226_s28 + $0xf0] sm:$0xff] %vm741_vm6, %v3453_v48  ;;  %v1759_v34 = vadd.f32 %v2365_v59, %v3363_v26  ;;  %v1753_v60 = vpop.f32.mrb[11].mxu1 }
 0x128   : > { %1903 = vst.msk [vmem:[%s3382_s14 + $0x48] sm:$0xff] %vm741_vm6, %v1871_v17  ;;  %v1754_v39 = vadd.f32 %v3363_v26, %v1753_v60  ;;  %v2368_v62 = vpop.f32.mrb[12].mxu1 }
 0x129   : > { %v1873_v43 = vmax.f32 %v1759_v34, 0.0  ;;  %v1769_v36 = vadd.f32 %v2368_v62, %v3363_v26  ;;  %v1763_v63 = vpop.f32.mrb[13].mxu1 }
 0x12a   : > { %895 = vrot.lane.b32.xlu1 %v3312_v23, %s2419_s30  ;;  %893 = vrot.lane.b32.xlu0 %v3314_v24, %s2419_s30  ;;  %v1872_v61 = vmax.f32 %v1754_v39, 0.0  ;;  %v1764_v40 = vadd.f32 %v3363_v26, %v1763_v63  ;;  %v2371_v56 = vpop.f32.mrb[14].mxu1 }
 0x12b   : > { %1905 = vst.msk [vmem:[%s3382_s14 + $0x58] sm:$0xff] %vm741_vm6, %v1873_v43  ;;  %v1875_v1 = vmax.f32 %v1769_v36, 0.0 }
 0x12c   : > { %1904 = vst.msk [vmem:[%s3382_s14 + $0x50] sm:$0xff] %vm741_vm6, %v1872_v61  ;;  %v1874_v57 = vmax.f32 %v1764_v40, 0.0 }
 0x12d   : > { %1907 = vst.msk [vmem:[%s3382_s14 + $0x68] sm:$0xff] %vm741_vm6, %v1875_v1 }
 0x12e   : > { %1085 = vrot.lane.b32.xlu1 %v3312_v23, %s2418_s29  ;;  %1083 = vrot.lane.b32.xlu0 %v3314_v24, %s2418_s29  ;;  %v1779_v23 = vadd.f32 %v2371_v56, %v3363_v26  ;;  %v1773_v24 = vpop.f32.mrb[15].mxu1  ;;  %1906 = vst.msk [vmem:[%s3382_s14 + $0x60] sm:$0xff] %vm741_vm6, %v1874_v57 }
 0x12f   : > { %v1774_v2 = vadd.f32 %v3363_v26, %v1773_v24  ;;  %v2374_v37 = vpop.f32.mrb[16].mxu1 }
 0x130   : > { %v1877_v25 = vmax.f32 %v1779_v23, 0.0  ;;  %v1789_v35 = vadd.f32 %v2374_v37, %v3363_v26  ;;  %v1783_v3 = vpop.f32.mrb[17].mxu1 }
 0x131   : > { %v1876_v4 = vmax.f32 %v1774_v2, 0.0  ;;  %v1784_v5 = vadd.f32 %v3363_v26, %v1783_v3 }
 0x132   : > { %899 = vrot.lane.b32.xlu1 %v3326_v30, %s2419_s30  ;;  %897 = vrot.lane.b32.xlu0 %v3328_v41, %s2419_s30  ;;  %1909 = vst.msk [vmem:[%s3382_s14 + $0x78] sm:$0xff] %vm741_vm6, %v1877_v25  ;;  %v1879_v7 = vmax.f32 %v1789_v35, 0.0 }
 0x133   : > { %1908 = vst.msk [vmem:[%s3382_s14 + $0x70] sm:$0xff] %vm741_vm6, %v1876_v4  ;;  %v1878_v8 = vmax.f32 %v1784_v5, 0.0 }
 0x134   : > { %1911 = vst.msk [vmem:[%s3382_s14 + $0x88] sm:$0xff] %vm741_vm6, %v1879_v7 }
 0x135   : > { %1910 = vst.msk [vmem:[%s3382_s14 + $0x80] sm:$0xff] %vm741_vm6, %v1878_v8 }
 0x136   : > { %1089 = vrot.lane.b32.xlu1 %v3326_v30, %s2418_s29  ;;  %1087 = vrot.lane.b32.xlu0 %v3328_v41, %s2418_s29  ;;  %v2377_v30 = vpop.f32.mrb[18].mxu1 }
 0x137   : > { %v1799_v41 = vadd.f32 %v2377_v30, %v3363_v26  ;;  %v1793_v9 = vpop.f32.mrb[19].mxu1 }
 0x138   : > { %v1794_v10 = vadd.f32 %v3363_v26, %v1793_v9  ;;  %v2380_v42 = vpop.f32.mrb[20].mxu1 }
 0x139   : > { %v1881_v11 = vmax.f32 %v1799_v41, 0.0  ;;  %v1809_v13 = vadd.f32 %v2380_v42, %v3363_v26  ;;  %v1803_v14 = vpop.f32.mrb[21].mxu1 }
 0x13a   : > { %903 = vrot.lane.b32.xlu1 %v3340_v50, %s2419_s30  ;;  %901 = vrot.lane.b32.xlu0 %v3342_v51, %s2419_s30  ;;  %v1880_v12 = vmax.f32 %v1794_v10, 0.0  ;;  %v1804_v38 = vadd.f32 %v3363_v26, %v1803_v14 }
 0x13b   : > { %1913 = vst.msk [vmem:[%s3382_s14 + $0x98] sm:$0xff] %vm741_vm6, %v1881_v11  ;;  %v1883_v16 = vmax.f32 %v1809_v13, 0.0 }
 0x13c   : > { %1912 = vst.msk [vmem:[%s3382_s14 + $0x90] sm:$0xff] %vm741_vm6, %v1880_v12 }
 0x13d   : > { %1915 = vst.msk [vmem:[%s3382_s14 + $0xa8] sm:$0xff] %vm741_vm6, %v1883_v16 }
 0x13e   : > { %1093 = vrot.lane.b32.xlu1 %v3340_v50, %s2418_s29  ;;  %1091 = vrot.lane.b32.xlu0 %v3342_v51, %s2418_s29  ;;  %v1882_v50 = vmax.f32 %v1804_v38, 0.0  ;;  %v2383_v51 = vpop.f32.mrb[22].mxu1 }
 0x13f   : > { %v1819_v18 = vadd.f32 %v2383_v51, %v3363_v26  ;;  %v1813_v19 = vpop.f32.mrb[23].mxu1 }
 0x140   : > { %1914 = vst.msk [vmem:[%s3382_s14 + $0xa0] sm:$0xff] %vm741_vm6, %v1882_v50  ;;  %v1814_v20 = vadd.f32 %v3363_v26, %v1813_v19  ;;  %v2386_v27 = vpop.f32.mrb[24].mxu1 }
 0x141   : > { %v1885_v21 = vmax.f32 %v1819_v18, 0.0  ;;  %v1829_v28 = vadd.f32 %v2386_v27, %v3363_v26  ;;  %v1823_v29 = vpop.f32.mrb[25].mxu1 }
 0x142   : > { %907 = vrot.lane.b32.xlu1 %v3356_v52, %s2419_s30  ;;  %905 = vrot.lane.b32.xlu0 %v3358_v58, %s2419_s30  ;;  %v1884_v47 = vmax.f32 %v1814_v20, 0.0  ;;  %v1824_v31 = vadd.f32 %v3363_v26, %v1823_v29 }
 0x143   : > { %1917 = vst.msk [vmem:[%s3382_s14 + $0xb8] sm:$0xff] %vm741_vm6, %v1885_v21  ;;  %v1887_v49 = vmax.f32 %v1829_v28, 0.0 }
 0x144   : > { %1916 = vst.msk [vmem:[%s3382_s14 + $0xb0] sm:$0xff] %vm741_vm6, %v1884_v47 }
 0x145   : > { %1919 = vst.msk [vmem:[%s3382_s14 + $0xc8] sm:$0xff] %vm741_vm6, %v1887_v49 }
 0x146   : > { %1097 = vrot.lane.b32.xlu1 %v3356_v52, %s2418_s29  ;;  %1095 = vrot.lane.b32.xlu0 %v3358_v58, %s2418_s29  ;;  %v1886_v52 = vmax.f32 %v1824_v31, 0.0  ;;  %v2389_v58 = vpop.f32.mrb[26].mxu1 }
 0x147   : > { %v1839_v53 = vadd.f32 %v2389_v58, %v3363_v26  ;;  %v1833_v32 = vpop.f32.mrb[27].mxu1 }
 0x148   : > { %1918 = vst.msk [vmem:[%s3382_s14 + $0xc0] sm:$0xff] %vm741_vm6, %v1886_v52  ;;  %v1834_v33 = vadd.f32 %v3363_v26, %v1833_v32  ;;  %v2392_v55 = vpop.f32.mrb[28].mxu1 }
 0x149   : > { %v1889_v54 = vmax.f32 %v1839_v53, 0.0  ;;  %v1849_v59 = vadd.f32 %v2392_v55, %v3363_v26  ;;  %v1843_v34 = vpop.f32.mrb[29].mxu1 }
 0x14a   : > { %911 = vrot.lane.b32.xlu1 %v3385_v0, %s2419_s30  ;;  %909 = vrot.lane.b32.xlu0 %v3387_v22, %s2419_s30  ;;  %v1888_v17 = vmax.f32 %v1834_v33, 0.0  ;;  %v1844_v60 = vadd.f32 %v3363_v26, %v1843_v34 }
 0x14b   : > { %1921 = vst.msk [vmem:[%s3382_s14 + $0xd8] sm:$0xff] %vm741_vm6, %v1889_v54  ;;  %v1891_v39 = vmax.f32 %v1849_v59, 0.0 }
 0x14c   : > { %1920 = vst.msk [vmem:[%s3382_s14 + $0xd0] sm:$0xff] %vm741_vm6, %v1888_v17 }
 0x14d   : > { %1923 = vst.msk [vmem:[%s3382_s14 + $0xe8] sm:$0xff] %vm741_vm6, %v1891_v39 }
 0x14e   : > { %1101 = vrot.lane.b32.xlu1 %v3385_v0, %s2418_s29  ;;  %1099 = vrot.lane.b32.xlu0 %v3387_v22, %s2418_s29  ;;  %v1890_v0 = vmax.f32 %v1844_v60, 0.0  ;;  %v2395_v22 = vpop.f32.mrb[30].mxu1 }
 0x14f   : > { %v1859_v43 = vadd.f32 %v2395_v22, %v3363_v26  ;;  %v1853_v61 = vpop.f32.mrb[31].mxu1 }
 0x150   : > { %1922 = vst.msk [vmem:[%s3382_s14 + $0xe0] sm:$0xff] %vm741_vm6, %v1890_v0  ;;  %v1854_v62 = vadd.f32 %v3363_v26, %v1853_v61 }
 0x151   : > { %v1893_v36 = vmax.f32 %v1859_v43, 0.0 }
 0x152   : > { %915 = vrot.lane.b32.xlu1 %v3407_v44, %s2419_s30  ;;  %913 = vrot.lane.b32.xlu0 %v3409_v6, %s2419_s30  ;;  %v1892_v63 = vmax.f32 %v1854_v62, 0.0 }
 0x153   : > { %1925 = vst.msk [vmem:[%s3382_s14 + $0xf8] sm:$0xff] %vm741_vm6, %v1893_v36 }
 0x154   : > { %1924 = vst.msk [vmem:[%s3382_s14 + $0xf0] sm:$0xff] %vm741_vm6, %v1892_v63 }
 0x156   : > { %1105 = vrot.lane.b32.xlu1 %v3407_v44, %s2418_s29  ;;  %1103 = vrot.lane.b32.xlu0 %v3409_v6, %s2418_s29 }
 0x15a   : > { %919 = vrot.lane.b32.xlu1 %v3429_v46, %s2419_s30  ;;  %917 = vrot.lane.b32.xlu0 %v3431_v15, %s2419_s30 }
 0x15c   : > { %v1054_v26 = vpop.permute.xlu1 %1053  ;;  %v864_v40 = vpop.permute.xlu0 %863 }
 0x15d   : > { %2160 = vst.msk [vmem:[%s2873_s22 + $0x3a] sm:$0xff] %vm383_vm1, %v1054_v26  ;;  %2128 = vst.msk [vmem:[%s2868_s19 + $0x21] sm:$0xff] %vm383_vm1, %v864_v40 }
 0x15e   : > { %1109 = vrot.lane.b32.xlu1 %v3429_v46, %s2418_s29  ;;  %1107 = vrot.lane.b32.xlu0 %v3431_v15, %s2418_s29 }
 0x160   : > { %v868_v44 = vpop.permute.xlu1 %867  ;;  %v862_v6 = vpop.permute.xlu0 %861 }
 0x161   : > { %2130 = vst.msk [vmem:[%s2868_s19 + $0x39] sm:$0xff] %vm383_vm1, %v868_v44  ;;  %2127 = vst.msk [vmem:[%s2868_s19 + $0x19] sm:$0xff] %vm383_vm1, %v862_v6 }
 0x162   : > { %923 = vrot.lane.b32.xlu1 %v3451_v45, %s2419_s30  ;;  %921 = vrot.lane.b32.xlu0 %v3453_v48, %s2419_s30 }
 0x164   : > { %v1058_v46 = vpop.permute.xlu1 %1057  ;;  %v1052_v1 = vpop.permute.xlu0 %1051 }
 0x165   : > { %2162 = vst.msk [vmem:[%s2873_s22 + $0x52] sm:$0xff] %vm383_vm1, %v1058_v46  ;;  %2159 = vst.msk [vmem:[%s2873_s22 + $0x32] sm:$0xff] %vm383_vm1, %v1052_v1 }
 0x166   : > { %1113 = vrot.lane.b32.xlu1 %v3451_v45, %s2418_s29  ;;  %1111 = vrot.lane.b32.xlu0 %v3453_v48, %s2418_s29 }
 0x168   : > { %v866_v15 = vpop.permute.xlu1 %865  ;;  %v1056_v57 = vpop.permute.xlu0 %1055 }
 0x169   : > { %2129 = vst.msk [vmem:[%s2868_s19 + $0x31] sm:$0xff] %vm383_vm1, %v866_v15  ;;  %2161 = vst.msk [vmem:[%s2873_s22 + $0x4a] sm:$0xff] %vm383_vm1, %v1056_v57 }
 0x16c   : > { %v872_v56 = vpop.permute.xlu1 %871  ;;  %v870_v23 = vpop.permute.xlu0 %869 }
 0x16d   : > { %2132 = vst.msk [vmem:[%s2868_s19 + $0x51] sm:$0xff] %vm383_vm1, %v872_v56  ;;  %2131 = vst.msk [vmem:[%s2868_s19 + $0x49] sm:$0xff] %vm383_vm1, %v870_v23 }
 0x170   : > { %v1062_v45 = vpop.permute.xlu1 %1061  ;;  %v1060_v24 = vpop.permute.xlu0 %1059 }
 0x171   : > { %2164 = vst.msk [vmem:[%s2873_s22 + $0x6a] sm:$0xff] %vm383_vm1, %v1062_v45  ;;  %2163 = vst.msk [vmem:[%s2873_s22 + $0x62] sm:$0xff] %vm383_vm1, %v1060_v24 }
 0x174   : > { %v876_v48 = vpop.permute.xlu1 %875  ;;  %v874_v2 = vpop.permute.xlu0 %873 }
 0x175   : > { %2134 = vst.msk [vmem:[%s2868_s19 + $0x69] sm:$0xff] %vm383_vm1, %v876_v48  ;;  %2133 = vst.msk [vmem:[%s2868_s19 + $0x61] sm:$0xff] %vm383_vm1, %v874_v2 }
 0x178   : > { %v1066_v25 = vpop.permute.xlu1 %1065  ;;  %v1064_v4 = vpop.permute.xlu0 %1063 }
 0x179   : > { %2166 = vst.msk [vmem:[%s2873_s22 + $0x82] sm:$0xff] %vm383_vm1, %v1066_v25  ;;  %2165 = vst.msk [vmem:[%s2873_s22 + $0x7a] sm:$0xff] %vm383_vm1, %v1064_v4 }
 0x17c   : > { %v880_v37 = vpop.permute.xlu1 %879  ;;  %v878_v35 = vpop.permute.xlu0 %877 }
 0x17d   : > { %2136 = vst.msk [vmem:[%s2868_s19 + $0x81] sm:$0xff] %vm383_vm1, %v880_v37  ;;  %2135 = vst.msk [vmem:[%s2868_s19 + $0x79] sm:$0xff] %vm383_vm1, %v878_v35 }
 0x180   : > { %v1070_v3 = vpop.permute.xlu1 %1069  ;;  %v1068_v5 = vpop.permute.xlu0 %1067 }
 0x181   : > { %2168 = vst.msk [vmem:[%s2873_s22 + $0x9a] sm:$0xff] %vm383_vm1, %v1070_v3  ;;  %2167 = vst.msk [vmem:[%s2873_s22 + $0x92] sm:$0xff] %vm383_vm1, %v1068_v5 }
 0x184   : > { %v884_v7 = vpop.permute.xlu1 %883  ;;  %v882_v8 = vpop.permute.xlu0 %881 }
 0x185   : > { %2138 = vst.msk [vmem:[%s2868_s19 + $0x99] sm:$0xff] %vm383_vm1, %v884_v7  ;;  %2137 = vst.msk [vmem:[%s2868_s19 + $0x91] sm:$0xff] %vm383_vm1, %v882_v8 }
 0x188   : > { %v1074_v30 = vpop.permute.xlu1 %1073  ;;  %v1072_v41 = vpop.permute.xlu0 %1071 }
 0x189   : > { %2170 = vst.msk [vmem:[%s2873_s22 + $0xb2] sm:$0xff] %vm383_vm1, %v1074_v30  ;;  %2169 = vst.msk [vmem:[%s2873_s22 + $0xaa] sm:$0xff] %vm383_vm1, %v1072_v41 }
 0x18c   : > { %v888_v9 = vpop.permute.xlu1 %887  ;;  %v886_v10 = vpop.permute.xlu0 %885 }
 0x18d   : > { %2140 = vst.msk [vmem:[%s2868_s19 + $0xb1] sm:$0xff] %vm383_vm1, %v888_v9  ;;  %2139 = vst.msk [vmem:[%s2868_s19 + $0xa9] sm:$0xff] %vm383_vm1, %v886_v10 }
 0x190   : > { %v1078_v11 = vpop.permute.xlu1 %1077  ;;  %v1076_v12 = vpop.permute.xlu0 %1075 }
 0x191   : > { %2172 = vst.msk [vmem:[%s2873_s22 + $0xca] sm:$0xff] %vm383_vm1, %v1078_v11  ;;  %2171 = vst.msk [vmem:[%s2873_s22 + $0xc2] sm:$0xff] %vm383_vm1, %v1076_v12 }
 0x194   : > { %v892_v42 = vpop.permute.xlu1 %891  ;;  %v890_v13 = vpop.permute.xlu0 %889 }
 0x195   : > { %2142 = vst.msk [vmem:[%s2868_s19 + $0xc9] sm:$0xff] %vm383_vm1, %v892_v42  ;;  %2141 = vst.msk [vmem:[%s2868_s19 + $0xc1] sm:$0xff] %vm383_vm1, %v890_v13 }
 0x198   : > { %v1082_v14 = vpop.permute.xlu1 %1081  ;;  %v1080_v38 = vpop.permute.xlu0 %1079 }
 0x199   : > { %2174 = vst.msk [vmem:[%s2873_s22 + $0xe2] sm:$0xff] %vm383_vm1, %v1082_v14  ;;  %2173 = vst.msk [vmem:[%s2873_s22 + $0xda] sm:$0xff] %vm383_vm1, %v1080_v38 }
 0x19c   : > { %v896_v16 = vpop.permute.xlu1 %895  ;;  %v894_v50 = vpop.permute.xlu0 %893 }
 0x19d   : > { %2144 = vst.msk [vmem:[%s2868_s19 + $0xe1] sm:$0xff] %vm383_vm1, %v896_v16  ;;  %2143 = vst.msk [vmem:[%s2868_s19 + $0xd9] sm:$0xff] %vm383_vm1, %v894_v50 }
 0x1a0   : > { %v1086_v51 = vpop.permute.xlu1 %1085  ;;  %v1084_v18 = vpop.permute.xlu0 %1083 }
 0x1a1   : > { %2176 = vst.msk [vmem:[%s2873_s22 + $0xfa] sm:$0xff] %vm383_vm1, %v1086_v51  ;;  %2175 = vst.msk [vmem:[%s2873_s22 + $0xf2] sm:$0xff] %vm383_vm1, %v1084_v18 }
 0x1a4   : > { %v900_v19 = vpop.permute.xlu1 %899  ;;  %v898_v20 = vpop.permute.xlu0 %897 }
 0x1a5   : > { %2146 = vst.msk [vmem:[%s2868_s19 + $0xf9] sm:$0xff] %vm383_vm1, %v900_v19  ;;  %2145 = vst.msk [vmem:[%s2868_s19 + $0xf1] sm:$0xff] %vm383_vm1, %v898_v20 }
 0x1a8   : > { %v1090_v21 = vpop.permute.xlu1 %1089  ;;  %v1088_v47 = vpop.permute.xlu0 %1087 }
 0x1a9   : > { %2178 = vst.msk [vmem:[%s2873_s22 + $0x112] sm:$0xff] %vm383_vm1, %v1090_v21  ;;  %2177 = vst.msk [vmem:[%s2873_s22 + $0x10a] sm:$0xff] %vm383_vm1, %v1088_v47 }
 0x1ac   : > { %v904_v27 = vpop.permute.xlu1 %903  ;;  %v902_v28 = vpop.permute.xlu0 %901 }
 0x1ad   : > { %2148 = vst.msk [vmem:[%s2868_s19 + $0x111] sm:$0xff] %vm383_vm1, %v904_v27  ;;  %2147 = vst.msk [vmem:[%s2868_s19 + $0x109] sm:$0xff] %vm383_vm1, %v902_v28 }
 0x1b0   : > { %v1094_v29 = vpop.permute.xlu1 %1093  ;;  %v1092_v31 = vpop.permute.xlu0 %1091 }
 0x1b1   : > { %2180 = vst.msk [vmem:[%s2873_s22 + $0x12a] sm:$0xff] %vm383_vm1, %v1094_v29  ;;  %2179 = vst.msk [vmem:[%s2873_s22 + $0x122] sm:$0xff] %vm383_vm1, %v1092_v31 }
 0x1b4   : > { %v908_v49 = vpop.permute.xlu1 %907  ;;  %v906_v52 = vpop.permute.xlu0 %905 }
 0x1b5   : > { %2150 = vst.msk [vmem:[%s2868_s19 + $0x129] sm:$0xff] %vm383_vm1, %v908_v49  ;;  %2149 = vst.msk [vmem:[%s2868_s19 + $0x121] sm:$0xff] %vm383_vm1, %v906_v52 }
 0x1b8   : > { %v1098_v58 = vpop.permute.xlu1 %1097  ;;  %v1096_v53 = vpop.permute.xlu0 %1095 }
 0x1b9   : > { %2182 = vst.msk [vmem:[%s2873_s22 + $0x142] sm:$0xff] %vm383_vm1, %v1098_v58  ;;  %2181 = vst.msk [vmem:[%s2873_s22 + $0x13a] sm:$0xff] %vm383_vm1, %v1096_v53 }
 0x1bc   : > { %v912_v32 = vpop.permute.xlu1 %911  ;;  %v910_v33 = vpop.permute.xlu0 %909 }
 0x1bd   : > { %2152 = vst.msk [vmem:[%s2868_s19 + $0x141] sm:$0xff] %vm383_vm1, %v912_v32  ;;  %2151 = vst.msk [vmem:[%s2868_s19 + $0x139] sm:$0xff] %vm383_vm1, %v910_v33 }
 0x1c0   : > { %v1102_v54 = vpop.permute.xlu1 %1101  ;;  %v1100_v17 = vpop.permute.xlu0 %1099 }
 0x1c1   : > { %2184 = vst.msk [vmem:[%s2873_s22 + $0x15a] sm:$0xff] %vm383_vm1, %v1102_v54  ;;  %2183 = vst.msk [vmem:[%s2873_s22 + $0x152] sm:$0xff] %vm383_vm1, %v1100_v17 }
 0x1c4   : > { %v916_v55 = vpop.permute.xlu1 %915  ;;  %v914_v59 = vpop.permute.xlu0 %913 }
 0x1c5   : > { %2154 = vst.msk [vmem:[%s2868_s19 + $0x159] sm:$0xff] %vm383_vm1, %v916_v55  ;;  %2153 = vst.msk [vmem:[%s2868_s19 + $0x151] sm:$0xff] %vm383_vm1, %v914_v59 }
 0x1c8   : > { %v1106_v34 = vpop.permute.xlu1 %1105  ;;  %v1104_v60 = vpop.permute.xlu0 %1103 }
 0x1c9   : > { %2186 = vst.msk [vmem:[%s2873_s22 + $0x172] sm:$0xff] %vm383_vm1, %v1106_v34  ;;  %2185 = vst.msk [vmem:[%s2873_s22 + $0x16a] sm:$0xff] %vm383_vm1, %v1104_v60 }
 0x1cc   : > { %v920_v39 = vpop.permute.xlu1 %919  ;;  %v918_v0 = vpop.permute.xlu0 %917 }
 0x1cd   : > { %2156 = vst.msk [vmem:[%s2868_s19 + $0x171] sm:$0xff] %vm383_vm1, %v920_v39  ;;  %2155 = vst.msk [vmem:[%s2868_s19 + $0x169] sm:$0xff] %vm383_vm1, %v918_v0 }
 0x1d0   : > { %v1110_v22 = vpop.permute.xlu1 %1109  ;;  %v1108_v43 = vpop.permute.xlu0 %1107 }
 0x1d1   : > { %2188 = vst.msk [vmem:[%s2873_s22 + $0x18a] sm:$0xff] %vm383_vm1, %v1110_v22  ;;  %2187 = vst.msk [vmem:[%s2873_s22 + $0x182] sm:$0xff] %vm383_vm1, %v1108_v43 }
 0x1d4   : > { %v924_v61 = vpop.permute.xlu1 %923  ;;  %v922_v62 = vpop.permute.xlu0 %921 }
 0x1d5   : > { %2158 = vst.msk [vmem:[%s2868_s19 + $0x189] sm:$0xff] %vm383_vm1, %v924_v61  ;;  %2157 = vst.msk [vmem:[%s2868_s19 + $0x181] sm:$0xff] %vm383_vm1, %v922_v62 }
 0x1d8   : > { %v1114_v36 = vpop.permute.xlu1 %1113  ;;  %v1112_v63 = vpop.permute.xlu0 %1111 }
 0x1d9   : > { %2190 = vst.msk [vmem:[%s2873_s22 + $0x1a2] sm:$0xff] %vm383_vm1, %v1114_v36  ;;  %2189 = vst.msk [vmem:[%s2873_s22 + $0x19a] sm:$0xff] %vm383_vm1, %v1112_v63 }
 0x1da PF: > { %s19_s27 = sadd.s32 1, %s2415_s27  }
 0x1db   : > { %p16_p4 = scmp.ge.s32.totalorder %s19_s27, 4  }
 0x1dd   :  { %18 = sbr.rel (!%p16_p4) target bundleno = 1 (0x1), region = 108 }

// kernel: a_call__.4
= control target key start
LH: loop header
LB: loop body
LE: loop exit
PB: predicated region body
PF: predicated region fallthrough
CT: control target
= control target key end

     0   :  { %s4490_s12 = smov 0   ;;  %s5731_s0 = inlined_call_operand.vmem [shape: f32[2,18,18,4], index: 0, kind: input, shape index: {}]   ;;  %s5732_s1 = inlined_call_operand.vmem [shape: f32[3,3,4,8], index: 1, kind: input, shape index: {}]   ;;  %s5733_s2 = inlined_call_operand.vmem [shape: f32[1,8], index: 2, kind: input, shape index: {}]   ;;  %s5734_s3 = inlined_call_operand.vmem [shape: f32[2,16,16,8], index: 3, kind: output, shape index: {}]  }
   0x1 LB: > { %s3131_s13 = sadd.s32 4294967295, %s4468_s12   ;;  %p3135_p0 = scmp.ge.s32.totalorder %s4468_s12, 1  ;;  %s4468_s12 = sphi %s4490_s12, %s13_s12  }
   0x2   : > { %p137_p1 = scmp.lt.s32.totalorder %s4468_s12, 3 }
   0x4   : > { %p138_p2 = pnand %p3135_p0, %p137_p1 }
   0x6   : > { %141 = sbr.rel (%p138_p2) target bundleno = 529 (0x211), region = 32 }
   0xd   : > { %v3139_v0 = vld [vmem:[%s5732_s1 + $0x4] sm:$0xf]  ;;  %vm422_vm0 = vcmask 1043456   ;;  %v4504_v1 = vld [vmem:[%s5732_s1 + $0x10] sm:$0xf]  ;;  %p161_p3 = scmp.lt.s32.totalorder %s3131_s13, 1 }
   0xe   : > { %3745 = vmatprep.subr.msk.mxu1 %vm422_vm0, %v3139_v0  ;;  %3945 = vmatprep.subr.msk.mxu0 %vm422_vm0, %v4504_v1  ;;  %v225_v2 = vld [vmem:[%s5732_s1] sm:$0xf]  ;;  %v3308_v3 = vld [vmem:[%s5732_s1 + $0x14] sm:$0xf]  ;;  %vm274_vm1 = vcmask 1046528   ;;  %vm357_vm2 = vcmask 31744  }
   0xf   : > { %3746 = vmatpush3.msk.msra.mxu1 %vm422_vm0, %v3139_v0  ;;  %3946 = vmatpush3.msk.msra.mxu0 %vm422_vm0, %v4504_v1  ;;  %s5910_s13 = smov (!%p161_p3, %s3131_s13), 1  ;;  %v4591_v33 = vld [vmem:[%s5732_s1 + $0x18] sm:$0xf]  ;;  %v4601_v35 = vld [vmem:[%s5732_s1 + $0x8] sm:$0xf]  ;;  %vm943_vm3 = vcmask 1045504  }
  0x10   : > { %3795 = vmatprep.subr.msk.mxu1 %vm422_vm0, %v225_v2  ;;  %3995 = vmatprep.subr.msk.mxu0 %vm422_vm0, %v3308_v3  ;;  %s4453_s22 = smul.u32 432, %s5910_s13  ;;  %s3447_s11 = sshll.u32 %s5910_s13, 8  ;;  %vm3043_vm4 = vcmask 64512  }
  0x11   : > { %s5627_s16 = scalar_lea.vmem %s5734_s3, %s3447_s11 }
  0x12   : > { %s4526_s25 = scalar_lea.vmem %s5731_s0, %s4453_s22 }
  0x13   : > { %v4529_v4 = vld [vmem:[%s4526_s25] sm:$0xff]  ;;  %v4532_v5 = vld [vmem:[%s4526_s25 + $0x8] sm:$0xff]  ;;  %v4535_v6 = vld [vmem:[%s4526_s25 + $0x18] sm:$0xff] }
  0x14   : > { %5808 = vst [vmem:[#allocation2_spill] sm:$0xff] %v4535_v6  ;;  %v275_v7 = vrot.slane %v4529_v4, 1  ;;  %v276_v8 = vrot.slane %v4532_v5, 1  ;;  %v4540_v9 = vld [vmem:[%s4526_s25 + $0x20] sm:$0xff]  ;;  %v280_v10 = vrot.slane %v4535_v6, 1  ;;  %v4552_v15 = vld [vmem:[%s4526_s25 + $0x30] sm:$0xff] }
  0x15   : > { %5809 = vst [vmem:[#allocation3_spill] sm:$0xff] %v4540_v9  ;;  %v4544_v11 = vld [vmem:[%s4526_s25 + $0x10] sm:$0x3]  ;;  %v281_v12 = vrot.slane %v4540_v9, 1  ;;  %v4549_v14 = vld [vmem:[%s4526_s25 + $0x28] sm:$0x3] }
  0x16   : > { %v278_v13 = vrot.slane %v4544_v11, 1  ;;  %v277_v16 = vsel %vm274_vm1, %v275_v7, %v276_v8  ;;  %v283_v17 = vrot.slane %v4549_v14, 1  ;;  %v4557_v18 = vld [vmem:[%s4526_s25 + $0x38] sm:$0xff]  ;;  %v285_v19 = vrot.slane %v4552_v15, 1  ;;  %v4561_v20 = vld [vmem:[%s4526_s25 + $0x40] sm:$0x3] }
  0x17   : > { %3747 = vmatprep.mubr.msk.f32.mxu1 %vm357_vm2, %v277_v16  ;;  %v282_v21 = vsel %vm274_vm1, %v280_v10, %v281_v12  ;;  %v286_v23 = vrot.slane %v4557_v18, 1  ;;  %v288_v24 = vrot.slane %v4561_v20, 1  ;;  %v4569_v25 = vld [vmem:[%s4526_s25 + $0x48] sm:$0xff]  ;;  %v4572_v26 = vld [vmem:[%s4526_s25 + $0x50] sm:$0xff]  ;;  %v4575_v27 = vld [vmem:[%s4526_s25 + $0x58] sm:$0x3] }
  0x18   : > { %v279_v22 = vsel %vm274_vm1, %v276_v8, %v278_v13  ;;  %3947 = vmatprep.mubr.msk.f32.mxu0 %vm357_vm2, %v282_v21  ;;  %v284_v28 = vsel %vm274_vm1, %v281_v12, %v283_v17  ;;  %v290_v29 = vrot.slane %v4569_v25, 1  ;;  %v291_v30 = vrot.slane %v4572_v26, 1  ;;  %v4583_v31 = vld [vmem:[%s4526_s25 + $0x60] sm:$0xff]  ;;  %v4586_v32 = vld [vmem:[%s4526_s25 + $0x68] sm:$0xff]  ;;  %v4617_v41 = vld [vmem:[%s4526_s25 + $0x70] sm:$0x3] }
  0x19   : > { %3748 = vmatmul.mubr.msk.f32.vlgmr.msra.gmra.mrb[0].mxu1 %vm357_vm2, %v279_v22  ;;  %3948 = vmatmul.mubr.msk.f32.vlgmr.msra.gmra.mrb[0].mxu0 %vm357_vm2, %v284_v28  ;;  %v4596_v34 = vsel %vm274_vm1, %v285_v19, %v286_v23  ;;  %v4606_v36 = vsel %vm274_vm1, %v286_v23, %v288_v24  ;;  %v293_v37 = vrot.slane %v4575_v27, 1  ;;  %v295_v39 = vrot.slane %v4583_v31, 1  ;;  %v4623_v42 = vld [vmem:[%s4526_s25 + $0x78] sm:$0xff]  ;;  %v4626_v43 = vld [vmem:[%s4526_s25 + $0x80] sm:$0xff]  ;;  %v4646_v49 = vld [vmem:[%s4526_s25 + $0x88] sm:$0x3] }
  0x1a   : > { %3796 = vmatpush3.msk.msra.mxu1 %vm422_vm0, %v225_v2  ;;  %5810 = vst [vmem:[#allocation4_spill] sm:$0xff] %v4596_v34  ;;  %3996 = vmatpush3.msk.msra.mxu0 %vm422_vm0, %v3308_v3  ;;  %5811 = vst [vmem:[#allocation5_spill] sm:$0xff] %v4606_v36  ;;  %v4612_v38 = vsel %vm274_vm1, %v290_v29, %v291_v30  ;;  %v296_v40 = vrot.slane %v4586_v32, 1  ;;  %v298_v45 = vrot.slane %v4617_v41, 1  ;;  %v300_v47 = vrot.slane %v4623_v42, 1  ;;  %v4651_v50 = vld [vmem:[%s4526_s25 + $0x90] sm:$0xff] }
  0x1b   : > { %3750 = vmatprep.mubr.msk.f32.mxu1 %vm357_vm2, %v282_v21  ;;  %3950 = vmatprep.mubr.msk.f32.mxu0 %vm357_vm2, %v4596_v34  ;;  %5812 = vst [vmem:[#allocation6_spill] sm:$0xff] %v4612_v38  ;;  %v4637_v44 = vsel %vm274_vm1, %v291_v30, %v293_v37  ;;  %v301_v48 = vrot.slane %v4626_v43, 1  ;;  %v4654_v51 = vld [vmem:[%s4526_s25 + $0x98] sm:$0xff]  ;;  %v303_v53 = vrot.slane %v4646_v49, 1  ;;  %v305_v55 = vrot.slane %v4651_v50, 1  ;;  %v4677_v58 = vld [vmem:[%s4526_s25 + $0xa8] sm:$0xff] }
  0x1c   : > { %4045 = vmatprep.subr.msk.mxu0 %vm422_vm0, %v4591_v33  ;;  %3845 = vmatprep.subr.msk.mxu1 %vm422_vm0, %v4601_v35  ;;  %5813 = vst [vmem:[#allocation7_spill] sm:$0xff] %v4637_v44  ;;  %v4641_v46 = vsel %vm274_vm1, %v295_v39, %v296_v40  ;;  %v4663_v52 = vsel %vm274_vm1, %v296_v40, %v298_v45  ;;  %v306_v56 = vrot.slane %v4654_v51, 1  ;;  %v4672_v57 = vld [vmem:[%s4526_s25 + $0xa0] sm:$0x3]  ;;  %v4680_v59 = vld [vmem:[%s4526_s25 + $0xb0] sm:$0xff]  ;;  %v310_v63 = vrot.slane %v4677_v58, 1 }
  0x1d   : > { %3751 = vmatmul.mubr.msk.f32.gmra.mrb[2].mxu1 %vm357_vm2, %v284_v28  ;;  %3951 = vmatmul.mubr.msk.f32.gmra.mrb[2].mxu0 %vm357_vm2, %v4606_v36  ;;  %5814 = vst [vmem:[#allocation8_spill] sm:$0xff] %v4641_v46  ;;  %5815 = vst [vmem:[#allocation9_spill] sm:$0xff] %v4663_v52  ;;  %v4667_v54 = vsel %vm274_vm1, %v300_v47, %v301_v48  ;;  %v4689_v60 = vsel %vm274_vm1, %v301_v48, %v303_v53  ;;  %v308_v61 = vrot.slane %v4672_v57, 1  ;;  %v4698_v2 = vld [vmem:[%s4526_s25 + $0xb8] sm:$0x3]  ;;  %v4703_v3 = vld [vmem:[%s4526_s25 + $0xc0] sm:$0xff] }
  0x1e   : > { %3753 = vmatprep.mubr.msk.f32.mxu1 %vm357_vm2, %v4596_v34  ;;  %3953 = vmatprep.mubr.msk.f32.mxu0 %vm357_vm2, %v4612_v38  ;;  %5816 = vst [vmem:[#allocation10_spill] sm:$0xff] %v4667_v54  ;;  %5817 = vst [vmem:[#allocation11_spill] sm:$0xff] %v4689_v60  ;;  %v4693_v62 = vsel %vm274_vm1, %v305_v55, %v306_v56  ;;  %v311_v0 = vrot.slane %v4680_v59, 1  ;;  %v4706_v7 = vld [vmem:[%s4526_s25 + $0xc8] sm:$0xff]  ;;  %v313_v10 = vrot.slane %v4698_v2, 1  ;;  %v315_v13 = vrot.slane %v4703_v3, 1 }
  0x1f   : > { %5818 = vst [vmem:[#allocation12_spill] sm:$0xff] %v4693_v62  ;;  %v4715_v8 = vsel %vm274_vm1, %v306_v56, %v308_v61  ;;  %v316_v16 = vrot.slane %v4706_v7, 1  ;;  %v4724_v17 = vld [vmem:[%s4526_s25 + $0xd0] sm:$0x3]  ;;  %v949_v23 = vrot.slane %v4535_v6, 2  ;;  %v950_v24 = vrot.slane %v4540_v9, 2 }
  0x20   : > { %5819 = vst [vmem:[#allocation13_spill] sm:$0xff] %v4715_v8  ;;  %v4719_v12 = vsel %vm274_vm1, %v310_v63, %v311_v0  ;;  %v4735_v19 = vsel %vm274_vm1, %v311_v0, %v313_v10  ;;  %v318_v21 = vrot.slane %v4724_v17, 1  ;;  %v4744_v28 = vld [vmem:[%s4526_s25 + $0xd8] sm:$0xff]  ;;  %v4747_v29 = vld [vmem:[%s4526_s25 + $0xe0] sm:$0xff]  ;;  %v952_v30 = vrot.slane %v4549_v14, 2  ;;  %v4772_v53 = vld [vmem:[%s4526_s25 + $0xf0] sm:$0xff] }
  0x21   : > { %3754 = vmatmul.mubr.msk.f32.gmra.mrb[4].mxu1 %vm357_vm2, %v4606_v36  ;;  %3954 = vmatmul.mubr.msk.f32.gmra.mrb[4].mxu0 %vm357_vm2, %v4637_v44  ;;  %5820 = vst [vmem:[#allocation14_spill] sm:$0xff] %v4719_v12  ;;  %5821 = vst [vmem:[#allocation15_spill] sm:$0xff] %v4735_v19  ;;  %v4739_v22 = vsel %vm274_vm1, %v315_v13, %v316_v16  ;;  %v320_v39 = vrot.slane %v4744_v28, 1  ;;  %v321_v40 = vrot.slane %v4747_v29, 1  ;;  %v4764_v45 = vld [vmem:[%s4526_s25 + $0xe8] sm:$0x3] }
  0x22   : > { %3756 = vmatprep.mubr.msk.f32.mxu1 %vm357_vm2, %v4612_v38  ;;  %3956 = vmatprep.mubr.msk.f32.mxu0 %vm357_vm2, %v4641_v46  ;;  %5822 = vst [vmem:[#allocation16_spill] sm:$0xff] %v4739_v22  ;;  %v4759_v37 = vsel %vm274_vm1, %v316_v16, %v318_v21  ;;  %v4767_v47 = vsel %vm943_vm3, %v949_v23, %v950_v24  ;;  %v954_v48 = vrot.slane %v4552_v15, 2  ;;  %v955_v14 = vrot.slane %v4557_v18, 2  ;;  %v4775_v55 = vld [vmem:[%s4526_s25 + $0xf8] sm:$0xff]  ;;  %v4796_v16 = vld [vmem:[%s4526_s25 + $0x100] sm:$0x3] }
  0x23   : > { %5823 = vst [vmem:[#allocation17_spill] sm:$0xff] %v4759_v37  ;;  %v323_v56 = vrot.slane %v4764_v45, 1  ;;  %v957_v61 = vrot.slane %v4561_v20, 2  ;;  %v4788_v63 = vsel %vm943_vm3, %v950_v24, %v952_v30  ;;  %v4791_v0 = vsel %vm274_vm1, %v320_v39, %v321_v40  ;;  %v4807_v24 = vld [vmem:[%s4526_s25 + $0x110] sm:$0xff]  ;;  %v4814_v30 = vld [vmem:[%s5732_s1 + $0x1c] sm:$0xf] }
  0x24   : > { %5824 = vst [vmem:[#allocation18_spill] sm:$0xff] %v4791_v0  ;;  %v325_v10 = vrot.slane %v4772_v53, 1  ;;  %v326_v13 = vrot.slane %v4775_v55, 1  ;;  %v4799_v21 = vsel %vm943_vm3, %v954_v48, %v955_v14  ;;  %v959_v20 = vrot.slane %v4569_v25, 2  ;;  %v4910_v36 = vld [vmem:[%s4526_s25 + $0x148] sm:$0x3] }
  0x25   : > { %3757 = vmatmul.mubr.msk.f32.gmra.mrb[6].mxu1 %vm357_vm2, %v4637_v44  ;;  %3957 = vmatmul.mubr.msk.f32.gmra.mrb[6].mxu0 %vm357_vm2, %v4663_v52  ;;  %v960_v23 = vrot.slane %v4572_v26, 2  ;;  %v4821_v39 = vsel %vm274_vm1, %v321_v40, %v323_v56  ;;  %v4824_v48 = vsel %vm943_vm3, %v955_v14, %v957_v61  ;;  %v331_v40 = vrot.slane %v4807_v24, 1  ;;  %v4838_v56 = vld [vmem:[%s4526_s25 + $0x118] sm:$0x3] }
  0x26   : > { %3759 = vmatprep.mubr.msk.f32.mxu1 %vm357_vm2, %v4641_v46  ;;  %3959 = vmatprep.mubr.msk.f32.mxu0 %vm357_vm2, %v4667_v54  ;;  %5825 = vst [vmem:[#allocation19_spill] sm:$0xff] %v4821_v39  ;;  %5826 = vst [vmem:[#allocation20_spill] sm:$0xff] %v4824_v48  ;;  %v964_v61 = vrot.slane %v4583_v31, 2  ;;  %v4883_v46 = vld [vmem:[%s4526_s25 + $0x138] sm:$0xff]  ;;  %v972_v44 = vrot.slane %v4646_v49, 2  ;;  %v977_v34 = vrot.slane %v4672_v57, 2 }
  0x27   : > { %v4841_v14 = vsel %vm943_vm3, %v959_v20, %v960_v23  ;;  %v333_v20 = vrot.slane %v4838_v56, 1  ;;  %v340_v38 = vrot.slane %v4883_v46, 1  ;;  %v979_v57 = vrot.slane %v4677_v58, 2 }
  0x28   : > { %5828 = vst [vmem:[#allocation22_spill] sm:$0xff] %v4841_v14 }
  0x29   : > { %3760 = vmatmul.mubr.msk.f32.gmra.mrb[8].mxu1 %vm357_vm2, %v4663_v52  ;;  %3960 = vmatmul.mubr.msk.f32.gmra.mrb[8].mxu0 %vm357_vm2, %v4689_v60  ;;  %v4875_v52 = vld [vmem:[%s4526_s25 + $0x130] sm:$0x3] }
  0x2a   : > { %3762 = vmatprep.mubr.msk.f32.mxu1 %vm357_vm2, %v4667_v54  ;;  %3962 = vmatprep.mubr.msk.f32.mxu0 %vm357_vm2, %v4693_v62 }
  0x2d   : > { %3763 = vmatmul.mubr.msk.f32.gmra.mrb[10].mxu1 %vm357_vm2, %v4689_v60  ;;  %3963 = vmatmul.mubr.msk.f32.gmra.mrb[10].mxu0 %vm357_vm2, %v4715_v8 }
  0x2e   : > { %3765 = vmatprep.mubr.msk.f32.mxu1 %vm357_vm2, %v4693_v62  ;;  %3965 = vmatprep.mubr.msk.f32.mxu0 %vm357_vm2, %v4719_v12  ;;  %v967_v62 = vrot.slane %v4617_v41, 2  ;;  %v969_v41 = vrot.slane %v4623_v42, 2 }
  0x31   : > { %3766 = vmatmul.mubr.msk.f32.gmra.mrb[12].mxu1 %vm357_vm2, %v4715_v8  ;;  %3966 = vmatmul.mubr.msk.f32.gmra.mrb[12].mxu0 %vm357_vm2, %v4735_v19  ;;  %v4846_v8 = vld [vmem:[%s4526_s25 + $0x120] sm:$0xff] }
  0x32   : > { %3768 = vmatprep.mubr.msk.f32.mxu1 %vm357_vm2, %v4719_v12  ;;  %3968 = vmatprep.mubr.msk.f32.mxu0 %vm357_vm2, %v4739_v22  ;;  %v962_v12 = vrot.slane %v4575_v27, 2  ;;  %v335_v54 = vrot.slane %v4846_v8, 1 }
  0x34   : > { %v4867_v60 = vsel %vm943_vm3, %v960_v23, %v962_v12  ;;  %v4886_v12 = vld [vmem:[%s4526_s25 + $0x140] sm:$0xff] }
  0x35   : > { %3769 = vmatmul.mubr.msk.f32.gmra.mrb[14].mxu1 %vm357_vm2, %v4735_v19  ;;  %3969 = vmatmul.mubr.msk.f32.gmra.mrb[14].mxu0 %vm357_vm2, %v4759_v37  ;;  %v4832_v19 = vsel %vm274_vm1, %v325_v10, %v326_v13  ;;  %v4849_v10 = vld [vmem:[%s4526_s25 + $0x128] sm:$0xff]  ;;  %5830 = vst [vmem:[#allocation24_spill] sm:$0xff] %v4867_v60 }
  0x36   : > { %3771 = vmatprep.mubr.msk.f32.mxu1 %vm357_vm2, %v4739_v22  ;;  %3997 = vmatprep.mubr.msk.f32.mxu0 %vm357_vm2, %v4767_v47  ;;  %v4804_v22 = vld [vmem:[%s4526_s25 + $0x108] sm:$0xff]  ;;  %5827 = vst [vmem:[#allocation21_spill] sm:$0xff] %v4832_v19 }
  0x39   : > { %3772 = vmatmul.mubr.msk.f32.gmra.mrb[16].mxu1 %vm357_vm2, %v4759_v37  ;;  %3998 = vmatmul.mubr.msk.f32.vlgmr.msra.gmra.mrb[0].mxu0 %vm357_vm2, %v4788_v63  ;;  %v328_v37 = vrot.slane %v4796_v16, 1 }
  0x3a   : > { %3774 = vmatprep.mubr.msk.f32.mxu1 %vm357_vm2, %v4791_v0  ;;  %4046 = vmatpush3.msk.msra.mxu0 %vm422_vm0, %v4591_v33  ;;  %v330_v0 = vrot.slane %v4804_v22, 1  ;;  %v965_v33 = vrot.slane %v4586_v32, 2 }
  0x3b   : > { %4000 = vmatprep.mubr.msk.f32.mxu0 %vm357_vm2, %v4799_v21  ;;  %4095 = vmatprep.subr.msk.mxu0 %vm422_vm0, %v4814_v30  ;;  %v4860_v27 = vsel %vm274_vm1, %v326_v13, %v328_v37  ;;  %v970_v13 = vrot.slane %v4626_v43, 2 }
  0x3c   : > { %5829 = vst [vmem:[#allocation23_spill] sm:$0xff] %v4860_v27  ;;  %v4878_v37 = vsel %vm943_vm3, %v964_v61, %v965_v33  ;;  %v4898_v23 = vsel %vm943_vm3, %v965_v33, %v967_v62  ;;  %v338_v61 = vrot.slane %v4875_v52, 1  ;;  %v974_v62 = vrot.slane %v4651_v50, 2 }
  0x3d   : > { %3775 = vmatmul.mubr.msk.f32.gmra.mrb[18].mxu1 %vm357_vm2, %v4821_v39  ;;  %4001 = vmatmul.mubr.msk.f32.gmra.mrb[2].mxu0 %vm357_vm2, %v4824_v48  ;;  %v4870_v39 = vsel %vm274_vm1, %v330_v0, %v331_v40  ;;  %5832 = vst [vmem:[#allocation26_spill] sm:$0xff] %v4878_v37  ;;  %v4895_v0 = vsel %vm274_vm1, %v331_v40, %v333_v20  ;;  %5834 = vst [vmem:[#allocation28_spill] sm:$0xff] %v4898_v23  ;;  %v975_v33 = vrot.slane %v4654_v51, 2  ;;  %v4918_v20 = vld [vmem:[%s4526_s25 + $0x150] sm:$0xff]  ;;  %v4980_v48 = vld [vmem:[%s4526_s25 + $0x178] sm:$0x3] }
  0x3e   : > { %3777 = vmatprep.mubr.msk.f32.mxu1 %vm357_vm2, %v4832_v19  ;;  %4003 = vmatprep.mubr.msk.f32.mxu0 %vm357_vm2, %v4841_v14  ;;  %5831 = vst [vmem:[#allocation25_spill] sm:$0xff] %v4870_v39  ;;  %v336_v19 = vrot.slane %v4849_v10, 1  ;;  %5833 = vst [vmem:[#allocation27_spill] sm:$0xff] %v4895_v0  ;;  %v4913_v40 = vsel %vm943_vm3, %v969_v41, %v970_v13  ;;  %v343_v41 = vrot.slane %v4910_v36, 1 }
  0x3f   : > { %5836 = vst [vmem:[#allocation30_spill] sm:$0xff] %v4913_v40 }
  0x40   : > { %v4930_v49 = vsel %vm274_vm1, %v336_v19, %v338_v61  ;;  %v980_v61 = vrot.slane %v4680_v59, 2 }
  0x41   : > { %3778 = vmatmul.mubr.msk.f32.gmra.mrb[20].mxu1 %vm357_vm2, %v4860_v27  ;;  %4004 = vmatmul.mubr.msk.f32.gmra.mrb[4].mxu0 %vm357_vm2, %v4867_v60  ;;  %v4904_v27 = vsel %vm274_vm1, %v335_v54, %v336_v19  ;;  %v4921_v54 = vld [vmem:[%s4526_s25 + $0x158] sm:$0xff]  ;;  %5837 = vst [vmem:[#allocation31_spill] sm:$0xff] %v4930_v49  ;;  %v4945_v60 = vld [vmem:[%s4526_s25 + $0x160] sm:$0x3]  ;;  %v4948_v19 = vsel %vm943_vm3, %v974_v62, %v975_v33 }
  0x42   : > { %3780 = vmatprep.mubr.msk.f32.mxu1 %vm357_vm2, %v4870_v39  ;;  %4006 = vmatprep.mubr.msk.f32.mxu0 %vm357_vm2, %v4878_v37  ;;  %5835 = vst [vmem:[#allocation29_spill] sm:$0xff] %v4904_v27  ;;  %v341_v39 = vrot.slane %v4886_v12, 1  ;;  %v4937_v37 = vsel %vm943_vm3, %v970_v13, %v972_v44  ;;  %v4956_v44 = vld [vmem:[%s4526_s25 + $0x170] sm:$0xff]  ;;  %v4968_v13 = vsel %vm943_vm3, %v975_v33, %v977_v34  ;;  %v348_v62 = vrot.slane %v4945_v60, 1 }
  0x43   : > { %5838 = vst [vmem:[#allocation32_spill] sm:$0xff] %v4937_v37  ;;  %5840 = vst [vmem:[#allocation34_spill] sm:$0xff] %v4956_v44  ;;  %v984_v34 = vrot.slane %v4703_v3, 2  ;;  %v985_v33 = vrot.slane %v4706_v7, 2 }
  0x44   : > { %5842 = vst [vmem:[#allocation36_spill] sm:$0xff] %v4968_v13 }
  0x45   : > { %3781 = vmatmul.mubr.msk.f32.gmra.mrb[22].mxu1 %vm357_vm2, %v4895_v0  ;;  %4007 = vmatmul.mubr.msk.f32.gmra.mrb[6].mxu0 %vm357_vm2, %v4898_v23  ;;  %v4940_v0 = vsel %vm274_vm1, %v340_v38, %v341_v39  ;;  %v345_v23 = vrot.slane %v4918_v20, 1  ;;  %v4965_v38 = vsel %vm274_vm1, %v341_v39, %v343_v41  ;;  %v4983_v39 = vsel %vm943_vm3, %v979_v57, %v980_v61 }
  0x46   : > { %3783 = vmatprep.mubr.msk.f32.mxu1 %vm357_vm2, %v4904_v27  ;;  %4009 = vmatprep.mubr.msk.f32.mxu0 %vm357_vm2, %v4913_v40  ;;  %5839 = vst [vmem:[#allocation33_spill] sm:$0xff] %v4940_v0  ;;  %v346_v27 = vrot.slane %v4921_v54, 1  ;;  %v4953_v40 = vld [vmem:[%s4526_s25 + $0x168] sm:$0xff]  ;;  %5841 = vst [vmem:[#allocation35_spill] sm:$0xff] %v4965_v38 }
  0x48   : > { %v4974_v14 = vsel %vm274_vm1, %v345_v23, %v346_v27  ;;  %v353_v23 = vrot.slane %v4980_v48, 1 }
  0x49   : > { %3784 = vmatmul.mubr.msk.f32.gmra.mrb[24].mxu1 %vm357_vm2, %v4930_v49  ;;  %4010 = vmatmul.mubr.msk.f32.gmra.mrb[8].mxu0 %vm357_vm2, %v4937_v37  ;;  %5843 = vst [vmem:[#allocation37_spill] sm:$0xff] %v4974_v14  ;;  %v982_v49 = vrot.slane %v4698_v2, 2  ;;  %v350_v37 = vrot.slane %v4953_v40, 1  ;;  %v4994_v2 = vsel %vm274_vm1, %v346_v27, %v348_v62  ;;  %v990_v27 = vrot.slane %v4747_v29, 2 }
  0x4a   : > { %3786 = vmatprep.mubr.msk.f32.mxu1 %vm357_vm2, %v4940_v0  ;;  %4012 = vmatprep.mubr.msk.f32.mxu0 %vm357_vm2, %v4948_v19  ;;  %v351_v0 = vrot.slane %v4956_v44, 1  ;;  %5844 = vst [vmem:[#allocation38_spill] sm:$0xff] %v4994_v2  ;;  %v994_v62 = vrot.slane %v4772_v53, 2 }
  0x4b   : > { %v5000_v41 = vsel %vm943_vm3, %v980_v61, %v982_v49  ;;  %v992_v49 = vrot.slane %v4764_v45, 2 }
  0x4c   : > { %v5003_v57 = vsel %vm274_vm1, %v350_v37, %v351_v0  ;;  %v5018_v37 = vsel %vm274_vm1, %v351_v0, %v353_v23  ;;  %v5053_v23 = vld [vmem:[%s5732_s1 + $0xc] sm:$0xf] }
  0x4d   : > { %3787 = vmatmul.mubr.msk.f32.gmra.mrb[26].mxu1 %vm357_vm2, %v4965_v38  ;;  %4013 = vmatmul.mubr.msk.f32.gmra.mrb[10].mxu0 %vm357_vm2, %v4968_v13  ;;  %5845 = vst [vmem:[#allocation39_spill] sm:$0xff] %v5003_v57  ;;  %v987_v38 = vrot.slane %v4724_v17, 2  ;;  %v5007_v13 = vsel %vm943_vm3, %v984_v34, %v985_v33  ;;  %5846 = vst [vmem:[#allocation40_spill] sm:$0xff] %v5018_v37  ;;  %v995_v34 = vrot.slane %v4775_v55, 2 }
  0x4e   : > { %3789 = vmatprep.mubr.msk.f32.mxu1 %vm357_vm2, %v4974_v14  ;;  %4015 = vmatprep.mubr.msk.f32.mxu0 %vm357_vm2, %v4983_v39  ;;  %v989_v14 = vrot.slane %v4744_v28, 2  ;;  %v5040_v45 = vsel %vm943_vm3, %v990_v27, %v992_v49 }
  0x4f   : > { %v5023_v17 = vsel %vm943_vm3, %v985_v33, %v987_v38  ;;  %v5044_v0 = vsel %vm943_vm3, %v994_v62, %v995_v34  ;;  %v999_v38 = vrot.slane %v4804_v22, 2  ;;  %v1000_v33 = vrot.slane %v4807_v24, 2 }
  0x50   : > { %v5027_v61 = vsel %vm943_vm3, %v989_v14, %v990_v27  ;;  %v997_v14 = vrot.slane %v4796_v16, 2  ;;  %v1002_v27 = vrot.slane %v4838_v56, 2  ;;  %v1004_v62 = vrot.slane %v4846_v8, 2 }
  0x51   : > { %3790 = vmatmul.mubr.msk.f32.gmra.mrb[28].mxu1 %vm357_vm2, %v4994_v2  ;;  %4016 = vmatmul.mubr.msk.f32.gmra.mrb[12].mxu0 %vm357_vm2, %v5000_v41  ;;  %v5068_v49 = vsel %vm943_vm3, %v999_v38, %v1000_v33  ;;  %v1009_v38 = vrot.slane %v4883_v46, 2  ;;  %v1020_v2 = vrot.slane %v4956_v44, 2 }
  0x52   : > { %3792 = vmatprep.mubr.msk.f32.mxu1 %vm357_vm2, %v5003_v57  ;;  %4018 = vmatprep.mubr.msk.f32.mxu0 %vm357_vm2, %v5007_v13  ;;  %v5064_v16 = vsel %vm943_vm3, %v995_v34, %v997_v14  ;;  %5847 = vst [vmem:[#allocation41_spill] sm:$0xff] %v5068_v49  ;;  %v5083_v56 = vsel %vm943_vm3, %v1000_v33, %v1002_v27  ;;  %v1007_v34 = vrot.slane %v4875_v52, 2  ;;  %v1012_v33 = vrot.slane %v4910_v36, 2 }
  0x53   : > { %v1015_v57 = vrot.slane %v4921_v54, 2 }
  0x55   : > { %3793 = vmatmul.mubr.msk.f32.gmra.mrb[30].mxu1 %vm357_vm2, %v5018_v37  ;;  %4019 = vmatmul.mubr.msk.f32.gmra.mrb[14].mxu0 %vm357_vm2, %v5023_v17  ;;  %v1010_v37 = vrot.slane %v4886_v12, 2 }
  0x56   : > { %3797 = vmatprep.mubr.msk.f32.mxu1 %vm357_vm2, %v4529_v4  ;;  %4021 = vmatprep.mubr.msk.f32.mxu0 %vm357_vm2, %v5027_v61 }
  0x57   : > { %v5104_v27 = vsel %vm943_vm3, %v1009_v38, %v1010_v37  ;;  %v5117_v36 = vsel %vm943_vm3, %v1010_v37, %v1012_v33  ;;  %v1019_v38 = vrot.slane %v4953_v40, 2  ;;  %v1022_v37 = vrot.slane %v4980_v48, 2 }
  0x58   : > { %5849 = vst [vmem:[#allocation43_spill] sm:$0xff] %v5104_v27  ;;  %5850 = vst [vmem:[#allocation44_spill] sm:$0xff] %v5117_v36 }
  0x59   : > { %3798 = vmatmul.mubr.msk.f32.vlgmr.msra.gmra.mrb[0].mxu1 %vm357_vm2, %v4532_v5  ;;  %4022 = vmatmul.mubr.msk.f32.gmra.mrb[16].mxu0 %vm357_vm2, %v5040_v45  ;;  %v5144_v33 = vsel %vm943_vm3, %v1019_v38, %v1020_v2  ;;  %v5160_v48 = vsel %vm943_vm3, %v1020_v2, %v1022_v37  ;;  %v945_v38 = vrot.slane %v4532_v5, 2  ;;  %v947_v37 = vrot.slane %v4544_v11, 2  ;;  %v5857_v5 = vld [vmem:[#allocation20_spill] sm:$0xff]  ;;  %v5858_v11 = vld [vmem:[#allocation22_spill] sm:$0xff] }
  0x5a   : > { %3846 = vmatpush3.msk.msra.mxu1 %vm422_vm0, %v4601_v35  ;;  %3800 = vmatprep.mubr.msk.f32.mxu1 %vm357_vm2, %v4535_v6  ;;  %v1005_v35 = vrot.slane %v4849_v10, 2  ;;  %v5131_v6 = vld [vmem:[%s4526_s25 + $0x188] sm:$0xff]  ;;  %5853 = vst [vmem:[#allocation47_spill] sm:$0xff] %v5144_v33  ;;  %5854 = vst [vmem:[#allocation48_spill] sm:$0xff] %v5160_v48 }
  0x5b   : > { %4024 = vmatprep.mubr.msk.f32.mxu0 %vm357_vm2, %v5044_v0  ;;  %3895 = vmatprep.subr.msk.mxu1 %vm422_vm0, %v5053_v23 }
  0x5c   : > { %v5087_v14 = vsel %vm943_vm3, %v1004_v62, %v1005_v35  ;;  %v5100_v52 = vsel %vm943_vm3, %v1005_v35, %v1007_v34  ;;  %v1014_v62 = vrot.slane %v4918_v20, 2  ;;  %v1017_v35 = vrot.slane %v4945_v60, 2 }
  0x5d   : > { %3801 = vmatmul.mubr.msk.f32.gmra.mrb[2].mxu1 %vm357_vm2, %v4540_v9  ;;  %4025 = vmatmul.mubr.msk.f32.gmra.mrb[18].mxu0 %vm357_vm2, %v5064_v16  ;;  %5848 = vst [vmem:[#allocation42_spill] sm:$0xff] %v5100_v52  ;;  %v5128_v9 = vld [vmem:[%s4526_s25 + $0x180] sm:$0xff] }
  0x5e   : > { %3803 = vmatprep.mubr.msk.f32.mxu1 %vm357_vm2, %v4552_v15  ;;  %4027 = vmatprep.mubr.msk.f32.mxu0 %vm357_vm2, %v5068_v49  ;;  %v5121_v34 = vsel %vm943_vm3, %v1014_v62, %v1015_v57  ;;  %v5140_v60 = vsel %vm943_vm3, %v1015_v57, %v1017_v35  ;;  %v1890_v62 = vrot.slane %v5128_v9, 2 }
  0x5f   : > { %5851 = vst [vmem:[#allocation45_spill] sm:$0xff] %v5121_v34  ;;  %5852 = vst [vmem:[#allocation46_spill] sm:$0xff] %v5140_v60 }
  0x61   : > { %3804 = vmatmul.mubr.msk.f32.gmra.mrb[4].mxu1 %vm357_vm2, %v4557_v18  ;;  %4028 = vmatmul.mubr.msk.f32.gmra.mrb[20].mxu0 %vm357_vm2, %v5083_v56 }
  0x62   : > { %3806 = vmatprep.mubr.msk.f32.mxu1 %vm357_vm2, %v4569_v25  ;;  %4030 = vmatprep.mubr.msk.f32.mxu0 %vm357_vm2, %v5087_v14 }
  0x65   : > { %3807 = vmatmul.mubr.msk.f32.gmra.mrb[6].mxu1 %vm357_vm2, %v4572_v26  ;;  %4031 = vmatmul.mubr.msk.f32.gmra.mrb[22].mxu0 %vm357_vm2, %v5100_v52  ;;  %v5149_v52 = vld [vmem:[%s4526_s25 + $0x190] sm:$0x3] }
  0x66   : > { %3809 = vmatprep.mubr.msk.f32.mxu1 %vm357_vm2, %v4583_v31  ;;  %4033 = vmatprep.mubr.msk.f32.mxu0 %vm357_vm2, %v5104_v27  ;;  %v1891_v27 = vrot.slane %v5131_v6, 2  ;;  %v1893_v57 = vrot.slane %v5149_v52, 2 }
  0x68   : > { %v5164_v35 = vsel %vm943_vm3, %v1890_v62, %v1891_v27  ;;  %v5175_v2 = vsel %vm943_vm3, %v1891_v27, %v1893_v57  ;;  %v5190_v27 = vld [vmem:[%s5732_s1 + $0x20] sm:$0xf] }
  0x69   : > { %3810 = vmatmul.mubr.msk.f32.gmra.mrb[8].mxu1 %vm357_vm2, %v4586_v32  ;;  %4034 = vmatmul.mubr.msk.f32.gmra.mrb[24].mxu0 %vm357_vm2, %v5117_v36  ;;  %5855 = vst [vmem:[#allocation49_spill] sm:$0xff] %v5164_v35  ;;  %5856 = vst [vmem:[#allocation50_spill] sm:$0xff] %v5175_v2  ;;  %v5862_v57 = vld [vmem:[#allocation30_spill] sm:$0xff] }
  0x6a   : > { %3812 = vmatprep.mubr.msk.f32.mxu1 %vm357_vm2, %v4623_v42  ;;  %4036 = vmatprep.mubr.msk.f32.mxu0 %vm357_vm2, %v5121_v34 }
  0x6d   : > { %3813 = vmatmul.mubr.msk.f32.gmra.mrb[10].mxu1 %vm357_vm2, %v4626_v43  ;;  %4037 = vmatmul.mubr.msk.f32.gmra.mrb[26].mxu0 %vm357_vm2, %v5140_v60 }
  0x6e   : > { %3815 = vmatprep.mubr.msk.f32.mxu1 %vm357_vm2, %v4651_v50  ;;  %4039 = vmatprep.mubr.msk.f32.mxu0 %vm357_vm2, %v5144_v33 }
  0x71   : > { %3816 = vmatmul.mubr.msk.f32.gmra.mrb[12].mxu1 %vm357_vm2, %v4654_v51  ;;  %4040 = vmatmul.mubr.msk.f32.gmra.mrb[28].mxu0 %vm357_vm2, %v5160_v48 }
  0x72   : > { %3818 = vmatprep.mubr.msk.f32.mxu1 %vm357_vm2, %v4677_v58  ;;  %4042 = vmatprep.mubr.msk.f32.mxu0 %vm357_vm2, %v5164_v35  ;;  %v5867_v35 = vld [vmem:[#allocation6_spill] sm:$0xff] }
  0x75   : > { %3819 = vmatmul.mubr.msk.f32.gmra.mrb[14].mxu1 %vm357_vm2, %v4680_v59  ;;  %4043 = vmatmul.mubr.msk.f32.gmra.mrb[30].mxu0 %vm357_vm2, %v5175_v2  ;;  %v5866_v2 = vld [vmem:[#allocation5_spill] sm:$0xff] }
  0x76   : > { %3821 = vmatprep.mubr.msk.f32.mxu1 %vm357_vm2, %v4703_v3  ;;  %4047 = vmatprep.mubr.msk.f32.mxu0 %vm357_vm2, %v4552_v15 }
  0x79   : > { %3822 = vmatmul.mubr.msk.f32.gmra.mrb[16].mxu1 %vm357_vm2, %v4706_v7  ;;  %4048 = vmatmul.mubr.msk.f32.vlgmr.msra.gmra.mrb[0].mxu0 %vm357_vm2, %v4557_v18 }
  0x7a   : > { %3824 = vmatprep.mubr.msk.f32.mxu1 %vm357_vm2, %v4744_v28  ;;  %4096 = vmatpush3.msk.msra.mxu0 %vm422_vm0, %v4814_v30  ;;  %v944_v30 = vrot.slane %v4529_v4, 2  ;;  %v948_v4 = vsel %vm943_vm3, %v945_v38, %v947_v37  ;;  %v5864_v37 = vld [vmem:[#allocation36_spill] sm:$0xff] }
  0x7b   : > { %4050 = vmatprep.mubr.msk.f32.mxu0 %vm357_vm2, %v4569_v25  ;;  %4145 = vmatprep.subr.msk.mxu0 %vm422_vm0, %v5190_v27 }
  0x7c   : > { %v946_v62 = vsel %vm943_vm3, %v944_v30, %v945_v38  ;;  %v5863_v30 = vld [vmem:[#allocation32_spill] sm:$0xff]  ;;  %v5314_v38 = vld [vmem:[%s4526_s25 + $0x198] sm:$0xff] }
  0x7d   : > { %3825 = vmatmul.mubr.msk.f32.gmra.mrb[18].mxu1 %vm357_vm2, %v4747_v29  ;;  %4051 = vmatmul.mubr.msk.f32.gmra.mrb[2].mxu0 %vm357_vm2, %v4572_v26 }
  0x7e   : > { %3827 = vmatprep.mubr.msk.f32.mxu1 %vm357_vm2, %v4772_v53  ;;  %4053 = vmatprep.mubr.msk.f32.mxu0 %vm357_vm2, %v4583_v31 }
  0x81   : > { %3828 = vmatmul.mubr.msk.f32.gmra.mrb[20].mxu1 %vm357_vm2, %v4775_v55  ;;  %4054 = vmatmul.mubr.msk.f32.gmra.mrb[4].mxu0 %vm357_vm2, %v4586_v32 }
  0x82   : > { %3830 = vmatprep.mubr.msk.f32.mxu1 %vm357_vm2, %v4804_v22  ;;  %4056 = vmatprep.mubr.msk.f32.mxu0 %vm357_vm2, %v4623_v42 }
  0x85   : > { %3831 = vmatmul.mubr.msk.f32.gmra.mrb[22].mxu1 %vm357_vm2, %v4807_v24  ;;  %4057 = vmatmul.mubr.msk.f32.gmra.mrb[6].mxu0 %vm357_vm2, %v4626_v43 }
  0x86   : > { %3833 = vmatprep.mubr.msk.f32.mxu1 %vm357_vm2, %v4846_v8  ;;  %4059 = vmatprep.mubr.msk.f32.mxu0 %vm357_vm2, %v4651_v50 }
  0x89   : > { %3834 = vmatmul.mubr.msk.f32.gmra.mrb[24].mxu1 %vm357_vm2, %v4849_v10  ;;  %4060 = vmatmul.mubr.msk.f32.gmra.mrb[8].mxu0 %vm357_vm2, %v4654_v51 }
  0x8a   : > { %3836 = vmatprep.mubr.msk.f32.mxu1 %vm357_vm2, %v4883_v46  ;;  %4062 = vmatprep.mubr.msk.f32.mxu0 %vm357_vm2, %v4677_v58 }
  0x8d   : > { %3837 = vmatmul.mubr.msk.f32.gmra.mrb[26].mxu1 %vm357_vm2, %v4886_v12  ;;  %4063 = vmatmul.mubr.msk.f32.gmra.mrb[10].mxu0 %vm357_vm2, %v4680_v59 }
  0x8e   : > { %3839 = vmatprep.mubr.msk.f32.mxu1 %vm357_vm2, %v4918_v20  ;;  %4065 = vmatprep.mubr.msk.f32.mxu0 %vm357_vm2, %v4703_v3 }
  0x91   : > { %3840 = vmatmul.mubr.msk.f32.gmra.mrb[28].mxu1 %vm357_vm2, %v4921_v54  ;;  %4066 = vmatmul.mubr.msk.f32.gmra.mrb[12].mxu0 %vm357_vm2, %v4706_v7 }
  0x92   : > { %3842 = vmatprep.mubr.msk.f32.mxu1 %vm357_vm2, %v4953_v40  ;;  %4068 = vmatprep.mubr.msk.f32.mxu0 %vm357_vm2, %v4744_v28 }
  0x95   : > { %3843 = vmatmul.mubr.msk.f32.gmra.mrb[30].mxu1 %vm357_vm2, %v4956_v44  ;;  %4069 = vmatmul.mubr.msk.f32.gmra.mrb[14].mxu0 %vm357_vm2, %v4747_v29 }
  0x96   : > { %3847 = vmatprep.mubr.msk.f32.mxu1 %vm357_vm2, %v946_v62  ;;  %4071 = vmatprep.mubr.msk.f32.mxu0 %vm357_vm2, %v4772_v53  ;;  %v5325_v62 = vld [vmem:[%s4526_s25 + $0x1a0] sm:$0xff] }
  0x99   : > { %3848 = vmatmul.mubr.msk.f32.vlgmr.msra.gmra.mrb[0].mxu1 %vm357_vm2, %v948_v4  ;;  %4072 = vmatmul.mubr.msk.f32.gmra.mrb[16].mxu0 %vm357_vm2, %v4775_v55  ;;  %v5865_v4 = vld [vmem:[#allocation4_spill] sm:$0xff] }
  0x9a   : > { %3896 = vmatpush3.msk.msra.mxu1 %vm422_vm0, %v5053_v23  ;;  %3850 = vmatprep.mubr.msk.f32.mxu1 %vm357_vm2, %v4767_v47  ;;  %v5859_v47 = vld [vmem:[#allocation24_spill] sm:$0xff] }
  0x9b   : > { %4074 = vmatprep.mubr.msk.f32.mxu0 %vm357_vm2, %v4804_v22  ;;  %4195 = vmatprep.subr.msk.mxu1 %vm422_vm0, %v4504_v1  ;;  %v5861_v23 = vld [vmem:[#allocation28_spill] sm:$0xff] }
  0x9d   : > { %3851 = vmatmul.mubr.msk.f32.gmra.mrb[2].mxu1 %vm357_vm2, %v4788_v63  ;;  %4075 = vmatmul.mubr.msk.f32.gmra.mrb[18].mxu0 %vm357_vm2, %v4807_v24  ;;  %v5860_v63 = vld [vmem:[#allocation26_spill] sm:$0xff] }
  0x9e   : > { %3853 = vmatprep.mubr.msk.f32.mxu1 %vm357_vm2, %v4799_v21  ;;  %4077 = vmatprep.mubr.msk.f32.mxu0 %vm357_vm2, %v4846_v8 }
  0xa1   : > { %3854 = vmatmul.mubr.msk.f32.gmra.mrb[4].mxu1 %vm357_vm2, %v5857_v5  ;;  %4078 = vmatmul.mubr.msk.f32.gmra.mrb[20].mxu0 %vm357_vm2, %v4849_v10 }
  0xa2   : > { %3856 = vmatprep.mubr.msk.f32.mxu1 %vm357_vm2, %v5858_v11  ;;  %4080 = vmatprep.mubr.msk.f32.mxu0 %vm357_vm2, %v4883_v46 }
  0xa5   : > { %3857 = vmatmul.mubr.msk.f32.gmra.mrb[6].mxu1 %vm357_vm2, %v5859_v47  ;;  %4081 = vmatmul.mubr.msk.f32.gmra.mrb[22].mxu0 %vm357_vm2, %v4886_v12 }
  0xa6   : > { %3859 = vmatprep.mubr.msk.f32.mxu1 %vm357_vm2, %v5860_v63  ;;  %4083 = vmatprep.mubr.msk.f32.mxu0 %vm357_vm2, %v4918_v20 }
  0xa9   : > { %3860 = vmatmul.mubr.msk.f32.gmra.mrb[8].mxu1 %vm357_vm2, %v5861_v23  ;;  %4084 = vmatmul.mubr.msk.f32.gmra.mrb[24].mxu0 %vm357_vm2, %v4921_v54 }
  0xaa   : > { %3862 = vmatprep.mubr.msk.f32.mxu1 %vm357_vm2, %v5862_v57  ;;  %4086 = vmatprep.mubr.msk.f32.mxu0 %vm357_vm2, %v4953_v40 }
  0xad   : > { %3863 = vmatmul.mubr.msk.f32.gmra.mrb[10].mxu1 %vm357_vm2, %v5863_v30  ;;  %4087 = vmatmul.mubr.msk.f32.gmra.mrb[26].mxu0 %vm357_vm2, %v4956_v44  ;;  %v5868_v44 = vld [vmem:[#allocation7_spill] sm:$0xff] }
  0xae   : > { %3865 = vmatprep.mubr.msk.f32.mxu1 %vm357_vm2, %v4948_v19  ;;  %4089 = vmatprep.mubr.msk.f32.mxu0 %vm357_vm2, %v5128_v9 }
  0xb1   : > { %3866 = vmatmul.mubr.msk.f32.gmra.mrb[12].mxu1 %vm357_vm2, %v5864_v37  ;;  %4090 = vmatmul.mubr.msk.f32.gmra.mrb[28].mxu0 %vm357_vm2, %v5131_v6 }
  0xb2   : > { %3868 = vmatprep.mubr.msk.f32.mxu1 %vm357_vm2, %v4983_v39  ;;  %4092 = vmatprep.mubr.msk.f32.mxu0 %vm357_vm2, %v5314_v38 }
  0xb5   : > { %3869 = vmatmul.mubr.msk.f32.gmra.mrb[14].mxu1 %vm357_vm2, %v5000_v41  ;;  %4093 = vmatmul.mubr.msk.f32.gmra.mrb[30].mxu0 %vm357_vm2, %v5325_v62 }
  0xb6   : > { %3871 = vmatprep.mubr.msk.f32.mxu1 %vm357_vm2, %v5007_v13  ;;  %4097 = vmatprep.mubr.msk.f32.mxu0 %vm357_vm2, %v5865_v4  ;;  %v5869_v4 = vld [vmem:[#allocation8_spill] sm:$0xff] }
  0xb9   : > { %3872 = vmatmul.mubr.msk.f32.gmra.mrb[16].mxu1 %vm357_vm2, %v5023_v17  ;;  %4098 = vmatmul.mubr.msk.f32.vlgmr.msra.gmra.mrb[0].mxu0 %vm357_vm2, %v5866_v2  ;;  %v5870_v2 = vld [vmem:[#allocation9_spill] sm:$0xff] }
  0xba   : > { %3874 = vmatprep.mubr.msk.f32.mxu1 %vm357_vm2, %v5027_v61  ;;  %4146 = vmatpush3.msk.msra.mxu0 %vm422_vm0, %v5190_v27  ;;  %v5873_v27 = vld [vmem:[#allocation12_spill] sm:$0xff] }
  0xbb   : > { %4100 = vmatprep.mubr.msk.f32.mxu0 %vm357_vm2, %v5867_v35  ;;  %v5871_v35 = vld [vmem:[#allocation10_spill] sm:$0xff] }
  0xbd   : > { %3875 = vmatmul.mubr.msk.f32.gmra.mrb[18].mxu1 %vm357_vm2, %v5040_v45  ;;  %4101 = vmatmul.mubr.msk.f32.gmra.mrb[2].mxu0 %vm357_vm2, %v5868_v44  ;;  %v5872_v44 = vld [vmem:[#allocation11_spill] sm:$0xff] }
  0xbe   : > { %3877 = vmatprep.mubr.msk.f32.mxu1 %vm357_vm2, %v5044_v0  ;;  %4103 = vmatprep.mubr.msk.f32.mxu0 %vm357_vm2, %v5869_v4  ;;  %v5874_v4 = vld [vmem:[#allocation42_spill] sm:$0xff] }
  0xc1   : > { %3878 = vmatmul.mubr.msk.f32.gmra.mrb[20].mxu1 %vm357_vm2, %v5064_v16  ;;  %4104 = vmatmul.mubr.msk.f32.gmra.mrb[4].mxu0 %vm357_vm2, %v5870_v2  ;;  %v5875_v2 = vld [vmem:[#allocation13_spill] sm:$0xff] }
  0xc2   : > { %3880 = vmatprep.mubr.msk.f32.mxu1 %vm357_vm2, %v5068_v49  ;;  %4106 = vmatprep.mubr.msk.f32.mxu0 %vm357_vm2, %v5871_v35  ;;  %v5876_v49 = vld [vmem:[#allocation43_spill] sm:$0xff]  ;;  %v5877_v35 = vld [vmem:[#allocation14_spill] sm:$0xff] }
  0xc5   : > { %3881 = vmatmul.mubr.msk.f32.gmra.mrb[22].mxu1 %vm357_vm2, %v5083_v56  ;;  %4107 = vmatmul.mubr.msk.f32.gmra.mrb[6].mxu0 %vm357_vm2, %v5872_v44  ;;  %v5878_v44 = vld [vmem:[#allocation15_spill] sm:$0xff] }
  0xc6   : > { %3883 = vmatprep.mubr.msk.f32.mxu1 %vm357_vm2, %v5087_v14  ;;  %4109 = vmatprep.mubr.msk.f32.mxu0 %vm357_vm2, %v5873_v27  ;;  %v5879_v27 = vld [vmem:[#allocation16_spill] sm:$0xff] }
  0xc9   : > { %3884 = vmatmul.mubr.msk.f32.gmra.mrb[24].mxu1 %vm357_vm2, %v5874_v4  ;;  %4110 = vmatmul.mubr.msk.f32.gmra.mrb[8].mxu0 %vm357_vm2, %v5875_v2  ;;  %v5880_v2 = vld [vmem:[#allocation17_spill] sm:$0xff] }
  0xca   : > { %3886 = vmatprep.mubr.msk.f32.mxu1 %vm357_vm2, %v5876_v49  ;;  %4112 = vmatprep.mubr.msk.f32.mxu0 %vm357_vm2, %v5877_v35  ;;  %v5881_v35 = vld [vmem:[#allocation18_spill] sm:$0xff] }
  0xcd   : > { %3887 = vmatmul.mubr.msk.f32.gmra.mrb[26].mxu1 %vm357_vm2, %v5117_v36  ;;  %4113 = vmatmul.mubr.msk.f32.gmra.mrb[10].mxu0 %vm357_vm2, %v5878_v44  ;;  %v5882_v44 = vld [vmem:[#allocation19_spill] sm:$0xff] }
  0xce   : > { %3889 = vmatprep.mubr.msk.f32.mxu1 %vm357_vm2, %v5121_v34  ;;  %4115 = vmatprep.mubr.msk.f32.mxu0 %vm357_vm2, %v5879_v27  ;;  %v5883_v34 = vld [vmem:[#allocation2_spill] sm:$0xff]  ;;  %v5884_v27 = vld [vmem:[#allocation21_spill] sm:$0xff]  ;;  %v5452_v36 = vld [vmem:[%s4526_s25 + $0x1a8] sm:$0x3] }
  0xd1   : > { %3890 = vmatmul.mubr.msk.f32.gmra.mrb[28].mxu1 %vm357_vm2, %v5140_v60  ;;  %4116 = vmatmul.mubr.msk.f32.gmra.mrb[12].mxu0 %vm357_vm2, %v5880_v2  ;;  %v5885_v60 = vld [vmem:[#allocation3_spill] sm:$0xff] }
  0xd2   : > { %3892 = vmatprep.mubr.msk.f32.mxu1 %vm357_vm2, %v5144_v33  ;;  %4118 = vmatprep.mubr.msk.f32.mxu0 %vm357_vm2, %v5881_v35  ;;  %v5886_v2 = vld [vmem:[#allocation23_spill] sm:$0xff]  ;;  %v5894_v33 = vld [vmem:[#allocation38_spill] sm:$0xff] }
  0xd5   : > { %3893 = vmatmul.mubr.msk.f32.gmra.mrb[30].mxu1 %vm357_vm2, %v5160_v48  ;;  %4119 = vmatmul.mubr.msk.f32.gmra.mrb[14].mxu0 %vm357_vm2, %v5882_v44  ;;  %v5887_v48 = vld [vmem:[#allocation25_spill] sm:$0xff] }
  0xd6   : > { %3897 = vmatprep.mubr.msk.f32.mxu1 %vm357_vm2, %v5883_v34  ;;  %4121 = vmatprep.mubr.msk.f32.mxu0 %vm357_vm2, %v5884_v27  ;;  %v5888_v34 = vld [vmem:[#allocation27_spill] sm:$0xff] }
  0xd9   : > { %3898 = vmatmul.mubr.msk.f32.vlgmr.msra.gmra.mrb[0].mxu1 %vm357_vm2, %v5885_v60  ;;  %4122 = vmatmul.mubr.msk.f32.gmra.mrb[16].mxu0 %vm357_vm2, %v5886_v2  ;;  %v5889_v60 = vld [vmem:[#allocation29_spill] sm:$0xff] }
  0xda   : > { %4196 = vmatpush3.msk.msra.mxu1 %vm422_vm0, %v4504_v1  ;;  %3900 = vmatprep.mubr.msk.f32.mxu1 %vm357_vm2, %v4552_v15  ;;  %v5890_v1 = vld [vmem:[#allocation31_spill] sm:$0xff]  ;;  %v5891_v15 = vld [vmem:[#allocation33_spill] sm:$0xff] }
  0xdb   : > { %4124 = vmatprep.mubr.msk.f32.mxu0 %vm357_vm2, %v5887_v48 }
  0xdd   : > { %3901 = vmatmul.mubr.msk.f32.gmra.mrb[2].mxu1 %vm357_vm2, %v4557_v18  ;;  %4125 = vmatmul.mubr.msk.f32.gmra.mrb[18].mxu0 %vm357_vm2, %v5888_v34  ;;  %v5892_v18 = vld [vmem:[#allocation35_spill] sm:$0xff] }
  0xde   : > { %3903 = vmatprep.mubr.msk.f32.mxu1 %vm357_vm2, %v4569_v25  ;;  %4127 = vmatprep.mubr.msk.f32.mxu0 %vm357_vm2, %v5889_v60  ;;  %v5893_v25 = vld [vmem:[#allocation37_spill] sm:$0xff] }
  0xe1   : > { %3904 = vmatmul.mubr.msk.f32.gmra.mrb[4].mxu1 %vm357_vm2, %v4572_v26  ;;  %4128 = vmatmul.mubr.msk.f32.gmra.mrb[20].mxu0 %vm357_vm2, %v5890_v1  ;;  %v1619_v26 = vrot.slane %v5128_v9, 1 }
  0xe2   : > { %3906 = vmatprep.mubr.msk.f32.mxu1 %vm357_vm2, %v4583_v31  ;;  %4130 = vmatprep.mubr.msk.f32.mxu0 %vm357_vm2, %v5891_v15  ;;  %v1620_v31 = vrot.slane %v5131_v6, 1 }
  0xe4   : > { %v5449_v15 = vsel %vm274_vm1, %v1619_v26, %v1620_v31 }
  0xe5   : > { %3907 = vmatmul.mubr.msk.f32.gmra.mrb[6].mxu1 %vm357_vm2, %v4586_v32  ;;  %4131 = vmatmul.mubr.msk.f32.gmra.mrb[22].mxu0 %vm357_vm2, %v5892_v18  ;;  %v5895_v32 = vld [vmem:[#allocation39_spill] sm:$0xff]  ;;  %v2431_v18 = vrot.slane %v5325_v62, 1 }
  0xe6   : > { %3909 = vmatprep.mubr.msk.f32.mxu1 %vm357_vm2, %v4623_v42  ;;  %4133 = vmatprep.mubr.msk.f32.mxu0 %vm357_vm2, %v5893_v25  ;;  %v1622_v42 = vrot.slane %v5149_v52, 1  ;;  %v2430_v25 = vrot.slane %v5314_v38, 1  ;;  %v2433_v52 = vrot.slane %v5452_v36, 1 }
  0xe8   : > { %v2432_v26 = vsel %vm274_vm1, %v2430_v25, %v2431_v18 }
  0xe9   : > { %3910 = vmatmul.mubr.msk.f32.gmra.mrb[8].mxu1 %vm357_vm2, %v4626_v43  ;;  %4134 = vmatmul.mubr.msk.f32.gmra.mrb[24].mxu0 %vm357_vm2, %v5894_v33  ;;  %v5896_v43 = vld [vmem:[#allocation40_spill] sm:$0xff] }
  0xea   : > { %3912 = vmatprep.mubr.msk.f32.mxu1 %vm357_vm2, %v4651_v50  ;;  %4136 = vmatprep.mubr.msk.f32.mxu0 %vm357_vm2, %v5895_v32  ;;  %v5463_v50 = vsel %vm274_vm1, %v1620_v31, %v1622_v42 }
  0xed   : > { %3913 = vmatmul.mubr.msk.f32.gmra.mrb[10].mxu1 %vm357_vm2, %v4654_v51  ;;  %4137 = vmatmul.mubr.msk.f32.gmra.mrb[26].mxu0 %vm357_vm2, %v5896_v43  ;;  %v2434_v51 = vsel %vm274_vm1, %v2431_v18, %v2433_v52 }
  0xee   : > { %3915 = vmatprep.mubr.msk.f32.mxu1 %vm357_vm2, %v4677_v58  ;;  %4139 = vmatprep.mubr.msk.f32.mxu0 %vm357_vm2, %v5449_v15  ;;  %v5900_v58 = vld [vmem:[#allocation33_spill] sm:$0xff] }
  0xf1   : > { %3916 = vmatmul.mubr.msk.f32.gmra.mrb[12].mxu1 %vm357_vm2, %v4680_v59  ;;  %4140 = vmatmul.mubr.msk.f32.gmra.mrb[28].mxu0 %vm357_vm2, %v5463_v50  ;;  %v5901_v59 = vld [vmem:[#allocation45_spill] sm:$0xff] }
  0xf2   : > { %3918 = vmatprep.mubr.msk.f32.mxu1 %vm357_vm2, %v4703_v3  ;;  %4142 = vmatprep.mubr.msk.f32.mxu0 %vm357_vm2, %v2432_v26  ;;  %v5902_v3 = vld [vmem:[#allocation35_spill] sm:$0xff] }
  0xf5   : > { %3919 = vmatmul.mubr.msk.f32.gmra.mrb[14].mxu1 %vm357_vm2, %v4706_v7  ;;  %4143 = vmatmul.mubr.msk.f32.gmra.mrb[30].mxu0 %vm357_vm2, %v2434_v51  ;;  %v5903_v7 = vld [vmem:[#allocation46_spill] sm:$0xff] }
  0xf6   : > { %3921 = vmatprep.mubr.msk.f32.mxu1 %vm357_vm2, %v4744_v28  ;;  %4147 = vmatprep.mubr.msk.f32.mxu0 %vm357_vm2, %v4799_v21  ;;  %v2701_v28 = vrot.slane %v5314_v38, 2  ;;  %v2704_v21 = vrot.slane %v5452_v36, 2 }
  0xf9   : > { %3922 = vmatmul.mubr.msk.f32.gmra.mrb[16].mxu1 %vm357_vm2, %v4747_v29  ;;  %4148 = vmatmul.mubr.msk.f32.vlgmr.msra.gmra.mrb[0].mxu0 %vm357_vm2, %v5857_v5  ;;  %v2702_v29 = vrot.slane %v5325_v62, 2 }
  0xfa   : > { %3924 = vmatprep.mubr.msk.f32.mxu1 %vm357_vm2, %v4772_v53  ;;  %4150 = vmatprep.mubr.msk.f32.mxu0 %vm357_vm2, %v5858_v11  ;;  %v5906_v53 = vld [vmem:[#allocation48_spill] sm:$0xff] }
  0xfd   : > { %3925 = vmatmul.mubr.msk.f32.gmra.mrb[18].mxu1 %vm357_vm2, %v4775_v55  ;;  %4151 = vmatmul.mubr.msk.f32.gmra.mrb[2].mxu0 %vm357_vm2, %v5859_v47  ;;  %v5907_v55 = vld [vmem:[#allocation49_spill] sm:$0xff] }
  0xfe   : > { %3927 = vmatprep.mubr.msk.f32.mxu1 %vm357_vm2, %v4804_v22  ;;  %4153 = vmatprep.mubr.msk.f32.mxu0 %vm357_vm2, %v5860_v63  ;;  %v5905_v22 = vld [vmem:[#allocation47_spill] sm:$0xff] }
 0x101   : > { %3928 = vmatmul.mubr.msk.f32.gmra.mrb[20].mxu1 %vm357_vm2, %v4807_v24  ;;  %4154 = vmatmul.mubr.msk.f32.gmra.mrb[4].mxu0 %vm357_vm2, %v5861_v23  ;;  %v2703_v24 = vsel %vm943_vm3, %v2701_v28, %v2702_v29 }
 0x102   : > { %3930 = vmatprep.mubr.msk.f32.mxu1 %vm357_vm2, %v4846_v8  ;;  %4156 = vmatprep.mubr.msk.f32.mxu0 %vm357_vm2, %v5862_v57  ;;  %v5904_v8 = vld [vmem:[#allocation37_spill] sm:$0xff] }
 0x105   : > { %3931 = vmatmul.mubr.msk.f32.gmra.mrb[22].mxu1 %vm357_vm2, %v4849_v10  ;;  %4157 = vmatmul.mubr.msk.f32.gmra.mrb[6].mxu0 %vm357_vm2, %v5863_v30  ;;  %v5908_v10 = vld [vmem:[#allocation50_spill] sm:$0xff] }
 0x106   : > { %3933 = vmatprep.mubr.msk.f32.mxu1 %vm357_vm2, %v4883_v46  ;;  %4159 = vmatprep.mubr.msk.f32.mxu0 %vm357_vm2, %v4948_v19  ;;  %v5897_v46 = vld [vmem:[#allocation34_spill] sm:$0xff] }
 0x109   : > { %3934 = vmatmul.mubr.msk.f32.gmra.mrb[24].mxu1 %vm357_vm2, %v4886_v12  ;;  %4160 = vmatmul.mubr.msk.f32.gmra.mrb[8].mxu0 %vm357_vm2, %v5864_v37  ;;  %v2705_v12 = vsel %vm943_vm3, %v2702_v29, %v2704_v21 }
 0x10a   : > { %3936 = vmatprep.mubr.msk.f32.mxu1 %vm357_vm2, %v4918_v20  ;;  %4162 = vmatprep.mubr.msk.f32.mxu0 %vm357_vm2, %v4983_v39 }
 0x10d   : > { %3937 = vmatmul.mubr.msk.f32.gmra.mrb[26].mxu1 %vm357_vm2, %v4921_v54  ;;  %4163 = vmatmul.mubr.msk.f32.gmra.mrb[10].mxu0 %vm357_vm2, %v5000_v41 }
 0x10e   : > { %3939 = vmatprep.mubr.msk.f32.mxu1 %vm357_vm2, %v4953_v40  ;;  %4165 = vmatprep.mubr.msk.f32.mxu0 %vm357_vm2, %v5007_v13 }
 0x111   : > { %3940 = vmatmul.mubr.msk.f32.gmra.mrb[28].mxu1 %vm357_vm2, %v5897_v46  ;;  %4166 = vmatmul.mubr.msk.f32.gmra.mrb[12].mxu0 %vm357_vm2, %v5023_v17 }
 0x112   : > { %3942 = vmatprep.mubr.msk.f32.mxu1 %vm357_vm2, %v5128_v9  ;;  %4168 = vmatprep.mubr.msk.f32.mxu0 %vm357_vm2, %v5027_v61  ;;  %v5898_v9 = vld [vmem:[#allocation41_spill] sm:$0xff] }
 0x115   : > { %3943 = vmatmul.mubr.msk.f32.gmra.mrb[30].mxu1 %vm357_vm2, %v5131_v6  ;;  %4169 = vmatmul.mubr.msk.f32.gmra.mrb[14].mxu0 %vm357_vm2, %v5040_v45  ;;  %v5899_v6 = vld [vmem:[#allocation44_spill] sm:$0xff] }
 0x116   : > { %3971 = vmatprep.mubr.msk.f32.mxu1 %vm357_vm2, %v5881_v35  ;;  %4171 = vmatprep.mubr.msk.f32.mxu0 %vm357_vm2, %v5044_v0 }
 0x119   : > { %3972 = vmatmul.mubr.msk.f32.vlgmr.msra.gmra.mrb[16].mxu1 %vm357_vm2, %v5882_v44  ;;  %4172 = vmatmul.mubr.msk.f32.gmra.mrb[16].mxu0 %vm357_vm2, %v5064_v16 }
 0x11a   : > { %3974 = vmatprep.mubr.msk.f32.mxu1 %vm357_vm2, %v5884_v27  ;;  %4174 = vmatprep.mubr.msk.f32.mxu0 %vm357_vm2, %v5898_v9 }
 0x11d   : > { %3975 = vmatmul.mubr.msk.f32.gmra.mrb[18].mxu1 %vm357_vm2, %v5886_v2  ;;  %4175 = vmatmul.mubr.msk.f32.gmra.mrb[18].mxu0 %vm357_vm2, %v5083_v56 }
 0x11e   : > { %3977 = vmatprep.mubr.msk.f32.mxu1 %vm357_vm2, %v5887_v48  ;;  %4177 = vmatprep.mubr.msk.f32.mxu0 %vm357_vm2, %v5087_v14  ;;  %v5620_v48 = vld [vmem:[%s5733_s2] ss:$0 sm:$0xff] }
 0x121   : > { %3978 = vmatmul.mubr.msk.f32.gmra.mrb[20].mxu1 %vm357_vm2, %v5888_v34  ;;  %4178 = vmatmul.mubr.msk.f32.gmra.mrb[20].mxu0 %vm357_vm2, %v5874_v4 }
 0x122   : > { %3980 = vmatprep.mubr.msk.f32.mxu1 %vm357_vm2, %v5889_v60  ;;  %4180 = vmatprep.mubr.msk.f32.mxu0 %vm357_vm2, %v5876_v49 }
 0x125   : > { %3981 = vmatmul.mubr.msk.f32.gmra.mrb[22].mxu1 %vm357_vm2, %v5890_v1  ;;  %4181 = vmatmul.mubr.msk.f32.gmra.mrb[22].mxu0 %vm357_vm2, %v5899_v6 }
 0x126   : > { %3983 = vmatprep.mubr.msk.f32.mxu1 %vm357_vm2, %v5900_v58  ;;  %4183 = vmatprep.mubr.msk.f32.mxu0 %vm357_vm2, %v5901_v59 }
 0x129   : > { %3984 = vmatmul.mubr.msk.f32.gmra.mrb[24].mxu1 %vm357_vm2, %v5902_v3  ;;  %4184 = vmatmul.mubr.msk.f32.gmra.mrb[24].mxu0 %vm357_vm2, %v5903_v7 }
 0x12a   : > { %3986 = vmatprep.mubr.msk.f32.mxu1 %vm357_vm2, %v5904_v8  ;;  %4186 = vmatprep.mubr.msk.f32.mxu0 %vm357_vm2, %v5905_v22 }
 0x12d   : > { %3987 = vmatmul.mubr.msk.f32.gmra.mrb[26].mxu1 %vm357_vm2, %v5894_v33  ;;  %4187 = vmatmul.mubr.msk.f32.gmra.mrb[26].mxu0 %vm357_vm2, %v5906_v53 }
 0x12e   : > { %3989 = vmatprep.mubr.msk.f32.mxu1 %vm357_vm2, %v5895_v32  ;;  %4189 = vmatprep.mubr.msk.f32.mxu0 %vm357_vm2, %v5907_v55 }
 0x131   : > { %3990 = vmatmul.mubr.msk.f32.gmra.mrb[28].mxu1 %vm357_vm2, %v5896_v43  ;;  %4190 = vmatmul.mubr.msk.f32.gmra.mrb[28].mxu0 %vm357_vm2, %v5908_v10 }
 0x132   : > { %3992 = vmatprep.mubr.msk.f32.mxu1 %vm357_vm2, %v5449_v15  ;;  %4192 = vmatprep.mubr.msk.f32.mxu0 %vm357_vm2, %v2703_v24 }
 0x135   : > { %3993 = vmatmul.mubr.msk.f32.gmra.mrb[30].mxu1 %vm357_vm2, %v5463_v50  ;;  %4193 = vmatmul.mubr.msk.f32.gmra.mrb[30].mxu0 %vm357_vm2, %v2705_v12 }
 0x1ac   : > { %v3899_v40 = vpop.f32.mrb[0].mxu1 }
 0x1ad   : > { %v1427_v20 = vpop.f32.mrb[1].mxu1 }
 0x1b0   : > { %v3902_v54 = vpop.f32.mrb[2].mxu1 }
 0x1b1   : > { %v1437_v19 = vpop.f32.mrb[3].mxu1 }
 0x1b4   : > { %v3905_v13 = vpop.f32.mrb[4].mxu1 }
 0x1b5   : > { %v1447_v39 = vpop.f32.mrb[5].mxu1 }
 0x1b8   : > { %v3908_v41 = vpop.f32.mrb[6].mxu1 }
 0x1b9   : > { %v1457_v17 = vpop.f32.mrb[7].mxu1 }
 0x1bc   : > { %v3911_v61 = vpop.f32.mrb[8].mxu1 }
 0x1bd   : > { %v1467_v45 = vpop.f32.mrb[9].mxu1 }
 0x1c0   : > { %v3914_v0 = vpop.f32.mrb[10].mxu1 }
 0x1c1   : > { %v1477_v16 = vpop.f32.mrb[11].mxu1 }
 0x1c4   : > { %v5609_v49 = vpop.f32.mrb[12].mxu1 }
 0x1c5   : > { %v5611_v56 = vpop.f32.mrb[13].mxu1 }
 0x1c8   : > { %v5613_v14 = vpop.f32.mrb[14].mxu1 }
 0x1c9   : > { %v5615_v36 = vpop.f32.mrb[15].mxu1 }
 0x1cc   : > { %v4149_v33 = vpop.f32.mrb[0].mxu0 }
 0x1cd   : > { %v4197_v5 = vadd.f32 %v4149_v33, %v3899_v40  ;;  %v2781_v11 = vpop.f32.mrb[1].mxu0 }
 0x1ce   : > { %v4198_v47 = vadd.f32 %v2781_v11, %v1427_v20 }
 0x1cf   : > { %v2980_v63 = vadd.f32 %v4197_v5, %v5620_v48 }
 0x1d0   : > { %v2979_v23 = vadd.f32 %v4198_v47, %v5620_v48  ;;  %v4152_v57 = vpop.f32.mrb[2].mxu0 }
 0x1d1   : > { %v3012_v30 = vmax.f32 %v2980_v63, 0.0  ;;  %v4199_v38 = vadd.f32 %v4152_v57, %v3902_v54  ;;  %v2791_v37 = vpop.f32.mrb[3].mxu0 }
 0x1d2   : > { %v3011_v62 = vmax.f32 %v2979_v23, 0.0  ;;  %v4200_v4 = vadd.f32 %v2791_v37, %v1437_v19 }
 0x1d3   : > { %3045 = vst.msk [vmem:[%s5627_s16 + $0x8] sm:$0xff] %vm3043_vm4, %v3012_v30  ;;  %v2982_v35 = vadd.f32 %v4199_v38, %v5620_v48 }
 0x1d4   : > { %3044 = vst.msk [vmem:[%s5627_s16] sm:$0xff] %vm3043_vm4, %v3011_v62  ;;  %v2981_v44 = vadd.f32 %v4200_v4, %v5620_v48  ;;  %v4155_v27 = vpop.f32.mrb[4].mxu0 }
 0x1d5   : > { %v3014_v2 = vmax.f32 %v2982_v35, 0.0  ;;  %v4201_v34 = vadd.f32 %v4155_v27, %v3905_v13  ;;  %v2801_v60 = vpop.f32.mrb[5].mxu0 }
 0x1d6   : > { %v3013_v1 = vmax.f32 %v2981_v44, 0.0  ;;  %v4202_v15 = vadd.f32 %v2801_v60, %v1447_v39 }
 0x1d7   : > { %3047 = vst.msk [vmem:[%s5627_s16 + $0x18] sm:$0xff] %vm3043_vm4, %v3014_v2  ;;  %v2984_v18 = vadd.f32 %v4201_v34, %v5620_v48 }
 0x1d8   : > { %3046 = vst.msk [vmem:[%s5627_s16 + $0x10] sm:$0xff] %vm3043_vm4, %v3013_v1  ;;  %v2983_v25 = vadd.f32 %v4202_v15, %v5620_v48  ;;  %v4158_v31 = vpop.f32.mrb[6].mxu0 }
 0x1d9   : > { %v3016_v32 = vmax.f32 %v2984_v18, 0.0  ;;  %v4203_v42 = vadd.f32 %v4158_v31, %v3908_v41  ;;  %v2811_v43 = vpop.f32.mrb[7].mxu0 }
 0x1da   : > { %v3015_v50 = vmax.f32 %v2983_v25, 0.0  ;;  %v4204_v52 = vadd.f32 %v2811_v43, %v1457_v17 }
 0x1db   : > { %3049 = vst.msk [vmem:[%s5627_s16 + $0x28] sm:$0xff] %vm3043_vm4, %v3016_v32  ;;  %v2986_v26 = vadd.f32 %v4203_v42, %v5620_v48 }
 0x1dc   : > { %3048 = vst.msk [vmem:[%s5627_s16 + $0x20] sm:$0xff] %vm3043_vm4, %v3015_v50  ;;  %v2985_v51 = vadd.f32 %v4204_v52, %v5620_v48  ;;  %v4161_v46 = vpop.f32.mrb[8].mxu0 }
 0x1dd   : > { %v3018_v9 = vmax.f32 %v2986_v26, 0.0  ;;  %v4205_v6 = vadd.f32 %v4161_v46, %v3911_v61  ;;  %v2821_v58 = vpop.f32.mrb[9].mxu0 }
 0x1de   : > { %v3017_v59 = vmax.f32 %v2985_v51, 0.0  ;;  %v4206_v3 = vadd.f32 %v2821_v58, %v1467_v45 }
 0x1df   : > { %3051 = vst.msk [vmem:[%s5627_s16 + $0x38] sm:$0xff] %vm3043_vm4, %v3018_v9  ;;  %v2988_v7 = vadd.f32 %v4205_v6, %v5620_v48 }
 0x1e0   : > { %3050 = vst.msk [vmem:[%s5627_s16 + $0x30] sm:$0xff] %vm3043_vm4, %v3017_v59  ;;  %v2987_v8 = vadd.f32 %v4206_v3, %v5620_v48  ;;  %v4164_v22 = vpop.f32.mrb[10].mxu0 }
 0x1e1   : > { %v3020_v28 = vmax.f32 %v2988_v7, 0.0  ;;  %v4207_v29 = vadd.f32 %v4164_v22, %v3914_v0  ;;  %v2831_v53 = vpop.f32.mrb[11].mxu0 }
 0x1e2   : > { %v3019_v55 = vmax.f32 %v2987_v8, 0.0  ;;  %v4208_v21 = vadd.f32 %v2831_v53, %v1477_v16 }
 0x1e3   : > { %3053 = vst.msk [vmem:[%s5627_s16 + $0x48] sm:$0xff] %vm3043_vm4, %v3020_v28  ;;  %v2990_v24 = vadd.f32 %v4207_v29, %v5620_v48 }
 0x1e4   : > { %3052 = vst.msk [vmem:[%s5627_s16 + $0x40] sm:$0xff] %vm3043_vm4, %v3019_v55  ;;  %v2989_v10 = vadd.f32 %v4208_v21, %v5620_v48  ;;  %v4167_v12 = vpop.f32.mrb[12].mxu0 }
 0x1e5   : > { %v3022_v40 = vmax.f32 %v2990_v24, 0.0  ;;  %v4209_v20 = vadd.f32 %v4167_v12, %v5609_v49  ;;  %v2841_v54 = vpop.f32.mrb[13].mxu0 }
 0x1e6   : > { %v3021_v19 = vmax.f32 %v2989_v10, 0.0  ;;  %v4210_v13 = vadd.f32 %v2841_v54, %v5611_v56 }
 0x1e7   : > { %3055 = vst.msk [vmem:[%s5627_s16 + $0x58] sm:$0xff] %vm3043_vm4, %v3022_v40  ;;  %v2992_v39 = vadd.f32 %v4209_v20, %v5620_v48 }
 0x1e8   : > { %3054 = vst.msk [vmem:[%s5627_s16 + $0x50] sm:$0xff] %vm3043_vm4, %v3021_v19  ;;  %v2991_v41 = vadd.f32 %v4210_v13, %v5620_v48  ;;  %v4170_v17 = vpop.f32.mrb[14].mxu0 }
 0x1e9   : > { %v3024_v61 = vmax.f32 %v2992_v39, 0.0  ;;  %v4211_v45 = vadd.f32 %v4170_v17, %v5613_v14  ;;  %v2851_v0 = vpop.f32.mrb[15].mxu0 }
 0x1ea   : > { %v3023_v16 = vmax.f32 %v2991_v41, 0.0  ;;  %v4212_v49 = vadd.f32 %v2851_v0, %v5615_v36 }
 0x1eb   : > { %3057 = vst.msk [vmem:[%s5627_s16 + $0x68] sm:$0xff] %vm3043_vm4, %v3024_v61  ;;  %v2994_v56 = vadd.f32 %v4211_v45, %v5620_v48 }
 0x1ec   : > { %v3973_v33 = vpop.f32.mrb[16].mxu1  ;;  %3056 = vst.msk [vmem:[%s5627_s16 + $0x60] sm:$0xff] %vm3043_vm4, %v3023_v16  ;;  %v2993_v5 = vadd.f32 %v4212_v49, %v5620_v48  ;;  %v4173_v11 = vpop.f32.mrb[16].mxu0 }
 0x1ed   : > { %v1779_v47 = vpop.f32.mrb[17].mxu1  ;;  %v3026_v63 = vmax.f32 %v2994_v56, 0.0  ;;  %v4213_v23 = vadd.f32 %v4173_v11, %v3973_v33  ;;  %v2861_v14 = vpop.f32.mrb[17].mxu0 }
 0x1ee   : > { %v3025_v57 = vmax.f32 %v2993_v5, 0.0  ;;  %v4214_v30 = vadd.f32 %v2861_v14, %v1779_v47 }
 0x1ef   : > { %3059 = vst.msk [vmem:[%s5627_s16 + $0x78] sm:$0xff] %vm3043_vm4, %v3026_v63  ;;  %v2996_v36 = vadd.f32 %v4213_v23, %v5620_v48 }
 0x1f0   : > { %v3976_v38 = vpop.f32.mrb[18].mxu1  ;;  %3058 = vst.msk [vmem:[%s5627_s16 + $0x70] sm:$0xff] %vm3043_vm4, %v3025_v57  ;;  %v2995_v37 = vadd.f32 %v4214_v30, %v5620_v48  ;;  %v4176_v62 = vpop.f32.mrb[18].mxu0 }
 0x1f1   : > { %v1789_v4 = vpop.f32.mrb[19].mxu1  ;;  %v3028_v35 = vmax.f32 %v2996_v36, 0.0  ;;  %v4215_v44 = vadd.f32 %v4176_v62, %v3976_v38  ;;  %v2871_v27 = vpop.f32.mrb[19].mxu0 }
 0x1f2   : > { %v3027_v2 = vmax.f32 %v2995_v37, 0.0  ;;  %v4216_v34 = vadd.f32 %v2871_v27, %v1789_v4 }
 0x1f3   : > { %3061 = vst.msk [vmem:[%s5627_s16 + $0x88] sm:$0xff] %vm3043_vm4, %v3028_v35  ;;  %v2998_v60 = vadd.f32 %v4215_v44, %v5620_v48 }
 0x1f4   : > { %v3979_v1 = vpop.f32.mrb[20].mxu1  ;;  %3060 = vst.msk [vmem:[%s5627_s16 + $0x80] sm:$0xff] %vm3043_vm4, %v3027_v2  ;;  %v2997_v15 = vadd.f32 %v4216_v34, %v5620_v48  ;;  %v4179_v18 = vpop.f32.mrb[20].mxu0 }
 0x1f5   : > { %v1799_v25 = vpop.f32.mrb[21].mxu1  ;;  %v3030_v31 = vmax.f32 %v2998_v60, 0.0  ;;  %v4217_v32 = vadd.f32 %v4179_v18, %v3979_v1  ;;  %v2881_v42 = vpop.f32.mrb[21].mxu0 }
 0x1f6   : > { %v3029_v43 = vmax.f32 %v2997_v15, 0.0  ;;  %v4218_v50 = vadd.f32 %v2881_v42, %v1799_v25 }
 0x1f7   : > { %3063 = vst.msk [vmem:[%s5627_s16 + $0x98] sm:$0xff] %vm3043_vm4, %v3030_v31  ;;  %v3000_v52 = vadd.f32 %v4217_v32, %v5620_v48 }
 0x1f8   : > { %v3982_v26 = vpop.f32.mrb[22].mxu1  ;;  %3062 = vst.msk [vmem:[%s5627_s16 + $0x90] sm:$0xff] %vm3043_vm4, %v3029_v43  ;;  %v2999_v51 = vadd.f32 %v4218_v50, %v5620_v48  ;;  %v4182_v46 = vpop.f32.mrb[22].mxu0 }
 0x1f9   : > { %v1809_v9 = vpop.f32.mrb[23].mxu1  ;;  %v3032_v6 = vmax.f32 %v3000_v52, 0.0  ;;  %v4219_v58 = vadd.f32 %v4182_v46, %v3982_v26  ;;  %v2891_v59 = vpop.f32.mrb[23].mxu0 }
 0x1fa   : > { %v3031_v3 = vmax.f32 %v2999_v51, 0.0  ;;  %v4220_v7 = vadd.f32 %v2891_v59, %v1809_v9 }
 0x1fb   : > { %3065 = vst.msk [vmem:[%s5627_s16 + $0xa8] sm:$0xff] %vm3043_vm4, %v3032_v6  ;;  %v3002_v8 = vadd.f32 %v4219_v58, %v5620_v48 }
 0x1fc   : > { %v3985_v22 = vpop.f32.mrb[24].mxu1  ;;  %3064 = vst.msk [vmem:[%s5627_s16 + $0xa0] sm:$0xff] %vm3043_vm4, %v3031_v3  ;;  %v3001_v28 = vadd.f32 %v4220_v7, %v5620_v48  ;;  %v4185_v29 = vpop.f32.mrb[24].mxu0 }
 0x1fd   : > { %v1819_v53 = vpop.f32.mrb[25].mxu1  ;;  %v3034_v55 = vmax.f32 %v3002_v8, 0.0  ;;  %v4221_v21 = vadd.f32 %v4185_v29, %v3985_v22  ;;  %v2901_v24 = vpop.f32.mrb[25].mxu0 }
 0x1fe   : > { %v3033_v10 = vmax.f32 %v3001_v28, 0.0  ;;  %v4222_v12 = vadd.f32 %v2901_v24, %v1819_v53 }
 0x1ff   : > { %3067 = vst.msk [vmem:[%s5627_s16 + $0xb8] sm:$0xff] %vm3043_vm4, %v3034_v55  ;;  %v3004_v40 = vadd.f32 %v4221_v21, %v5620_v48 }
 0x200   : > { %v3988_v20 = vpop.f32.mrb[26].mxu1  ;;  %3066 = vst.msk [vmem:[%s5627_s16 + $0xb0] sm:$0xff] %vm3043_vm4, %v3033_v10  ;;  %v3003_v54 = vadd.f32 %v4222_v12, %v5620_v48  ;;  %v4188_v19 = vpop.f32.mrb[26].mxu0 }
 0x201   : > { %v1829_v13 = vpop.f32.mrb[27].mxu1  ;;  %v3036_v39 = vmax.f32 %v3004_v40, 0.0  ;;  %v4223_v41 = vadd.f32 %v4188_v19, %v3988_v20  ;;  %v2911_v17 = vpop.f32.mrb[27].mxu0 }
 0x202   : > { %v3035_v61 = vmax.f32 %v3003_v54, 0.0  ;;  %v4224_v45 = vadd.f32 %v2911_v17, %v1829_v13 }
 0x203   : > { %3069 = vst.msk [vmem:[%s5627_s16 + $0xc8] sm:$0xff] %vm3043_vm4, %v3036_v39  ;;  %v3006_v0 = vadd.f32 %v4223_v41, %v5620_v48 }
 0x204   : > { %v3991_v16 = vpop.f32.mrb[28].mxu1  ;;  %3068 = vst.msk [vmem:[%s5627_s16 + $0xc0] sm:$0xff] %vm3043_vm4, %v3035_v61  ;;  %v3005_v49 = vadd.f32 %v4224_v45, %v5620_v48  ;;  %v4191_v56 = vpop.f32.mrb[28].mxu0 }
 0x205   : > { %v1839_v33 = vpop.f32.mrb[29].mxu1  ;;  %v3038_v5 = vmax.f32 %v3006_v0, 0.0  ;;  %v4225_v11 = vadd.f32 %v4191_v56, %v3991_v16  ;;  %v2921_v47 = vpop.f32.mrb[29].mxu0 }
 0x206   : > { %v3037_v63 = vmax.f32 %v3005_v49, 0.0  ;;  %v4226_v23 = vadd.f32 %v2921_v47, %v1839_v33 }
 0x207   : > { %3071 = vst.msk [vmem:[%s5627_s16 + $0xd8] sm:$0xff] %vm3043_vm4, %v3038_v5  ;;  %v3008_v14 = vadd.f32 %v4225_v11, %v5620_v48 }
 0x208   : > { %v3994_v57 = vpop.f32.mrb[30].mxu1  ;;  %3070 = vst.msk [vmem:[%s5627_s16 + $0xd0] sm:$0xff] %vm3043_vm4, %v3037_v63  ;;  %v3007_v30 = vadd.f32 %v4226_v23, %v5620_v48  ;;  %v4194_v36 = vpop.f32.mrb[30].mxu0 }
 0x209   : > { %v1849_v38 = vpop.f32.mrb[31].mxu1  ;;  %v3040_v37 = vmax.f32 %v3008_v14, 0.0  ;;  %v4227_v62 = vadd.f32 %v4194_v36, %v3994_v57  ;;  %v2931_v4 = vpop.f32.mrb[31].mxu0 }
 0x20a   : > { %v3039_v35 = vmax.f32 %v3007_v30, 0.0  ;;  %v4228_v44 = vadd.f32 %v2931_v4, %v1849_v38 }
 0x20b   : > { %3073 = vst.msk [vmem:[%s5627_s16 + $0xe8] sm:$0xff] %vm3043_vm4, %v3040_v37  ;;  %v3010_v27 = vadd.f32 %v4227_v62, %v5620_v48 }
 0x20c   : > { %3072 = vst.msk [vmem:[%s5627_s16 + $0xe0] sm:$0xff] %vm3043_vm4, %v3039_v35  ;;  %v3009_v2 = vadd.f32 %v4228_v44, %v5620_v48 }
 0x20d   : > { %v3042_v34 = vmax.f32 %v3010_v27, 0.0 }
 0x20e   : > { %v3041_v60 = vmax.f32 %v3009_v2, 0.0 }
 0x20f   : > { %3075 = vst.msk [vmem:[%s5627_s16 + $0xf8] sm:$0xff] %vm3043_vm4, %v3042_v34 }
 0x210   : > { %3074 = vst.msk [vmem:[%s5627_s16 + $0xf0] sm:$0xff] %vm3043_vm4, %v3041_v60 }
 0x211 PF: > { %s13_s12 = sadd.s32 1, %s4468_s12  }
 0x212   : > { %p10_p4 = scmp.ge.s32.totalorder %s13_s12, 4  }
 0x214   :  { %12 = sbr.rel (!%p10_p4) target bundleno = 1 (0x1), region = 70 }

// kernel: a_call__.5
= control target key start
LH: loop header
LB: loop body
LE: loop exit
PB: predicated region body
PF: predicated region fallthrough
CT: control target
= control target key end

     0   :  { %s11523_s12 = smov 0   ;;  %s14445_s0 = inlined_call_operand.vmem [shape: f32[2,20,20,4], index: 0, kind: input, shape index: {}]   ;;  %s14446_s1 = inlined_call_operand.vmem [shape: f32[5,5,4,8], index: 1, kind: input, shape index: {}]   ;;  %s14447_s2 = inlined_call_operand.vmem [shape: f32[1,8], index: 2, kind: input, shape index: {}]   ;;  %s14448_s3 = inlined_call_operand.vmem [shape: f32[2,16,16,8], index: 3, kind: output, shape index: {}]  }
   0x1 LB: > { %s7740_s13 = sadd.s32 4294967295, %s11501_s12   ;;  %p7744_p0 = scmp.ge.s32.totalorder %s11501_s12, 1  ;;  %s11501_s12 = sphi %s11523_s12, %s13_s12  }
   0x2   : > { %p137_p1 = scmp.lt.s32.totalorder %s11501_s12, 3 }
   0x4   : > { %p138_p2 = pnand %p7744_p0, %p137_p1 }
   0x6   : > { %141 = sbr.rel (%p138_p2) target bundleno = 1041 (0x411), region = 32 }
   0xd   : > { %v7748_v0 = vld [vmem:[%s14446_s1 + $0x4] sm:$0xf]  ;;  %vm428_vm0 = vcmask 1043456   ;;  %v8155_v1 = vld [vmem:[%s14446_s1 + $0x30] sm:$0xf]  ;;  %p161_p3 = scmp.lt.s32.totalorder %s7740_s13, 1 }
   0xe   : > { %9426 = vmatprep.subr.msk.mxu1 %vm428_vm0, %v7748_v0  ;;  %10026 = vmatprep.subr.msk.mxu0 %vm428_vm0, %v8155_v1  ;;  %v231_v2 = vld [vmem:[%s14446_s1] sm:$0xf]  ;;  %v8189_v3 = vld [vmem:[%s14446_s1 + $0x34] sm:$0xf]  ;;  %vm280_vm1 = vcmask 1046528   ;;  %vm363_vm2 = vcmask 31744  }
   0xf   : > { %9427 = vmatpush3.msk.msra.mxu1 %vm428_vm0, %v7748_v0  ;;  %10027 = vmatpush3.msk.msra.mxu0 %vm428_vm0, %v8155_v1  ;;  %s15319_s13 = smov (!%p161_p3, %s7740_s13), 1  ;;  %vm949_vm3 = vcmask 1045504   ;;  %v11602_v24 = vld [vmem:[%s14446_s1 + $0x38] sm:$0xf]  ;;  %v11620_v31 = vld [vmem:[%s14446_s1 + $0x8] sm:$0xf] }
  0x10   : > { %9476 = vmatprep.subr.msk.mxu1 %vm428_vm0, %v231_v2  ;;  %10076 = vmatprep.subr.msk.mxu0 %vm428_vm0, %v8189_v3  ;;  %s11446_s22 = smul.u32 480, %s15319_s13  ;;  %vm1356_vm4 = vcmask 1044480   ;;  %vm7652_vm5 = vcmask 64512  }
  0x12   : > { %s11555_s25 = scalar_lea.vmem %s14445_s0, %s11446_s22  ;;  %s8600_s22 = sshll.u32 %s15319_s13, 8 }
  0x13   : > { %v11558_v4 = vld [vmem:[%s11555_s25] sm:$0xff]  ;;  %v11561_v5 = vld [vmem:[%s11555_s25 + $0x8] sm:$0xff]  ;;  %v11564_v6 = vld [vmem:[%s11555_s25 + $0x30] sm:$0xff]  ;;  %s14341_s26 = scalar_lea.vmem %s14448_s3, %s8600_s22 }
  0x14   : > { %v281_v7 = vrot.slane %v11558_v4, 1  ;;  %v282_v8 = vrot.slane %v11561_v5, 1  ;;  %v11569_v9 = vld [vmem:[%s11555_s25 + $0x38] sm:$0xff]  ;;  %v960_v10 = vrot.slane %v11564_v6, 2  ;;  %v11573_v11 = vld [vmem:[%s11555_s25 + $0x10] sm:$0xf] }
  0x15   : > { %14802 = vst [vmem:[#allocation2_spill] sm:$0xff] %v11573_v11  ;;  %v961_v12 = vrot.slane %v11569_v9, 2  ;;  %v284_v13 = vrot.slane %v11573_v11, 1  ;;  %v11578_v14 = vld [vmem:[%s11555_s25 + $0x40] sm:$0xf]  ;;  %v11581_v15 = vld [vmem:[%s11555_s25 + $0x18] sm:$0xff] }
  0x16   : > { %v11584_v16 = vld [vmem:[%s11555_s25 + $0x20] sm:$0xff]  ;;  %v283_v17 = vsel %vm280_vm1, %v281_v7, %v282_v8  ;;  %v963_v18 = vrot.slane %v11578_v14, 2  ;;  %v286_v19 = vrot.slane %v11581_v15, 1  ;;  %v11591_v21 = vld [vmem:[%s11555_s25 + $0x48] sm:$0xff]  ;;  %v11594_v22 = vld [vmem:[%s11555_s25 + $0x50] sm:$0xff]  ;;  %v291_v39 = vrot.slane %v11564_v6, 1 }
  0x17   : > { %v287_v20 = vrot.slane %v11584_v16, 1  ;;  %v11597_v23 = vld [vmem:[%s11555_s25 + $0x60] sm:$0xff]  ;;  %9428 = vmatprep.mubr.msk.f32.mxu1 %vm363_vm2, %v283_v17  ;;  %v11606_v25 = vsel %vm949_vm3, %v960_v10, %v961_v12  ;;  %v285_v26 = vsel %vm280_vm1, %v282_v8, %v284_v13  ;;  %v965_v27 = vrot.slane %v11591_v21, 2  ;;  %v11612_v29 = vld [vmem:[%s11555_s25 + $0x28] sm:$0xf]  ;;  %v11649_v42 = vld [vmem:[%s11555_s25 + $0x78] sm:$0xff] }
  0x18   : > { %14803 = vst [vmem:[#allocation3_spill] sm:$0xff] %v11606_v25  ;;  %v966_v28 = vrot.slane %v11594_v22, 2  ;;  %14804 = vst [vmem:[#allocation4_spill] sm:$0xff] %v11612_v29  ;;  %v11615_v30 = vld [vmem:[%s11555_s25 + $0x58] sm:$0xf]  ;;  %10028 = vmatprep.mubr.msk.f32.mxu0 %vm363_vm2, %v11606_v25  ;;  %9429 = vmatmul.mubr.msk.f32.vlgmr.msra.gmra.mrb[0].mxu1 %vm363_vm2, %v285_v26  ;;  %v11626_v32 = vsel %vm949_vm3, %v961_v12, %v963_v18  ;;  %v289_v34 = vrot.slane %v11612_v29, 1 }
  0x19   : > { %14805 = vst [vmem:[#allocation5_spill] sm:$0xff] %v11626_v32  ;;  %v11629_v33 = vsel %vm280_vm1, %v286_v19, %v287_v20  ;;  %v968_v35 = vrot.slane %v11615_v30, 2  ;;  %v11634_v36 = vld [vmem:[%s11555_s25 + $0x68] sm:$0xff]  ;;  %v11637_v37 = vld [vmem:[%s11555_s25 + $0x70] sm:$0xf]  ;;  %9477 = vmatpush3.msk.msra.mxu1 %vm428_vm0, %v231_v2  ;;  %10029 = vmatmul.mubr.msk.f32.vlgmr.msra.gmra.mrb[0].mxu0 %vm363_vm2, %v11626_v32  ;;  %v292_v40 = vrot.slane %v11569_v9, 1 }
  0x1a   : > { %14806 = vst [vmem:[#allocation6_spill] sm:$0xff] %v11629_v33  ;;  %v11643_v38 = vsel %vm949_vm3, %v965_v27, %v966_v28  ;;  %v970_v41 = vrot.slane %v11597_v23, 2  ;;  %v11652_v43 = vld [vmem:[%s11555_s25 + $0x80] sm:$0xff]  ;;  %10077 = vmatpush3.msk.msra.mxu0 %vm428_vm0, %v8189_v3  ;;  %9431 = vmatprep.mubr.msk.f32.mxu1 %vm363_vm2, %v11629_v33  ;;  %v11658_v44 = vsel %vm280_vm1, %v287_v20, %v289_v34  ;;  %v971_v46 = vrot.slane %v11634_v36, 2  ;;  %v11666_v48 = vld [vmem:[%s11555_s25 + $0x88] sm:$0xf] }
  0x1b   : > { %14807 = vst [vmem:[#allocation7_spill] sm:$0xff] %v11643_v38  ;;  %14808 = vst [vmem:[#allocation8_spill] sm:$0xff] %v11658_v44  ;;  %v11661_v45 = vsel %vm949_vm3, %v966_v28, %v968_v35  ;;  %v294_v47 = vrot.slane %v11578_v14, 1  ;;  %10031 = vmatprep.mubr.msk.f32.mxu0 %vm363_vm2, %v11643_v38  ;;  %v11671_v49 = vsel %vm280_vm1, %v291_v39, %v292_v40  ;;  %v973_v50 = vrot.slane %v11637_v37, 2  ;;  %v11686_v56 = vld [vmem:[%s11555_s25 + $0x90] sm:$0xff]  ;;  %v11689_v57 = vld [vmem:[%s11555_s25 + $0x98] sm:$0xff] }
  0x1c   : > { %14809 = vst [vmem:[#allocation9_spill] sm:$0xff] %v11661_v45  ;;  %14810 = vst [vmem:[#allocation10_spill] sm:$0xff] %v11671_v49  ;;  %v296_v51 = vrot.slane %v11591_v21, 1  ;;  %v297_v52 = vrot.slane %v11594_v22, 1  ;;  %10126 = vmatprep.subr.msk.mxu0 %vm428_vm0, %v11602_v24  ;;  %9432 = vmatmul.mubr.msk.f32.gmra.mrb[2].mxu1 %vm363_vm2, %v11658_v44  ;;  %v11681_v53 = vsel %vm949_vm3, %v970_v41, %v971_v46  ;;  %v975_v54 = vrot.slane %v11649_v42, 2  ;;  %v11723_v8 = vld [vmem:[%s11555_s25 + $0xa8] sm:$0xff] }
  0x1d   : > { %14811 = vst [vmem:[#allocation11_spill] sm:$0xff] %v11681_v53  ;;  %v976_v55 = vrot.slane %v11652_v43, 2  ;;  %9526 = vmatprep.subr.msk.mxu1 %vm428_vm0, %v11620_v31  ;;  %10032 = vmatmul.mubr.msk.f32.gmra.mrb[2].mxu0 %vm363_vm2, %v11661_v45  ;;  %v11698_v58 = vsel %vm280_vm1, %v292_v40, %v294_v47  ;;  %v299_v59 = vrot.slane %v11615_v30, 1  ;;  %v978_v60 = vrot.slane %v11666_v48, 2  ;;  %v11718_v7 = vld [vmem:[%s11555_s25 + $0xa0] sm:$0xf] }
  0x1e   : > { %9434 = vmatprep.mubr.msk.f32.mxu1 %vm363_vm2, %v11671_v49  ;;  %14812 = vst [vmem:[#allocation12_spill] sm:$0xff] %v11698_v58  ;;  %10034 = vmatprep.mubr.msk.f32.mxu0 %vm363_vm2, %v11681_v53  ;;  %v11705_v61 = vsel %vm949_vm3, %v971_v46, %v973_v50  ;;  %v11708_v62 = vsel %vm280_vm1, %v296_v51, %v297_v52  ;;  %v301_v63 = vrot.slane %v11597_v23, 1  ;;  %v302_v0 = vrot.slane %v11634_v36, 1  ;;  %v11726_v10 = vld [vmem:[%s11555_s25 + $0xb0] sm:$0xff]  ;;  %v11748_v27 = vld [vmem:[%s11555_s25 + $0xb8] sm:$0xf] }
  0x1f   : > { %14813 = vst [vmem:[#allocation13_spill] sm:$0xff] %v11705_v61  ;;  %14814 = vst [vmem:[#allocation14_spill] sm:$0xff] %v11708_v62  ;;  %v11713_v1 = vsel %vm949_vm3, %v975_v54, %v976_v55  ;;  %v980_v2 = vrot.slane %v11686_v56, 2  ;;  %v981_v3 = vrot.slane %v11689_v57, 2  ;;  %v11733_v12 = vsel %vm280_vm1, %v297_v52, %v299_v59  ;;  %v11758_v39 = vld [vmem:[%s11555_s25 + $0xc0] sm:$0xff]  ;;  %v11761_v40 = vld [vmem:[%s11555_s25 + $0xc8] sm:$0xff] }
  0x20   : > { %14815 = vst [vmem:[#allocation15_spill] sm:$0xff] %v11713_v1  ;;  %9435 = vmatmul.mubr.msk.f32.gmra.mrb[4].mxu1 %vm363_vm2, %v11698_v58  ;;  %14816 = vst [vmem:[#allocation16_spill] sm:$0xff] %v11733_v12  ;;  %v11736_v13 = vsel %vm949_vm3, %v976_v55, %v978_v60  ;;  %v304_v17 = vrot.slane %v11637_v37, 1  ;;  %v11742_v18 = vsel %vm280_vm1, %v301_v63, %v302_v0  ;;  %v983_v19 = vrot.slane %v11718_v7, 2  ;;  %v11788_v63 = vld [vmem:[%s11555_s25 + $0xd0] sm:$0xf] }
  0x21   : > { %10035 = vmatmul.mubr.msk.f32.gmra.mrb[4].mxu0 %vm363_vm2, %v11705_v61  ;;  %9437 = vmatprep.mubr.msk.f32.mxu1 %vm363_vm2, %v11708_v62  ;;  %14817 = vst [vmem:[#allocation17_spill] sm:$0xff] %v11736_v13  ;;  %14818 = vst [vmem:[#allocation18_spill] sm:$0xff] %v11742_v18  ;;  %v306_v20 = vrot.slane %v11649_v42, 1  ;;  %v307_v26 = vrot.slane %v11652_v43, 1  ;;  %v11751_v28 = vsel %vm949_vm3, %v980_v2, %v981_v3  ;;  %v985_v34 = vrot.slane %v11723_v8, 2  ;;  %v11796_v2 = vld [vmem:[%s11555_s25 + $0xe0] sm:$0xff] }
  0x22   : > { %10037 = vmatprep.mubr.msk.f32.mxu0 %vm363_vm2, %v11713_v1  ;;  %14819 = vst [vmem:[#allocation19_spill] sm:$0xff] %v11751_v28  ;;  %v986_v35 = vrot.slane %v11726_v10, 2  ;;  %v11768_v41 = vsel %vm280_vm1, %v302_v0, %v304_v17  ;;  %v309_v46 = vrot.slane %v11666_v48, 1  ;;  %v988_v47 = vrot.slane %v11748_v27, 2  ;;  %v11793_v0 = vld [vmem:[%s11555_s25 + $0xd8] sm:$0xff]  ;;  %v12062_v25 = vld [vmem:[%s11555_s25 + $0x168] sm:$0xff] }
  0x23   : > { %14820 = vst [vmem:[#allocation20_spill] sm:$0xff] %v11768_v41  ;;  %v11775_v50 = vsel %vm949_vm3, %v981_v3, %v983_v19  ;;  %v11778_v51 = vsel %vm280_vm1, %v306_v20, %v307_v26  ;;  %v311_v52 = vrot.slane %v11686_v56, 1  ;;  %v312_v54 = vrot.slane %v11689_v57, 1  ;;  %v11818_v44 = vld [vmem:[%s11555_s25 + $0xe8] sm:$0xf]  ;;  %v11992_v1 = vld [vmem:[%s11555_s25 + $0x138] sm:$0xff] }
  0x24   : > { %9438 = vmatmul.mubr.msk.f32.gmra.mrb[6].mxu1 %vm363_vm2, %v11733_v12  ;;  %14821 = vst [vmem:[#allocation21_spill] sm:$0xff] %v11775_v50  ;;  %14822 = vst [vmem:[#allocation22_spill] sm:$0xff] %v11778_v51  ;;  %v11783_v55 = vsel %vm949_vm3, %v985_v34, %v986_v35  ;;  %v990_v59 = vrot.slane %v11758_v39, 2  ;;  %v991_v60 = vrot.slane %v11761_v40, 2  ;;  %v11803_v3 = vsel %vm280_vm1, %v307_v26, %v309_v46  ;;  %v11881_v12 = vld [vmem:[%s11555_s25 + $0xf8] sm:$0xff] }
  0x25   : > { %10038 = vmatmul.mubr.msk.f32.gmra.mrb[6].mxu0 %vm363_vm2, %v11736_v13  ;;  %9440 = vmatprep.mubr.msk.f32.mxu1 %vm363_vm2, %v11742_v18  ;;  %14823 = vst [vmem:[#allocation23_spill] sm:$0xff] %v11783_v55  ;;  %14824 = vst [vmem:[#allocation24_spill] sm:$0xff] %v11803_v3  ;;  %v11806_v17 = vsel %vm949_vm3, %v986_v35, %v988_v47  ;;  %v314_v19 = vrot.slane %v11718_v7, 1  ;;  %v11812_v20 = vsel %vm280_vm1, %v311_v52, %v312_v54  ;;  %v11984_v13 = vld [vmem:[%s11555_s25 + $0x130] sm:$0xf] }
  0x26   : > { %10040 = vmatprep.mubr.msk.f32.mxu0 %vm363_vm2, %v11751_v28  ;;  %14825 = vst [vmem:[#allocation25_spill] sm:$0xff] %v11806_v17  ;;  %14826 = vst [vmem:[#allocation26_spill] sm:$0xff] %v11812_v20  ;;  %v993_v34 = vrot.slane %v11788_v63, 2  ;;  %v316_v58 = vrot.slane %v11723_v8, 1  ;;  %v317_v49 = vrot.slane %v11726_v10, 1  ;;  %v11821_v26 = vsel %vm949_vm3, %v990_v59, %v991_v60 }
  0x27   : > { %14827 = vst [vmem:[#allocation27_spill] sm:$0xff] %v11821_v26  ;;  %v995_v35 = vrot.slane %v11793_v0, 2  ;;  %v996_v46 = vrot.slane %v11796_v2, 2  ;;  %v11832_v47 = vsel %vm280_vm1, %v312_v54, %v314_v19  ;;  %v319_v52 = vrot.slane %v11748_v27, 1  ;;  %v12019_v53 = vld [vmem:[%s11555_s25 + $0x148] sm:$0xf] }
  0x28   : > { %9441 = vmatmul.mubr.msk.f32.gmra.mrb[8].mxu1 %vm363_vm2, %v11768_v41  ;;  %14828 = vst [vmem:[#allocation28_spill] sm:$0xff] %v11832_v47  ;;  %v998_v59 = vrot.slane %v11818_v44, 2  ;;  %v11839_v33 = vsel %vm949_vm3, %v991_v60, %v993_v34  ;;  %v1367_v19 = vrot.slane %v11564_v6, 3  ;;  %v1368_v41 = vrot.slane %v11569_v9, 3  ;;  %v12054_v32 = vld [vmem:[%s11555_s25 + $0x160] sm:$0xf] }
  0x29   : > { %10041 = vmatmul.mubr.msk.f32.gmra.mrb[8].mxu0 %vm363_vm2, %v11775_v50  ;;  %9443 = vmatprep.mubr.msk.f32.mxu1 %vm363_vm2, %v11778_v51  ;;  %14829 = vst [vmem:[#allocation29_spill] sm:$0xff] %v11839_v33  ;;  %v321_v51 = vrot.slane %v11758_v39, 1  ;;  %v11847_v54 = vsel %vm949_vm3, %v995_v35, %v996_v46  ;;  %v324_v34 = vrot.slane %v11788_v63, 1  ;;  %v326_v18 = vrot.slane %v11793_v0, 1  ;;  %v12089_v11 = vld [vmem:[%s11555_s25 + $0x178] sm:$0xf] }
  0x2a   : > { %10043 = vmatprep.mubr.msk.f32.mxu0 %vm363_vm2, %v11783_v55  ;;  %14831 = vst [vmem:[#allocation31_spill] sm:$0xff] %v11847_v54  ;;  %v11861_v60 = vsel %vm949_vm3, %v996_v46, %v998_v59  ;;  %v1372_v46 = vrot.slane %v11591_v21, 3  ;;  %v11878_v59 = vld [vmem:[%s11555_s25 + $0xf0] sm:$0xff]  ;;  %v1375_v62 = vrot.slane %v11615_v30, 3  ;;  %v1385_v50 = vrot.slane %v11666_v48, 3 }
  0x2b   : > { %14833 = vst [vmem:[#allocation33_spill] sm:$0xff] %v11861_v60  ;;  %v1390_v61 = vrot.slane %v11718_v7, 3  ;;  %v1395_v45 = vrot.slane %v11748_v27, 3 }
  0x2c   : > { %9444 = vmatmul.mubr.msk.f32.gmra.mrb[10].mxu1 %vm363_vm2, %v11803_v3  ;;  %v11842_v3 = vsel %vm280_vm1, %v316_v58, %v317_v49  ;;  %v11858_v58 = vsel %vm280_vm1, %v317_v49, %v319_v52  ;;  %v11873_v49 = vsel %vm1356_vm4, %v1367_v19, %v1368_v41  ;;  %v1373_v52 = vrot.slane %v11594_v22, 3 }
  0x2d   : > { %10044 = vmatmul.mubr.msk.f32.gmra.mrb[10].mxu0 %vm363_vm2, %v11806_v17  ;;  %9446 = vmatprep.mubr.msk.f32.mxu1 %vm363_vm2, %v11812_v20  ;;  %14830 = vst [vmem:[#allocation30_spill] sm:$0xff] %v11842_v3  ;;  %v322_v20 = vrot.slane %v11761_v40, 1  ;;  %14832 = vst [vmem:[#allocation32_spill] sm:$0xff] %v11858_v58  ;;  %v329_v19 = vrot.slane %v11818_v44, 1  ;;  %v1380_v17 = vrot.slane %v11637_v37, 3 }
  0x2e   : > { %10046 = vmatprep.mubr.msk.f32.mxu0 %vm363_vm2, %v11821_v26  ;;  %14835 = vst [vmem:[#allocation35_spill] sm:$0xff] %v11873_v49  ;;  %v1378_v26 = vrot.slane %v11634_v36, 3 }
  0x2f   : > { %v11867_v35 = vsel %vm280_vm1, %v321_v51, %v322_v20  ;;  %v11890_v51 = vsel %vm280_vm1, %v322_v20, %v324_v34  ;;  %v11908_v20 = vsel %vm1356_vm4, %v1372_v46, %v1373_v52  ;;  %v1377_v34 = vrot.slane %v11597_v23, 3 }
  0x30   : > { %9447 = vmatmul.mubr.msk.f32.gmra.mrb[12].mxu1 %vm363_vm2, %v11832_v47  ;;  %14834 = vst [vmem:[#allocation34_spill] sm:$0xff] %v11867_v35  ;;  %v1370_v47 = vrot.slane %v11578_v14, 3  ;;  %14836 = vst [vmem:[#allocation36_spill] sm:$0xff] %v11890_v51  ;;  %v11933_v46 = vsel %vm1356_vm4, %v1373_v52, %v1375_v62  ;;  %v1382_v52 = vrot.slane %v11649_v42, 3  ;;  %v11976_v28 = vsel %vm1356_vm4, %v1378_v26, %v1380_v17  ;;  %v11995_v17 = vld [vmem:[%s11555_s25 + $0x140] sm:$0xff] }
  0x31   : > { %10047 = vmatmul.mubr.msk.f32.gmra.mrb[12].mxu0 %vm363_vm2, %v11839_v33  ;;  %9449 = vmatprep.mubr.msk.f32.mxu1 %vm363_vm2, %v11842_v3  ;;  %v327_v3 = vrot.slane %v11796_v2, 1  ;;  %v11905_v33 = vld [vmem:[%s11555_s25 + $0x100] sm:$0xf]  ;;  %14839 = vst [vmem:[#allocation39_spill] sm:$0xff] %v11908_v20  ;;  %14841 = vst [vmem:[#allocation41_spill] sm:$0xff] %v11933_v46  ;;  %v11950_v62 = vsel %vm1356_vm4, %v1377_v34, %v1378_v26 }
  0x32   : > { %10049 = vmatprep.mubr.msk.f32.mxu0 %vm363_vm2, %v11847_v54  ;;  %v11897_v54 = vsel %vm1356_vm4, %v1368_v41, %v1370_v47  ;;  %v11916_v41 = vld [vmem:[%s11555_s25 + $0x110] sm:$0xff]  ;;  %14843 = vst [vmem:[#allocation43_spill] sm:$0xff] %v11950_v62  ;;  %14845 = vst [vmem:[#allocation45_spill] sm:$0xff] %v11976_v28 }
  0x33   : > { %14837 = vst [vmem:[#allocation37_spill] sm:$0xff] %v11897_v54  ;;  %v11930_v47 = vsel %vm280_vm1, %v327_v3, %v329_v19  ;;  %v11947_v19 = vld [vmem:[%s11555_s25 + $0x118] sm:$0xf] }
  0x34   : > { %9450 = vmatmul.mubr.msk.f32.gmra.mrb[14].mxu1 %vm363_vm2, %v11858_v58  ;;  %v11900_v58 = vsel %vm280_vm1, %v326_v18, %v327_v3  ;;  %v11923_v18 = vld [vmem:[%s14446_s1 + $0x3c] sm:$0xf]  ;;  %14840 = vst [vmem:[#allocation40_spill] sm:$0xff] %v11930_v47  ;;  %v337_v3 = vrot.slane %v11916_v41, 1  ;;  %v339_v55 = vrot.slane %v11947_v19, 1 }
  0x35   : > { %10050 = vmatmul.mubr.msk.f32.gmra.mrb[14].mxu0 %vm363_vm2, %v11861_v60  ;;  %9452 = vmatprep.mubr.msk.f32.mxu1 %vm363_vm2, %v11867_v35  ;;  %14838 = vst [vmem:[#allocation38_spill] sm:$0xff] %v11900_v58  ;;  %v331_v60 = vrot.slane %v11878_v59, 1  ;;  %v332_v35 = vrot.slane %v11881_v12, 1 }
  0x36   : > { %10078 = vmatprep.mubr.msk.f32.mxu0 %vm363_vm2, %v11873_v49  ;;  %v11913_v49 = vld [vmem:[%s11555_s25 + $0x108] sm:$0xff]  ;;  %v12004_v26 = vsel %vm280_vm1, %v337_v3, %v339_v55 }
  0x37   : > { %14848 = vst [vmem:[#allocation48_spill] sm:$0xff] %v12004_v26 }
  0x38   : > { %9453 = vmatmul.mubr.msk.f32.gmra.mrb[16].mxu1 %vm363_vm2, %v11890_v51  ;;  %v334_v51 = vrot.slane %v11905_v33, 1 }
  0x39   : > { %10079 = vmatmul.mubr.msk.f32.vlgmr.msra.gmra.mrb[0].mxu0 %vm363_vm2, %v11897_v54  ;;  %9455 = vmatprep.mubr.msk.f32.mxu1 %vm363_vm2, %v11900_v58  ;;  %v11941_v54 = vsel %vm280_vm1, %v331_v60, %v332_v35  ;;  %v336_v58 = vrot.slane %v11913_v49, 1  ;;  %v11958_v60 = vld [vmem:[%s11555_s25 + $0x128] sm:$0xff] }
  0x3a   : > { %10127 = vmatpush3.msk.msra.mxu0 %vm428_vm0, %v11602_v24  ;;  %10081 = vmatprep.mubr.msk.f32.mxu0 %vm363_vm2, %v11908_v20  ;;  %14842 = vst [vmem:[#allocation42_spill] sm:$0xff] %v11941_v54  ;;  %v1383_v24 = vrot.slane %v11652_v43, 3  ;;  %v11955_v20 = vld [vmem:[%s11555_s25 + $0x120] sm:$0xff]  ;;  %v11969_v34 = vsel %vm280_vm1, %v332_v35, %v334_v51  ;;  %v1387_v51 = vrot.slane %v11686_v56, 3 }
  0x3b   : > { %10176 = vmatprep.subr.msk.mxu0 %vm428_vm0, %v11923_v18  ;;  %14844 = vst [vmem:[#allocation44_spill] sm:$0xff] %v11969_v34 }
  0x3c   : > { %9456 = vmatmul.mubr.msk.f32.gmra.mrb[18].mxu1 %vm363_vm2, %v11930_v47  ;;  %v11979_v47 = vsel %vm280_vm1, %v336_v58, %v337_v3  ;;  %v11987_v35 = vsel %vm1356_vm4, %v1382_v52, %v1383_v24  ;;  %v12007_v58 = vsel %vm1356_vm4, %v1383_v24, %v1385_v50  ;;  %v344_v52 = vrot.slane %v11984_v13, 1  ;;  %v12027_v24 = vld [vmem:[%s11555_s25 + $0x150] sm:$0xff] }
  0x3d   : > { %10082 = vmatmul.mubr.msk.f32.gmra.mrb[2].mxu0 %vm363_vm2, %v11933_v46  ;;  %9458 = vmatprep.mubr.msk.f32.mxu1 %vm363_vm2, %v11941_v54  ;;  %14846 = vst [vmem:[#allocation46_spill] sm:$0xff] %v11979_v47  ;;  %v341_v46 = vrot.slane %v11955_v20, 1  ;;  %v342_v54 = vrot.slane %v11958_v60, 1  ;;  %14847 = vst [vmem:[#allocation47_spill] sm:$0xff] %v11987_v35  ;;  %v1392_v50 = vrot.slane %v11723_v8, 3  ;;  %v1393_v3 = vrot.slane %v11726_v10, 3 }
  0x3e   : > { %10084 = vmatprep.mubr.msk.f32.mxu0 %vm363_vm2, %v11950_v62  ;;  %v1388_v62 = vrot.slane %v11689_v57, 3  ;;  %14849 = vst [vmem:[#allocation49_spill] sm:$0xff] %v12007_v58 }
  0x40   : > { %9459 = vmatmul.mubr.msk.f32.gmra.mrb[20].mxu1 %vm363_vm2, %v11969_v34  ;;  %v12013_v34 = vsel %vm280_vm1, %v341_v46, %v342_v54  ;;  %v12022_v55 = vsel %vm1356_vm4, %v1387_v51, %v1388_v62  ;;  %v12030_v46 = vld [vmem:[%s11555_s25 + $0x158] sm:$0xff]  ;;  %v12039_v51 = vsel %vm280_vm1, %v342_v54, %v344_v52  ;;  %v12046_v38 = vsel %vm1356_vm4, %v1388_v62, %v1390_v61  ;;  %v12065_v61 = vld [vmem:[%s11555_s25 + $0x170] sm:$0xff] }
  0x41   : > { %10085 = vmatmul.mubr.msk.f32.gmra.mrb[4].mxu0 %vm363_vm2, %v11976_v28  ;;  %9461 = vmatprep.mubr.msk.f32.mxu1 %vm363_vm2, %v11979_v47  ;;  %14850 = vst [vmem:[#allocation50_spill] sm:$0xff] %v12013_v34  ;;  %v346_v28 = vrot.slane %v11992_v1, 1  ;;  %v347_v47 = vrot.slane %v11995_v17, 1  ;;  %14851 = vst [vmem:[#allocation51_spill] sm:$0xff] %v12022_v55  ;;  %v12057_v54 = vsel %vm1356_vm4, %v1392_v50, %v1393_v3  ;;  %v1397_v52 = vrot.slane %v11758_v39, 3 }
  0x42   : > { %10087 = vmatprep.mubr.msk.f32.mxu0 %vm363_vm2, %v11987_v35  ;;  %14852 = vst [vmem:[#allocation52_spill] sm:$0xff] %v12039_v51  ;;  %v349_v35 = vrot.slane %v12019_v53, 1  ;;  %14853 = vst [vmem:[#allocation53_spill] sm:$0xff] %v12046_v38  ;;  %v12077_v62 = vsel %vm1356_vm4, %v1393_v3, %v1395_v45  ;;  %v354_v50 = vrot.slane %v12054_v32, 1  ;;  %v1402_v45 = vrot.slane %v11793_v0, 3 }
  0x43   : > { %14855 = vst [vmem:[#allocation55_spill] sm:$0xff] %v12057_v54  ;;  %14857 = vst [vmem:[#allocation57_spill] sm:$0xff] %v12077_v62  ;;  %v359_v3 = vrot.slane %v12089_v11, 1 }
  0x44   : > { %9462 = vmatmul.mubr.msk.f32.gmra.mrb[22].mxu1 %vm363_vm2, %v12004_v26  ;;  %v12049_v26 = vsel %vm280_vm1, %v346_v28, %v347_v47  ;;  %v12074_v28 = vsel %vm280_vm1, %v347_v47, %v349_v35  ;;  %v1403_v35 = vrot.slane %v11796_v2, 3 }
  0x45   : > { %10088 = vmatmul.mubr.msk.f32.gmra.mrb[6].mxu0 %vm363_vm2, %v12007_v58  ;;  %9464 = vmatprep.mubr.msk.f32.mxu1 %vm363_vm2, %v12013_v34  ;;  %14854 = vst [vmem:[#allocation54_spill] sm:$0xff] %v12049_v26  ;;  %v351_v58 = vrot.slane %v12027_v24, 1  ;;  %v352_v34 = vrot.slane %v12030_v46, 1  ;;  %14856 = vst [vmem:[#allocation56_spill] sm:$0xff] %v12074_v28 }
  0x46   : > { %10090 = vmatprep.mubr.msk.f32.mxu0 %vm363_vm2, %v12022_v55  ;;  %v1398_v55 = vrot.slane %v11761_v40, 3 }
  0x47   : > { %v12083_v29 = vsel %vm280_vm1, %v351_v58, %v352_v34  ;;  %v12103_v58 = vsel %vm280_vm1, %v352_v34, %v354_v50  ;;  %v1408_v34 = vrot.slane %v11881_v12, 3 }
  0x48   : > { %9465 = vmatmul.mubr.msk.f32.gmra.mrb[24].mxu1 %vm363_vm2, %v12039_v51  ;;  %14858 = vst [vmem:[#allocation58_spill] sm:$0xff] %v12083_v29  ;;  %v1400_v51 = vrot.slane %v11788_v63, 3  ;;  %v12092_v47 = vsel %vm1356_vm4, %v1397_v52, %v1398_v55  ;;  %14860 = vst [vmem:[#allocation60_spill] sm:$0xff] %v12103_v58 }
  0x49   : > { %10091 = vmatmul.mubr.msk.f32.gmra.mrb[8].mxu0 %vm363_vm2, %v12046_v38  ;;  %9467 = vmatprep.mubr.msk.f32.mxu1 %vm363_vm2, %v12049_v26  ;;  %v356_v38 = vrot.slane %v12062_v25, 1  ;;  %v357_v26 = vrot.slane %v12065_v61, 1  ;;  %14859 = vst [vmem:[#allocation59_spill] sm:$0xff] %v12092_v47 }
  0x4a   : > { %10093 = vmatprep.mubr.msk.f32.mxu0 %vm363_vm2, %v12057_v54  ;;  %v12109_v52 = vsel %vm1356_vm4, %v1398_v55, %v1400_v51  ;;  %v1410_v51 = vrot.slane %v11905_v33, 3 }
  0x4b   : > { %14861 = vst [vmem:[#allocation61_spill] sm:$0xff] %v12109_v52  ;;  %v12112_v54 = vsel %vm280_vm1, %v356_v38, %v357_v26  ;;  %v12127_v38 = vsel %vm280_vm1, %v357_v26, %v359_v3  ;;  %v1418_v3 = vrot.slane %v11958_v60, 3 }
  0x4c   : > { %9468 = vmatmul.mubr.msk.f32.gmra.mrb[26].mxu1 %vm363_vm2, %v12074_v28  ;;  %14862 = vst [vmem:[#allocation62_spill] sm:$0xff] %v12112_v54  ;;  %v1405_v28 = vrot.slane %v11818_v44, 3  ;;  %14864 = vst [vmem:[#allocation64_spill] sm:$0xff] %v12127_v38  ;;  %v12149_v26 = vsel %vm1356_vm4, %v1408_v34, %v1410_v51  ;;  %v1420_v51 = vrot.slane %v11984_v13, 3 }
  0x4d   : > { %10094 = vmatmul.mubr.msk.f32.gmra.mrb[10].mxu0 %vm363_vm2, %v12077_v62  ;;  %9470 = vmatprep.mubr.msk.f32.mxu1 %vm363_vm2, %v12083_v29  ;;  %v12116_v62 = vsel %vm1356_vm4, %v1402_v45, %v1403_v35  ;;  %v1407_v29 = vrot.slane %v11878_v59, 3  ;;  %v1412_v45 = vrot.slane %v11913_v49, 3  ;;  %14867 = vst [vmem:[#allocation67_spill] sm:$0xff] %v12149_v26 }
  0x4e   : > { %10096 = vmatprep.mubr.msk.f32.mxu0 %vm363_vm2, %v12092_v47  ;;  %14863 = vst [vmem:[#allocation63_spill] sm:$0xff] %v12116_v62  ;;  %v12132_v55 = vsel %vm1356_vm4, %v1403_v35, %v1405_v28  ;;  %v1417_v35 = vrot.slane %v11955_v20, 3 }
  0x4f   : > { %14865 = vst [vmem:[#allocation65_spill] sm:$0xff] %v12132_v55  ;;  %v12136_v50 = vsel %vm1356_vm4, %v1407_v29, %v1408_v34  ;;  %v1415_v29 = vrot.slane %v11947_v19, 3 }
  0x50   : > { %9471 = vmatmul.mubr.msk.f32.gmra.mrb[28].mxu1 %vm363_vm2, %v12103_v58  ;;  %14866 = vst [vmem:[#allocation66_spill] sm:$0xff] %v12136_v50  ;;  %v1413_v58 = vrot.slane %v11916_v41, 3 }
  0x51   : > { %10097 = vmatmul.mubr.msk.f32.gmra.mrb[12].mxu0 %vm363_vm2, %v12109_v52  ;;  %9473 = vmatprep.mubr.msk.f32.mxu1 %vm363_vm2, %v12112_v54  ;;  %v1422_v54 = vrot.slane %v11992_v1, 3 }
  0x52   : > { %10099 = vmatprep.mubr.msk.f32.mxu0 %vm363_vm2, %v12116_v62  ;;  %v12153_v28 = vsel %vm1356_vm4, %v1412_v45, %v1413_v58  ;;  %v12173_v34 = vsel %vm1356_vm4, %v1413_v58, %v1415_v29  ;;  %v12177_v45 = vsel %vm1356_vm4, %v1417_v35, %v1418_v3  ;;  %v12192_v58 = vsel %vm1356_vm4, %v1418_v3, %v1420_v51  ;;  %v12246_v62 = vld [vmem:[%s11555_s25 + $0x198] sm:$0xff] }
  0x53   : > { %14868 = vst [vmem:[#allocation68_spill] sm:$0xff] %v12153_v28  ;;  %14869 = vst [vmem:[#allocation69_spill] sm:$0xff] %v12173_v34  ;;  %v1425_v29 = vrot.slane %v12019_v53, 3  ;;  %v4333_v52 = vrot.slane %v12246_v62, 3 }
  0x54   : > { %9474 = vmatmul.mubr.msk.f32.gmra.mrb[30].mxu1 %vm363_vm2, %v12127_v38  ;;  %v12162_v38 = vld [vmem:[%s14446_s1 + $0xc] sm:$0xf]  ;;  %14870 = vst [vmem:[#allocation70_spill] sm:$0xff] %v12177_v45  ;;  %14871 = vst [vmem:[#allocation71_spill] sm:$0xff] %v12192_v58 }
  0x55   : > { %10100 = vmatmul.mubr.msk.f32.gmra.mrb[14].mxu0 %vm363_vm2, %v12132_v55  ;;  %9478 = vmatprep.mubr.msk.f32.mxu1 %vm363_vm2, %v11558_v4 }
  0x56   : > { %10102 = vmatprep.mubr.msk.f32.mxu0 %vm363_vm2, %v12136_v50 }
  0x58   : > { %9479 = vmatmul.mubr.msk.f32.vlgmr.msra.gmra.mrb[0].mxu1 %vm363_vm2, %v11561_v5 }
  0x59   : > { %9527 = vmatpush3.msk.msra.mxu1 %vm428_vm0, %v11620_v31  ;;  %10103 = vmatmul.mubr.msk.f32.gmra.mrb[16].mxu0 %vm363_vm2, %v12149_v26  ;;  %v1423_v31 = vrot.slane %v11995_v17, 3  ;;  %v12220_v26 = vld [vmem:[%s11555_s25 + $0x180] sm:$0xff] }
  0x5a   : > { %9481 = vmatprep.mubr.msk.f32.mxu1 %vm363_vm2, %v11581_v15  ;;  %10105 = vmatprep.mubr.msk.f32.mxu0 %vm363_vm2, %v12153_v28  ;;  %v1427_v28 = vrot.slane %v12027_v24, 3  ;;  %v2980_v50 = vrot.slane %v12220_v26, 3 }
  0x5b   : > { %9576 = vmatprep.subr.msk.mxu1 %vm428_vm0, %v12162_v38  ;;  %v12196_v35 = vsel %vm1356_vm4, %v1422_v54, %v1423_v31  ;;  %v12209_v3 = vsel %vm1356_vm4, %v1423_v31, %v1425_v29  ;;  %v1430_v54 = vrot.slane %v12054_v32, 3  ;;  %v1435_v31 = vrot.slane %v12089_v11, 3 }
  0x5c   : > { %9482 = vmatmul.mubr.msk.f32.gmra.mrb[2].mxu1 %vm363_vm2, %v11584_v16  ;;  %14872 = vst [vmem:[#allocation72_spill] sm:$0xff] %v12196_v35  ;;  %14873 = vst [vmem:[#allocation73_spill] sm:$0xff] %v12209_v3 }
  0x5d   : > { %10106 = vmatmul.mubr.msk.f32.gmra.mrb[18].mxu0 %vm363_vm2, %v12173_v34  ;;  %9484 = vmatprep.mubr.msk.f32.mxu1 %vm363_vm2, %v11564_v6  ;;  %v1428_v34 = vrot.slane %v12030_v46, 3 }
  0x5e   : > { %10108 = vmatprep.mubr.msk.f32.mxu0 %vm363_vm2, %v12177_v45  ;;  %v1432_v45 = vrot.slane %v12062_v25, 3 }
  0x5f   : > { %v12213_v51 = vsel %vm1356_vm4, %v1427_v28, %v1428_v34  ;;  %v12232_v28 = vsel %vm1356_vm4, %v1428_v34, %v1430_v54 }
  0x60   : > { %9485 = vmatmul.mubr.msk.f32.gmra.mrb[4].mxu1 %vm363_vm2, %v11569_v9  ;;  %14874 = vst [vmem:[#allocation74_spill] sm:$0xff] %v12213_v51  ;;  %14876 = vst [vmem:[#allocation76_spill] sm:$0xff] %v12232_v28 }
  0x61   : > { %10109 = vmatmul.mubr.msk.f32.gmra.mrb[20].mxu0 %vm363_vm2, %v12192_v58  ;;  %9487 = vmatprep.mubr.msk.f32.mxu1 %vm363_vm2, %v11591_v21  ;;  %v1433_v58 = vrot.slane %v12065_v61, 3 }
  0x62   : > { %10111 = vmatprep.mubr.msk.f32.mxu0 %vm363_vm2, %v12196_v35  ;;  %v12223_v35 = vld [vmem:[%s11555_s25 + $0x188] sm:$0xff] }
  0x63   : > { %14875 = vst [vmem:[#allocation75_spill] sm:$0xff] %v12223_v35  ;;  %v12236_v29 = vsel %vm1356_vm4, %v1432_v45, %v1433_v58  ;;  %v2981_v55 = vrot.slane %v12223_v35, 3  ;;  %v12258_v34 = vsel %vm1356_vm4, %v1433_v58, %v1435_v31  ;;  %v12267_v35 = vld [vmem:[%s11555_s25 + $0x1a8] sm:$0xf] }
  0x64   : > { %9488 = vmatmul.mubr.msk.f32.gmra.mrb[6].mxu1 %vm363_vm2, %v11594_v22  ;;  %14877 = vst [vmem:[#allocation77_spill] sm:$0xff] %v12236_v29  ;;  %14878 = vst [vmem:[#allocation78_spill] sm:$0xff] %v12258_v34  ;;  %v4336_v58 = vrot.slane %v12267_v35, 3 }
  0x65   : > { %10112 = vmatmul.mubr.msk.f32.gmra.mrb[22].mxu0 %vm363_vm2, %v12209_v3  ;;  %9490 = vmatprep.mubr.msk.f32.mxu1 %vm363_vm2, %v11597_v23  ;;  %v12241_v3 = vld [vmem:[%s11555_s25 + $0x190] sm:$0xf]  ;;  %v12262_v54 = vsel %vm1356_vm4, %v2980_v50, %v2981_v55 }
  0x66   : > { %10114 = vmatprep.mubr.msk.f32.mxu0 %vm363_vm2, %v12213_v51  ;;  %v12249_v51 = vld [vmem:[%s11555_s25 + $0x1a0] sm:$0xff]  ;;  %v2983_v45 = vrot.slane %v12241_v3, 3  ;;  %14879 = vst [vmem:[#allocation79_spill] sm:$0xff] %v12262_v54 }
  0x67   : > { %v4334_v47 = vrot.slane %v12249_v51, 3 }
  0x68   : > { %9491 = vmatmul.mubr.msk.f32.gmra.mrb[8].mxu1 %vm363_vm2, %v11634_v36  ;;  %v12278_v50 = vsel %vm1356_vm4, %v2981_v55, %v2983_v45  ;;  %v1779_v45 = vrot.slane %v11594_v22, 4 }
  0x69   : > { %10115 = vmatmul.mubr.msk.f32.gmra.mrb[24].mxu0 %vm363_vm2, %v12232_v28  ;;  %9493 = vmatprep.mubr.msk.f32.mxu1 %vm363_vm2, %v11649_v42  ;;  %14880 = vst [vmem:[#allocation80_spill] sm:$0xff] %v12278_v50  ;;  %v12282_v31 = vsel %vm1356_vm4, %v4333_v52, %v4334_v47  ;;  %v1774_v28 = vrot.slane %v11569_v9, 4  ;;  %v12295_v55 = vsel %vm1356_vm4, %v4334_v47, %v4336_v58  ;;  %v1776_v52 = vrot.slane %v11578_v14, 4 }
  0x6a   : > { %10117 = vmatprep.mubr.msk.f32.mxu0 %vm363_vm2, %v12236_v29  ;;  %14881 = vst [vmem:[#allocation81_spill] sm:$0xff] %v12282_v31  ;;  %v1773_v29 = vrot.slane %v11564_v6, 4  ;;  %14882 = vst [vmem:[#allocation82_spill] sm:$0xff] %v12295_v55  ;;  %v1778_v9 = vrot.slane %v11591_v21, 4  ;;  %v1781_v47 = vrot.slane %v11615_v30, 4  ;;  %v1783_v58 = vrot.slane %v11597_v23, 4 }
  0x6b   : > { %v12312_v14 = vsel %vm428_vm0, %v1774_v28, %v1776_v52  ;;  %v1786_v30 = vrot.slane %v11637_v37, 4  ;;  %v1788_v52 = vrot.slane %v11649_v42, 4 }
  0x6c   : > { %9494 = vmatmul.mubr.msk.f32.gmra.mrb[10].mxu1 %vm363_vm2, %v11652_v43  ;;  %v12299_v6 = vsel %vm428_vm0, %v1773_v29, %v1774_v28  ;;  %14884 = vst [vmem:[#allocation84_spill] sm:$0xff] %v12312_v14  ;;  %v12316_v29 = vsel %vm428_vm0, %v1778_v9, %v1779_v45  ;;  %v12336_v23 = vsel %vm428_vm0, %v1779_v45, %v1781_v47  ;;  %v1789_v9 = vrot.slane %v11652_v43, 4 }
  0x6d   : > { %10118 = vmatmul.mubr.msk.f32.gmra.mrb[26].mxu0 %vm363_vm2, %v12258_v34  ;;  %9496 = vmatprep.mubr.msk.f32.mxu1 %vm363_vm2, %v11686_v56  ;;  %14883 = vst [vmem:[#allocation83_spill] sm:$0xff] %v12299_v6  ;;  %v1793_v47 = vrot.slane %v11686_v56, 4 }
  0x6e   : > { %10120 = vmatprep.mubr.msk.f32.mxu0 %vm363_vm2, %v12262_v54  ;;  %v12359_v45 = vsel %vm428_vm0, %v1788_v52, %v1789_v9  ;;  %v1798_v52 = vrot.slane %v11723_v8, 4  ;;  %v1804_v54 = vrot.slane %v11761_v40, 4 }
  0x6f   : > { %14887 = vst [vmem:[#allocation87_spill] sm:$0xff] %v12359_v45 }
  0x70   : > { %9497 = vmatmul.mubr.msk.f32.gmra.mrb[12].mxu1 %vm363_vm2, %v11689_v57 }
  0x71   : > { %10121 = vmatmul.mubr.msk.f32.gmra.mrb[28].mxu0 %vm363_vm2, %v12278_v50  ;;  %9499 = vmatprep.mubr.msk.f32.mxu1 %vm363_vm2, %v11723_v8  ;;  %v1799_v50 = vrot.slane %v11726_v10, 4 }
  0x72   : > { %10123 = vmatprep.mubr.msk.f32.mxu0 %vm363_vm2, %v12282_v31  ;;  %v1784_v31 = vrot.slane %v11634_v36, 4 }
  0x74   : > { %9500 = vmatmul.mubr.msk.f32.gmra.mrb[14].mxu1 %vm363_vm2, %v11726_v10  ;;  %v12340_v28 = vsel %vm428_vm0, %v1783_v58, %v1784_v31  ;;  %v12355_v37 = vsel %vm428_vm0, %v1784_v31, %v1786_v30  ;;  %v1794_v58 = vrot.slane %v11689_v57, 4  ;;  %v1796_v31 = vrot.slane %v11718_v7, 4 }
  0x75   : > { %10124 = vmatmul.mubr.msk.f32.gmra.mrb[30].mxu0 %vm363_vm2, %v12295_v55  ;;  %9502 = vmatprep.mubr.msk.f32.mxu1 %vm363_vm2, %v11758_v39  ;;  %v12325_v55 = vld [vmem:[%s14446_s1 + $0x40] sm:$0xf]  ;;  %14885 = vst [vmem:[#allocation85_spill] sm:$0xff] %v12340_v28  ;;  %14886 = vst [vmem:[#allocation86_spill] sm:$0xff] %v12355_v37 }
  0x76   : > { %10128 = vmatprep.mubr.msk.f32.mxu0 %vm363_vm2, %v12299_v6  ;;  %v12376_v30 = vsel %vm428_vm0, %v1793_v47, %v1794_v58  ;;  %v12389_v7 = vsel %vm428_vm0, %v1794_v58, %v1796_v31  ;;  %v1803_v47 = vrot.slane %v11758_v39, 4  ;;  %v1806_v58 = vrot.slane %v11788_v63, 4 }
  0x77   : > { %14889 = vst [vmem:[#allocation89_spill] sm:$0xff] %v12376_v30  ;;  %14890 = vst [vmem:[#allocation90_spill] sm:$0xff] %v12389_v7 }
  0x78   : > { %9503 = vmatmul.mubr.msk.f32.gmra.mrb[16].mxu1 %vm363_vm2, %v11761_v40  ;;  %v12410_v31 = vsel %vm428_vm0, %v1803_v47, %v1804_v54  ;;  %v12423_v63 = vsel %vm428_vm0, %v1804_v54, %v1806_v58  ;;  %v951_v47 = vrot.slane %v11561_v5, 2  ;;  %v1816_v58 = vrot.slane %v11905_v33, 4 }
  0x79   : > { %10129 = vmatmul.mubr.msk.f32.vlgmr.msra.gmra.mrb[0].mxu0 %vm363_vm2, %v12312_v14  ;;  %9505 = vmatprep.mubr.msk.f32.mxu1 %vm363_vm2, %v11793_v0  ;;  %14893 = vst [vmem:[#allocation93_spill] sm:$0xff] %v12410_v31  ;;  %14894 = vst [vmem:[#allocation94_spill] sm:$0xff] %v12423_v63 }
  0x7a   : > { %10177 = vmatpush3.msk.msra.mxu0 %vm428_vm0, %v11923_v18  ;;  %10131 = vmatprep.mubr.msk.f32.mxu0 %vm363_vm2, %v12316_v29  ;;  %v1791_v18 = vrot.slane %v11666_v48, 4 }
  0x7b   : > { %10226 = vmatprep.subr.msk.mxu0 %vm428_vm0, %v12325_v55 }
  0x7c   : > { %9506 = vmatmul.mubr.msk.f32.gmra.mrb[18].mxu1 %vm363_vm2, %v11796_v2  ;;  %v12372_v48 = vsel %vm428_vm0, %v1789_v9, %v1791_v18  ;;  %v1801_v9 = vrot.slane %v11748_v27, 4  ;;  %v12393_v18 = vsel %vm428_vm0, %v1798_v52, %v1799_v50  ;;  %v1808_v52 = vrot.slane %v11793_v0, 4 }
  0x7d   : > { %10132 = vmatmul.mubr.msk.f32.gmra.mrb[2].mxu0 %vm363_vm2, %v12336_v23  ;;  %9508 = vmatprep.mubr.msk.f32.mxu1 %vm363_vm2, %v11878_v59  ;;  %14888 = vst [vmem:[#allocation88_spill] sm:$0xff] %v12372_v48  ;;  %14891 = vst [vmem:[#allocation91_spill] sm:$0xff] %v12393_v18 }
  0x7e   : > { %10134 = vmatprep.mubr.msk.f32.mxu0 %vm363_vm2, %v12340_v28  ;;  %v12406_v27 = vsel %vm428_vm0, %v1799_v50, %v1801_v9  ;;  %v1811_v50 = vrot.slane %v11818_v44, 4  ;;  %v950_v9 = vrot.slane %v11558_v4, 2  ;;  %v14896_v44 = vld [vmem:[#allocation2_spill] sm:$0xff] }
  0x7f   : > { %14892 = vst [vmem:[#allocation92_spill] sm:$0xff] %v12406_v27  ;;  %v953_v4 = vrot.slane %v14896_v44, 2  ;;  %v1819_v44 = vrot.slane %v11916_v41, 4 }
  0x80   : > { %9509 = vmatmul.mubr.msk.f32.gmra.mrb[20].mxu1 %vm363_vm2, %v11881_v12  ;;  %v952_v54 = vsel %vm949_vm3, %v950_v9, %v951_v47 }
  0x81   : > { %10135 = vmatmul.mubr.msk.f32.gmra.mrb[4].mxu0 %vm363_vm2, %v12355_v37  ;;  %9511 = vmatprep.mubr.msk.f32.mxu1 %vm363_vm2, %v11913_v49 }
  0x82   : > { %10137 = vmatprep.mubr.msk.f32.mxu0 %vm363_vm2, %v12359_v45 }
  0x84   : > { %9512 = vmatmul.mubr.msk.f32.gmra.mrb[22].mxu1 %vm363_vm2, %v11916_v41 }
  0x85   : > { %10138 = vmatmul.mubr.msk.f32.gmra.mrb[6].mxu0 %vm363_vm2, %v12372_v48  ;;  %9514 = vmatprep.mubr.msk.f32.mxu1 %vm363_vm2, %v11955_v20  ;;  %v1818_v48 = vrot.slane %v11913_v49, 4 }
  0x86   : > { %10140 = vmatprep.mubr.msk.f32.mxu0 %vm363_vm2, %v12376_v30  ;;  %v1809_v30 = vrot.slane %v11796_v2, 4 }
  0x88   : > { %9515 = vmatmul.mubr.msk.f32.gmra.mrb[24].mxu1 %vm363_vm2, %v11958_v60  ;;  %v12443_v5 = vsel %vm428_vm0, %v1809_v30, %v1811_v50 }
  0x89   : > { %10141 = vmatmul.mubr.msk.f32.gmra.mrb[8].mxu0 %vm363_vm2, %v12389_v7  ;;  %9517 = vmatprep.mubr.msk.f32.mxu1 %vm363_vm2, %v11992_v1  ;;  %v1814_v7 = vrot.slane %v11881_v12, 4  ;;  %14897 = vst [vmem:[#allocation2_spill] sm:$0xff] %v12443_v5 }
  0x8a   : > { %10143 = vmatprep.mubr.msk.f32.mxu0 %vm363_vm2, %v12393_v18  ;;  %v12429_v18 = vsel %vm428_vm0, %v1808_v52, %v1809_v30  ;;  %v955_v52 = vrot.slane %v11581_v15, 2  ;;  %v954_v30 = vsel %vm949_vm3, %v951_v47, %v953_v4  ;;  %v14899_v15 = vld [vmem:[#allocation4_spill] sm:$0xff]  ;;  %v1824_v47 = vrot.slane %v11958_v60, 4 }
  0x8b   : > { %14895 = vst [vmem:[#allocation95_spill] sm:$0xff] %v12429_v18  ;;  %v958_v50 = vrot.slane %v14899_v15, 2  ;;  %v12479_v4 = vld [vmem:[%s14446_s1 + $0x10] sm:$0xf]  ;;  %v1831_v15 = vrot.slane %v12019_v53, 4 }
  0x8c   : > { %9518 = vmatmul.mubr.msk.f32.gmra.mrb[26].mxu1 %vm363_vm2, %v11995_v17 }
  0x8d   : > { %10144 = vmatmul.mubr.msk.f32.gmra.mrb[10].mxu0 %vm363_vm2, %v12406_v27  ;;  %9520 = vmatprep.mubr.msk.f32.mxu1 %vm363_vm2, %v12027_v24  ;;  %v1813_v27 = vrot.slane %v11878_v59, 4 }
  0x8e   : > { %10146 = vmatprep.mubr.msk.f32.mxu0 %vm363_vm2, %v12410_v31 }
  0x8f   : > { %v12449_v31 = vsel %vm428_vm0, %v1813_v27, %v1814_v7  ;;  %v1821_v27 = vrot.slane %v11947_v19, 4 }
  0x90   : > { %9521 = vmatmul.mubr.msk.f32.gmra.mrb[28].mxu1 %vm363_vm2, %v12030_v46  ;;  %14898 = vst [vmem:[#allocation96_spill] sm:$0xff] %v12449_v31 }
  0x91   : > { %10147 = vmatmul.mubr.msk.f32.gmra.mrb[12].mxu0 %vm363_vm2, %v12423_v63  ;;  %9523 = vmatprep.mubr.msk.f32.mxu1 %vm363_vm2, %v12062_v25  ;;  %v956_v63 = vrot.slane %v11584_v16, 2  ;;  %v12464_v16 = vsel %vm428_vm0, %v1814_v7, %v1816_v58  ;;  %v12493_v7 = vsel %vm428_vm0, %v1819_v44, %v1821_v27  ;;  %v1826_v58 = vrot.slane %v11984_v13, 4 }
  0x92   : > { %10149 = vmatprep.mubr.msk.f32.mxu0 %vm363_vm2, %v12429_v18  ;;  %14900 = vst [vmem:[#allocation4_spill] sm:$0xff] %v12464_v16  ;;  %v12471_v18 = vsel %vm428_vm0, %v1818_v48, %v1819_v44  ;;  %14904 = vst [vmem:[#allocation100_spill] sm:$0xff] %v12493_v7  ;;  %v1833_v27 = vrot.slane %v12027_v24, 4 }
  0x93   : > { %v12468_v9 = vsel %vm949_vm3, %v955_v52, %v956_v63  ;;  %14902 = vst [vmem:[#allocation98_spill] sm:$0xff] %v12471_v18  ;;  %v12486_v48 = vsel %vm949_vm3, %v956_v63, %v958_v50  ;;  %v14906_v63 = vld [vmem:[#allocation3_spill] sm:$0xff]  ;;  %v12512_v44 = vsel %vm428_vm0, %v1824_v47, %v1826_v58  ;;  %v1836_v58 = vrot.slane %v12054_v32, 4 }
  0x94   : > { %9524 = vmatmul.mubr.msk.f32.gmra.mrb[30].mxu1 %vm363_vm2, %v12065_v61  ;;  %14901 = vst [vmem:[#allocation97_spill] sm:$0xff] %v12468_v9  ;;  %14903 = vst [vmem:[#allocation99_spill] sm:$0xff] %v12486_v48 }
  0x95   : > { %10150 = vmatmul.mubr.msk.f32.gmra.mrb[14].mxu0 %vm363_vm2, %v12443_v5  ;;  %9528 = vmatprep.mubr.msk.f32.mxu1 %vm363_vm2, %v952_v54  ;;  %v1823_v54 = vrot.slane %v11955_v20, 4  ;;  %14907 = vst [vmem:[#allocation102_spill] sm:$0xff] %v12512_v44 }
  0x96   : > { %10152 = vmatprep.mubr.msk.f32.mxu0 %vm363_vm2, %v12449_v31  ;;  %v4605_v31 = vrot.slane %v12249_v51, 4 }
  0x97   : > { %v12497_v52 = vsel %vm428_vm0, %v1823_v54, %v1824_v47  ;;  %v1834_v54 = vrot.slane %v12030_v46, 4 }
  0x98   : > { %9529 = vmatmul.mubr.msk.f32.vlgmr.msra.gmra.mrb[0].mxu1 %vm363_vm2, %v954_v30  ;;  %14905 = vst [vmem:[#allocation101_spill] sm:$0xff] %v12497_v52  ;;  %v1829_v30 = vrot.slane %v11995_v17, 4 }
  0x99   : > { %9577 = vmatpush3.msk.msra.mxu1 %vm428_vm0, %v12162_v38  ;;  %10153 = vmatmul.mubr.msk.f32.gmra.mrb[16].mxu0 %vm363_vm2, %v12464_v16  ;;  %v1828_v38 = vrot.slane %v11992_v1, 4  ;;  %v14918_v16 = vld [vmem:[#allocation13_spill] sm:$0xff] }
  0x9a   : > { %9531 = vmatprep.mubr.msk.f32.mxu1 %vm363_vm2, %v12468_v9  ;;  %10155 = vmatprep.mubr.msk.f32.mxu0 %vm363_vm2, %v12471_v18  ;;  %v12529_v47 = vsel %vm428_vm0, %v1829_v30, %v1831_v15  ;;  %v1838_v9 = vrot.slane %v12062_v25, 4  ;;  %v1841_v15 = vrot.slane %v12089_v11, 4 }
  0x9b   : > { %9626 = vmatprep.subr.msk.mxu1 %vm428_vm0, %v12479_v4  ;;  %v12516_v50 = vsel %vm428_vm0, %v1828_v38, %v1829_v30  ;;  %14911 = vst [vmem:[#allocation104_spill] sm:$0xff] %v12529_v47  ;;  %v12533_v38 = vsel %vm428_vm0, %v1833_v27, %v1834_v54  ;;  %v12546_v30 = vsel %vm428_vm0, %v1834_v54, %v1836_v58 }
  0x9c   : > { %9532 = vmatmul.mubr.msk.f32.gmra.mrb[2].mxu1 %vm363_vm2, %v12486_v48  ;;  %14908 = vst [vmem:[#allocation103_spill] sm:$0xff] %v12516_v50  ;;  %v14909_v48 = vld [vmem:[#allocation5_spill] sm:$0xff]  ;;  %14912 = vst [vmem:[#allocation105_spill] sm:$0xff] %v12533_v38 }
  0x9d   : > { %10156 = vmatmul.mubr.msk.f32.gmra.mrb[18].mxu0 %vm363_vm2, %v12493_v7  ;;  %9534 = vmatprep.mubr.msk.f32.mxu1 %vm363_vm2, %v14906_v63  ;;  %v14910_v63 = vld [vmem:[#allocation7_spill] sm:$0xff]  ;;  %14915 = vst [vmem:[#allocation106_spill] sm:$0xff] %v12546_v30 }
  0x9e   : > { %10158 = vmatprep.mubr.msk.f32.mxu0 %vm363_vm2, %v12497_v52  ;;  %v14913_v52 = vld [vmem:[#allocation9_spill] sm:$0xff]  ;;  %v14917_v7 = vld [vmem:[#allocation75_spill] sm:$0xff] }
  0x9f   : > { %v3252_v18 = vrot.slane %v14917_v7, 4 }
  0xa0   : > { %9535 = vmatmul.mubr.msk.f32.gmra.mrb[4].mxu1 %vm363_vm2, %v14909_v48  ;;  %v1839_v48 = vrot.slane %v12065_v61, 4 }
  0xa1   : > { %10159 = vmatmul.mubr.msk.f32.gmra.mrb[20].mxu0 %vm363_vm2, %v12512_v44  ;;  %9537 = vmatprep.mubr.msk.f32.mxu1 %vm363_vm2, %v14910_v63  ;;  %v14914_v44 = vld [vmem:[#allocation11_spill] sm:$0xff] }
  0xa2   : > { %10161 = vmatprep.mubr.msk.f32.mxu0 %vm363_vm2, %v12516_v50  ;;  %v12550_v27 = vsel %vm428_vm0, %v1838_v9, %v1839_v48  ;;  %v3251_v50 = vrot.slane %v12220_v26, 4  ;;  %v12563_v54 = vsel %vm428_vm0, %v1839_v48, %v1841_v15  ;;  %v3254_v9 = vrot.slane %v12241_v3, 4 }
  0xa3   : > { %14916 = vst [vmem:[#allocation107_spill] sm:$0xff] %v12550_v27  ;;  %14920 = vst [vmem:[#allocation75_spill] sm:$0xff] %v12563_v54 }
  0xa4   : > { %9538 = vmatmul.mubr.msk.f32.gmra.mrb[6].mxu1 %vm363_vm2, %v14913_v52  ;;  %v12567_v58 = vsel %vm428_vm0, %v3251_v50, %v3252_v18  ;;  %v12580_v48 = vsel %vm428_vm0, %v3252_v18, %v3254_v9  ;;  %v4607_v50 = vrot.slane %v12267_v35, 4  ;;  %v14929_v9 = vld [vmem:[#allocation25_spill] sm:$0xff] }
  0xa5   : > { %10162 = vmatmul.mubr.msk.f32.gmra.mrb[22].mxu0 %vm363_vm2, %v12529_v47  ;;  %9540 = vmatprep.mubr.msk.f32.mxu1 %vm363_vm2, %v14914_v44  ;;  %v14919_v47 = vld [vmem:[#allocation15_spill] sm:$0xff]  ;;  %14921 = vst [vmem:[#allocation108_spill] sm:$0xff] %v12567_v58  ;;  %14924 = vst [vmem:[#allocation109_spill] sm:$0xff] %v12580_v48 }
  0xa6   : > { %10164 = vmatprep.mubr.msk.f32.mxu0 %vm363_vm2, %v12533_v38  ;;  %v4604_v38 = vrot.slane %v12246_v62, 4  ;;  %v12595_v18 = vsel %vm428_vm0, %v4605_v31, %v4607_v50  ;;  %v14932_v50 = vld [vmem:[#allocation31_spill] sm:$0xff] }
  0xa7   : > { %14928 = vst [vmem:[#allocation111_spill] sm:$0xff] %v12595_v18 }
  0xa8   : > { %9541 = vmatmul.mubr.msk.f32.gmra.mrb[8].mxu1 %vm363_vm2, %v14918_v16  ;;  %v14922_v16 = vld [vmem:[#allocation17_spill] sm:$0xff]  ;;  %v12584_v15 = vsel %vm428_vm0, %v4604_v38, %v4605_v31  ;;  %v14930_v38 = vld [vmem:[#allocation27_spill] sm:$0xff]  ;;  %v12612_v31 = vld [vmem:[%s14446_s1 + $0x44] sm:$0xf] }
  0xa9   : > { %10165 = vmatmul.mubr.msk.f32.gmra.mrb[24].mxu0 %vm363_vm2, %v12546_v30  ;;  %9543 = vmatprep.mubr.msk.f32.mxu1 %vm363_vm2, %v14919_v47  ;;  %v14923_v30 = vld [vmem:[#allocation19_spill] sm:$0xff]  ;;  %14925 = vst [vmem:[#allocation110_spill] sm:$0xff] %v12584_v15 }
  0xaa   : > { %10167 = vmatprep.mubr.msk.f32.mxu0 %vm363_vm2, %v12550_v27  ;;  %v14926_v27 = vld [vmem:[#allocation21_spill] sm:$0xff] }
  0xac   : > { %9544 = vmatmul.mubr.msk.f32.gmra.mrb[10].mxu1 %vm363_vm2, %v14922_v16 }
  0xad   : > { %10168 = vmatmul.mubr.msk.f32.gmra.mrb[26].mxu0 %vm363_vm2, %v12563_v54  ;;  %9546 = vmatprep.mubr.msk.f32.mxu1 %vm363_vm2, %v14923_v30  ;;  %v14927_v54 = vld [vmem:[#allocation23_spill] sm:$0xff] }
  0xae   : > { %10170 = vmatprep.mubr.msk.f32.mxu0 %vm363_vm2, %v12567_v58  ;;  %v1001_v58 = vrot.slane %v11881_v12, 2 }
  0xb0   : > { %9547 = vmatmul.mubr.msk.f32.gmra.mrb[12].mxu1 %vm363_vm2, %v14926_v27 }
  0xb1   : > { %10171 = vmatmul.mubr.msk.f32.gmra.mrb[28].mxu0 %vm363_vm2, %v12580_v48  ;;  %9549 = vmatprep.mubr.msk.f32.mxu1 %vm363_vm2, %v14927_v54  ;;  %v1000_v48 = vrot.slane %v11878_v59, 2 }
  0xb2   : > { %10173 = vmatprep.mubr.msk.f32.mxu0 %vm363_vm2, %v12584_v15  ;;  %v14931_v15 = vld [vmem:[#allocation29_spill] sm:$0xff] }
  0xb4   : > { %9550 = vmatmul.mubr.msk.f32.gmra.mrb[14].mxu1 %vm363_vm2, %v14929_v9 }
  0xb5   : > { %10174 = vmatmul.mubr.msk.f32.gmra.mrb[30].mxu0 %vm363_vm2, %v12595_v18  ;;  %9552 = vmatprep.mubr.msk.f32.mxu1 %vm363_vm2, %v14930_v38  ;;  %v12622_v18 = vld [vmem:[%s11555_s25 + $0x60] sm:$0xff]  ;;  %v1005_v38 = vrot.slane %v11913_v49, 2 }
  0xb6   : > { %10178 = vmatprep.mubr.msk.f32.mxu0 %vm363_vm2, %v11591_v21  ;;  %v1003_v21 = vrot.slane %v11905_v33, 2  ;;  %14933 = vst [vmem:[#allocation112_spill] sm:$0xff] %v12622_v18 }
  0xb8   : > { %9553 = vmatmul.mubr.msk.f32.gmra.mrb[16].mxu1 %vm363_vm2, %v14931_v15  ;;  %v12627_v15 = vsel %vm949_vm3, %v1000_v48, %v1001_v58  ;;  %v12640_v33 = vsel %vm949_vm3, %v1001_v58, %v1003_v21  ;;  %v1015_v58 = vrot.slane %v11992_v1, 2  ;;  %v1021_v21 = vrot.slane %v12030_v46, 2 }
  0xb9   : > { %10179 = vmatmul.mubr.msk.f32.vlgmr.msra.gmra.mrb[0].mxu0 %vm363_vm2, %v11594_v22  ;;  %9555 = vmatprep.mubr.msk.f32.mxu1 %vm363_vm2, %v14932_v50  ;;  %14934 = vst [vmem:[#allocation113_spill] sm:$0xff] %v12627_v15  ;;  %v1006_v22 = vrot.slane %v11916_v41, 2  ;;  %v14935_v50 = vld [vmem:[#allocation33_spill] sm:$0xff]  ;;  %14936 = vst [vmem:[#allocation114_spill] sm:$0xff] %v12640_v33 }
  0xba   : > { %10227 = vmatpush3.msk.msra.mxu0 %vm428_vm0, %v12325_v55  ;;  %10181 = vmatprep.mubr.msk.f32.mxu0 %vm363_vm2, %v12622_v18  ;;  %v1008_v55 = vrot.slane %v11947_v19, 2  ;;  %v1010_v18 = vrot.slane %v11955_v20, 2 }
  0xbb   : > { %10276 = vmatprep.subr.msk.mxu0 %vm428_vm0, %v12612_v31  ;;  %v12646_v48 = vsel %vm949_vm3, %v1005_v38, %v1006_v22  ;;  %v1016_v38 = vrot.slane %v11995_v17, 2 }
  0xbc   : > { %9556 = vmatmul.mubr.msk.f32.gmra.mrb[18].mxu1 %vm363_vm2, %v14935_v50  ;;  %v1011_v50 = vrot.slane %v11958_v60, 2 }
  0xbd   : > { %10182 = vmatmul.mubr.msk.f32.gmra.mrb[2].mxu0 %vm363_vm2, %v11634_v36  ;;  %9558 = vmatprep.mubr.msk.f32.mxu1 %vm363_vm2, %v12627_v15  ;;  %v12657_v36 = vsel %vm949_vm3, %v1006_v22, %v1008_v55  ;;  %v1026_v22 = vrot.slane %v12065_v61, 2  ;;  %v12717_v55 = vld [vmem:[%s11555_s25] sm:$0xff] }
  0xbe   : > { %10184 = vmatprep.mubr.msk.f32.mxu0 %vm363_vm2, %v11649_v42  ;;  %v1013_v42 = vrot.slane %v11984_v13, 2  ;;  %v12663_v19 = vsel %vm949_vm3, %v1010_v18, %v1011_v50  ;;  %v12680_v13 = vsel %vm949_vm3, %v1015_v58, %v1016_v38  ;;  %v1020_v18 = vrot.slane %v12027_v24, 2 }
  0xbf   : > { %14938 = vst [vmem:[#allocation116_spill] sm:$0xff] %v12680_v13 }
  0xc0   : > { %9559 = vmatmul.mubr.msk.f32.gmra.mrb[20].mxu1 %vm363_vm2, %v12640_v33 }
  0xc1   : > { %10185 = vmatmul.mubr.msk.f32.gmra.mrb[4].mxu0 %vm363_vm2, %v11652_v43  ;;  %9561 = vmatprep.mubr.msk.f32.mxu1 %vm363_vm2, %v12646_v48  ;;  %v12674_v43 = vsel %vm949_vm3, %v1011_v50, %v1013_v42  ;;  %v1025_v50 = vrot.slane %v12062_v25, 2  ;;  %v12721_v42 = vld [vmem:[%s11555_s25 + $0x8] sm:$0xff] }
  0xc2   : > { %10187 = vmatprep.mubr.msk.f32.mxu0 %vm363_vm2, %v11686_v56  ;;  %14937 = vst [vmem:[#allocation115_spill] sm:$0xff] %v12674_v43  ;;  %v1018_v56 = vrot.slane %v12019_v53, 2  ;;  %v1358_v58 = vrot.slane %v12721_v42, 3 }
  0xc4   : > { %9562 = vmatmul.mubr.msk.f32.gmra.mrb[22].mxu1 %vm363_vm2, %v12657_v36  ;;  %v12691_v53 = vsel %vm949_vm3, %v1016_v38, %v1018_v56 }
  0xc5   : > { %10188 = vmatmul.mubr.msk.f32.gmra.mrb[6].mxu0 %vm363_vm2, %v11689_v57  ;;  %9564 = vmatprep.mubr.msk.f32.mxu1 %vm363_vm2, %v12663_v19  ;;  %14939 = vst [vmem:[#allocation117_spill] sm:$0xff] %v12691_v53  ;;  %v1023_v57 = vrot.slane %v12054_v32, 2 }
  0xc6   : > { %10190 = vmatprep.mubr.msk.f32.mxu0 %vm363_vm2, %v11723_v8  ;;  %v12697_v8 = vsel %vm949_vm3, %v1020_v18, %v1021_v21  ;;  %v12741_v18 = vld [vmem:[%s11555_s25 + $0x18] sm:$0xff] }
  0xc7   : > { %14940 = vst [vmem:[#allocation118_spill] sm:$0xff] %v12697_v8  ;;  %v12708_v32 = vsel %vm949_vm3, %v1021_v21, %v1023_v57  ;;  %v1362_v21 = vrot.slane %v12741_v18, 3 }
  0xc8   : > { %9565 = vmatmul.mubr.msk.f32.gmra.mrb[24].mxu1 %vm363_vm2, %v12674_v43  ;;  %14941 = vst [vmem:[#allocation119_spill] sm:$0xff] %v12708_v32 }
  0xc9   : > { %10191 = vmatmul.mubr.msk.f32.gmra.mrb[8].mxu0 %vm363_vm2, %v11726_v10  ;;  %9567 = vmatprep.mubr.msk.f32.mxu1 %vm363_vm2, %v12680_v13  ;;  %v1028_v10 = vrot.slane %v12089_v11, 2 }
  0xca   : > { %10193 = vmatprep.mubr.msk.f32.mxu0 %vm363_vm2, %v11758_v39  ;;  %v12714_v39 = vsel %vm949_vm3, %v1025_v50, %v1026_v22  ;;  %v12755_v50 = vld [vmem:[%s11555_s25 + $0x28] sm:$0xf] }
  0xcb   : > { %14942 = vst [vmem:[#allocation120_spill] sm:$0xff] %v12714_v39  ;;  %v12731_v11 = vsel %vm949_vm3, %v1026_v22, %v1028_v10  ;;  %v1365_v22 = vrot.slane %v12755_v50, 3 }
  0xcc   : > { %9568 = vmatmul.mubr.msk.f32.gmra.mrb[26].mxu1 %vm363_vm2, %v12691_v53  ;;  %14943 = vst [vmem:[#allocation121_spill] sm:$0xff] %v12731_v11 }
  0xcd   : > { %10194 = vmatmul.mubr.msk.f32.gmra.mrb[10].mxu0 %vm363_vm2, %v11761_v40  ;;  %9570 = vmatprep.mubr.msk.f32.mxu1 %vm363_vm2, %v12697_v8  ;;  %v1357_v40 = vrot.slane %v12717_v55, 3 }
  0xce   : > { %10196 = vmatprep.mubr.msk.f32.mxu0 %vm363_vm2, %v11793_v0  ;;  %v12734_v0 = vld [vmem:[%s11555_s25 + $0x10] sm:$0xf] }
  0xcf   : > { %v1360_v38 = vrot.slane %v12734_v0, 3  ;;  %v1359_v56 = vsel %vm1356_vm4, %v1357_v40, %v1358_v58 }
  0xd0   : > { %9571 = vmatmul.mubr.msk.f32.gmra.mrb[28].mxu1 %vm363_vm2, %v12708_v32 }
  0xd1   : > { %10197 = vmatmul.mubr.msk.f32.gmra.mrb[12].mxu0 %vm363_vm2, %v11796_v2  ;;  %9573 = vmatprep.mubr.msk.f32.mxu1 %vm363_vm2, %v12714_v39  ;;  %v12745_v2 = vld [vmem:[%s11555_s25 + $0x20] sm:$0xff] }
  0xd2   : > { %10199 = vmatprep.mubr.msk.f32.mxu0 %vm363_vm2, %v11878_v59  ;;  %v1363_v57 = vrot.slane %v12745_v2, 3  ;;  %v1361_v59 = vsel %vm1356_vm4, %v1358_v58, %v1360_v38  ;;  %v14956_v58 = vld [vmem:[#allocation55_spill] sm:$0xff]  ;;  %v12834_v38 = vld [vmem:[%s11555_s25 + $0x1b8] sm:$0xff] }
  0xd4   : > { %9574 = vmatmul.mubr.msk.f32.gmra.mrb[30].mxu1 %vm363_vm2, %v12731_v11  ;;  %v12761_v10 = vsel %vm1356_vm4, %v1362_v21, %v1363_v57  ;;  %v12774_v40 = vsel %vm1356_vm4, %v1363_v57, %v1365_v22  ;;  %v14958_v21 = vld [vmem:[#allocation59_spill] sm:$0xff]  ;;  %v14959_v57 = vld [vmem:[#allocation14_spill] sm:$0xff] }
  0xd5   : > { %10200 = vmatmul.mubr.msk.f32.gmra.mrb[14].mxu0 %vm363_vm2, %v11881_v12  ;;  %9578 = vmatprep.mubr.msk.f32.mxu1 %vm363_vm2, %v1359_v56  ;;  %14944 = vst [vmem:[#allocation122_spill] sm:$0xff] %v12761_v10  ;;  %v12767_v12 = vld [vmem:[%s14446_s1 + $0x14] sm:$0xf]  ;;  %14945 = vst [vmem:[#allocation123_spill] sm:$0xff] %v12774_v40  ;;  %v14957_v56 = vld [vmem:[#allocation57_spill] sm:$0xff] }
  0xd6   : > { %10202 = vmatprep.mubr.msk.f32.mxu0 %vm363_vm2, %v11913_v49  ;;  %v14946_v49 = vld [vmem:[#allocation35_spill] sm:$0xff] }
  0xd7   : > { %v12849_v22 = vld [vmem:[%s14446_s1 + $0x48] sm:$0xf] }
  0xd8   : > { %9579 = vmatmul.mubr.msk.f32.vlgmr.msra.gmra.mrb[0].mxu1 %vm363_vm2, %v1361_v59  ;;  %v14960_v59 = vld [vmem:[#allocation61_spill] sm:$0xff] }
  0xd9   : > { %9627 = vmatpush3.msk.msra.mxu1 %vm428_vm0, %v12479_v4  ;;  %10203 = vmatmul.mubr.msk.f32.gmra.mrb[16].mxu0 %vm363_vm2, %v11916_v41  ;;  %v14947_v41 = vld [vmem:[#allocation37_spill] sm:$0xff]  ;;  %v14954_v4 = vld [vmem:[#allocation51_spill] sm:$0xff] }
  0xda   : > { %9581 = vmatprep.mubr.msk.f32.mxu1 %vm363_vm2, %v12761_v10  ;;  %10205 = vmatprep.mubr.msk.f32.mxu0 %vm363_vm2, %v11955_v20  ;;  %v14948_v20 = vld [vmem:[#allocation39_spill] sm:$0xff]  ;;  %v14964_v10 = vld [vmem:[#allocation65_spill] sm:$0xff] }
  0xdb   : > { %9676 = vmatprep.subr.msk.mxu1 %vm428_vm0, %v12767_v12 }
  0xdc   : > { %9582 = vmatmul.mubr.msk.f32.gmra.mrb[2].mxu1 %vm363_vm2, %v12774_v40  ;;  %v14963_v40 = vld [vmem:[#allocation18_spill] sm:$0xff] }
  0xdd   : > { %10206 = vmatmul.mubr.msk.f32.gmra.mrb[18].mxu0 %vm363_vm2, %v11958_v60  ;;  %9584 = vmatprep.mubr.msk.f32.mxu1 %vm363_vm2, %v14946_v49  ;;  %v14949_v60 = vld [vmem:[#allocation41_spill] sm:$0xff]  ;;  %v14962_v49 = vld [vmem:[#allocation63_spill] sm:$0xff] }
  0xde   : > { %10208 = vmatprep.mubr.msk.f32.mxu0 %vm363_vm2, %v11992_v1  ;;  %v14950_v1 = vld [vmem:[#allocation43_spill] sm:$0xff] }
  0xe0   : > { %9585 = vmatmul.mubr.msk.f32.gmra.mrb[4].mxu1 %vm363_vm2, %v14947_v41  ;;  %v14961_v41 = vld [vmem:[#allocation16_spill] sm:$0xff] }
  0xe1   : > { %10209 = vmatmul.mubr.msk.f32.gmra.mrb[20].mxu0 %vm363_vm2, %v11995_v17  ;;  %9587 = vmatprep.mubr.msk.f32.mxu1 %vm363_vm2, %v14948_v20  ;;  %v14951_v17 = vld [vmem:[#allocation45_spill] sm:$0xff] }
  0xe2   : > { %10211 = vmatprep.mubr.msk.f32.mxu0 %vm363_vm2, %v12027_v24  ;;  %v14952_v24 = vld [vmem:[#allocation47_spill] sm:$0xff] }
  0xe4   : > { %9588 = vmatmul.mubr.msk.f32.gmra.mrb[6].mxu1 %vm363_vm2, %v14949_v60 }
  0xe5   : > { %10212 = vmatmul.mubr.msk.f32.gmra.mrb[22].mxu0 %vm363_vm2, %v12030_v46  ;;  %9590 = vmatprep.mubr.msk.f32.mxu1 %vm363_vm2, %v14950_v1  ;;  %v14953_v46 = vld [vmem:[#allocation49_spill] sm:$0xff] }
  0xe6   : > { %10214 = vmatprep.mubr.msk.f32.mxu0 %vm363_vm2, %v12062_v25  ;;  %v12823_v25 = vld [vmem:[%s11555_s25 + $0x1b0] sm:$0xff] }
  0xe8   : > { %9591 = vmatmul.mubr.msk.f32.gmra.mrb[8].mxu1 %vm363_vm2, %v14951_v17 }
  0xe9   : > { %10215 = vmatmul.mubr.msk.f32.gmra.mrb[24].mxu0 %vm363_vm2, %v12065_v61  ;;  %9593 = vmatprep.mubr.msk.f32.mxu1 %vm363_vm2, %v14952_v24  ;;  %v14955_v61 = vld [vmem:[#allocation53_spill] sm:$0xff] }
  0xea   : > { %10217 = vmatprep.mubr.msk.f32.mxu0 %vm363_vm2, %v12220_v26 }
  0xec   : > { %9594 = vmatmul.mubr.msk.f32.gmra.mrb[10].mxu1 %vm363_vm2, %v14953_v46 }
  0xed   : > { %10218 = vmatmul.mubr.msk.f32.gmra.mrb[26].mxu0 %vm363_vm2, %v14917_v7  ;;  %9596 = vmatprep.mubr.msk.f32.mxu1 %vm363_vm2, %v14954_v4 }
  0xee   : > { %10220 = vmatprep.mubr.msk.f32.mxu0 %vm363_vm2, %v12246_v62 }
  0xf0   : > { %9597 = vmatmul.mubr.msk.f32.gmra.mrb[12].mxu1 %vm363_vm2, %v14955_v61 }
  0xf1   : > { %10221 = vmatmul.mubr.msk.f32.gmra.mrb[28].mxu0 %vm363_vm2, %v12249_v51  ;;  %9599 = vmatprep.mubr.msk.f32.mxu1 %vm363_vm2, %v14956_v58 }
  0xf2   : > { %10223 = vmatprep.mubr.msk.f32.mxu0 %vm363_vm2, %v12823_v25 }
  0xf4   : > { %9600 = vmatmul.mubr.msk.f32.gmra.mrb[14].mxu1 %vm363_vm2, %v14957_v56  ;;  %v14987_v56 = vld [vmem:[#allocation42_spill] sm:$0xff] }
  0xf5   : > { %10224 = vmatmul.mubr.msk.f32.gmra.mrb[30].mxu0 %vm363_vm2, %v12834_v38  ;;  %9602 = vmatprep.mubr.msk.f32.mxu1 %vm363_vm2, %v14958_v21  ;;  %v14971_v21 = vld [vmem:[#allocation26_spill] sm:$0xff] }
  0xf6   : > { %10228 = vmatprep.mubr.msk.f32.mxu0 %vm363_vm2, %v14959_v57  ;;  %v14965_v57 = vld [vmem:[#allocation20_spill] sm:$0xff] }
  0xf8   : > { %9603 = vmatmul.mubr.msk.f32.gmra.mrb[16].mxu1 %vm363_vm2, %v14960_v59  ;;  %v14966_v59 = vld [vmem:[#allocation66_spill] sm:$0xff] }
  0xf9   : > { %10229 = vmatmul.mubr.msk.f32.vlgmr.msra.gmra.mrb[0].mxu0 %vm363_vm2, %v14961_v41  ;;  %9605 = vmatprep.mubr.msk.f32.mxu1 %vm363_vm2, %v14962_v49  ;;  %v14967_v41 = vld [vmem:[#allocation22_spill] sm:$0xff]  ;;  %v14968_v49 = vld [vmem:[#allocation67_spill] sm:$0xff] }
  0xfa   : > { %10277 = vmatpush3.msk.msra.mxu0 %vm428_vm0, %v12612_v31  ;;  %10231 = vmatprep.mubr.msk.f32.mxu0 %vm363_vm2, %v14963_v40  ;;  %v14969_v31 = vld [vmem:[#allocation24_spill] sm:$0xff] }
  0xfb   : > { %10326 = vmatprep.subr.msk.mxu0 %vm428_vm0, %v12849_v22  ;;  %v14970_v40 = vld [vmem:[#allocation68_spill] sm:$0xff] }
  0xfc   : > { %9606 = vmatmul.mubr.msk.f32.gmra.mrb[18].mxu1 %vm363_vm2, %v14964_v10  ;;  %v14972_v10 = vld [vmem:[#allocation69_spill] sm:$0xff] }
  0xfd   : > { %10232 = vmatmul.mubr.msk.f32.gmra.mrb[2].mxu0 %vm363_vm2, %v14965_v57  ;;  %9608 = vmatprep.mubr.msk.f32.mxu1 %vm363_vm2, %v14966_v59  ;;  %v14973_v57 = vld [vmem:[#allocation28_spill] sm:$0xff]  ;;  %v14974_v59 = vld [vmem:[#allocation70_spill] sm:$0xff] }
  0xfe   : > { %10234 = vmatprep.mubr.msk.f32.mxu0 %vm363_vm2, %v14967_v41  ;;  %v14975_v41 = vld [vmem:[#allocation30_spill] sm:$0xff] }
 0x100   : > { %9609 = vmatmul.mubr.msk.f32.gmra.mrb[20].mxu1 %vm363_vm2, %v14968_v49  ;;  %v14976_v49 = vld [vmem:[#allocation71_spill] sm:$0xff] }
 0x101   : > { %10235 = vmatmul.mubr.msk.f32.gmra.mrb[4].mxu0 %vm363_vm2, %v14969_v31  ;;  %9611 = vmatprep.mubr.msk.f32.mxu1 %vm363_vm2, %v14970_v40  ;;  %v14977_v31 = vld [vmem:[#allocation32_spill] sm:$0xff] }
 0x102   : > { %10237 = vmatprep.mubr.msk.f32.mxu0 %vm363_vm2, %v14971_v21  ;;  %v14978_v40 = vld [vmem:[#allocation72_spill] sm:$0xff]  ;;  %v14979_v21 = vld [vmem:[#allocation34_spill] sm:$0xff] }
 0x104   : > { %9612 = vmatmul.mubr.msk.f32.gmra.mrb[22].mxu1 %vm363_vm2, %v14972_v10  ;;  %v14980_v10 = vld [vmem:[#allocation73_spill] sm:$0xff] }
 0x105   : > { %10238 = vmatmul.mubr.msk.f32.gmra.mrb[6].mxu0 %vm363_vm2, %v14973_v57  ;;  %9614 = vmatprep.mubr.msk.f32.mxu1 %vm363_vm2, %v14974_v59  ;;  %v14981_v57 = vld [vmem:[#allocation36_spill] sm:$0xff]  ;;  %v14982_v59 = vld [vmem:[#allocation74_spill] sm:$0xff] }
 0x106   : > { %10240 = vmatprep.mubr.msk.f32.mxu0 %vm363_vm2, %v14975_v41  ;;  %v14983_v41 = vld [vmem:[#allocation38_spill] sm:$0xff] }
 0x108   : > { %9615 = vmatmul.mubr.msk.f32.gmra.mrb[24].mxu1 %vm363_vm2, %v14976_v49  ;;  %v1764_v49 = vrot.slane %v12721_v42, 4  ;;  %v1769_v42 = vrot.slane %v12745_v2, 4 }
 0x109   : > { %10241 = vmatmul.mubr.msk.f32.gmra.mrb[8].mxu0 %vm363_vm2, %v14977_v31  ;;  %9617 = vmatprep.mubr.msk.f32.mxu1 %vm363_vm2, %v14978_v40  ;;  %v1763_v31 = vrot.slane %v12717_v55, 4  ;;  %v14984_v40 = vld [vmem:[#allocation76_spill] sm:$0xff]  ;;  %v1768_v55 = vrot.slane %v12741_v18, 4 }
 0x10a   : > { %10243 = vmatprep.mubr.msk.f32.mxu0 %vm363_vm2, %v14979_v21  ;;  %v14985_v21 = vld [vmem:[#allocation40_spill] sm:$0xff] }
 0x10c   : > { %9618 = vmatmul.mubr.msk.f32.gmra.mrb[26].mxu1 %vm363_vm2, %v14980_v10  ;;  %v14986_v10 = vld [vmem:[#allocation77_spill] sm:$0xff] }
 0x10d   : > { %10244 = vmatmul.mubr.msk.f32.gmra.mrb[10].mxu0 %vm363_vm2, %v14981_v57  ;;  %9620 = vmatprep.mubr.msk.f32.mxu1 %vm363_vm2, %v14982_v59  ;;  %v1766_v57 = vrot.slane %v12734_v0, 4  ;;  %v1771_v0 = vrot.slane %v12755_v50, 4 }
 0x10e   : > { %10246 = vmatprep.mubr.msk.f32.mxu0 %vm363_vm2, %v14983_v41  ;;  %v1765_v41 = vsel %vm428_vm0, %v1763_v31, %v1764_v49  ;;  %v12925_v31 = vsel %vm428_vm0, %v1768_v55, %v1769_v42  ;;  %v14997_v55 = vld [vmem:[#allocation58_spill] sm:$0xff] }
 0x10f   : > { %v12938_v50 = vsel %vm428_vm0, %v1769_v42, %v1771_v0  ;;  %v2438_v42 = vrot.slane %v12220_v26, 1  ;;  %v2439_v0 = vrot.slane %v14917_v7, 1 }
 0x110   : > { %9621 = vmatmul.mubr.msk.f32.gmra.mrb[28].mxu1 %vm363_vm2, %v14984_v40  ;;  %v14988_v40 = vld [vmem:[#allocation44_spill] sm:$0xff]  ;;  %14992 = vst [vmem:[#allocation124_spill] sm:$0xff] %v12938_v50 }
 0x111   : > { %10247 = vmatmul.mubr.msk.f32.gmra.mrb[12].mxu0 %vm363_vm2, %v14985_v21  ;;  %9623 = vmatprep.mubr.msk.f32.mxu1 %vm363_vm2, %v14986_v10  ;;  %v1767_v21 = vsel %vm428_vm0, %v1764_v49, %v1766_v57  ;;  %v14989_v10 = vld [vmem:[#allocation46_spill] sm:$0xff]  ;;  %v14996_v57 = vld [vmem:[#allocation56_spill] sm:$0xff] }
 0x112   : > { %10249 = vmatprep.mubr.msk.f32.mxu0 %vm363_vm2, %v14987_v56  ;;  %14990 = vst [vmem:[#allocation46_spill] sm:$0xff] %v12925_v31  ;;  %v12931_v56 = vld [vmem:[%s14446_s1 + $0x18] sm:$0xf]  ;;  %v14993_v49 = vld [vmem:[#allocation50_spill] sm:$0xff] }
 0x114   : > { %9624 = vmatmul.mubr.msk.f32.gmra.mrb[30].mxu1 %vm363_vm2, %v12258_v34 }
 0x115   : > { %10250 = vmatmul.mubr.msk.f32.gmra.mrb[14].mxu0 %vm363_vm2, %v14988_v40  ;;  %9628 = vmatprep.mubr.msk.f32.mxu1 %vm363_vm2, %v1765_v41  ;;  %v14991_v41 = vld [vmem:[#allocation48_spill] sm:$0xff] }
 0x116   : > { %10252 = vmatprep.mubr.msk.f32.mxu0 %vm363_vm2, %v14989_v10 }
 0x118   : > { %9629 = vmatmul.mubr.msk.f32.vlgmr.msra.gmra.mrb[0].mxu1 %vm363_vm2, %v1767_v21  ;;  %v14994_v21 = vld [vmem:[#allocation52_spill] sm:$0xff] }
 0x119   : > { %9677 = vmatpush3.msk.msra.mxu1 %vm428_vm0, %v12767_v12  ;;  %10253 = vmatmul.mubr.msk.f32.gmra.mrb[16].mxu0 %vm363_vm2, %v14991_v41  ;;  %v14995_v12 = vld [vmem:[#allocation54_spill] sm:$0xff] }
 0x11a   : > { %9631 = vmatprep.mubr.msk.f32.mxu1 %vm363_vm2, %v12925_v31  ;;  %10255 = vmatprep.mubr.msk.f32.mxu0 %vm363_vm2, %v14993_v49  ;;  %v12974_v31 = vsel %vm280_vm1, %v2438_v42, %v2439_v0  ;;  %v3794_v42 = vrot.slane %v12267_v35, 1  ;;  %v5145_v49 = vrot.slane %v12834_v38, 1  ;;  %v12996_v41 = vld [vmem:[%s11555_s25 + $0x1c0] sm:$0xf] }
 0x11b   : > { %9726 = vmatprep.subr.msk.mxu1 %vm428_vm0, %v12931_v56  ;;  %15000 = vst [vmem:[#allocation125_spill] sm:$0xff] %v12974_v31 }
 0x11c   : > { %9632 = vmatmul.mubr.msk.f32.gmra.mrb[2].mxu1 %vm363_vm2, %v12938_v50  ;;  %v2441_v50 = vrot.slane %v12241_v3, 1 }
 0x11d   : > { %10256 = vmatmul.mubr.msk.f32.gmra.mrb[18].mxu0 %vm363_vm2, %v14994_v21  ;;  %9634 = vmatprep.mubr.msk.f32.mxu1 %vm363_vm2, %v12299_v6  ;;  %v14998_v6 = vld [vmem:[#allocation60_spill] sm:$0xff]  ;;  %v5144_v21 = vrot.slane %v12823_v25, 1 }
 0x11e   : > { %10258 = vmatprep.mubr.msk.f32.mxu0 %vm363_vm2, %v14995_v12 }
 0x120   : > { %9635 = vmatmul.mubr.msk.f32.gmra.mrb[4].mxu1 %vm363_vm2, %v12312_v14  ;;  %v14999_v14 = vld [vmem:[#allocation62_spill] sm:$0xff] }
 0x121   : > { %10259 = vmatmul.mubr.msk.f32.gmra.mrb[20].mxu0 %vm363_vm2, %v14996_v57  ;;  %9637 = vmatprep.mubr.msk.f32.mxu1 %vm363_vm2, %v12316_v29  ;;  %v3792_v57 = vrot.slane %v12249_v51, 1 }
 0x122   : > { %10261 = vmatprep.mubr.msk.f32.mxu0 %vm363_vm2, %v14997_v55  ;;  %v3791_v55 = vrot.slane %v12246_v62, 1 }
 0x124   : > { %9638 = vmatmul.mubr.msk.f32.gmra.mrb[6].mxu1 %vm363_vm2, %v12336_v23  ;;  %v12991_v12 = vsel %vm280_vm1, %v3791_v55, %v3792_v57  ;;  %v5147_v55 = vrot.slane %v12996_v41, 1 }
 0x125   : > { %10262 = vmatmul.mubr.msk.f32.gmra.mrb[22].mxu0 %vm363_vm2, %v14998_v6  ;;  %9640 = vmatprep.mubr.msk.f32.mxu1 %vm363_vm2, %v12340_v28  ;;  %v15001_v6 = vld [vmem:[#allocation64_spill] sm:$0xff]  ;;  %15003 = vst [vmem:[#allocation127_spill] sm:$0xff] %v12991_v12 }
 0x126   : > { %10264 = vmatprep.mubr.msk.f32.mxu0 %vm363_vm2, %v14999_v14  ;;  %v12987_v14 = vsel %vm280_vm1, %v2439_v0, %v2441_v50  ;;  %v13007_v50 = vsel %vm280_vm1, %v3792_v57, %v3794_v42  ;;  %v13011_v0 = vsel %vm280_vm1, %v5144_v21, %v5145_v49  ;;  %v13022_v57 = vsel %vm280_vm1, %v5145_v49, %v5147_v55  ;;  %v15011_v42 = vld [vmem:[#allocation92_spill] sm:$0xff]  ;;  %v15012_v21 = vld [vmem:[#allocation93_spill] sm:$0xff]  ;;  %v13037_v49 = vld [vmem:[%s14446_s1 + $0x4c] sm:$0xf] }
 0x127   : > { %15002 = vst [vmem:[#allocation126_spill] sm:$0xff] %v12987_v14  ;;  %15006 = vst [vmem:[#allocation128_spill] sm:$0xff] %v13007_v50  ;;  %v15014_v55 = vld [vmem:[#allocation95_spill] sm:$0xff] }
 0x128   : > { %9641 = vmatmul.mubr.msk.f32.gmra.mrb[8].mxu1 %vm363_vm2, %v12355_v37  ;;  %15007 = vst [vmem:[#allocation129_spill] sm:$0xff] %v13011_v0  ;;  %15010 = vst [vmem:[#allocation130_spill] sm:$0xff] %v13022_v57 }
 0x129   : > { %10265 = vmatmul.mubr.msk.f32.gmra.mrb[24].mxu0 %vm363_vm2, %v15001_v6  ;;  %9643 = vmatprep.mubr.msk.f32.mxu1 %vm363_vm2, %v12359_v45  ;;  %v15004_v6 = vld [vmem:[#allocation88_spill] sm:$0xff]  ;;  %v15008_v45 = vld [vmem:[#allocation90_spill] sm:$0xff] }
 0x12a   : > { %10267 = vmatprep.mubr.msk.f32.mxu0 %vm363_vm2, %v12974_v31  ;;  %v15005_v31 = vld [vmem:[#allocation89_spill] sm:$0xff] }
 0x12c   : > { %9644 = vmatmul.mubr.msk.f32.gmra.mrb[10].mxu1 %vm363_vm2, %v15004_v6 }
 0x12d   : > { %10268 = vmatmul.mubr.msk.f32.gmra.mrb[26].mxu0 %vm363_vm2, %v12987_v14  ;;  %9646 = vmatprep.mubr.msk.f32.mxu1 %vm363_vm2, %v15005_v31  ;;  %v15009_v14 = vld [vmem:[#allocation91_spill] sm:$0xff] }
 0x12e   : > { %10270 = vmatprep.mubr.msk.f32.mxu0 %vm363_vm2, %v12991_v12  ;;  %v15017_v12 = vld [vmem:[#allocation4_spill] sm:$0xff] }
 0x130   : > { %9647 = vmatmul.mubr.msk.f32.gmra.mrb[12].mxu1 %vm363_vm2, %v15008_v45 }
 0x131   : > { %10271 = vmatmul.mubr.msk.f32.gmra.mrb[28].mxu0 %vm363_vm2, %v13007_v50  ;;  %9649 = vmatprep.mubr.msk.f32.mxu1 %vm363_vm2, %v15009_v14  ;;  %v15013_v50 = vld [vmem:[#allocation94_spill] sm:$0xff] }
 0x132   : > { %10273 = vmatprep.mubr.msk.f32.mxu0 %vm363_vm2, %v13011_v0  ;;  %v15016_v0 = vld [vmem:[#allocation96_spill] sm:$0xff] }
 0x134   : > { %9650 = vmatmul.mubr.msk.f32.gmra.mrb[14].mxu1 %vm363_vm2, %v15011_v42 }
 0x135   : > { %10274 = vmatmul.mubr.msk.f32.gmra.mrb[30].mxu0 %vm363_vm2, %v13022_v57  ;;  %9652 = vmatprep.mubr.msk.f32.mxu1 %vm363_vm2, %v15012_v21  ;;  %v15015_v57 = vld [vmem:[#allocation13_spill] sm:$0xff] }
 0x136   : > { %10278 = vmatprep.mubr.msk.f32.mxu0 %vm363_vm2, %v14910_v63  ;;  %v15027_v63 = vld [vmem:[#allocation31_spill] sm:$0xff] }
 0x138   : > { %9653 = vmatmul.mubr.msk.f32.gmra.mrb[16].mxu1 %vm363_vm2, %v15013_v50 }
 0x139   : > { %10279 = vmatmul.mubr.msk.f32.vlgmr.msra.gmra.mrb[0].mxu0 %vm363_vm2, %v14913_v52  ;;  %9655 = vmatprep.mubr.msk.f32.mxu1 %vm363_vm2, %v15014_v55  ;;  %v15024_v52 = vld [vmem:[#allocation104_spill] sm:$0xff] }
 0x13a   : > { %10327 = vmatpush3.msk.msra.mxu0 %vm428_vm0, %v12849_v22  ;;  %10281 = vmatprep.mubr.msk.f32.mxu0 %vm363_vm2, %v14914_v44  ;;  %v15018_v22 = vld [vmem:[#allocation98_spill] sm:$0xff]  ;;  %v15019_v44 = vld [vmem:[#allocation100_spill] sm:$0xff] }
 0x13b   : > { %10376 = vmatprep.subr.msk.mxu0 %vm428_vm0, %v13037_v49 }
 0x13c   : > { %9656 = vmatmul.mubr.msk.f32.gmra.mrb[18].mxu1 %vm363_vm2, %v12443_v5 }
 0x13d   : > { %10282 = vmatmul.mubr.msk.f32.gmra.mrb[2].mxu0 %vm363_vm2, %v15015_v57  ;;  %9658 = vmatprep.mubr.msk.f32.mxu1 %vm363_vm2, %v15016_v0  ;;  %v15020_v57 = vld [vmem:[#allocation101_spill] sm:$0xff] }
 0x13e   : > { %10284 = vmatprep.mubr.msk.f32.mxu0 %vm363_vm2, %v14919_v47  ;;  %v15021_v47 = vld [vmem:[#allocation102_spill] sm:$0xff] }
 0x140   : > { %9659 = vmatmul.mubr.msk.f32.gmra.mrb[20].mxu1 %vm363_vm2, %v15017_v12 }
 0x141   : > { %10285 = vmatmul.mubr.msk.f32.gmra.mrb[4].mxu0 %vm363_vm2, %v14922_v16  ;;  %9661 = vmatprep.mubr.msk.f32.mxu1 %vm363_vm2, %v15018_v22  ;;  %v15022_v16 = vld [vmem:[#allocation103_spill] sm:$0xff] }
 0x142   : > { %10287 = vmatprep.mubr.msk.f32.mxu0 %vm363_vm2, %v14923_v30  ;;  %v15023_v30 = vld [vmem:[#allocation27_spill] sm:$0xff] }
 0x144   : > { %9662 = vmatmul.mubr.msk.f32.gmra.mrb[22].mxu1 %vm363_vm2, %v15019_v44 }
 0x145   : > { %10288 = vmatmul.mubr.msk.f32.gmra.mrb[6].mxu0 %vm363_vm2, %v14926_v27  ;;  %9664 = vmatprep.mubr.msk.f32.mxu1 %vm363_vm2, %v15020_v57  ;;  %v15025_v27 = vld [vmem:[#allocation29_spill] sm:$0xff] }
 0x146   : > { %10290 = vmatprep.mubr.msk.f32.mxu0 %vm363_vm2, %v14927_v54  ;;  %v15026_v54 = vld [vmem:[#allocation105_spill] sm:$0xff] }
 0x148   : > { %9665 = vmatmul.mubr.msk.f32.gmra.mrb[24].mxu1 %vm363_vm2, %v15021_v47 }
 0x149   : > { %10291 = vmatmul.mubr.msk.f32.gmra.mrb[8].mxu0 %vm363_vm2, %v14929_v9  ;;  %9667 = vmatprep.mubr.msk.f32.mxu1 %vm363_vm2, %v15022_v16  ;;  %v15028_v9 = vld [vmem:[#allocation106_spill] sm:$0xff]  ;;  %v15029_v16 = vld [vmem:[#allocation33_spill] sm:$0xff] }
 0x14a   : > { %10293 = vmatprep.mubr.msk.f32.mxu0 %vm363_vm2, %v15023_v30  ;;  %v15030_v30 = vld [vmem:[#allocation107_spill] sm:$0xff] }
 0x14c   : > { %9668 = vmatmul.mubr.msk.f32.gmra.mrb[26].mxu1 %vm363_vm2, %v15024_v52 }
 0x14d   : > { %10294 = vmatmul.mubr.msk.f32.gmra.mrb[10].mxu0 %vm363_vm2, %v15025_v27  ;;  %9670 = vmatprep.mubr.msk.f32.mxu1 %vm363_vm2, %v15026_v54  ;;  %v15031_v27 = vld [vmem:[#allocation75_spill] sm:$0xff] }
 0x14e   : > { %10296 = vmatprep.mubr.msk.f32.mxu0 %vm363_vm2, %v15027_v63 }
 0x150   : > { %9671 = vmatmul.mubr.msk.f32.gmra.mrb[28].mxu1 %vm363_vm2, %v15028_v9 }
 0x151   : > { %10297 = vmatmul.mubr.msk.f32.gmra.mrb[12].mxu0 %vm363_vm2, %v15029_v16  ;;  %9673 = vmatprep.mubr.msk.f32.mxu1 %vm363_vm2, %v15030_v30 }
 0x152   : > { %10299 = vmatprep.mubr.msk.f32.mxu0 %vm363_vm2, %v12627_v15  ;;  %v13110_v15 = vld [vmem:[%s14446_s1 + $0x1c] sm:$0xf] }
 0x154   : > { %9674 = vmatmul.mubr.msk.f32.gmra.mrb[30].mxu1 %vm363_vm2, %v15031_v27 }
 0x155   : > { %10300 = vmatmul.mubr.msk.f32.gmra.mrb[14].mxu0 %vm363_vm2, %v12640_v33  ;;  %9678 = vmatprep.mubr.msk.f32.mxu1 %vm363_vm2, %v12741_v18  ;;  %v13117_v33 = vld [vmem:[%s11555_s25 + $0x30] sm:$0xff]  ;;  %v13126_v18 = vld [vmem:[%s11555_s25 + $0x38] sm:$0xff] }
 0x156   : > { %10302 = vmatprep.mubr.msk.f32.mxu0 %vm363_vm2, %v12646_v48  ;;  %15032 = vst [vmem:[#allocation96_spill] sm:$0xff] %v13117_v33  ;;  %15033 = vst [vmem:[#allocation31_spill] sm:$0xff] %v13126_v18 }
 0x158   : > { %9679 = vmatmul.mubr.msk.f32.vlgmr.msra.gmra.mrb[0].mxu1 %vm363_vm2, %v12745_v2  ;;  %v13133_v2 = vld [vmem:[%s11555_s25 + $0x48] sm:$0xff] }
 0x159   : > { %9727 = vmatpush3.msk.msra.mxu1 %vm428_vm0, %v12931_v56  ;;  %10303 = vmatmul.mubr.msk.f32.gmra.mrb[16].mxu0 %vm363_vm2, %v12657_v36  ;;  %15034 = vst [vmem:[#allocation33_spill] sm:$0xff] %v13133_v2  ;;  %v13140_v56 = vld [vmem:[%s11555_s25 + $0x50] sm:$0xff] }
 0x15a   : > { %9681 = vmatprep.mubr.msk.f32.mxu1 %vm363_vm2, %v13117_v33  ;;  %10305 = vmatprep.mubr.msk.f32.mxu0 %vm363_vm2, %v12663_v19  ;;  %15035 = vst [vmem:[#allocation131_spill] sm:$0xff] %v13140_v56  ;;  %v2710_v33 = vrot.slane %v14917_v7, 2 }
 0x15b   : > { %9776 = vmatprep.subr.msk.mxu1 %vm428_vm0, %v13110_v15 }
 0x15c   : > { %9682 = vmatmul.mubr.msk.f32.gmra.mrb[2].mxu1 %vm363_vm2, %v13126_v18  ;;  %v15036_v18 = vld [vmem:[#allocation112_spill] sm:$0xff] }
 0x15d   : > { %10306 = vmatmul.mubr.msk.f32.gmra.mrb[18].mxu0 %vm363_vm2, %v12674_v43  ;;  %9684 = vmatprep.mubr.msk.f32.mxu1 %vm363_vm2, %v13133_v2  ;;  %v2709_v2 = vrot.slane %v12220_v26, 2  ;;  %v2712_v26 = vrot.slane %v12241_v3, 2  ;;  %v4065_v3 = vrot.slane %v12267_v35, 2  ;;  %v13196_v43 = vld [vmem:[%s11555_s25 + $0x98] sm:$0xff] }
 0x15e   : > { %10308 = vmatprep.mubr.msk.f32.mxu0 %vm363_vm2, %v12680_v13  ;;  %v13153_v13 = vld [vmem:[%s11555_s25 + $0x68] sm:$0xff] }
 0x15f   : > { %v13168_v7 = vsel %vm949_vm3, %v2709_v2, %v2710_v33  ;;  %v5415_v2 = vrot.slane %v12823_v25, 2 }
 0x160   : > { %9685 = vmatmul.mubr.msk.f32.gmra.mrb[4].mxu1 %vm363_vm2, %v13140_v56  ;;  %v13160_v56 = vld [vmem:[%s11555_s25 + $0x78] sm:$0xff]  ;;  %15037 = vst [vmem:[#allocation112_spill] sm:$0xff] %v13168_v7 }
 0x161   : > { %10309 = vmatmul.mubr.msk.f32.gmra.mrb[20].mxu0 %vm363_vm2, %v12691_v53  ;;  %9687 = vmatprep.mubr.msk.f32.mxu1 %vm363_vm2, %v15036_v18  ;;  %v4063_v53 = vrot.slane %v12249_v51, 2 }
 0x162   : > { %10311 = vmatprep.mubr.msk.f32.mxu0 %vm363_vm2, %v12697_v8  ;;  %v4062_v8 = vrot.slane %v12246_v62, 2  ;;  %v13187_v62 = vsel %vm949_vm3, %v2710_v33, %v2712_v26  ;;  %v13203_v33 = vld [vmem:[%s11555_s25 + $0xa8] sm:$0xff] }
 0x163   : > { %15038 = vst [vmem:[#allocation132_spill] sm:$0xff] %v13187_v62  ;;  %v13210_v35 = vsel %vm949_vm3, %v4063_v53, %v4065_v3  ;;  %v13234_v3 = vld [vmem:[%s11555_s25 + $0xc8] sm:$0xff] }
 0x164   : > { %9688 = vmatmul.mubr.msk.f32.gmra.mrb[6].mxu1 %vm363_vm2, %v13153_v13  ;;  %v13191_v51 = vsel %vm949_vm3, %v4062_v8, %v4063_v53  ;;  %15040 = vst [vmem:[#allocation134_spill] sm:$0xff] %v13210_v35  ;;  %v5418_v8 = vrot.slane %v12996_v41, 2  ;;  %15044 = vst [vmem:[#allocation138_spill] sm:$0xff] %v13234_v3 }
 0x165   : > { %10312 = vmatmul.mubr.msk.f32.gmra.mrb[22].mxu0 %vm363_vm2, %v12708_v32  ;;  %9690 = vmatprep.mubr.msk.f32.mxu1 %vm363_vm2, %v13160_v56  ;;  %v13173_v32 = vld [vmem:[%s11555_s25 + $0x80] sm:$0xff]  ;;  %15039 = vst [vmem:[#allocation133_spill] sm:$0xff] %v13191_v51 }
 0x166   : > { %10314 = vmatprep.mubr.msk.f32.mxu0 %vm363_vm2, %v12714_v39  ;;  %v13180_v39 = vld [vmem:[%s11555_s25 + $0x90] sm:$0xff] }
 0x168   : > { %9691 = vmatmul.mubr.msk.f32.gmra.mrb[8].mxu1 %vm363_vm2, %v13173_v32 }
 0x169   : > { %10315 = vmatmul.mubr.msk.f32.gmra.mrb[24].mxu0 %vm363_vm2, %v12731_v11  ;;  %9693 = vmatprep.mubr.msk.f32.mxu1 %vm363_vm2, %v13180_v39  ;;  %v5416_v11 = vrot.slane %v12834_v38, 2 }
 0x16a   : > { %10317 = vmatprep.mubr.msk.f32.mxu0 %vm363_vm2, %v13168_v7  ;;  %v13217_v7 = vld [vmem:[%s11555_s25 + $0xb0] sm:$0xff] }
 0x16b   : > { %v13214_v26 = vsel %vm949_vm3, %v5415_v2, %v5416_v11  ;;  %v13231_v53 = vsel %vm949_vm3, %v5416_v11, %v5418_v8  ;;  %v13241_v2 = vld [vmem:[%s11555_s25 + $0xd8] sm:$0xff]  ;;  %v13248_v11 = vld [vmem:[%s11555_s25 + $0xe0] sm:$0xff]  ;;  %v13255_v8 = vld [vmem:[%s14446_s1 + $0x50] sm:$0xf] }
 0x16c   : > { %9694 = vmatmul.mubr.msk.f32.gmra.mrb[10].mxu1 %vm363_vm2, %v13196_v43  ;;  %15041 = vst [vmem:[#allocation135_spill] sm:$0xff] %v13214_v26  ;;  %15043 = vst [vmem:[#allocation137_spill] sm:$0xff] %v13231_v53 }
 0x16d   : > { %10318 = vmatmul.mubr.msk.f32.gmra.mrb[26].mxu0 %vm363_vm2, %v13187_v62  ;;  %9696 = vmatprep.mubr.msk.f32.mxu1 %vm363_vm2, %v13203_v33  ;;  %v13224_v62 = vld [vmem:[%s11555_s25 + $0xc0] sm:$0xff]  ;;  %15045 = vst [vmem:[#allocation139_spill] sm:$0xff] %v13241_v2  ;;  %15046 = vst [vmem:[#allocation140_spill] sm:$0xff] %v13248_v11 }
 0x16e   : > { %10320 = vmatprep.mubr.msk.f32.mxu0 %vm363_vm2, %v13191_v51  ;;  %15042 = vst [vmem:[#allocation136_spill] sm:$0xff] %v13224_v62  ;;  %v13292_v51 = vld [vmem:[%s11555_s25 + $0x120] sm:$0xff] }
 0x16f   : > { %15051 = vst [vmem:[#allocation145_spill] sm:$0xff] %v13292_v51 }
 0x170   : > { %9697 = vmatmul.mubr.msk.f32.gmra.mrb[12].mxu1 %vm363_vm2, %v13217_v7 }
 0x171   : > { %10321 = vmatmul.mubr.msk.f32.gmra.mrb[28].mxu0 %vm363_vm2, %v13210_v35  ;;  %9699 = vmatprep.mubr.msk.f32.mxu1 %vm363_vm2, %v13224_v62  ;;  %v13278_v35 = vld [vmem:[%s11555_s25 + $0x108] sm:$0xff] }
 0x172   : > { %10323 = vmatprep.mubr.msk.f32.mxu0 %vm363_vm2, %v13214_v26  ;;  %v13271_v26 = vld [vmem:[%s11555_s25 + $0xf8] sm:$0xff]  ;;  %15049 = vst [vmem:[#allocation143_spill] sm:$0xff] %v13278_v35 }
 0x173   : > { %15048 = vst [vmem:[#allocation142_spill] sm:$0xff] %v13271_v26 }
 0x174   : > { %9700 = vmatmul.mubr.msk.f32.gmra.mrb[14].mxu1 %vm363_vm2, %v13234_v3 }
 0x175   : > { %10324 = vmatmul.mubr.msk.f32.gmra.mrb[30].mxu0 %vm363_vm2, %v13231_v53  ;;  %9702 = vmatprep.mubr.msk.f32.mxu1 %vm363_vm2, %v13241_v2  ;;  %v13260_v53 = vld [vmem:[%s11555_s25 + $0xf0] sm:$0xff] }
 0x176   : > { %10328 = vmatprep.mubr.msk.f32.mxu0 %vm363_vm2, %v14948_v20  ;;  %15047 = vst [vmem:[#allocation141_spill] sm:$0xff] %v13260_v53  ;;  %v13334_v20 = vld [vmem:[%s11555_s25 + $0x168] sm:$0xff] }
 0x177   : > { %15060 = vst [vmem:[#allocation151_spill] sm:$0xff] %v13334_v20 }
 0x178   : > { %9703 = vmatmul.mubr.msk.f32.gmra.mrb[16].mxu1 %vm363_vm2, %v13248_v11 }
 0x179   : > { %10329 = vmatmul.mubr.msk.f32.vlgmr.msra.gmra.mrb[0].mxu0 %vm363_vm2, %v14949_v60  ;;  %9705 = vmatprep.mubr.msk.f32.mxu1 %vm363_vm2, %v13260_v53  ;;  %v13327_v60 = vld [vmem:[%s11555_s25 + $0x158] sm:$0xff] }
 0x17a   : > { %10377 = vmatpush3.msk.msra.mxu0 %vm428_vm0, %v13037_v49  ;;  %10331 = vmatprep.mubr.msk.f32.mxu0 %vm363_vm2, %v14950_v1  ;;  %v13285_v49 = vld [vmem:[%s11555_s25 + $0x110] sm:$0xff]  ;;  %v15057_v1 = vld [vmem:[#allocation59_spill] sm:$0xff]  ;;  %15058 = vst [vmem:[#allocation150_spill] sm:$0xff] %v13327_v60 }
 0x17b   : > { %10426 = vmatprep.subr.msk.mxu0 %vm428_vm0, %v13255_v8  ;;  %15050 = vst [vmem:[#allocation144_spill] sm:$0xff] %v13285_v49 }
 0x17c   : > { %9706 = vmatmul.mubr.msk.f32.gmra.mrb[18].mxu1 %vm363_vm2, %v13271_v26 }
 0x17d   : > { %10332 = vmatmul.mubr.msk.f32.gmra.mrb[2].mxu0 %vm363_vm2, %v14951_v17  ;;  %9708 = vmatprep.mubr.msk.f32.mxu1 %vm363_vm2, %v13278_v35  ;;  %v15055_v17 = vld [vmem:[#allocation57_spill] sm:$0xff] }
 0x17e   : > { %10334 = vmatprep.mubr.msk.f32.mxu0 %vm363_vm2, %v14952_v24  ;;  %v13299_v24 = vld [vmem:[%s11555_s25 + $0x128] sm:$0xff] }
 0x17f   : > { %15052 = vst [vmem:[#allocation146_spill] sm:$0xff] %v13299_v24 }
 0x180   : > { %9709 = vmatmul.mubr.msk.f32.gmra.mrb[20].mxu1 %vm363_vm2, %v13285_v49 }
 0x181   : > { %10335 = vmatmul.mubr.msk.f32.gmra.mrb[4].mxu0 %vm363_vm2, %v14953_v46  ;;  %9711 = vmatprep.mubr.msk.f32.mxu1 %vm363_vm2, %v13292_v51  ;;  %v13306_v46 = vld [vmem:[%s11555_s25 + $0x138] sm:$0xff] }
 0x182   : > { %10337 = vmatprep.mubr.msk.f32.mxu0 %vm363_vm2, %v14954_v4  ;;  %15053 = vst [vmem:[#allocation147_spill] sm:$0xff] %v13306_v46  ;;  %v13313_v4 = vld [vmem:[%s11555_s25 + $0x140] sm:$0xff] }
 0x183   : > { %15054 = vst [vmem:[#allocation148_spill] sm:$0xff] %v13313_v4 }
 0x184   : > { %9712 = vmatmul.mubr.msk.f32.gmra.mrb[22].mxu1 %vm363_vm2, %v13299_v24 }
 0x185   : > { %10338 = vmatmul.mubr.msk.f32.gmra.mrb[6].mxu0 %vm363_vm2, %v14955_v61  ;;  %9714 = vmatprep.mubr.msk.f32.mxu1 %vm363_vm2, %v13306_v46  ;;  %v13320_v61 = vld [vmem:[%s11555_s25 + $0x150] sm:$0xff]  ;;  %v15094_v46 = vld [vmem:[#allocation82_spill] sm:$0xff] }
 0x186   : > { %10340 = vmatprep.mubr.msk.f32.mxu0 %vm363_vm2, %v14956_v58  ;;  %15056 = vst [vmem:[#allocation149_spill] sm:$0xff] %v13320_v61  ;;  %v15059_v58 = vld [vmem:[#allocation61_spill] sm:$0xff] }
 0x188   : > { %9715 = vmatmul.mubr.msk.f32.gmra.mrb[24].mxu1 %vm363_vm2, %v13313_v4  ;;  %v15070_v4 = vld [vmem:[#allocation8_spill] sm:$0xff] }
 0x189   : > { %10341 = vmatmul.mubr.msk.f32.gmra.mrb[8].mxu0 %vm363_vm2, %v15055_v17  ;;  %9717 = vmatprep.mubr.msk.f32.mxu1 %vm363_vm2, %v13320_v61  ;;  %v15061_v17 = vld [vmem:[#allocation63_spill] sm:$0xff]  ;;  %v13341_v61 = vld [vmem:[%s11555_s25 + $0x170] sm:$0xff] }
 0x18a   : > { %10343 = vmatprep.mubr.msk.f32.mxu0 %vm363_vm2, %v15057_v1  ;;  %15062 = vst [vmem:[#allocation152_spill] sm:$0xff] %v13341_v61  ;;  %v15063_v1 = vld [vmem:[#allocation65_spill] sm:$0xff] }
 0x18c   : > { %9718 = vmatmul.mubr.msk.f32.gmra.mrb[26].mxu1 %vm363_vm2, %v13327_v60  ;;  %v13348_v60 = vld [vmem:[%s11555_s25 + $0x180] sm:$0xff] }
 0x18d   : > { %10344 = vmatmul.mubr.msk.f32.gmra.mrb[10].mxu0 %vm363_vm2, %v15059_v58  ;;  %9720 = vmatprep.mubr.msk.f32.mxu1 %vm363_vm2, %v13334_v20  ;;  %15064 = vst [vmem:[#allocation153_spill] sm:$0xff] %v13348_v60  ;;  %v15065_v58 = vld [vmem:[#allocation66_spill] sm:$0xff]  ;;  %v13355_v20 = vld [vmem:[%s11555_s25 + $0x188] sm:$0xff] }
 0x18e   : > { %10346 = vmatprep.mubr.msk.f32.mxu0 %vm363_vm2, %v15061_v17  ;;  %15066 = vst [vmem:[#allocation154_spill] sm:$0xff] %v13355_v20  ;;  %v15067_v17 = vld [vmem:[#allocation67_spill] sm:$0xff] }
 0x190   : > { %9721 = vmatmul.mubr.msk.f32.gmra.mrb[28].mxu1 %vm363_vm2, %v13341_v61  ;;  %v15068_v61 = vld [vmem:[#allocation6_spill] sm:$0xff] }
 0x191   : > { %10347 = vmatmul.mubr.msk.f32.gmra.mrb[12].mxu0 %vm363_vm2, %v15063_v1  ;;  %9723 = vmatprep.mubr.msk.f32.mxu1 %vm363_vm2, %v13348_v60  ;;  %v15069_v1 = vld [vmem:[#allocation68_spill] sm:$0xff]  ;;  %v15076_v60 = vld [vmem:[#allocation14_spill] sm:$0xff] }
 0x192   : > { %10349 = vmatprep.mubr.msk.f32.mxu0 %vm363_vm2, %v15065_v58  ;;  %v13370_v58 = vld [vmem:[%s14446_s1 + $0x20] sm:$0xf] }
 0x194   : > { %9724 = vmatmul.mubr.msk.f32.gmra.mrb[30].mxu1 %vm363_vm2, %v13355_v20  ;;  %v15071_v20 = vld [vmem:[#allocation69_spill] sm:$0xff] }
 0x195   : > { %10350 = vmatmul.mubr.msk.f32.gmra.mrb[14].mxu0 %vm363_vm2, %v15067_v17  ;;  %9728 = vmatprep.mubr.msk.f32.mxu1 %vm363_vm2, %v15068_v61  ;;  %v15072_v17 = vld [vmem:[#allocation10_spill] sm:$0xff] }
 0x196   : > { %10352 = vmatprep.mubr.msk.f32.mxu0 %vm363_vm2, %v15069_v1  ;;  %v15073_v61 = vld [vmem:[#allocation70_spill] sm:$0xff]  ;;  %v15075_v1 = vld [vmem:[#allocation71_spill] sm:$0xff] }
 0x198   : > { %9729 = vmatmul.mubr.msk.f32.vlgmr.msra.gmra.mrb[0].mxu1 %vm363_vm2, %v15070_v4  ;;  %v15074_v4 = vld [vmem:[#allocation12_spill] sm:$0xff] }
 0x199   : > { %9777 = vmatpush3.msk.msra.mxu1 %vm428_vm0, %v13110_v15  ;;  %10353 = vmatmul.mubr.msk.f32.gmra.mrb[16].mxu0 %vm363_vm2, %v15071_v20  ;;  %v15077_v15 = vld [vmem:[#allocation72_spill] sm:$0xff] }
 0x19a   : > { %9731 = vmatprep.mubr.msk.f32.mxu1 %vm363_vm2, %v15072_v17  ;;  %10355 = vmatprep.mubr.msk.f32.mxu0 %vm363_vm2, %v15073_v61  ;;  %v15078_v20 = vld [vmem:[#allocation16_spill] sm:$0xff]  ;;  %v15079_v17 = vld [vmem:[#allocation73_spill] sm:$0xff]  ;;  %v15080_v61 = vld [vmem:[#allocation18_spill] sm:$0xff] }
 0x19b   : > { %9826 = vmatprep.subr.msk.mxu1 %vm428_vm0, %v13370_v58 }
 0x19c   : > { %9732 = vmatmul.mubr.msk.f32.gmra.mrb[2].mxu1 %vm363_vm2, %v15074_v4  ;;  %v15081_v4 = vld [vmem:[#allocation20_spill] sm:$0xff] }
 0x19d   : > { %10356 = vmatmul.mubr.msk.f32.gmra.mrb[18].mxu0 %vm363_vm2, %v15075_v1  ;;  %9734 = vmatprep.mubr.msk.f32.mxu1 %vm363_vm2, %v15076_v60  ;;  %v15082_v1 = vld [vmem:[#allocation76_spill] sm:$0xff]  ;;  %v15083_v60 = vld [vmem:[#allocation22_spill] sm:$0xff] }
 0x19e   : > { %10358 = vmatprep.mubr.msk.f32.mxu0 %vm363_vm2, %v15077_v15  ;;  %v15084_v15 = vld [vmem:[#allocation77_spill] sm:$0xff] }
 0x1a0   : > { %9735 = vmatmul.mubr.msk.f32.gmra.mrb[4].mxu1 %vm363_vm2, %v15078_v20  ;;  %v15085_v20 = vld [vmem:[#allocation24_spill] sm:$0xff] }
 0x1a1   : > { %10359 = vmatmul.mubr.msk.f32.gmra.mrb[20].mxu0 %vm363_vm2, %v15079_v17  ;;  %9737 = vmatprep.mubr.msk.f32.mxu1 %vm363_vm2, %v15080_v61  ;;  %v15086_v17 = vld [vmem:[#allocation26_spill] sm:$0xff]  ;;  %v15093_v61 = vld [vmem:[#allocation32_spill] sm:$0xff] }
 0x1a2   : > { %10361 = vmatprep.mubr.msk.f32.mxu0 %vm363_vm2, %v14982_v59  ;;  %v15087_v59 = vld [vmem:[#allocation79_spill] sm:$0xff] }
 0x1a4   : > { %9738 = vmatmul.mubr.msk.f32.gmra.mrb[6].mxu1 %vm363_vm2, %v15081_v4  ;;  %v5687_v4 = vrot.slane %v12834_v38, 3 }
 0x1a5   : > { %10362 = vmatmul.mubr.msk.f32.gmra.mrb[22].mxu0 %vm363_vm2, %v15082_v1  ;;  %9740 = vmatprep.mubr.msk.f32.mxu1 %vm363_vm2, %v15083_v60  ;;  %v5686_v1 = vrot.slane %v12823_v25, 3  ;;  %v15088_v60 = vld [vmem:[#allocation28_spill] sm:$0xff] }
 0x1a6   : > { %10364 = vmatprep.mubr.msk.f32.mxu0 %vm363_vm2, %v15084_v15  ;;  %v15089_v15 = vld [vmem:[#allocation80_spill] sm:$0xff] }
 0x1a8   : > { %9741 = vmatmul.mubr.msk.f32.gmra.mrb[8].mxu1 %vm363_vm2, %v15085_v20  ;;  %v15090_v20 = vld [vmem:[#allocation30_spill] sm:$0xff] }
 0x1a9   : > { %10365 = vmatmul.mubr.msk.f32.gmra.mrb[24].mxu0 %vm363_vm2, %v12258_v34  ;;  %9743 = vmatprep.mubr.msk.f32.mxu1 %vm363_vm2, %v15086_v17  ;;  %v15091_v34 = vld [vmem:[#allocation81_spill] sm:$0xff]  ;;  %v5689_v17 = vrot.slane %v12996_v41, 3 }
 0x1aa   : > { %10367 = vmatprep.mubr.msk.f32.mxu0 %vm363_vm2, %v15087_v59  ;;  %v13426_v59 = vsel %vm1356_vm4, %v5686_v1, %v5687_v4  ;;  %v15098_v1 = vld [vmem:[#allocation38_spill] sm:$0xff] }
 0x1ab   : > { %15092 = vst [vmem:[#allocation6_spill] sm:$0xff] %v13426_v59 }
 0x1ac   : > { %9744 = vmatmul.mubr.msk.f32.gmra.mrb[10].mxu1 %vm363_vm2, %v15088_v60  ;;  %v15095_v60 = vld [vmem:[#allocation34_spill] sm:$0xff] }
 0x1ad   : > { %10368 = vmatmul.mubr.msk.f32.gmra.mrb[26].mxu0 %vm363_vm2, %v15089_v15  ;;  %9746 = vmatprep.mubr.msk.f32.mxu1 %vm363_vm2, %v15090_v20  ;;  %v13437_v15 = vsel %vm1356_vm4, %v5687_v4, %v5689_v17  ;;  %v13452_v17 = vld [vmem:[%s14446_s1 + $0x54] sm:$0xf]  ;;  %v15100_v4 = vld [vmem:[#allocation42_spill] sm:$0xff] }
 0x1ae   : > { %10370 = vmatprep.mubr.msk.f32.mxu0 %vm363_vm2, %v15091_v34  ;;  %15096 = vst [vmem:[#allocation8_spill] sm:$0xff] %v13437_v15  ;;  %v15097_v34 = vld [vmem:[#allocation36_spill] sm:$0xff] }
 0x1b0   : > { %9747 = vmatmul.mubr.msk.f32.gmra.mrb[12].mxu1 %vm363_vm2, %v15093_v61 }
 0x1b1   : > { %10371 = vmatmul.mubr.msk.f32.gmra.mrb[28].mxu0 %vm363_vm2, %v15094_v46  ;;  %9749 = vmatprep.mubr.msk.f32.mxu1 %vm363_vm2, %v15095_v60  ;;  %v15099_v46 = vld [vmem:[#allocation40_spill] sm:$0xff] }
 0x1b2   : > { %10373 = vmatprep.mubr.msk.f32.mxu0 %vm363_vm2, %v13426_v59  ;;  %v15102_v59 = vld [vmem:[#allocation48_spill] sm:$0xff] }
 0x1b4   : > { %9750 = vmatmul.mubr.msk.f32.gmra.mrb[14].mxu1 %vm363_vm2, %v15097_v34 }
 0x1b5   : > { %10374 = vmatmul.mubr.msk.f32.gmra.mrb[30].mxu0 %vm363_vm2, %v13437_v15  ;;  %9752 = vmatprep.mubr.msk.f32.mxu1 %vm363_vm2, %v15098_v1  ;;  %v15101_v15 = vld [vmem:[#allocation87_spill] sm:$0xff] }
 0x1b6   : > { %10378 = vmatprep.mubr.msk.f32.mxu0 %vm363_vm2, %v12316_v29 }
 0x1b8   : > { %9753 = vmatmul.mubr.msk.f32.gmra.mrb[16].mxu1 %vm363_vm2, %v15099_v46 }
 0x1b9   : > { %10379 = vmatmul.mubr.msk.f32.vlgmr.msra.gmra.mrb[0].mxu0 %vm363_vm2, %v12336_v23  ;;  %9755 = vmatprep.mubr.msk.f32.mxu1 %vm363_vm2, %v15100_v4 }
 0x1ba   : > { %10427 = vmatpush3.msk.msra.mxu0 %vm428_vm0, %v13255_v8  ;;  %10381 = vmatprep.mubr.msk.f32.mxu0 %vm363_vm2, %v12340_v28  ;;  %v15103_v8 = vld [vmem:[#allocation50_spill] sm:$0xff]  ;;  %v15104_v28 = vld [vmem:[#allocation52_spill] sm:$0xff] }
 0x1bb   : > { %10476 = vmatprep.subr.msk.mxu0 %vm428_vm0, %v13452_v17 }
 0x1bc   : > { %9756 = vmatmul.mubr.msk.f32.gmra.mrb[18].mxu1 %vm363_vm2, %v14988_v40 }
 0x1bd   : > { %10382 = vmatmul.mubr.msk.f32.gmra.mrb[2].mxu0 %vm363_vm2, %v12355_v37  ;;  %9758 = vmatprep.mubr.msk.f32.mxu1 %vm363_vm2, %v14989_v10  ;;  %v15105_v37 = vld [vmem:[#allocation54_spill] sm:$0xff] }
 0x1be   : > { %10384 = vmatprep.mubr.msk.f32.mxu0 %vm363_vm2, %v15101_v15  ;;  %v15106_v15 = vld [vmem:[#allocation56_spill] sm:$0xff] }
 0x1c0   : > { %9759 = vmatmul.mubr.msk.f32.gmra.mrb[20].mxu1 %vm363_vm2, %v15102_v59 }
 0x1c1   : > { %10385 = vmatmul.mubr.msk.f32.gmra.mrb[4].mxu0 %vm363_vm2, %v15004_v6  ;;  %9761 = vmatprep.mubr.msk.f32.mxu1 %vm363_vm2, %v15103_v8  ;;  %v15107_v6 = vld [vmem:[#allocation58_spill] sm:$0xff] }
 0x1c2   : > { %10387 = vmatprep.mubr.msk.f32.mxu0 %vm363_vm2, %v15005_v31  ;;  %v15108_v31 = vld [vmem:[#allocation60_spill] sm:$0xff] }
 0x1c4   : > { %9762 = vmatmul.mubr.msk.f32.gmra.mrb[22].mxu1 %vm363_vm2, %v15104_v28 }
 0x1c5   : > { %10388 = vmatmul.mubr.msk.f32.gmra.mrb[6].mxu0 %vm363_vm2, %v15008_v45  ;;  %9764 = vmatprep.mubr.msk.f32.mxu1 %vm363_vm2, %v15105_v37  ;;  %v15109_v45 = vld [vmem:[#allocation62_spill] sm:$0xff] }
 0x1c6   : > { %10390 = vmatprep.mubr.msk.f32.mxu0 %vm363_vm2, %v15009_v14  ;;  %v15110_v14 = vld [vmem:[#allocation64_spill] sm:$0xff] }
 0x1c8   : > { %9765 = vmatmul.mubr.msk.f32.gmra.mrb[24].mxu1 %vm363_vm2, %v15106_v15 }
 0x1c9   : > { %10391 = vmatmul.mubr.msk.f32.gmra.mrb[8].mxu0 %vm363_vm2, %v15011_v42  ;;  %9767 = vmatprep.mubr.msk.f32.mxu1 %vm363_vm2, %v15107_v6  ;;  %v15111_v42 = vld [vmem:[#allocation125_spill] sm:$0xff] }
 0x1ca   : > { %10393 = vmatprep.mubr.msk.f32.mxu0 %vm363_vm2, %v15012_v21  ;;  %v15112_v21 = vld [vmem:[#allocation126_spill] sm:$0xff] }
 0x1cc   : > { %9768 = vmatmul.mubr.msk.f32.gmra.mrb[26].mxu1 %vm363_vm2, %v15108_v31 }
 0x1cd   : > { %10394 = vmatmul.mubr.msk.f32.gmra.mrb[10].mxu0 %vm363_vm2, %v15013_v50  ;;  %9770 = vmatprep.mubr.msk.f32.mxu1 %vm363_vm2, %v15109_v45  ;;  %v15113_v50 = vld [vmem:[#allocation97_spill] sm:$0xff] }
 0x1ce   : > { %10396 = vmatprep.mubr.msk.f32.mxu0 %vm363_vm2, %v15014_v55  ;;  %v15114_v55 = vld [vmem:[#allocation99_spill] sm:$0xff] }
 0x1d0   : > { %9771 = vmatmul.mubr.msk.f32.gmra.mrb[28].mxu1 %vm363_vm2, %v15110_v14 }
 0x1d1   : > { %10397 = vmatmul.mubr.msk.f32.gmra.mrb[12].mxu0 %vm363_vm2, %v12443_v5  ;;  %9773 = vmatprep.mubr.msk.f32.mxu1 %vm363_vm2, %v15111_v42  ;;  %v13525_v5 = vld [vmem:[%s14446_s1 + $0x24] sm:$0xf] }
 0x1d2   : > { %10399 = vmatprep.mubr.msk.f32.mxu0 %vm363_vm2, %v15016_v0 }
 0x1d4   : > { %9774 = vmatmul.mubr.msk.f32.gmra.mrb[30].mxu1 %vm363_vm2, %v15112_v21 }
 0x1d5   : > { %10400 = vmatmul.mubr.msk.f32.gmra.mrb[14].mxu0 %vm363_vm2, %v15017_v12  ;;  %9778 = vmatprep.mubr.msk.f32.mxu1 %vm363_vm2, %v15113_v50  ;;  %v15115_v12 = vld [vmem:[#allocation3_spill] sm:$0xff]  ;;  %v15116_v50 = vld [vmem:[#allocation5_spill] sm:$0xff] }
 0x1d6   : > { %10402 = vmatprep.mubr.msk.f32.mxu0 %vm363_vm2, %v15018_v22  ;;  %v15131_v22 = vld [vmem:[#allocation25_spill] sm:$0xff] }
 0x1d8   : > { %9779 = vmatmul.mubr.msk.f32.vlgmr.msra.gmra.mrb[0].mxu1 %vm363_vm2, %v15114_v55  ;;  %v15117_v55 = vld [vmem:[#allocation7_spill] sm:$0xff] }
 0x1d9   : > { %9827 = vmatpush3.msk.msra.mxu1 %vm428_vm0, %v13370_v58  ;;  %10403 = vmatmul.mubr.msk.f32.gmra.mrb[16].mxu0 %vm363_vm2, %v15019_v44  ;;  %v15118_v58 = vld [vmem:[#allocation103_spill] sm:$0xff]  ;;  %v15119_v44 = vld [vmem:[#allocation9_spill] sm:$0xff] }
 0x1da   : > { %9781 = vmatprep.mubr.msk.f32.mxu1 %vm363_vm2, %v15115_v12  ;;  %10405 = vmatprep.mubr.msk.f32.mxu0 %vm363_vm2, %v15020_v57  ;;  %v15120_v12 = vld [vmem:[#allocation11_spill] sm:$0xff] }
 0x1db   : > { %9876 = vmatprep.subr.msk.mxu1 %vm428_vm0, %v13525_v5  ;;  %v15128_v57 = vld [vmem:[#allocation23_spill] sm:$0xff] }
 0x1dc   : > { %9782 = vmatmul.mubr.msk.f32.gmra.mrb[2].mxu1 %vm363_vm2, %v15116_v50  ;;  %v15121_v50 = vld [vmem:[#allocation13_spill] sm:$0xff] }
 0x1dd   : > { %10406 = vmatmul.mubr.msk.f32.gmra.mrb[18].mxu0 %vm363_vm2, %v15021_v47  ;;  %9784 = vmatprep.mubr.msk.f32.mxu1 %vm363_vm2, %v15117_v55  ;;  %v15122_v55 = vld [vmem:[#allocation15_spill] sm:$0xff]  ;;  %v15126_v47 = vld [vmem:[#allocation21_spill] sm:$0xff] }
 0x1de   : > { %10408 = vmatprep.mubr.msk.f32.mxu0 %vm363_vm2, %v15118_v58  ;;  %v5958_v58 = vrot.slane %v12834_v38, 4 }
 0x1e0   : > { %9785 = vmatmul.mubr.msk.f32.gmra.mrb[4].mxu1 %vm363_vm2, %v15119_v44  ;;  %v15123_v44 = vld [vmem:[#allocation17_spill] sm:$0xff] }
 0x1e1   : > { %10409 = vmatmul.mubr.msk.f32.gmra.mrb[20].mxu0 %vm363_vm2, %v15024_v52  ;;  %9787 = vmatprep.mubr.msk.f32.mxu1 %vm363_vm2, %v15120_v12  ;;  %v15124_v52 = vld [vmem:[#allocation19_spill] sm:$0xff] }
 0x1e2   : > { %10411 = vmatprep.mubr.msk.f32.mxu0 %vm363_vm2, %v15026_v54  ;;  %v15125_v54 = vld [vmem:[#allocation108_spill] sm:$0xff] }
 0x1e4   : > { %9788 = vmatmul.mubr.msk.f32.gmra.mrb[6].mxu1 %vm363_vm2, %v15121_v50 }
 0x1e5   : > { %10412 = vmatmul.mubr.msk.f32.gmra.mrb[22].mxu0 %vm363_vm2, %v15028_v9  ;;  %9790 = vmatprep.mubr.msk.f32.mxu1 %vm363_vm2, %v15122_v55  ;;  %v5957_v9 = vrot.slane %v12823_v25, 4 }
 0x1e6   : > { %10414 = vmatprep.mubr.msk.f32.mxu0 %vm363_vm2, %v15030_v30  ;;  %v15127_v30 = vld [vmem:[#allocation109_spill] sm:$0xff] }
 0x1e8   : > { %9791 = vmatmul.mubr.msk.f32.gmra.mrb[8].mxu1 %vm363_vm2, %v15123_v44  ;;  %v15132_v44 = vld [vmem:[#allocation111_spill] sm:$0xff] }
 0x1e9   : > { %10415 = vmatmul.mubr.msk.f32.gmra.mrb[24].mxu0 %vm363_vm2, %v15031_v27  ;;  %9793 = vmatprep.mubr.msk.f32.mxu1 %vm363_vm2, %v15124_v52  ;;  %v15129_v27 = vld [vmem:[#allocation110_spill] sm:$0xff]  ;;  %v5960_v52 = vrot.slane %v12996_v41, 4 }
 0x1ea   : > { %10417 = vmatprep.mubr.msk.f32.mxu0 %vm363_vm2, %v15125_v54  ;;  %v13581_v54 = vsel %vm428_vm0, %v5957_v9, %v5958_v58  ;;  %v15136_v9 = vld [vmem:[#allocation113_spill] sm:$0xff]  ;;  %v15137_v41 = vld [vmem:[#allocation114_spill] sm:$0xff] }
 0x1eb   : > { %15130 = vst [vmem:[#allocation50_spill] sm:$0xff] %v13581_v54 }
 0x1ec   : > { %9794 = vmatmul.mubr.msk.f32.gmra.mrb[10].mxu1 %vm363_vm2, %v15126_v47  ;;  %v15133_v47 = vld [vmem:[#allocation27_spill] sm:$0xff] }
 0x1ed   : > { %10418 = vmatmul.mubr.msk.f32.gmra.mrb[26].mxu0 %vm363_vm2, %v15127_v30  ;;  %9796 = vmatprep.mubr.msk.f32.mxu1 %vm363_vm2, %v15128_v57  ;;  %v13592_v30 = vsel %vm428_vm0, %v5958_v58, %v5960_v52  ;;  %v13607_v52 = vld [vmem:[%s14446_s1 + $0x58] sm:$0xf] }
 0x1ee   : > { %10420 = vmatprep.mubr.msk.f32.mxu0 %vm363_vm2, %v15129_v27  ;;  %15134 = vst [vmem:[#allocation97_spill] sm:$0xff] %v13592_v30  ;;  %v15135_v27 = vld [vmem:[#allocation29_spill] sm:$0xff] }
 0x1ef   : > { %v15140_v58 = vld [vmem:[#allocation117_spill] sm:$0xff] }
 0x1f0   : > { %9797 = vmatmul.mubr.msk.f32.gmra.mrb[12].mxu1 %vm363_vm2, %v15131_v22 }
 0x1f1   : > { %10421 = vmatmul.mubr.msk.f32.gmra.mrb[28].mxu0 %vm363_vm2, %v15132_v44  ;;  %9799 = vmatprep.mubr.msk.f32.mxu1 %vm363_vm2, %v15133_v47  ;;  %v15143_v44 = vld [vmem:[#allocation120_spill] sm:$0xff] }
 0x1f2   : > { %10423 = vmatprep.mubr.msk.f32.mxu0 %vm363_vm2, %v13581_v54  ;;  %v15142_v54 = vld [vmem:[#allocation119_spill] sm:$0xff] }
 0x1f4   : > { %9800 = vmatmul.mubr.msk.f32.gmra.mrb[14].mxu1 %vm363_vm2, %v15135_v27 }
 0x1f5   : > { %10424 = vmatmul.mubr.msk.f32.gmra.mrb[30].mxu0 %vm363_vm2, %v13592_v30  ;;  %9802 = vmatprep.mubr.msk.f32.mxu1 %vm363_vm2, %v15027_v63  ;;  %v15141_v30 = vld [vmem:[#allocation118_spill] sm:$0xff] }
 0x1f6   : > { %10428 = vmatprep.mubr.msk.f32.mxu0 %vm363_vm2, %v15036_v18  ;;  %v15138_v18 = vld [vmem:[#allocation115_spill] sm:$0xff] }
 0x1f8   : > { %9803 = vmatmul.mubr.msk.f32.gmra.mrb[16].mxu1 %vm363_vm2, %v15029_v16 }
 0x1f9   : > { %10429 = vmatmul.mubr.msk.f32.vlgmr.msra.gmra.mrb[0].mxu0 %vm363_vm2, %v13153_v13  ;;  %9805 = vmatprep.mubr.msk.f32.mxu1 %vm363_vm2, %v15136_v9 }
 0x1fa   : > { %10477 = vmatpush3.msk.msra.mxu0 %vm428_vm0, %v13452_v17  ;;  %10431 = vmatprep.mubr.msk.f32.mxu0 %vm363_vm2, %v13160_v56  ;;  %v15139_v17 = vld [vmem:[#allocation116_spill] sm:$0xff] }
 0x1fb   : > { %10526 = vmatprep.subr.msk.mxu0 %vm428_vm0, %v13607_v52 }
 0x1fc   : > { %9806 = vmatmul.mubr.msk.f32.gmra.mrb[18].mxu1 %vm363_vm2, %v15137_v41 }
 0x1fd   : > { %10432 = vmatmul.mubr.msk.f32.gmra.mrb[2].mxu0 %vm363_vm2, %v13173_v32  ;;  %9808 = vmatprep.mubr.msk.f32.mxu1 %vm363_vm2, %v12646_v48 }
 0x1fe   : > { %10434 = vmatprep.mubr.msk.f32.mxu0 %vm363_vm2, %v13180_v39 }
 0x200   : > { %9809 = vmatmul.mubr.msk.f32.gmra.mrb[20].mxu1 %vm363_vm2, %v12657_v36 }
 0x201   : > { %10435 = vmatmul.mubr.msk.f32.gmra.mrb[4].mxu0 %vm363_vm2, %v13196_v43  ;;  %9811 = vmatprep.mubr.msk.f32.mxu1 %vm363_vm2, %v12663_v19 }
 0x202   : > { %10437 = vmatprep.mubr.msk.f32.mxu0 %vm363_vm2, %v13203_v33 }
 0x204   : > { %9812 = vmatmul.mubr.msk.f32.gmra.mrb[22].mxu1 %vm363_vm2, %v15138_v18 }
 0x205   : > { %10438 = vmatmul.mubr.msk.f32.gmra.mrb[6].mxu0 %vm363_vm2, %v13217_v7  ;;  %9814 = vmatprep.mubr.msk.f32.mxu1 %vm363_vm2, %v15139_v17 }
 0x206   : > { %10440 = vmatprep.mubr.msk.f32.mxu0 %vm363_vm2, %v13224_v62  ;;  %v15144_v62 = vld [vmem:[#allocation121_spill] sm:$0xff] }
 0x208   : > { %9815 = vmatmul.mubr.msk.f32.gmra.mrb[24].mxu1 %vm363_vm2, %v15140_v58 }
 0x209   : > { %10441 = vmatmul.mubr.msk.f32.gmra.mrb[8].mxu0 %vm363_vm2, %v13234_v3  ;;  %9817 = vmatprep.mubr.msk.f32.mxu1 %vm363_vm2, %v15141_v30  ;;  %v15145_v3 = vld [vmem:[#allocation112_spill] sm:$0xff] }
 0x20a   : > { %10443 = vmatprep.mubr.msk.f32.mxu0 %vm363_vm2, %v13241_v2  ;;  %v15146_v2 = vld [vmem:[#allocation132_spill] sm:$0xff] }
 0x20c   : > { %9818 = vmatmul.mubr.msk.f32.gmra.mrb[26].mxu1 %vm363_vm2, %v15142_v54 }
 0x20d   : > { %10444 = vmatmul.mubr.msk.f32.gmra.mrb[10].mxu0 %vm363_vm2, %v13248_v11  ;;  %9820 = vmatprep.mubr.msk.f32.mxu1 %vm363_vm2, %v15143_v44  ;;  %v15147_v11 = vld [vmem:[#allocation122_spill] sm:$0xff] }
 0x20e   : > { %10446 = vmatprep.mubr.msk.f32.mxu0 %vm363_vm2, %v13260_v53  ;;  %v15148_v53 = vld [vmem:[#allocation123_spill] sm:$0xff] }
 0x210   : > { %9821 = vmatmul.mubr.msk.f32.gmra.mrb[28].mxu1 %vm363_vm2, %v15144_v62 }
 0x211   : > { %10447 = vmatmul.mubr.msk.f32.gmra.mrb[12].mxu0 %vm363_vm2, %v13271_v26  ;;  %9823 = vmatprep.mubr.msk.f32.mxu1 %vm363_vm2, %v15145_v3  ;;  %v13680_v26 = vld [vmem:[%s14446_s1 + $0x28] sm:$0xf] }
 0x212   : > { %10449 = vmatprep.mubr.msk.f32.mxu0 %vm363_vm2, %v13278_v35  ;;  %v15157_v35 = vld [vmem:[#allocation43_spill] sm:$0xff] }
 0x214   : > { %9824 = vmatmul.mubr.msk.f32.gmra.mrb[30].mxu1 %vm363_vm2, %v15146_v2 }
 0x215   : > { %10450 = vmatmul.mubr.msk.f32.gmra.mrb[14].mxu0 %vm363_vm2, %v13285_v49  ;;  %9828 = vmatprep.mubr.msk.f32.mxu1 %vm363_vm2, %v15147_v11  ;;  %v15149_v49 = vld [vmem:[#allocation35_spill] sm:$0xff] }
 0x216   : > { %10452 = vmatprep.mubr.msk.f32.mxu0 %vm363_vm2, %v13292_v51  ;;  %v15150_v11 = vld [vmem:[#allocation147_spill] sm:$0xff]  ;;  %v15152_v51 = vld [vmem:[#allocation148_spill] sm:$0xff] }
 0x218   : > { %9829 = vmatmul.mubr.msk.f32.vlgmr.msra.gmra.mrb[0].mxu1 %vm363_vm2, %v15148_v53  ;;  %v15151_v53 = vld [vmem:[#allocation37_spill] sm:$0xff] }
 0x219   : > { %9877 = vmatpush3.msk.msra.mxu1 %vm428_vm0, %v13525_v5  ;;  %10453 = vmatmul.mubr.msk.f32.gmra.mrb[16].mxu0 %vm363_vm2, %v13299_v24  ;;  %v15153_v5 = vld [vmem:[#allocation39_spill] sm:$0xff]  ;;  %v15154_v24 = vld [vmem:[#allocation149_spill] sm:$0xff] }
 0x21a   : > { %9831 = vmatprep.mubr.msk.f32.mxu1 %vm363_vm2, %v15149_v49  ;;  %10455 = vmatprep.mubr.msk.f32.mxu0 %vm363_vm2, %v15150_v11  ;;  %v15155_v49 = vld [vmem:[#allocation41_spill] sm:$0xff]  ;;  %v15156_v11 = vld [vmem:[#allocation150_spill] sm:$0xff] }
 0x21b   : > { %9926 = vmatprep.subr.msk.mxu1 %vm428_vm0, %v13680_v26 }
 0x21c   : > { %9832 = vmatmul.mubr.msk.f32.gmra.mrb[2].mxu1 %vm363_vm2, %v15151_v53  ;;  %v15158_v53 = vld [vmem:[#allocation151_spill] sm:$0xff] }
 0x21d   : > { %10456 = vmatmul.mubr.msk.f32.gmra.mrb[18].mxu0 %vm363_vm2, %v15152_v51  ;;  %9834 = vmatprep.mubr.msk.f32.mxu1 %vm363_vm2, %v15153_v5  ;;  %v15159_v51 = vld [vmem:[#allocation45_spill] sm:$0xff]  ;;  %v15160_v5 = vld [vmem:[#allocation152_spill] sm:$0xff] }
 0x21e   : > { %10458 = vmatprep.mubr.msk.f32.mxu0 %vm363_vm2, %v15154_v24  ;;  %v15161_v24 = vld [vmem:[#allocation47_spill] sm:$0xff] }
 0x220   : > { %9835 = vmatmul.mubr.msk.f32.gmra.mrb[4].mxu1 %vm363_vm2, %v15155_v49  ;;  %v15162_v49 = vld [vmem:[#allocation153_spill] sm:$0xff] }
 0x221   : > { %10459 = vmatmul.mubr.msk.f32.gmra.mrb[20].mxu0 %vm363_vm2, %v15156_v11  ;;  %9837 = vmatprep.mubr.msk.f32.mxu1 %vm363_vm2, %v15157_v35  ;;  %v15163_v11 = vld [vmem:[#allocation49_spill] sm:$0xff]  ;;  %v15164_v35 = vld [vmem:[#allocation154_spill] sm:$0xff] }
 0x222   : > { %10461 = vmatprep.mubr.msk.f32.mxu0 %vm363_vm2, %v15158_v53  ;;  %v15165_v53 = vld [vmem:[#allocation51_spill] sm:$0xff] }
 0x224   : > { %9838 = vmatmul.mubr.msk.f32.gmra.mrb[6].mxu1 %vm363_vm2, %v15159_v51  ;;  %v13723_v51 = vld [vmem:[%s11555_s25 + $0x198] sm:$0xff] }
 0x225   : > { %10462 = vmatmul.mubr.msk.f32.gmra.mrb[22].mxu0 %vm363_vm2, %v15160_v5  ;;  %9840 = vmatprep.mubr.msk.f32.mxu1 %vm363_vm2, %v15161_v24  ;;  %15166 = vst [vmem:[#allocation99_spill] sm:$0xff] %v13723_v51  ;;  %v15167_v5 = vld [vmem:[#allocation53_spill] sm:$0xff]  ;;  %v13730_v24 = vld [vmem:[%s11555_s25 + $0x1a0] sm:$0xff] }
 0x226   : > { %10464 = vmatprep.mubr.msk.f32.mxu0 %vm363_vm2, %v15162_v49  ;;  %15168 = vst [vmem:[#allocation3_spill] sm:$0xff] %v13730_v24  ;;  %v15169_v49 = vld [vmem:[#allocation55_spill] sm:$0xff] }
 0x228   : > { %9841 = vmatmul.mubr.msk.f32.gmra.mrb[8].mxu1 %vm363_vm2, %v15163_v11  ;;  %v15181_v11 = vld [vmem:[#allocation68_spill] sm:$0xff] }
 0x229   : > { %10465 = vmatmul.mubr.msk.f32.gmra.mrb[24].mxu0 %vm363_vm2, %v15164_v35  ;;  %9843 = vmatprep.mubr.msk.f32.mxu1 %vm363_vm2, %v15165_v53  ;;  %v13739_v35 = vld [vmem:[%s11555_s25 + $0x1c8] sm:$0xff]  ;;  %v15170_v53 = vld [vmem:[#allocation57_spill] sm:$0xff] }
 0x22a   : > { %10467 = vmatprep.mubr.msk.f32.mxu0 %vm363_vm2, %v13723_v51  ;;  %v15171_v51 = vld [vmem:[#allocation59_spill] sm:$0xff] }
 0x22c   : > { %9844 = vmatmul.mubr.msk.f32.gmra.mrb[10].mxu1 %vm363_vm2, %v15167_v5  ;;  %v15176_v5 = vld [vmem:[#allocation20_spill] sm:$0xff] }
 0x22d   : > { %10468 = vmatmul.mubr.msk.f32.gmra.mrb[26].mxu0 %vm363_vm2, %v13730_v24  ;;  %9846 = vmatprep.mubr.msk.f32.mxu1 %vm363_vm2, %v15169_v49  ;;  %v13750_v24 = vld [vmem:[%s11555_s25 + $0x1d0] sm:$0xff]  ;;  %v15172_v49 = vld [vmem:[#allocation61_spill] sm:$0xff] }
 0x22e   : > { %10470 = vmatprep.mubr.msk.f32.mxu0 %vm363_vm2, %v12823_v25  ;;  %v15173_v25 = vld [vmem:[#allocation63_spill] sm:$0xff] }
 0x230   : > { %9847 = vmatmul.mubr.msk.f32.gmra.mrb[12].mxu1 %vm363_vm2, %v15170_v53  ;;  %v15174_v53 = vld [vmem:[#allocation18_spill] sm:$0xff] }
 0x231   : > { %10471 = vmatmul.mubr.msk.f32.gmra.mrb[28].mxu0 %vm363_vm2, %v12834_v38  ;;  %9849 = vmatprep.mubr.msk.f32.mxu1 %vm363_vm2, %v15171_v51  ;;  %v15175_v38 = vld [vmem:[#allocation65_spill] sm:$0xff] }
 0x232   : > { %10473 = vmatprep.mubr.msk.f32.mxu0 %vm363_vm2, %v13739_v35  ;;  %v13765_v51 = vld [vmem:[%s14446_s1 + $0x5c] sm:$0xf] }
 0x234   : > { %9850 = vmatmul.mubr.msk.f32.gmra.mrb[14].mxu1 %vm363_vm2, %v15172_v49  ;;  %v15177_v49 = vld [vmem:[#allocation66_spill] sm:$0xff] }
 0x235   : > { %10474 = vmatmul.mubr.msk.f32.gmra.mrb[30].mxu0 %vm363_vm2, %v13750_v24  ;;  %9852 = vmatprep.mubr.msk.f32.mxu1 %vm363_vm2, %v15173_v25  ;;  %v15178_v25 = vld [vmem:[#allocation22_spill] sm:$0xff] }
 0x236   : > { %10478 = vmatprep.mubr.msk.f32.mxu0 %vm363_vm2, %v15174_v53  ;;  %v15179_v53 = vld [vmem:[#allocation67_spill] sm:$0xff] }
 0x238   : > { %9853 = vmatmul.mubr.msk.f32.gmra.mrb[16].mxu1 %vm363_vm2, %v15175_v38  ;;  %v15180_v38 = vld [vmem:[#allocation24_spill] sm:$0xff] }
 0x239   : > { %10479 = vmatmul.mubr.msk.f32.vlgmr.msra.gmra.mrb[0].mxu0 %vm363_vm2, %v15176_v5  ;;  %9855 = vmatprep.mubr.msk.f32.mxu1 %vm363_vm2, %v15177_v49  ;;  %v15182_v5 = vld [vmem:[#allocation26_spill] sm:$0xff]  ;;  %v15183_v49 = vld [vmem:[#allocation69_spill] sm:$0xff] }
 0x23a   : > { %10527 = vmatpush3.msk.msra.mxu0 %vm428_vm0, %v13607_v52  ;;  %10481 = vmatprep.mubr.msk.f32.mxu0 %vm363_vm2, %v15178_v25  ;;  %v15184_v52 = vld [vmem:[#allocation28_spill] sm:$0xff]  ;;  %v15185_v25 = vld [vmem:[#allocation70_spill] sm:$0xff] }
 0x23b   : > { %10576 = vmatprep.subr.msk.mxu0 %vm428_vm0, %v13765_v51 }
 0x23c   : > { %9856 = vmatmul.mubr.msk.f32.gmra.mrb[18].mxu1 %vm363_vm2, %v15179_v53  ;;  %v15186_v53 = vld [vmem:[#allocation71_spill] sm:$0xff] }
 0x23d   : > { %10482 = vmatmul.mubr.msk.f32.gmra.mrb[2].mxu0 %vm363_vm2, %v15180_v38  ;;  %9858 = vmatprep.mubr.msk.f32.mxu1 %vm363_vm2, %v15181_v11  ;;  %v15187_v38 = vld [vmem:[#allocation72_spill] sm:$0xff] }
 0x23e   : > { %10484 = vmatprep.mubr.msk.f32.mxu0 %vm363_vm2, %v15182_v5  ;;  %v15188_v5 = vld [vmem:[#allocation73_spill] sm:$0xff] }
 0x240   : > { %9859 = vmatmul.mubr.msk.f32.gmra.mrb[20].mxu1 %vm363_vm2, %v15183_v49 }
 0x241   : > { %10485 = vmatmul.mubr.msk.f32.gmra.mrb[4].mxu0 %vm363_vm2, %v15184_v52  ;;  %9861 = vmatprep.mubr.msk.f32.mxu1 %vm363_vm2, %v15185_v25  ;;  %v15189_v52 = vld [vmem:[#allocation74_spill] sm:$0xff] }
 0x242   : > { %10487 = vmatprep.mubr.msk.f32.mxu0 %vm363_vm2, %v15090_v20  ;;  %v15190_v20 = vld [vmem:[#allocation76_spill] sm:$0xff] }
 0x244   : > { %9862 = vmatmul.mubr.msk.f32.gmra.mrb[22].mxu1 %vm363_vm2, %v15186_v53 }
 0x245   : > { %10488 = vmatmul.mubr.msk.f32.gmra.mrb[6].mxu0 %vm363_vm2, %v15093_v61  ;;  %9864 = vmatprep.mubr.msk.f32.mxu1 %vm363_vm2, %v15187_v38  ;;  %v15191_v61 = vld [vmem:[#allocation77_spill] sm:$0xff] }
 0x246   : > { %10490 = vmatprep.mubr.msk.f32.mxu0 %vm363_vm2, %v15095_v60  ;;  %v15192_v60 = vld [vmem:[#allocation78_spill] sm:$0xff] }
 0x248   : > { %9865 = vmatmul.mubr.msk.f32.gmra.mrb[24].mxu1 %vm363_vm2, %v15188_v5 }
 0x249   : > { %10491 = vmatmul.mubr.msk.f32.gmra.mrb[8].mxu0 %vm363_vm2, %v15097_v34  ;;  %9867 = vmatprep.mubr.msk.f32.mxu1 %vm363_vm2, %v15189_v52  ;;  %v15193_v34 = vld [vmem:[#allocation79_spill] sm:$0xff] }
 0x24a   : > { %10493 = vmatprep.mubr.msk.f32.mxu0 %vm363_vm2, %v15098_v1  ;;  %v15194_v1 = vld [vmem:[#allocation80_spill] sm:$0xff] }
 0x24c   : > { %9868 = vmatmul.mubr.msk.f32.gmra.mrb[26].mxu1 %vm363_vm2, %v15190_v20 }
 0x24d   : > { %10494 = vmatmul.mubr.msk.f32.gmra.mrb[10].mxu0 %vm363_vm2, %v15099_v46  ;;  %9870 = vmatprep.mubr.msk.f32.mxu1 %vm363_vm2, %v15191_v61  ;;  %v15195_v46 = vld [vmem:[#allocation46_spill] sm:$0xff] }
 0x24e   : > { %10496 = vmatprep.mubr.msk.f32.mxu0 %vm363_vm2, %v15100_v4  ;;  %v15196_v4 = vld [vmem:[#allocation124_spill] sm:$0xff] }
 0x250   : > { %9871 = vmatmul.mubr.msk.f32.gmra.mrb[28].mxu1 %vm363_vm2, %v15192_v60 }
 0x251   : > { %10497 = vmatmul.mubr.msk.f32.gmra.mrb[12].mxu0 %vm363_vm2, %v14988_v40  ;;  %9873 = vmatprep.mubr.msk.f32.mxu1 %vm363_vm2, %v15193_v34  ;;  %v13838_v40 = vld [vmem:[%s14446_s1 + $0x2c] sm:$0xf] }
 0x252   : > { %10499 = vmatprep.mubr.msk.f32.mxu0 %vm363_vm2, %v14989_v10 }
 0x254   : > { %9874 = vmatmul.mubr.msk.f32.gmra.mrb[30].mxu1 %vm363_vm2, %v15194_v1 }
 0x255   : > { %10500 = vmatmul.mubr.msk.f32.gmra.mrb[14].mxu0 %vm363_vm2, %v15102_v59  ;;  %9878 = vmatprep.mubr.msk.f32.mxu1 %vm363_vm2, %v15195_v46  ;;  %v15197_v59 = vld [vmem:[#allocation83_spill] sm:$0xff]  ;;  %v15198_v46 = vld [vmem:[#allocation84_spill] sm:$0xff] }
 0x256   : > { %10502 = vmatprep.mubr.msk.f32.mxu0 %vm363_vm2, %v15103_v8 }
 0x258   : > { %9879 = vmatmul.mubr.msk.f32.vlgmr.msra.gmra.mrb[0].mxu1 %vm363_vm2, %v15196_v4  ;;  %v15203_v4 = vld [vmem:[#allocation89_spill] sm:$0xff] }
 0x259   : > { %9927 = vmatpush3.msk.msra.mxu1 %vm428_vm0, %v13680_v26  ;;  %10503 = vmatmul.mubr.msk.f32.gmra.mrb[16].mxu0 %vm363_vm2, %v15104_v28  ;;  %v15200_v26 = vld [vmem:[#allocation86_spill] sm:$0xff]  ;;  %v15209_v28 = vld [vmem:[#allocation92_spill] sm:$0xff] }
 0x25a   : > { %9881 = vmatprep.mubr.msk.f32.mxu1 %vm363_vm2, %v15197_v59  ;;  %10505 = vmatprep.mubr.msk.f32.mxu0 %vm363_vm2, %v15105_v37  ;;  %v15199_v59 = vld [vmem:[#allocation85_spill] sm:$0xff] }
 0x25b   : > { %9976 = vmatprep.subr.msk.mxu1 %vm428_vm0, %v13838_v40 }
 0x25c   : > { %9882 = vmatmul.mubr.msk.f32.gmra.mrb[2].mxu1 %vm363_vm2, %v15198_v46  ;;  %v15204_v46 = vld [vmem:[#allocation127_spill] sm:$0xff] }
 0x25d   : > { %10506 = vmatmul.mubr.msk.f32.gmra.mrb[18].mxu0 %vm363_vm2, %v15106_v15  ;;  %9884 = vmatprep.mubr.msk.f32.mxu1 %vm363_vm2, %v12316_v29  ;;  %v15201_v29 = vld [vmem:[#allocation87_spill] sm:$0xff] }
 0x25e   : > { %10508 = vmatprep.mubr.msk.f32.mxu0 %vm363_vm2, %v15107_v6  ;;  %v15205_v6 = vld [vmem:[#allocation90_spill] sm:$0xff]  ;;  %v15207_v15 = vld [vmem:[#allocation91_spill] sm:$0xff] }
 0x260   : > { %9885 = vmatmul.mubr.msk.f32.gmra.mrb[4].mxu1 %vm363_vm2, %v12336_v23  ;;  %v15202_v23 = vld [vmem:[#allocation88_spill] sm:$0xff] }
 0x261   : > { %10509 = vmatmul.mubr.msk.f32.gmra.mrb[20].mxu0 %vm363_vm2, %v15108_v31  ;;  %9887 = vmatprep.mubr.msk.f32.mxu1 %vm363_vm2, %v15199_v59  ;;  %v13885_v31 = vld [vmem:[%s11555_s25 + $0x1d8] sm:$0xf] }
 0x262   : > { %10511 = vmatprep.mubr.msk.f32.mxu0 %vm363_vm2, %v15109_v45  ;;  %v6498_v45 = vrot.slane %v13750_v24, 1 }
 0x264   : > { %9888 = vmatmul.mubr.msk.f32.gmra.mrb[6].mxu1 %vm363_vm2, %v15200_v26 }
 0x265   : > { %10512 = vmatmul.mubr.msk.f32.gmra.mrb[22].mxu0 %vm363_vm2, %v15110_v14  ;;  %9890 = vmatprep.mubr.msk.f32.mxu1 %vm363_vm2, %v15201_v29  ;;  %v6497_v14 = vrot.slane %v13739_v35, 1 }
 0x266   : > { %10514 = vmatprep.mubr.msk.f32.mxu0 %vm363_vm2, %v15111_v42  ;;  %v15206_v42 = vld [vmem:[#allocation128_spill] sm:$0xff] }
 0x267   : > { %v6499_v37 = vsel %vm280_vm1, %v6497_v14, %v6498_v45  ;;  %v15214_v14 = vld [vmem:[#allocation2_spill] sm:$0xff] }
 0x268   : > { %9891 = vmatmul.mubr.msk.f32.gmra.mrb[8].mxu1 %vm363_vm2, %v15202_v23 }
 0x269   : > { %10515 = vmatmul.mubr.msk.f32.gmra.mrb[24].mxu0 %vm363_vm2, %v15112_v21  ;;  %9893 = vmatprep.mubr.msk.f32.mxu1 %vm363_vm2, %v15203_v4  ;;  %v15208_v21 = vld [vmem:[#allocation129_spill] sm:$0xff]  ;;  %v15210_v4 = vld [vmem:[#allocation130_spill] sm:$0xff] }
 0x26a   : > { %10517 = vmatprep.mubr.msk.f32.mxu0 %vm363_vm2, %v15204_v46  ;;  %v6500_v46 = vrot.slane %v13885_v31, 1 }
 0x26c   : > { %9894 = vmatmul.mubr.msk.f32.gmra.mrb[10].mxu1 %vm363_vm2, %v15205_v6  ;;  %v15211_v6 = vld [vmem:[#allocation93_spill] sm:$0xff] }
 0x26d   : > { %10518 = vmatmul.mubr.msk.f32.gmra.mrb[26].mxu0 %vm363_vm2, %v15206_v42  ;;  %9896 = vmatprep.mubr.msk.f32.mxu1 %vm363_vm2, %v15207_v15  ;;  %v6501_v42 = vsel %vm280_vm1, %v6498_v45, %v6500_v46  ;;  %v15212_v15 = vld [vmem:[#allocation94_spill] sm:$0xff]  ;;  %v15215_v45 = vld [vmem:[#allocation4_spill] sm:$0xff] }
 0x26e   : > { %10520 = vmatprep.mubr.msk.f32.mxu0 %vm363_vm2, %v15208_v21  ;;  %v15213_v21 = vld [vmem:[#allocation95_spill] sm:$0xff]  ;;  %v15222_v46 = vld [vmem:[#allocation102_spill] sm:$0xff] }
 0x270   : > { %9897 = vmatmul.mubr.msk.f32.gmra.mrb[12].mxu1 %vm363_vm2, %v15209_v28 }
 0x271   : > { %10521 = vmatmul.mubr.msk.f32.gmra.mrb[28].mxu0 %vm363_vm2, %v15210_v4  ;;  %9899 = vmatprep.mubr.msk.f32.mxu1 %vm363_vm2, %v15211_v6  ;;  %v15219_v4 = vld [vmem:[#allocation100_spill] sm:$0xff] }
 0x272   : > { %10523 = vmatprep.mubr.msk.f32.mxu0 %vm363_vm2, %v6499_v37  ;;  %v13917_v37 = vld [vmem:[%s14446_s1 + $0x60] sm:$0xf] }
 0x274   : > { %9900 = vmatmul.mubr.msk.f32.gmra.mrb[14].mxu1 %vm363_vm2, %v15212_v15 }
 0x275   : > { %10524 = vmatmul.mubr.msk.f32.gmra.mrb[30].mxu0 %vm363_vm2, %v6501_v42  ;;  %9902 = vmatprep.mubr.msk.f32.mxu1 %vm363_vm2, %v15213_v21  ;;  %v15216_v42 = vld [vmem:[#allocation17_spill] sm:$0xff] }
 0x276   : > { %10528 = vmatprep.mubr.msk.f32.mxu0 %vm363_vm2, %v15120_v12  ;;  %v15217_v12 = vld [vmem:[#allocation98_spill] sm:$0xff] }
 0x278   : > { %9903 = vmatmul.mubr.msk.f32.gmra.mrb[16].mxu1 %vm363_vm2, %v15214_v14 }
 0x279   : > { %10529 = vmatmul.mubr.msk.f32.vlgmr.msra.gmra.mrb[0].mxu0 %vm363_vm2, %v15121_v50  ;;  %9905 = vmatprep.mubr.msk.f32.mxu1 %vm363_vm2, %v15016_v0  ;;  %v15218_v50 = vld [vmem:[#allocation19_spill] sm:$0xff] }
 0x27a   : > { %10577 = vmatpush3.msk.msra.mxu0 %vm428_vm0, %v13765_v51  ;;  %10531 = vmatprep.mubr.msk.f32.mxu0 %vm363_vm2, %v15122_v55  ;;  %v15220_v51 = vld [vmem:[#allocation21_spill] sm:$0xff] }
 0x27b   : > { %10626 = vmatprep.subr.msk.mxu0 %vm428_vm0, %v13917_v37  ;;  %v15221_v55 = vld [vmem:[#allocation101_spill] sm:$0xff] }
 0x27c   : > { %9906 = vmatmul.mubr.msk.f32.gmra.mrb[18].mxu1 %vm363_vm2, %v15215_v45 }
 0x27d   : > { %10532 = vmatmul.mubr.msk.f32.gmra.mrb[2].mxu0 %vm363_vm2, %v15216_v42  ;;  %9908 = vmatprep.mubr.msk.f32.mxu1 %vm363_vm2, %v15217_v12  ;;  %v15223_v42 = vld [vmem:[#allocation103_spill] sm:$0xff] }
 0x27e   : > { %10534 = vmatprep.mubr.msk.f32.mxu0 %vm363_vm2, %v15218_v50  ;;  %v15224_v50 = vld [vmem:[#allocation104_spill] sm:$0xff] }
 0x280   : > { %9909 = vmatmul.mubr.msk.f32.gmra.mrb[20].mxu1 %vm363_vm2, %v15219_v4 }
 0x281   : > { %10535 = vmatmul.mubr.msk.f32.gmra.mrb[4].mxu0 %vm363_vm2, %v15220_v51  ;;  %9911 = vmatprep.mubr.msk.f32.mxu1 %vm363_vm2, %v15221_v55  ;;  %v15225_v51 = vld [vmem:[#allocation105_spill] sm:$0xff] }
 0x282   : > { %10537 = vmatprep.mubr.msk.f32.mxu0 %vm363_vm2, %v15128_v57  ;;  %v15226_v57 = vld [vmem:[#allocation106_spill] sm:$0xff] }
 0x284   : > { %9912 = vmatmul.mubr.msk.f32.gmra.mrb[22].mxu1 %vm363_vm2, %v15222_v46 }
 0x285   : > { %10538 = vmatmul.mubr.msk.f32.gmra.mrb[6].mxu0 %vm363_vm2, %v15131_v22  ;;  %9914 = vmatprep.mubr.msk.f32.mxu1 %vm363_vm2, %v15223_v42  ;;  %v15227_v22 = vld [vmem:[#allocation107_spill] sm:$0xff] }
 0x286   : > { %10540 = vmatprep.mubr.msk.f32.mxu0 %vm363_vm2, %v15133_v47  ;;  %v15228_v47 = vld [vmem:[#allocation75_spill] sm:$0xff] }
 0x288   : > { %9915 = vmatmul.mubr.msk.f32.gmra.mrb[24].mxu1 %vm363_vm2, %v15224_v50 }
 0x289   : > { %10541 = vmatmul.mubr.msk.f32.gmra.mrb[8].mxu0 %vm363_vm2, %v15135_v27  ;;  %9917 = vmatprep.mubr.msk.f32.mxu1 %vm363_vm2, %v15225_v51  ;;  %v15229_v27 = vld [vmem:[#allocation108_spill] sm:$0xff] }
 0x28a   : > { %10543 = vmatprep.mubr.msk.f32.mxu0 %vm363_vm2, %v15027_v63  ;;  %v15231_v63 = vld [vmem:[#allocation96_spill] sm:$0xff] }
 0x28c   : > { %9918 = vmatmul.mubr.msk.f32.gmra.mrb[26].mxu1 %vm363_vm2, %v15226_v57 }
 0x28d   : > { %10544 = vmatmul.mubr.msk.f32.gmra.mrb[10].mxu0 %vm363_vm2, %v15029_v16  ;;  %9920 = vmatprep.mubr.msk.f32.mxu1 %vm363_vm2, %v15227_v22  ;;  %v15230_v16 = vld [vmem:[#allocation109_spill] sm:$0xff] }
 0x28e   : > { %10546 = vmatprep.mubr.msk.f32.mxu0 %vm363_vm2, %v15136_v9 }
 0x290   : > { %9921 = vmatmul.mubr.msk.f32.gmra.mrb[28].mxu1 %vm363_vm2, %v15228_v47  ;;  %v15232_v47 = vld [vmem:[#allocation31_spill] sm:$0xff] }
 0x291   : > { %10547 = vmatmul.mubr.msk.f32.gmra.mrb[12].mxu0 %vm363_vm2, %v15137_v41  ;;  %9923 = vmatprep.mubr.msk.f32.mxu1 %vm363_vm2, %v15229_v27  ;;  %v15233_v27 = vld [vmem:[#allocation33_spill] sm:$0xff] }
 0x292   : > { %10549 = vmatprep.mubr.msk.f32.mxu0 %vm363_vm2, %v12646_v48 }
 0x294   : > { %9924 = vmatmul.mubr.msk.f32.gmra.mrb[30].mxu1 %vm363_vm2, %v15230_v16 }
 0x295   : > { %10550 = vmatmul.mubr.msk.f32.gmra.mrb[14].mxu0 %vm363_vm2, %v12657_v36  ;;  %9928 = vmatprep.mubr.msk.f32.mxu1 %vm363_vm2, %v15231_v63  ;;  %v13998_v63 = vld [vmem:[%s14446_s1 + $0x30] sm:$0xf] }
 0x296   : > { %10552 = vmatprep.mubr.msk.f32.mxu0 %vm363_vm2, %v12663_v19 }
 0x298   : > { %9929 = vmatmul.mubr.msk.f32.vlgmr.msra.gmra.mrb[0].mxu1 %vm363_vm2, %v15232_v47  ;;  %v15234_v47 = vld [vmem:[#allocation131_spill] sm:$0xff] }
 0x299   : > { %9977 = vmatpush3.msk.msra.mxu1 %vm428_vm0, %v13838_v40  ;;  %10553 = vmatmul.mubr.msk.f32.gmra.mrb[16].mxu0 %vm363_vm2, %v15138_v18  ;;  %v11494_v40 = vld [vmem:[%s11555_s25 + $0x60] sm:$0xff] }
 0x29a   : > { %9931 = vmatprep.mubr.msk.f32.mxu1 %vm363_vm2, %v15233_v27  ;;  %10555 = vmatprep.mubr.msk.f32.mxu0 %vm363_vm2, %v15139_v17  ;;  %v15238_v27 = vld [vmem:[#allocation135_spill] sm:$0xff] }
 0x29b   : > { %10676 = vmatprep.subr.msk.mxu1 %vm428_vm0, %v13998_v63 }
 0x29c   : > { %9932 = vmatmul.mubr.msk.f32.gmra.mrb[2].mxu1 %vm363_vm2, %v15234_v47 }
 0x29d   : > { %10556 = vmatmul.mubr.msk.f32.gmra.mrb[18].mxu0 %vm363_vm2, %v15140_v58  ;;  %9934 = vmatprep.mubr.msk.f32.mxu1 %vm363_vm2, %v11494_v40  ;;  %v15239_v40 = vld [vmem:[#allocation138_spill] sm:$0xff] }
 0x29e   : > { %10558 = vmatprep.mubr.msk.f32.mxu0 %vm363_vm2, %v15141_v30 }
 0x2a0   : > { %9935 = vmatmul.mubr.msk.f32.gmra.mrb[4].mxu1 %vm363_vm2, %v13153_v13  ;;  %v15235_v13 = vld [vmem:[#allocation133_spill] sm:$0xff] }
 0x2a1   : > { %10559 = vmatmul.mubr.msk.f32.gmra.mrb[20].mxu0 %vm363_vm2, %v15142_v54  ;;  %9937 = vmatprep.mubr.msk.f32.mxu1 %vm363_vm2, %v13160_v56  ;;  %v6769_v56 = vrot.slane %v13750_v24, 2 }
 0x2a2   : > { %10561 = vmatprep.mubr.msk.f32.mxu0 %vm363_vm2, %v15143_v44 }
 0x2a4   : > { %9938 = vmatmul.mubr.msk.f32.gmra.mrb[6].mxu1 %vm363_vm2, %v13173_v32  ;;  %v6768_v32 = vrot.slane %v13739_v35, 2 }
 0x2a5   : > { %10562 = vmatmul.mubr.msk.f32.gmra.mrb[22].mxu0 %vm363_vm2, %v15144_v62  ;;  %9940 = vmatprep.mubr.msk.f32.mxu1 %vm363_vm2, %v13180_v39  ;;  %v15236_v39 = vld [vmem:[#allocation134_spill] sm:$0xff] }
 0x2a6   : > { %10564 = vmatprep.mubr.msk.f32.mxu0 %vm363_vm2, %v15145_v3  ;;  %v6770_v47 = vsel %vm949_vm3, %v6768_v32, %v6769_v56  ;;  %v15244_v32 = vld [vmem:[#allocation43_spill] sm:$0xff] }
 0x2a8   : > { %9941 = vmatmul.mubr.msk.f32.gmra.mrb[8].mxu1 %vm363_vm2, %v13196_v43  ;;  %v15237_v43 = vld [vmem:[#allocation136_spill] sm:$0xff] }
 0x2a9   : > { %10565 = vmatmul.mubr.msk.f32.gmra.mrb[24].mxu0 %vm363_vm2, %v15146_v2  ;;  %9943 = vmatprep.mubr.msk.f32.mxu1 %vm363_vm2, %v13203_v33  ;;  %v6771_v33 = vrot.slane %v13885_v31, 2 }
 0x2aa   : > { %10567 = vmatprep.mubr.msk.f32.mxu0 %vm363_vm2, %v15235_v13  ;;  %v15240_v13 = vld [vmem:[#allocation137_spill] sm:$0xff] }
 0x2ac   : > { %9944 = vmatmul.mubr.msk.f32.gmra.mrb[10].mxu1 %vm363_vm2, %v13217_v7  ;;  %v15241_v7 = vld [vmem:[#allocation139_spill] sm:$0xff] }
 0x2ad   : > { %10568 = vmatmul.mubr.msk.f32.gmra.mrb[26].mxu0 %vm363_vm2, %v15236_v39  ;;  %9946 = vmatprep.mubr.msk.f32.mxu1 %vm363_vm2, %v15237_v43  ;;  %v6772_v43 = vsel %vm949_vm3, %v6769_v56, %v6771_v33  ;;  %v15242_v39 = vld [vmem:[#allocation140_spill] sm:$0xff]  ;;  %v15248_v56 = vld [vmem:[#allocation47_spill] sm:$0xff]  ;;  %v15250_v33 = vld [vmem:[#allocation49_spill] sm:$0xff] }
 0x2ae   : > { %10570 = vmatprep.mubr.msk.f32.mxu0 %vm363_vm2, %v15238_v27  ;;  %v15243_v27 = vld [vmem:[#allocation141_spill] sm:$0xff] }
 0x2b0   : > { %9947 = vmatmul.mubr.msk.f32.gmra.mrb[12].mxu1 %vm363_vm2, %v15239_v40  ;;  %v15245_v40 = vld [vmem:[#allocation142_spill] sm:$0xff] }
 0x2b1   : > { %10571 = vmatmul.mubr.msk.f32.gmra.mrb[28].mxu0 %vm363_vm2, %v15240_v13  ;;  %9949 = vmatprep.mubr.msk.f32.mxu1 %vm363_vm2, %v15241_v7  ;;  %v15246_v13 = vld [vmem:[#allocation45_spill] sm:$0xff] }
 0x2b2   : > { %10573 = vmatprep.mubr.msk.f32.mxu0 %vm363_vm2, %v6770_v47  ;;  %v15247_v47 = vld [vmem:[#allocation143_spill] sm:$0xff]  ;;  %v15251_v7 = vld [vmem:[#allocation145_spill] sm:$0xff] }
 0x2b4   : > { %9950 = vmatmul.mubr.msk.f32.gmra.mrb[14].mxu1 %vm363_vm2, %v15242_v39  ;;  %v15249_v39 = vld [vmem:[#allocation144_spill] sm:$0xff] }
 0x2b5   : > { %10574 = vmatmul.mubr.msk.f32.gmra.mrb[30].mxu0 %vm363_vm2, %v6772_v43  ;;  %9952 = vmatprep.mubr.msk.f32.mxu1 %vm363_vm2, %v15243_v27  ;;  %v15252_v43 = vld [vmem:[#allocation51_spill] sm:$0xff]  ;;  %v15253_v27 = vld [vmem:[#allocation146_spill] sm:$0xff] }
 0x2b6   : > { %10578 = vmatprep.mubr.msk.f32.mxu0 %vm363_vm2, %v15244_v32  ;;  %v15254_v32 = vld [vmem:[#allocation53_spill] sm:$0xff] }
 0x2b8   : > { %9953 = vmatmul.mubr.msk.f32.gmra.mrb[16].mxu1 %vm363_vm2, %v15245_v40  ;;  %v15256_v40 = vld [vmem:[#allocation55_spill] sm:$0xff] }
 0x2b9   : > { %10579 = vmatmul.mubr.msk.f32.vlgmr.msra.gmra.mrb[0].mxu0 %vm363_vm2, %v15246_v13  ;;  %9955 = vmatprep.mubr.msk.f32.mxu1 %vm363_vm2, %v15247_v47  ;;  %v15257_v13 = vld [vmem:[#allocation148_spill] sm:$0xff]  ;;  %v15258_v47 = vld [vmem:[#allocation57_spill] sm:$0xff] }
 0x2ba   : > { %10627 = vmatpush3.msk.msra.mxu0 %vm428_vm0, %v13917_v37  ;;  %10581 = vmatprep.mubr.msk.f32.mxu0 %vm363_vm2, %v15248_v56  ;;  %v15255_v37 = vld [vmem:[#allocation147_spill] sm:$0xff]  ;;  %v15259_v56 = vld [vmem:[#allocation149_spill] sm:$0xff] }
 0x2bc   : > { %9956 = vmatmul.mubr.msk.f32.gmra.mrb[18].mxu1 %vm363_vm2, %v15249_v39  ;;  %v15260_v39 = vld [vmem:[#allocation59_spill] sm:$0xff] }
 0x2bd   : > { %10582 = vmatmul.mubr.msk.f32.gmra.mrb[2].mxu0 %vm363_vm2, %v15250_v33  ;;  %9958 = vmatprep.mubr.msk.f32.mxu1 %vm363_vm2, %v15251_v7  ;;  %v15261_v33 = vld [vmem:[#allocation150_spill] sm:$0xff]  ;;  %v15262_v7 = vld [vmem:[#allocation61_spill] sm:$0xff] }
 0x2be   : > { %10584 = vmatprep.mubr.msk.f32.mxu0 %vm363_vm2, %v15252_v43  ;;  %v15263_v43 = vld [vmem:[#allocation151_spill] sm:$0xff] }
 0x2c0   : > { %9959 = vmatmul.mubr.msk.f32.gmra.mrb[20].mxu1 %vm363_vm2, %v15253_v27  ;;  %v15264_v27 = vld [vmem:[#allocation63_spill] sm:$0xff] }
 0x2c1   : > { %10585 = vmatmul.mubr.msk.f32.gmra.mrb[4].mxu0 %vm363_vm2, %v15254_v32  ;;  %9961 = vmatprep.mubr.msk.f32.mxu1 %vm363_vm2, %v15255_v37  ;;  %v15265_v32 = vld [vmem:[#allocation152_spill] sm:$0xff]  ;;  %v15266_v37 = vld [vmem:[#allocation65_spill] sm:$0xff] }
 0x2c2   : > { %10587 = vmatprep.mubr.msk.f32.mxu0 %vm363_vm2, %v15256_v40  ;;  %v15267_v40 = vld [vmem:[#allocation153_spill] sm:$0xff] }
 0x2c4   : > { %9962 = vmatmul.mubr.msk.f32.gmra.mrb[22].mxu1 %vm363_vm2, %v15257_v13  ;;  %v15268_v13 = vld [vmem:[#allocation66_spill] sm:$0xff] }
 0x2c5   : > { %10588 = vmatmul.mubr.msk.f32.gmra.mrb[6].mxu0 %vm363_vm2, %v15258_v47  ;;  %9964 = vmatprep.mubr.msk.f32.mxu1 %vm363_vm2, %v15259_v56  ;;  %v15269_v47 = vld [vmem:[#allocation154_spill] sm:$0xff]  ;;  %v15270_v56 = vld [vmem:[#allocation67_spill] sm:$0xff] }
 0x2c6   : > { %10590 = vmatprep.mubr.msk.f32.mxu0 %vm363_vm2, %v15260_v39  ;;  %v15271_v39 = vld [vmem:[#allocation99_spill] sm:$0xff] }
 0x2c8   : > { %9965 = vmatmul.mubr.msk.f32.gmra.mrb[24].mxu1 %vm363_vm2, %v15261_v33  ;;  %v15272_v33 = vld [vmem:[#allocation3_spill] sm:$0xff] }
 0x2c9   : > { %10591 = vmatmul.mubr.msk.f32.gmra.mrb[8].mxu0 %vm363_vm2, %v15262_v7  ;;  %9967 = vmatprep.mubr.msk.f32.mxu1 %vm363_vm2, %v15263_v43  ;;  %v15273_v7 = vld [vmem:[#allocation10_spill] sm:$0xff]  ;;  %v15274_v43 = vld [vmem:[#allocation12_spill] sm:$0xff] }
 0x2ca   : > { %10593 = vmatprep.mubr.msk.f32.mxu0 %vm363_vm2, %v15264_v27  ;;  %v7040_v27 = vrot.slane %v13750_v24, 3 }
 0x2cc   : > { %9968 = vmatmul.mubr.msk.f32.gmra.mrb[26].mxu1 %vm363_vm2, %v15265_v32  ;;  %v15285_v32 = vld [vmem:[#allocation32_spill] sm:$0xff] }
 0x2cd   : > { %10594 = vmatmul.mubr.msk.f32.gmra.mrb[10].mxu0 %vm363_vm2, %v15266_v37  ;;  %9970 = vmatprep.mubr.msk.f32.mxu1 %vm363_vm2, %v15267_v40  ;;  %v15287_v37 = vld [vmem:[#allocation34_spill] sm:$0xff]  ;;  %v7042_v40 = vrot.slane %v13885_v31, 3 }
 0x2ce   : > { %10596 = vmatprep.mubr.msk.f32.mxu0 %vm363_vm2, %v15268_v13 }
 0x2d0   : > { %9971 = vmatmul.mubr.msk.f32.gmra.mrb[28].mxu1 %vm363_vm2, %v15269_v47  ;;  %v15289_v47 = vld [vmem:[#allocation36_spill] sm:$0xff] }
 0x2d1   : > { %10597 = vmatmul.mubr.msk.f32.gmra.mrb[12].mxu0 %vm363_vm2, %v15270_v56  ;;  %9973 = vmatprep.mubr.msk.f32.mxu1 %vm363_vm2, %v15271_v39  ;;  %v15290_v56 = vld [vmem:[#allocation8_spill] sm:$0xff]  ;;  %v15291_v39 = vld [vmem:[#allocation38_spill] sm:$0xff] }
 0x2d2   : > { %10599 = vmatprep.mubr.msk.f32.mxu0 %vm363_vm2, %v15181_v11  ;;  %v15275_v11 = vld [vmem:[#allocation14_spill] sm:$0xff] }
 0x2d4   : > { %9974 = vmatmul.mubr.msk.f32.gmra.mrb[30].mxu1 %vm363_vm2, %v15272_v33  ;;  %v7043_v33 = vsel %vm1356_vm4, %v7040_v27, %v7042_v40 }
 0x2d5   : > { %10600 = vmatmul.mubr.msk.f32.gmra.mrb[14].mxu0 %vm363_vm2, %v15183_v49  ;;  %9978 = vmatprep.mubr.msk.f32.mxu1 %vm363_vm2, %v15273_v7  ;;  %v15276_v49 = vld [vmem:[#allocation16_spill] sm:$0xff] }
 0x2d6   : > { %10602 = vmatprep.mubr.msk.f32.mxu0 %vm363_vm2, %v15185_v25  ;;  %v15277_v25 = vld [vmem:[#allocation18_spill] sm:$0xff]  ;;  %v15292_v7 = vld [vmem:[#allocation40_spill] sm:$0xff] }
 0x2d8   : > { %9979 = vmatmul.mubr.msk.f32.vlgmr.msra.gmra.mrb[0].mxu1 %vm363_vm2, %v15274_v43  ;;  %v15293_v43 = vld [vmem:[#allocation42_spill] sm:$0xff] }
 0x2d9   : > { %10677 = vmatpush3.msk.msra.mxu1 %vm428_vm0, %v13998_v63  ;;  %10603 = vmatmul.mubr.msk.f32.gmra.mrb[16].mxu0 %vm363_vm2, %v15186_v53  ;;  %v15278_v63 = vld [vmem:[#allocation20_spill] sm:$0xff]  ;;  %v15279_v53 = vld [vmem:[#allocation22_spill] sm:$0xff] }
 0x2da   : > { %9981 = vmatprep.mubr.msk.f32.mxu1 %vm363_vm2, %v15275_v11  ;;  %10605 = vmatprep.mubr.msk.f32.mxu0 %vm363_vm2, %v15187_v38  ;;  %v15280_v38 = vld [vmem:[#allocation24_spill] sm:$0xff] }
 0x2db   : > { %v15294_v11 = vld [vmem:[#allocation44_spill] sm:$0xff] }
 0x2dc   : > { %9982 = vmatmul.mubr.msk.f32.gmra.mrb[2].mxu1 %vm363_vm2, %v15276_v49  ;;  %v15295_v49 = vld [vmem:[#allocation48_spill] sm:$0xff] }
 0x2dd   : > { %10606 = vmatmul.mubr.msk.f32.gmra.mrb[18].mxu0 %vm363_vm2, %v15188_v5  ;;  %9984 = vmatprep.mubr.msk.f32.mxu1 %vm363_vm2, %v15277_v25  ;;  %v15281_v5 = vld [vmem:[#allocation26_spill] sm:$0xff]  ;;  %v15297_v25 = vld [vmem:[#allocation52_spill] sm:$0xff] }
 0x2de   : > { %10608 = vmatprep.mubr.msk.f32.mxu0 %vm363_vm2, %v15189_v52  ;;  %v15282_v52 = vld [vmem:[#allocation28_spill] sm:$0xff] }
 0x2e0   : > { %9985 = vmatmul.mubr.msk.f32.gmra.mrb[4].mxu1 %vm363_vm2, %v15278_v63  ;;  %v15301_v63 = vld [vmem:[#allocation56_spill] sm:$0xff] }
 0x2e1   : > { %10609 = vmatmul.mubr.msk.f32.gmra.mrb[20].mxu0 %vm363_vm2, %v15190_v20  ;;  %9987 = vmatprep.mubr.msk.f32.mxu1 %vm363_vm2, %v15279_v53  ;;  %v15283_v20 = vld [vmem:[#allocation30_spill] sm:$0xff] }
 0x2e2   : > { %10611 = vmatprep.mubr.msk.f32.mxu0 %vm363_vm2, %v15191_v61  ;;  %v15284_v61 = vld [vmem:[#allocation81_spill] sm:$0xff]  ;;  %v15304_v53 = vld [vmem:[#allocation62_spill] sm:$0xff] }
 0x2e4   : > { %9988 = vmatmul.mubr.msk.f32.gmra.mrb[6].mxu1 %vm363_vm2, %v15280_v38  ;;  %v15305_v38 = vld [vmem:[#allocation64_spill] sm:$0xff] }
 0x2e5   : > { %10612 = vmatmul.mubr.msk.f32.gmra.mrb[22].mxu0 %vm363_vm2, %v15192_v60  ;;  %9990 = vmatprep.mubr.msk.f32.mxu1 %vm363_vm2, %v15281_v5  ;;  %v7039_v60 = vrot.slane %v13739_v35, 3  ;;  %v14334_v5 = vld [vmem:[%s14447_s2] ss:$0 sm:$0xff] }
 0x2e6   : > { %10614 = vmatprep.mubr.msk.f32.mxu0 %vm363_vm2, %v15193_v34  ;;  %v15286_v34 = vld [vmem:[#allocation82_spill] sm:$0xff] }
 0x2e7   : > { %v7041_v13 = vsel %vm1356_vm4, %v7039_v60, %v7040_v27 }
 0x2e8   : > { %9991 = vmatmul.mubr.msk.f32.gmra.mrb[8].mxu1 %vm363_vm2, %v15282_v52 }
 0x2e9   : > { %10615 = vmatmul.mubr.msk.f32.gmra.mrb[24].mxu0 %vm363_vm2, %v15194_v1  ;;  %9993 = vmatprep.mubr.msk.f32.mxu1 %vm363_vm2, %v15283_v20  ;;  %v15288_v1 = vld [vmem:[#allocation6_spill] sm:$0xff] }
 0x2ea   : > { %10617 = vmatprep.mubr.msk.f32.mxu0 %vm363_vm2, %v15284_v61 }
 0x2ec   : > { %9994 = vmatmul.mubr.msk.f32.gmra.mrb[10].mxu1 %vm363_vm2, %v15285_v32 }
 0x2ed   : > { %10618 = vmatmul.mubr.msk.f32.gmra.mrb[26].mxu0 %vm363_vm2, %v15286_v34  ;;  %9996 = vmatprep.mubr.msk.f32.mxu1 %vm363_vm2, %v15287_v37 }
 0x2ee   : > { %10620 = vmatprep.mubr.msk.f32.mxu0 %vm363_vm2, %v15288_v1 }
 0x2f0   : > { %9997 = vmatmul.mubr.msk.f32.gmra.mrb[12].mxu1 %vm363_vm2, %v15289_v47 }
 0x2f1   : > { %10621 = vmatmul.mubr.msk.f32.gmra.mrb[28].mxu0 %vm363_vm2, %v15290_v56  ;;  %9999 = vmatprep.mubr.msk.f32.mxu1 %vm363_vm2, %v15291_v39 }
 0x2f2   : > { %10623 = vmatprep.mubr.msk.f32.mxu0 %vm363_vm2, %v7041_v13 }
 0x2f4   : > { %10000 = vmatmul.mubr.msk.f32.gmra.mrb[14].mxu1 %vm363_vm2, %v15292_v7 }
 0x2f5   : > { %10624 = vmatmul.mubr.msk.f32.gmra.mrb[30].mxu0 %vm363_vm2, %v7043_v33  ;;  %10002 = vmatprep.mubr.msk.f32.mxu1 %vm363_vm2, %v15293_v43 }
 0x2f6   : > { %10628 = vmatprep.mubr.msk.f32.mxu0 %vm363_vm2, %v15199_v59  ;;  %v15296_v59 = vld [vmem:[#allocation89_spill] sm:$0xff] }
 0x2f8   : > { %10003 = vmatmul.mubr.msk.f32.gmra.mrb[16].mxu1 %vm363_vm2, %v15294_v11 }
 0x2f9   : > { %10629 = vmatmul.mubr.msk.f32.vlgmr.msra.gmra.mrb[0].mxu0 %vm363_vm2, %v15200_v26  ;;  %10005 = vmatprep.mubr.msk.f32.mxu1 %vm363_vm2, %v14989_v10  ;;  %v15298_v26 = vld [vmem:[#allocation90_spill] sm:$0xff] }
 0x2fa   : > { %10631 = vmatprep.mubr.msk.f32.mxu0 %vm363_vm2, %v15201_v29  ;;  %v15299_v10 = vld [vmem:[#allocation54_spill] sm:$0xff]  ;;  %v15300_v29 = vld [vmem:[#allocation91_spill] sm:$0xff] }
 0x2fc   : > { %10006 = vmatmul.mubr.msk.f32.gmra.mrb[18].mxu1 %vm363_vm2, %v15295_v49 }
 0x2fd   : > { %10632 = vmatmul.mubr.msk.f32.gmra.mrb[2].mxu0 %vm363_vm2, %v15202_v23  ;;  %10008 = vmatprep.mubr.msk.f32.mxu1 %vm363_vm2, %v15103_v8  ;;  %v15302_v8 = vld [vmem:[#allocation58_spill] sm:$0xff]  ;;  %v15303_v23 = vld [vmem:[#allocation60_spill] sm:$0xff] }
 0x2fe   : > { %10634 = vmatprep.mubr.msk.f32.mxu0 %vm363_vm2, %v15296_v59 }
 0x300   : > { %10009 = vmatmul.mubr.msk.f32.gmra.mrb[20].mxu1 %vm363_vm2, %v15297_v25 }
 0x301   : > { %10635 = vmatmul.mubr.msk.f32.gmra.mrb[4].mxu0 %vm363_vm2, %v15298_v26  ;;  %10011 = vmatprep.mubr.msk.f32.mxu1 %vm363_vm2, %v15299_v10 }
 0x302   : > { %10637 = vmatprep.mubr.msk.f32.mxu0 %vm363_vm2, %v15300_v29 }
 0x304   : > { %10012 = vmatmul.mubr.msk.f32.gmra.mrb[22].mxu1 %vm363_vm2, %v15301_v63 }
 0x305   : > { %10638 = vmatmul.mubr.msk.f32.gmra.mrb[6].mxu0 %vm363_vm2, %v15209_v28  ;;  %10014 = vmatprep.mubr.msk.f32.mxu1 %vm363_vm2, %v15302_v8  ;;  %v15306_v28 = vld [vmem:[#allocation125_spill] sm:$0xff] }
 0x306   : > { %10640 = vmatprep.mubr.msk.f32.mxu0 %vm363_vm2, %v15211_v6  ;;  %v15307_v6 = vld [vmem:[#allocation126_spill] sm:$0xff] }
 0x308   : > { %10015 = vmatmul.mubr.msk.f32.gmra.mrb[24].mxu1 %vm363_vm2, %v15303_v23 }
 0x309   : > { %10641 = vmatmul.mubr.msk.f32.gmra.mrb[8].mxu0 %vm363_vm2, %v15212_v15  ;;  %10017 = vmatprep.mubr.msk.f32.mxu1 %vm363_vm2, %v15304_v53  ;;  %v15308_v15 = vld [vmem:[#allocation127_spill] sm:$0xff] }
 0x30a   : > { %10643 = vmatprep.mubr.msk.f32.mxu0 %vm363_vm2, %v15213_v21  ;;  %v15309_v21 = vld [vmem:[#allocation128_spill] sm:$0xff] }
 0x30c   : > { %10018 = vmatmul.mubr.msk.f32.gmra.mrb[26].mxu1 %vm363_vm2, %v15305_v38 }
 0x30d   : > { %10644 = vmatmul.mubr.msk.f32.gmra.mrb[10].mxu0 %vm363_vm2, %v15214_v14  ;;  %10020 = vmatprep.mubr.msk.f32.mxu1 %vm363_vm2, %v15306_v28 }
 0x30e   : > { %10646 = vmatprep.mubr.msk.f32.mxu0 %vm363_vm2, %v15016_v0  ;;  %v7310_v0 = vrot.slane %v13739_v35, 4 }
 0x310   : > { %10021 = vmatmul.mubr.msk.f32.gmra.mrb[28].mxu1 %vm363_vm2, %v15307_v6 }
 0x311   : > { %10647 = vmatmul.mubr.msk.f32.gmra.mrb[12].mxu0 %vm363_vm2, %v15215_v45  ;;  %10023 = vmatprep.mubr.msk.f32.mxu1 %vm363_vm2, %v15308_v15 }
 0x312   : > { %10649 = vmatprep.mubr.msk.f32.mxu0 %vm363_vm2, %v15217_v12 }
 0x314   : > { %10024 = vmatmul.mubr.msk.f32.gmra.mrb[30].mxu1 %vm363_vm2, %v15309_v21 }
 0x315   : > { %10650 = vmatmul.mubr.msk.f32.gmra.mrb[14].mxu0 %vm363_vm2, %v15219_v4  ;;  %10052 = vmatprep.mubr.msk.f32.mxu1 %vm363_vm2, %v15136_v9  ;;  %v7311_v9 = vrot.slane %v13750_v24, 4  ;;  %v15315_v24 = vld [vmem:[#allocation97_spill] sm:$0xff] }
 0x316   : > { %10652 = vmatprep.mubr.msk.f32.mxu0 %vm363_vm2, %v15221_v55 }
 0x318   : > { %10053 = vmatmul.mubr.msk.f32.vlgmr.msra.gmra.mrb[16].mxu1 %vm363_vm2, %v15137_v41  ;;  %v7312_v41 = vsel %vm428_vm0, %v7310_v0, %v7311_v9 }
 0x319   : > { %10653 = vmatmul.mubr.msk.f32.gmra.mrb[16].mxu0 %vm363_vm2, %v15222_v46  ;;  %10055 = vmatprep.mubr.msk.f32.mxu1 %vm363_vm2, %v12646_v48  ;;  %v15310_v48 = vld [vmem:[#allocation75_spill] sm:$0xff] }
 0x31a   : > { %10655 = vmatprep.mubr.msk.f32.mxu0 %vm363_vm2, %v15223_v42 }
 0x31c   : > { %10056 = vmatmul.mubr.msk.f32.gmra.mrb[18].mxu1 %vm363_vm2, %v12657_v36  ;;  %v15311_v36 = vld [vmem:[#allocation108_spill] sm:$0xff] }
 0x31d   : > { %10656 = vmatmul.mubr.msk.f32.gmra.mrb[18].mxu0 %vm363_vm2, %v15224_v50  ;;  %10058 = vmatprep.mubr.msk.f32.mxu1 %vm363_vm2, %v12663_v19  ;;  %v15312_v19 = vld [vmem:[#allocation110_spill] sm:$0xff] }
 0x31e   : > { %10658 = vmatprep.mubr.msk.f32.mxu0 %vm363_vm2, %v15225_v51 }
 0x320   : > { %10059 = vmatmul.mubr.msk.f32.gmra.mrb[20].mxu1 %vm363_vm2, %v15138_v18 }
 0x321   : > { %10659 = vmatmul.mubr.msk.f32.gmra.mrb[20].mxu0 %vm363_vm2, %v15226_v57  ;;  %10061 = vmatprep.mubr.msk.f32.mxu1 %vm363_vm2, %v15139_v17 }
 0x322   : > { %10661 = vmatprep.mubr.msk.f32.mxu0 %vm363_vm2, %v15227_v22 }
 0x324   : > { %10062 = vmatmul.mubr.msk.f32.gmra.mrb[22].mxu1 %vm363_vm2, %v15140_v58 }
 0x325   : > { %10662 = vmatmul.mubr.msk.f32.gmra.mrb[22].mxu0 %vm363_vm2, %v15310_v48  ;;  %10064 = vmatprep.mubr.msk.f32.mxu1 %vm363_vm2, %v15141_v30  ;;  %v15313_v30 = vld [vmem:[#allocation111_spill] sm:$0xff] }
 0x326   : > { %10664 = vmatprep.mubr.msk.f32.mxu0 %vm363_vm2, %v15311_v36 }
 0x328   : > { %10065 = vmatmul.mubr.msk.f32.gmra.mrb[24].mxu1 %vm363_vm2, %v15142_v54  ;;  %v15314_v54 = vld [vmem:[#allocation50_spill] sm:$0xff] }
 0x329   : > { %10665 = vmatmul.mubr.msk.f32.gmra.mrb[24].mxu0 %vm363_vm2, %v15230_v16  ;;  %10067 = vmatprep.mubr.msk.f32.mxu1 %vm363_vm2, %v15143_v44  ;;  %v7313_v44 = vrot.slane %v13885_v31, 4 }
 0x32a   : > { %10667 = vmatprep.mubr.msk.f32.mxu0 %vm363_vm2, %v15312_v19 }
 0x32b   : > { %v7314_v35 = vsel %vm428_vm0, %v7311_v9, %v7313_v44 }
 0x32c   : > { %10068 = vmatmul.mubr.msk.f32.gmra.mrb[26].mxu1 %vm363_vm2, %v15144_v62  ;;  %v15316_v62 = vld [vmem:[#allocation133_spill] sm:$0xff] }
 0x32d   : > { %10668 = vmatmul.mubr.msk.f32.gmra.mrb[26].mxu0 %vm363_vm2, %v15313_v30  ;;  %10070 = vmatprep.mubr.msk.f32.mxu1 %vm363_vm2, %v15145_v3  ;;  %v15317_v3 = vld [vmem:[#allocation134_spill] sm:$0xff] }
 0x32e   : > { %10670 = vmatprep.mubr.msk.f32.mxu0 %vm363_vm2, %v15314_v54 }
 0x330   : > { %10071 = vmatmul.mubr.msk.f32.gmra.mrb[28].mxu1 %vm363_vm2, %v15146_v2 }
 0x331   : > { %10671 = vmatmul.mubr.msk.f32.gmra.mrb[28].mxu0 %vm363_vm2, %v15315_v24  ;;  %10073 = vmatprep.mubr.msk.f32.mxu1 %vm363_vm2, %v15316_v62 }
 0x332   : > { %10673 = vmatprep.mubr.msk.f32.mxu0 %vm363_vm2, %v7312_v41 }
 0x334   : > { %10074 = vmatmul.mubr.msk.f32.gmra.mrb[30].mxu1 %vm363_vm2, %v15317_v3 }
 0x335   : > { %10674 = vmatmul.mubr.msk.f32.gmra.mrb[30].mxu0 %vm363_vm2, %v7314_v35 }
 0x3ab   : > { %v9980_v31 = vpop.f32.mrb[0].mxu1 }
 0x3ac   : > { %v3871_v18 = vpop.f32.mrb[1].mxu1 }
 0x3af   : > { %v9983_v17 = vpop.f32.mrb[2].mxu1 }
 0x3b0   : > { %v3881_v2 = vpop.f32.mrb[3].mxu1 }
 0x3b3   : > { %v9986_v58 = vpop.f32.mrb[4].mxu1 }
 0x3b4   : > { %v3891_v14 = vpop.f32.mrb[5].mxu1 }
 0x3b7   : > { %v9989_v45 = vpop.f32.mrb[6].mxu1 }
 0x3b8   : > { %v3901_v12 = vpop.f32.mrb[7].mxu1 }
 0x3bb   : > { %v9992_v4 = vpop.f32.mrb[8].mxu1 }
 0x3bc   : > { %v3911_v55 = vpop.f32.mrb[9].mxu1 }
 0x3bf   : > { %v9995_v46 = vpop.f32.mrb[10].mxu1 }
 0x3c0   : > { %v3921_v42 = vpop.f32.mrb[11].mxu1 }
 0x3c3   : > { %v14323_v50 = vpop.f32.mrb[12].mxu1 }
 0x3c4   : > { %v14325_v51 = vpop.f32.mrb[13].mxu1 }
 0x3c7   : > { %v14327_v57 = vpop.f32.mrb[14].mxu1 }
 0x3c8   : > { %v14329_v22 = vpop.f32.mrb[15].mxu1 }
 0x3cc   : > { %v10630_v16 = vpop.f32.mrb[0].mxu0 }
 0x3cd   : > { %v10678_v52 = vadd.f32 %v10630_v16, %v9980_v31  ;;  %v7390_v20 = vpop.f32.mrb[1].mxu0 }
 0x3ce   : > { %v10679_v61 = vadd.f32 %v7390_v20, %v3871_v18 }
 0x3cf   : > { %v7589_v60 = vadd.f32 %v10678_v52, %v14334_v5 }
 0x3d0   : > { %v7588_v27 = vadd.f32 %v10679_v61, %v14334_v5  ;;  %v10633_v32 = vpop.f32.mrb[2].mxu0 }
 0x3d1   : > { %v7621_v34 = vmax.f32 %v7589_v60, 0.0  ;;  %v10680_v37 = vadd.f32 %v10633_v32, %v9983_v17  ;;  %v7400_v1 = vpop.f32.mrb[3].mxu0 }
 0x3d2   : > { %v7620_v40 = vmax.f32 %v7588_v27, 0.0  ;;  %v10681_v13 = vadd.f32 %v7400_v1, %v3881_v2 }
 0x3d3   : > { %7654 = vst.msk [vmem:[%s14341_s26 + $0x8] sm:$0xff] %vm7652_vm5, %v7621_v34  ;;  %v7591_v47 = vadd.f32 %v10680_v37, %v14334_v5 }
 0x3d4   : > { %7653 = vst.msk [vmem:[%s14341_s26] sm:$0xff] %vm7652_vm5, %v7620_v40  ;;  %v7590_v56 = vadd.f32 %v10681_v13, %v14334_v5  ;;  %v10636_v39 = vpop.f32.mrb[4].mxu0 }
 0x3d5   : > { %v7623_v33 = vmax.f32 %v7591_v47, 0.0  ;;  %v10682_v7 = vadd.f32 %v10636_v39, %v9986_v58  ;;  %v7410_v43 = vpop.f32.mrb[5].mxu0 }
 0x3d6   : > { %v7622_v11 = vmax.f32 %v7590_v56, 0.0  ;;  %v10683_v49 = vadd.f32 %v7410_v43, %v3891_v14 }
 0x3d7   : > { %7656 = vst.msk [vmem:[%s14341_s26 + $0x18] sm:$0xff] %vm7652_vm5, %v7623_v33  ;;  %v7593_v59 = vadd.f32 %v10682_v7, %v14334_v5 }
 0x3d8   : > { %7655 = vst.msk [vmem:[%s14341_s26 + $0x10] sm:$0xff] %vm7652_vm5, %v7622_v11  ;;  %v7592_v25 = vadd.f32 %v10683_v49, %v14334_v5  ;;  %v10639_v26 = vpop.f32.mrb[6].mxu0 }
 0x3d9   : > { %v7625_v10 = vmax.f32 %v7593_v59, 0.0  ;;  %v10684_v29 = vadd.f32 %v10639_v26, %v9989_v45  ;;  %v7420_v63 = vpop.f32.mrb[7].mxu0 }
 0x3da   : > { %v7624_v8 = vmax.f32 %v7592_v25, 0.0  ;;  %v10685_v23 = vadd.f32 %v7420_v63, %v3901_v12 }
 0x3db   : > { %7658 = vst.msk [vmem:[%s14341_s26 + $0x28] sm:$0xff] %vm7652_vm5, %v7625_v10  ;;  %v7595_v53 = vadd.f32 %v10684_v29, %v14334_v5 }
 0x3dc   : > { %7657 = vst.msk [vmem:[%s14341_s26 + $0x20] sm:$0xff] %vm7652_vm5, %v7624_v8  ;;  %v7594_v38 = vadd.f32 %v10685_v23, %v14334_v5  ;;  %v10642_v28 = vpop.f32.mrb[8].mxu0 }
 0x3dd   : > { %v7627_v6 = vmax.f32 %v7595_v53, 0.0  ;;  %v10686_v15 = vadd.f32 %v10642_v28, %v9992_v4  ;;  %v7430_v21 = vpop.f32.mrb[9].mxu0 }
 0x3de   : > { %v7626_v48 = vmax.f32 %v7594_v38, 0.0  ;;  %v10687_v36 = vadd.f32 %v7430_v21, %v3911_v55 }
 0x3df   : > { %7660 = vst.msk [vmem:[%s14341_s26 + $0x38] sm:$0xff] %vm7652_vm5, %v7627_v6  ;;  %v7597_v19 = vadd.f32 %v10686_v15, %v14334_v5 }
 0x3e0   : > { %7659 = vst.msk [vmem:[%s14341_s26 + $0x30] sm:$0xff] %vm7652_vm5, %v7626_v48  ;;  %v7596_v0 = vadd.f32 %v10687_v36, %v14334_v5  ;;  %v10645_v9 = vpop.f32.mrb[10].mxu0 }
 0x3e1   : > { %v7629_v30 = vmax.f32 %v7597_v19, 0.0  ;;  %v10688_v54 = vadd.f32 %v10645_v9, %v9995_v46  ;;  %v7440_v44 = vpop.f32.mrb[11].mxu0 }
 0x3e2   : > { %v7628_v41 = vmax.f32 %v7596_v0, 0.0  ;;  %v10689_v24 = vadd.f32 %v7440_v44, %v3921_v42 }
 0x3e3   : > { %7662 = vst.msk [vmem:[%s14341_s26 + $0x48] sm:$0xff] %vm7652_vm5, %v7629_v30  ;;  %v7599_v62 = vadd.f32 %v10688_v54, %v14334_v5 }
 0x3e4   : > { %7661 = vst.msk [vmem:[%s14341_s26 + $0x40] sm:$0xff] %vm7652_vm5, %v7628_v41  ;;  %v7598_v35 = vadd.f32 %v10689_v24, %v14334_v5  ;;  %v10648_v3 = vpop.f32.mrb[12].mxu0 }
 0x3e5   : > { %v7631_v31 = vmax.f32 %v7599_v62, 0.0  ;;  %v10690_v18 = vadd.f32 %v10648_v3, %v14323_v50  ;;  %v7450_v17 = vpop.f32.mrb[13].mxu0 }
 0x3e6   : > { %v7630_v2 = vmax.f32 %v7598_v35, 0.0  ;;  %v10691_v58 = vadd.f32 %v7450_v17, %v14325_v51 }
 0x3e7   : > { %7664 = vst.msk [vmem:[%s14341_s26 + $0x58] sm:$0xff] %vm7652_vm5, %v7631_v31  ;;  %v7601_v14 = vadd.f32 %v10690_v18, %v14334_v5 }
 0x3e8   : > { %7663 = vst.msk [vmem:[%s14341_s26 + $0x50] sm:$0xff] %vm7652_vm5, %v7630_v2  ;;  %v7600_v45 = vadd.f32 %v10691_v58, %v14334_v5  ;;  %v10651_v12 = vpop.f32.mrb[14].mxu0 }
 0x3e9   : > { %v7633_v4 = vmax.f32 %v7601_v14, 0.0  ;;  %v10692_v55 = vadd.f32 %v10651_v12, %v14327_v57  ;;  %v7460_v46 = vpop.f32.mrb[15].mxu0 }
 0x3ea   : > { %v7632_v42 = vmax.f32 %v7600_v45, 0.0  ;;  %v10693_v50 = vadd.f32 %v7460_v46, %v14329_v22 }
 0x3eb   : > { %7666 = vst.msk [vmem:[%s14341_s26 + $0x68] sm:$0xff] %vm7652_vm5, %v7633_v4  ;;  %v7603_v51 = vadd.f32 %v10692_v55, %v14334_v5  ;;  %v10054_v16 = vpop.f32.mrb[16].mxu1 }
 0x3ec   : > { %7665 = vst.msk [vmem:[%s14341_s26 + $0x60] sm:$0xff] %vm7652_vm5, %v7632_v42  ;;  %v7602_v52 = vadd.f32 %v10693_v50, %v14334_v5  ;;  %v10654_v20 = vpop.f32.mrb[16].mxu0  ;;  %v4222_v61 = vpop.f32.mrb[17].mxu1 }
 0x3ed   : > { %v7635_v60 = vmax.f32 %v7603_v51, 0.0  ;;  %v10694_v27 = vadd.f32 %v10654_v20, %v10054_v16  ;;  %v7470_v57 = vpop.f32.mrb[17].mxu0 }
 0x3ee   : > { %v7634_v32 = vmax.f32 %v7602_v52, 0.0  ;;  %v10695_v34 = vadd.f32 %v7470_v57, %v4222_v61 }
 0x3ef   : > { %7668 = vst.msk [vmem:[%s14341_s26 + $0x78] sm:$0xff] %vm7652_vm5, %v7635_v60  ;;  %v7605_v22 = vadd.f32 %v10694_v27, %v14334_v5  ;;  %v10057_v37 = vpop.f32.mrb[18].mxu1 }
 0x3f0   : > { %7667 = vst.msk [vmem:[%s14341_s26 + $0x70] sm:$0xff] %vm7652_vm5, %v7634_v32  ;;  %v7604_v1 = vadd.f32 %v10695_v34, %v14334_v5  ;;  %v10657_v40 = vpop.f32.mrb[18].mxu0  ;;  %v4232_v13 = vpop.f32.mrb[19].mxu1 }
 0x3f1   : > { %v7637_v47 = vmax.f32 %v7605_v22, 0.0  ;;  %v10696_v56 = vadd.f32 %v10657_v40, %v10057_v37  ;;  %v7480_v39 = vpop.f32.mrb[19].mxu0 }
 0x3f2   : > { %v7636_v33 = vmax.f32 %v7604_v1, 0.0  ;;  %v10697_v7 = vadd.f32 %v7480_v39, %v4232_v13 }
 0x3f3   : > { %7670 = vst.msk [vmem:[%s14341_s26 + $0x88] sm:$0xff] %vm7652_vm5, %v7637_v47  ;;  %v7607_v43 = vadd.f32 %v10696_v56, %v14334_v5  ;;  %v10060_v11 = vpop.f32.mrb[20].mxu1 }
 0x3f4   : > { %7669 = vst.msk [vmem:[%s14341_s26 + $0x80] sm:$0xff] %vm7652_vm5, %v7636_v33  ;;  %v7606_v49 = vadd.f32 %v10697_v7, %v14334_v5  ;;  %v10660_v59 = vpop.f32.mrb[20].mxu0  ;;  %v4242_v25 = vpop.f32.mrb[21].mxu1 }
 0x3f5   : > { %v7639_v26 = vmax.f32 %v7607_v43, 0.0  ;;  %v10698_v10 = vadd.f32 %v10660_v59, %v10060_v11  ;;  %v7490_v29 = vpop.f32.mrb[21].mxu0 }
 0x3f6   : > { %v7638_v63 = vmax.f32 %v7606_v49, 0.0  ;;  %v10699_v8 = vadd.f32 %v7490_v29, %v4242_v25 }
 0x3f7   : > { %7672 = vst.msk [vmem:[%s14341_s26 + $0x98] sm:$0xff] %vm7652_vm5, %v7639_v26  ;;  %v7609_v23 = vadd.f32 %v10698_v10, %v14334_v5  ;;  %v10063_v53 = vpop.f32.mrb[22].mxu1 }
 0x3f8   : > { %7671 = vst.msk [vmem:[%s14341_s26 + $0x90] sm:$0xff] %vm7652_vm5, %v7638_v63  ;;  %v7608_v38 = vadd.f32 %v10699_v8, %v14334_v5  ;;  %v10663_v28 = vpop.f32.mrb[22].mxu0  ;;  %v4252_v6 = vpop.f32.mrb[23].mxu1 }
 0x3f9   : > { %v7641_v15 = vmax.f32 %v7609_v23, 0.0  ;;  %v10700_v21 = vadd.f32 %v10663_v28, %v10063_v53  ;;  %v7500_v48 = vpop.f32.mrb[23].mxu0 }
 0x3fa   : > { %v7640_v36 = vmax.f32 %v7608_v38, 0.0  ;;  %v10701_v19 = vadd.f32 %v7500_v48, %v4252_v6 }
 0x3fb   : > { %7674 = vst.msk [vmem:[%s14341_s26 + $0xa8] sm:$0xff] %vm7652_vm5, %v7641_v15  ;;  %v7611_v0 = vadd.f32 %v10700_v21, %v14334_v5  ;;  %v10066_v9 = vpop.f32.mrb[24].mxu1 }
 0x3fc   : > { %7673 = vst.msk [vmem:[%s14341_s26 + $0xa0] sm:$0xff] %vm7652_vm5, %v7640_v36  ;;  %v7610_v30 = vadd.f32 %v10701_v19, %v14334_v5  ;;  %v10666_v54 = vpop.f32.mrb[24].mxu0  ;;  %v4262_v44 = vpop.f32.mrb[25].mxu1 }
 0x3fd   : > { %v7643_v41 = vmax.f32 %v7611_v0, 0.0  ;;  %v10702_v24 = vadd.f32 %v10666_v54, %v10066_v9  ;;  %v7510_v62 = vpop.f32.mrb[25].mxu0 }
 0x3fe   : > { %v7642_v35 = vmax.f32 %v7610_v30, 0.0  ;;  %v10703_v3 = vadd.f32 %v7510_v62, %v4262_v44 }
 0x3ff   : > { %7676 = vst.msk [vmem:[%s14341_s26 + $0xb8] sm:$0xff] %vm7652_vm5, %v7643_v41  ;;  %v7613_v31 = vadd.f32 %v10702_v24, %v14334_v5  ;;  %v10069_v18 = vpop.f32.mrb[26].mxu1 }
 0x400   : > { %7675 = vst.msk [vmem:[%s14341_s26 + $0xb0] sm:$0xff] %vm7652_vm5, %v7642_v35  ;;  %v7612_v17 = vadd.f32 %v10703_v3, %v14334_v5  ;;  %v10669_v2 = vpop.f32.mrb[26].mxu0  ;;  %v4272_v58 = vpop.f32.mrb[27].mxu1 }
 0x401   : > { %v7645_v14 = vmax.f32 %v7613_v31, 0.0  ;;  %v10704_v45 = vadd.f32 %v10669_v2, %v10069_v18  ;;  %v7520_v12 = vpop.f32.mrb[27].mxu0 }
 0x402   : > { %v7644_v4 = vmax.f32 %v7612_v17, 0.0  ;;  %v10705_v55 = vadd.f32 %v7520_v12, %v4272_v58 }
 0x403   : > { %7678 = vst.msk [vmem:[%s14341_s26 + $0xc8] sm:$0xff] %vm7652_vm5, %v7645_v14  ;;  %v7615_v46 = vadd.f32 %v10704_v45, %v14334_v5  ;;  %v10072_v42 = vpop.f32.mrb[28].mxu1 }
 0x404   : > { %7677 = vst.msk [vmem:[%s14341_s26 + $0xc0] sm:$0xff] %vm7652_vm5, %v7644_v4  ;;  %v7614_v50 = vadd.f32 %v10705_v55, %v14334_v5  ;;  %v10672_v51 = vpop.f32.mrb[28].mxu0  ;;  %v4282_v16 = vpop.f32.mrb[29].mxu1 }
 0x405   : > { %v7647_v52 = vmax.f32 %v7615_v46, 0.0  ;;  %v10706_v20 = vadd.f32 %v10672_v51, %v10072_v42  ;;  %v7530_v61 = vpop.f32.mrb[29].mxu0 }
 0x406   : > { %v7646_v60 = vmax.f32 %v7614_v50, 0.0  ;;  %v10707_v27 = vadd.f32 %v7530_v61, %v4282_v16 }
 0x407   : > { %7680 = vst.msk [vmem:[%s14341_s26 + $0xd8] sm:$0xff] %vm7652_vm5, %v7647_v52  ;;  %v7617_v57 = vadd.f32 %v10706_v20, %v14334_v5  ;;  %v10075_v32 = vpop.f32.mrb[30].mxu1 }
 0x408   : > { %7679 = vst.msk [vmem:[%s14341_s26 + $0xd0] sm:$0xff] %vm7652_vm5, %v7646_v60  ;;  %v7616_v34 = vadd.f32 %v10707_v27, %v14334_v5  ;;  %v10675_v22 = vpop.f32.mrb[30].mxu0  ;;  %v4292_v37 = vpop.f32.mrb[31].mxu1 }
 0x409   : > { %v7649_v1 = vmax.f32 %v7617_v57, 0.0  ;;  %v10708_v40 = vadd.f32 %v10675_v22, %v10075_v32  ;;  %v7540_v13 = vpop.f32.mrb[31].mxu0 }
 0x40a   : > { %v7648_v47 = vmax.f32 %v7616_v34, 0.0  ;;  %v10709_v56 = vadd.f32 %v7540_v13, %v4292_v37 }
 0x40b   : > { %7682 = vst.msk [vmem:[%s14341_s26 + $0xe8] sm:$0xff] %vm7652_vm5, %v7649_v1  ;;  %v7619_v39 = vadd.f32 %v10708_v40, %v14334_v5 }
 0x40c   : > { %7681 = vst.msk [vmem:[%s14341_s26 + $0xe0] sm:$0xff] %vm7652_vm5, %v7648_v47  ;;  %v7618_v33 = vadd.f32 %v10709_v56, %v14334_v5 }
 0x40d   : > { %v7651_v7 = vmax.f32 %v7619_v39, 0.0 }
 0x40e   : > { %v7650_v43 = vmax.f32 %v7618_v33, 0.0 }
 0x40f   : > { %7684 = vst.msk [vmem:[%s14341_s26 + $0xf8] sm:$0xff] %vm7652_vm5, %v7651_v7 }
 0x410   : > { %7683 = vst.msk [vmem:[%s14341_s26 + $0xf0] sm:$0xff] %vm7652_vm5, %v7650_v43 }
 0x411 PF: > { %s13_s12 = sadd.s32 1, %s11501_s12  }
 0x412   : > { %p10_p4 = scmp.ge.s32.totalorder %s13_s12, 4  }
 0x414   :  { %12 = sbr.rel (!%p10_p4) target bundleno = 1 (0x1), region = 86 }

</bundles_post_ra>
